<compile_context>
chip_gen: v7x
topology: tpu7x:2x2x1
jax: 0.10.0
libtpu: 0.0.40
codegen_flags: <defaults>
</compile_context>

<pallas_src>
import functools

import jax
import jax.numpy as jnp
from jax import lax
from jax.experimental import pallas as pl
from jax.experimental.pallas import tpu as pltpu

GN_EPS = 1e-5


# ----------------------------- in-kernel helpers -----------------------------

def _conv3x3_im2col(xpad_ref, w_ref, compute_dtype):
    """3x3 / stride 1 conv on a pre-padded (C_in, H+2, W+2) VMEM scratch.

    w_ref: (C_out, 9*C_in) with column index = (kh*3 + kw)*C_in + ci.
    Returns fp32 (C_out, H*W).
    """
    c_in, hp, wp = xpad_ref.shape
    H, W = hp - 2, wp - 2
    taps = []
    for kh in range(3):
        for kw in range(3):
            taps.append(xpad_ref[:, kh:kh + H, kw:kw + W].reshape(c_in, H * W))
    patches = jnp.concatenate(taps, axis=0).astype(compute_dtype)     # (9*C_in, H*W)
    return jnp.dot(w_ref[...].astype(compute_dtype), patches,
                   preferred_element_type=jnp.float32)                # (C_out, H*W)


def _group_norm_cfirst(y, gamma, beta, avg_map):
    """GroupNorm on a channels-first (C, H*W) fp32 tile for one sample.

    avg_map: (C, C), avg_map[i, j] = 1/cpg if channels i, j share a group else 0.
    gamma/beta: (C, 1).
    """
    hw = y.shape[1]
    inv_hw = 1.0 / float(hw)
    row_mean = jnp.sum(y, axis=1, keepdims=True) * inv_hw             # (C, 1)
    row_ex2 = jnp.sum(y * y, axis=1, keepdims=True) * inv_hw          # (C, 1)
    mean_c = jnp.dot(avg_map, row_mean, preferred_element_type=jnp.float32)
    ex2_c = jnp.dot(avg_map, row_ex2, preferred_element_type=jnp.float32)
    var_c = jnp.maximum(ex2_c - mean_c * mean_c, 0.0)                 # clamp >= 0
    return (y - mean_c) * lax.rsqrt(var_c + GN_EPS) * gamma + beta


# --------------------------------- kernel body --------------------------------

def _resblock_body(x_ref, w1_ref, g1_ref, b1_ref, w2_ref, g2_ref, b2_ref, avg_ref,
                   film, o_ref, xpad_ref, hpad_ref, *, compute_dtype):
    c_in, hp, wp = xpad_ref.shape
    H, W = hp - 2, wp - 2
    c_out = o_ref.shape[1]
    hw = o_ref.shape[2]

    # ---- in-kernel halo for conv1: zero borders, write interior ----
    xpad_ref[...] = jnp.zeros_like(xpad_ref)
    xpad_ref[:, 1:H + 1, 1:W + 1] = x_ref[0].reshape(c_in, H, W)

    # ---- conv1 (single im2col matmul) + GroupNorm ----
    y = _conv3x3_im2col(xpad_ref, w1_ref, compute_dtype)              # (C_out, HW) f32
    y = _group_norm_cfirst(y, g1_ref[...], b1_ref[...], avg_ref[...])

    # ---- FiLM: scale/shift from the embedding MLP ----
    if film is not None:
        embt_ref, wm_ref, bm_ref = film
        n = pl.program_id(0)
        n_total = embt_ref.shape[1]
        sel = (lax.broadcasted_iota(jnp.int32, (1, n_total), 1) == n).astype(jnp.float32)
        emb_col = jnp.sum(embt_ref[...] * sel, axis=1, keepdims=True)  # (E, 1)
        mlp = jnp.dot(wm_ref[...].astype(compute_dtype),
                      emb_col.astype(compute_dtype),
                      preferred_element_type=jnp.float32) + bm_ref[...]  # (2*C_out, 1)
        scale = mlp[:c_out, :]
        shift = mlp[c_out:, :]
        y = y * (1.0 + scale) * shift

    # ---- SiLU ----
    y = y * jax.nn.sigmoid(y)

    # ---- in-kernel halo for conv2: h1 stays in VMEM ----
    hpad_ref[...] = jnp.zeros_like(hpad_ref)
    hpad_ref[:, 1:H + 1, 1:W + 1] = y.reshape(c_out, H, W)

    # ---- conv2 + GroupNorm + SiLU ----
    y2 = _conv3x3_im2col(hpad_ref, w2_ref, compute_dtype)
    y2 = _group_norm_cfirst(y2, g2_ref[...], b2_ref[...], avg_ref[...])
    y2 = y2 * jax.nn.sigmoid(y2)

    o_ref[...] = y2.reshape(1, c_out, hw).astype(o_ref.dtype)


def _resblock_film_kernel(x_ref, w1_ref, g1_ref, b1_ref, w2_ref, g2_ref, b2_ref,
                          avg_ref, embt_ref, wm_ref, bm_ref,
                          o_ref, xpad_ref, hpad_ref, *, compute_dtype):
    _resblock_body(x_ref, w1_ref, g1_ref, b1_ref, w2_ref, g2_ref, b2_ref, avg_ref,
                   (embt_ref, wm_ref, bm_ref), o_ref, xpad_ref, hpad_ref,
                   compute_dtype=compute_dtype)


def _resblock_plain_kernel(x_ref, w1_ref, g1_ref, b1_ref, w2_ref, g2_ref, b2_ref,
                           avg_ref, o_ref, xpad_ref, hpad_ref, *, compute_dtype):
    _resblock_body(x_ref, w1_ref, g1_ref, b1_ref, w2_ref, g2_ref, b2_ref, avg_ref,
                   None, o_ref, xpad_ref, hpad_ref, compute_dtype=compute_dtype)


# ---------------------------------- wrapper -----------------------------------

def _group_avg_map(C, groups):
    cpg = C // groups
    gid = jnp.arange(C) // cpg
    same = (gid[:, None] == gid[None, :]).astype(jnp.float32)
    return same / float(cpg)                                          # (C, C)


def residual_block_forward(params, x_nchw, embed=None, *, groups,
                           compute_dtype=jnp.float32):
    """Matches ResidualBlock.forward(x, embed). x_nchw: (N, Cin, H, W) -> (N, Cout, H, W)."""
    N, C_in, H, W = x_nchw.shape
    C_out = params["w1"].shape[0]
    assert C_out % groups == 0, "GroupNorm requires C_out % groups == 0"
    HW = H * W

    # Lane-dense input view (pure reshape, no transpose).
    x_flat = x_nchw.reshape(N, C_in, HW)

    # conv weights (Cout, Cin, 3, 3) -> im2col matrix, col = (kh*3 + kw)*Cin + ci.
    w1m = params["w1"].transpose(0, 2, 3, 1).reshape(C_out, 9 * C_in)
    w2m = params["w2"].transpose(0, 2, 3, 1).reshape(C_out, 9 * C_out)
    g1 = params["gamma1"].reshape(C_out, 1)
    b1 = params["beta1"].reshape(C_out, 1)
    g2 = params["gamma2"].reshape(C_out, 1)
    b2 = params["beta2"].reshape(C_out, 1)
    avg = _group_avg_map(C_out, groups)

    inputs = [x_flat, w1m, g1, b1, w2m, g2, b2, avg]
    in_specs = [
        pl.BlockSpec((1, C_in, HW), lambda n: (n, 0, 0)),
        pl.BlockSpec((C_out, 9 * C_in), lambda n: (0, 0)),
        pl.BlockSpec((C_out, 1), lambda n: (0, 0)),
        pl.BlockSpec((C_out, 1), lambda n: (0, 0)),
        pl.BlockSpec((C_out, 9 * C_out), lambda n: (0, 0)),
        pl.BlockSpec((C_out, 1), lambda n: (0, 0)),
        pl.BlockSpec((C_out, 1), lambda n: (0, 0)),
        pl.BlockSpec((C_out, C_out), lambda n: (0, 0)),
    ]
    if embed is None:
        kern = functools.partial(_resblock_plain_kernel, compute_dtype=compute_dtype)
    else:
        E = embed.shape[-1]
        inputs += [embed.T, params["wm"], params["bm"].reshape(2 * C_out, 1)]
        in_specs += [
            pl.BlockSpec((E, N), lambda n: (0, 0)),
            pl.BlockSpec((2 * C_out, E), lambda n: (0, 0)),
            pl.BlockSpec((2 * C_out, 1), lambda n: (0, 0)),
        ]
        kern = functools.partial(_resblock_film_kernel, compute_dtype=compute_dtype)

    out = pl.pallas_call(
        kern,
        out_shape=jax.ShapeDtypeStruct((N, C_out, HW), x_nchw.dtype),
        grid_spec=pltpu.PrefetchScalarGridSpec(
            num_scalar_prefetch=0,
            grid=(N,),
            in_specs=in_specs,
            out_specs=pl.BlockSpec((1, C_out, HW), lambda n: (n, 0, 0)),
            scratch_shapes=[
                pltpu.VMEM((C_in, H + 2, W + 2), jnp.float32),
                pltpu.VMEM((C_out, H + 2, W + 2), jnp.float32),
            ],
        ),
        compiler_params=pltpu.CompilerParams(dimension_semantics=("parallel",)),
    )(*inputs)
    return out.reshape(N, C_out, H, W)                                # NCHW (reshape only)


# ----------------------------- pure-JAX reference ------------------------------

def _ref_forward(params, x_nchw, embed, groups):
    def conv(x, w_oihw):
        return lax.conv_general_dilated(
            x, w_oihw, (1, 1), "SAME",
            dimension_numbers=("NCHW", "OIHW", "NCHW"))

    def gn(x, gamma, beta):
        N, C, H, W = x.shape
        xg = x.reshape(N, groups, (C // groups) * H * W)
        mean = xg.mean(axis=2, keepdims=True)
        var = ((xg - mean) ** 2).mean(axis=2, keepdims=True)
        xn = ((xg - mean) / jnp.sqrt(var + GN_EPS)).reshape(N, C, H, W)
        return xn * gamma[None, :, None, None] + beta[None, :, None, None]

    h = gn(conv(x_nchw, params["w1"]), params["gamma1"], params["beta1"])
    if embed is not None:
        mlp = embed @ params["wm"].T + params["bm"]
        scale, shift = jnp.split(mlp, 2, axis=1)
        h = h * (1.0 + scale[:, :, None, None]) * shift[:, :, None, None]
    h = h * jax.nn.sigmoid(h)
    h = gn(conv(h, params["w2"]), params["gamma2"], params["beta2"])
    return h * jax.nn.sigmoid(h)


# ------------------------------------ main -------------------------------------

if __name__ == "__main__":
    N, Cin, Cout, H, W = 2, 4, 16, 16, 16
    GROUPS = 8
    EMBED_DIM = 32

    key = jax.random.PRNGKey(0)
    keys = jax.random.split(key, 10)

    params = {
        # torch Conv2d weight layout (Cout, Cin, 3, 3)
        "w1": 0.2 * jax.random.normal(keys[0], (Cout, Cin, 3, 3), jnp.float32),
        "gamma1": 1.0 + 0.1 * jax.random.normal(keys[1], (Cout,), jnp.float32),
        "beta1": 0.1 * jax.random.normal(keys[2], (Cout,), jnp.float32),
        "w2": 0.2 * jax.random.normal(keys[3], (Cout, Cout, 3, 3), jnp.float32),
        "gamma2": 1.0 + 0.1 * jax.random.normal(keys[4], (Cout,), jnp.float32),
        "beta2": 0.1 * jax.random.normal(keys[5], (Cout,), jnp.float32),
        # torch Linear weight layout (2*Cout, E), bias (2*Cout,)
        "wm": 0.2 * jax.random.normal(keys[6], (2 * Cout, EMBED_DIM), jnp.float32),
        "bm": 0.2 * jax.random.normal(keys[7], (2 * Cout,), jnp.float32),
    }

    x = jax.random.normal(keys[8], (N, Cin, H, W), jnp.float32)        # NCHW input
    embed = jax.random.normal(keys[9], (N, EMBED_DIM), jnp.float32)

    fwd = jax.jit(functools.partial(residual_block_forward, groups=GROUPS))

    # Full-precision path (strict correctness check).
    out = jax.block_until_ready(fwd(params, x, embed))
    assert out.shape == (N, Cout, H, W), out.shape
    ref = _ref_forward(params, x, embed, GROUPS)
    err = float(jnp.max(jnp.abs(out - ref)))
    assert jnp.allclose(out, ref, rtol=1e-2, atol=1e-2), err

    # embed=None path.
    out_ne = jax.block_until_ready(fwd(params, x, None))
    ref_ne = _ref_forward(params, x, None, GROUPS)
    err_ne = float(jnp.max(jnp.abs(out_ne - ref_ne)))
    assert jnp.allclose(out_ne, ref_ne, rtol=1e-2, atol=1e-2), err_ne

    # bf16 MXU-operand path (v5e/v6e feedback): f32 accumulation, looser tolerance.
    fwd_bf16 = jax.jit(functools.partial(residual_block_forward, groups=GROUPS,
                                         compute_dtype=jnp.bfloat16))
    out_bf = jax.block_until_ready(fwd_bf16(params, x, embed))
    err_bf = float(jnp.max(jnp.abs(out_bf - ref)))
    assert jnp.allclose(out_bf, ref, rtol=1e-1, atol=1e-1), err_bf

    print("KERNEL_OK")
</pallas_src>

<mosaic_0001>
module attributes {stable_mosaic.version = 11 : i64} {
  func.func @_resblock_film_kernel(%arg0: i32, %arg1: memref<1x4x256xf32, #tpu.memory_space<vmem>>, %arg2: memref<16x36xf32, #tpu.memory_space<vmem>>, %arg3: memref<16x1xf32, #tpu.memory_space<vmem>>, %arg4: memref<16x1xf32, #tpu.memory_space<vmem>>, %arg5: memref<16x144xf32, #tpu.memory_space<vmem>>, %arg6: memref<16x1xf32, #tpu.memory_space<vmem>>, %arg7: memref<16x1xf32, #tpu.memory_space<vmem>>, %arg8: memref<16x16xf32, #tpu.memory_space<vmem>>, %arg9: memref<32x2xf32, #tpu.memory_space<vmem>>, %arg10: memref<32x32xf32, #tpu.memory_space<vmem>>, %arg11: memref<32x1xf32, #tpu.memory_space<vmem>>, %arg12: memref<1x16x256xf32, #tpu.memory_space<vmem>>, %arg13: memref<4x18x18xf32, #tpu.memory_space<vmem>>, %arg14: memref<16x18x18xf32, #tpu.memory_space<vmem>>) attributes {dimension_semantics = [#tpu.dimension_semantics<parallel>], iteration_bounds = array<i64: 2>, scalar_prefetch = 0 : i64, scratch_operands = 2 : i64, tpu.core_type = #tpu.core_type<tc>, window_params = [{transform_indices = @transform_0, window_bounds = array<i64: 1, 4, 256>}, {pipeline_mode = #tpu.pipeline_mode<synchronous>, transform_indices = @transform_1, window_bounds = array<i64: 16, 36>}, {pipeline_mode = #tpu.pipeline_mode<synchronous>, transform_indices = @transform_2, window_bounds = array<i64: 16, 1>}, {pipeline_mode = #tpu.pipeline_mode<synchronous>, transform_indices = @transform_3, window_bounds = array<i64: 16, 1>}, {pipeline_mode = #tpu.pipeline_mode<synchronous>, transform_indices = @transform_4, window_bounds = array<i64: 16, 144>}, {pipeline_mode = #tpu.pipeline_mode<synchronous>, transform_indices = @transform_5, window_bounds = array<i64: 16, 1>}, {pipeline_mode = #tpu.pipeline_mode<synchronous>, transform_indices = @transform_6, window_bounds = array<i64: 16, 1>}, {pipeline_mode = #tpu.pipeline_mode<synchronous>, transform_indices = @transform_7, window_bounds = array<i64: 16, 16>}, {pipeline_mode = #tpu.pipeline_mode<synchronous>, transform_indices = @transform_8, window_bounds = array<i64: 32, 2>}, {pipeline_mode = #tpu.pipeline_mode<synchronous>, transform_indices = @transform_9, window_bounds = array<i64: 32, 32>}, {pipeline_mode = #tpu.pipeline_mode<synchronous>, transform_indices = @transform_10, window_bounds = array<i64: 32, 1>}, {transform_indices = @transform_11, window_bounds = array<i64: 1, 16, 256>}]} {
    %cst = arith.constant 0.000000e+00 : f32
    %0 = vector.broadcast %cst : f32 to vector<4x18x18xf32>
    %c0 = arith.constant 0 : index
    %c0_0 = arith.constant 0 : index
    %c0_1 = arith.constant 0 : index
    %1 = vector.load %arg13[%c0, %c0_0, %c0_1] : memref<4x18x18xf32, #tpu.memory_space<vmem>>, vector<4x18x18xf32>
    tpu.vector_store %arg13[%c0, %c0_0, %c0_1], %0 {strides = array<i32>} : memref<4x18x18xf32, #tpu.memory_space<vmem>>, vector<4x18x18xf32>,
    %c0_2 = arith.constant 0 : index
    %c0_3 = arith.constant 0 : index
    %c0_4 = arith.constant 0 : index
    %2 = vector.load %arg1[%c0_2, %c0_3, %c0_4] : memref<1x4x256xf32, #tpu.memory_space<vmem>>, vector<1x4x256xf32>
    %3 = vector.shape_cast %2 : vector<1x4x256xf32> to vector<4x256xf32>
    %4 = vector.shape_cast %3 : vector<4x256xf32> to vector<4x16x16xf32>
    %c0_5 = arith.constant 0 : index
    %c1 = arith.constant 1 : index
    %c1_6 = arith.constant 1 : index
    %5 = vector.load %arg13[%c0_5, %c1, %c1_6] : memref<4x18x18xf32, #tpu.memory_space<vmem>>, vector<4x16x16xf32>
    tpu.vector_store %arg13[%c0_5, %c1, %c1_6], %4 {strides = array<i32>} : memref<4x18x18xf32, #tpu.memory_space<vmem>>, vector<4x16x16xf32>,
    %c0_7 = arith.constant 0 : index
    %c0_8 = arith.constant 0 : index
    %c0_9 = arith.constant 0 : index
    %6 = vector.load %arg13[%c0_7, %c0_8, %c0_9] : memref<4x18x18xf32, #tpu.memory_space<vmem>>, vector<4x16x16xf32>
    %7 = vector.shape_cast %6 : vector<4x16x16xf32> to vector<4x256xf32>
    %c0_10 = arith.constant 0 : index
    %c0_11 = arith.constant 0 : index
    %c1_12 = arith.constant 1 : index
    %8 = vector.load %arg13[%c0_10, %c0_11, %c1_12] : memref<4x18x18xf32, #tpu.memory_space<vmem>>, vector<4x16x16xf32>
    %9 = vector.shape_cast %8 : vector<4x16x16xf32> to vector<4x256xf32>
    %c0_13 = arith.constant 0 : index
    %c0_14 = arith.constant 0 : index
    %c2 = arith.constant 2 : index
    %10 = vector.load %arg13[%c0_13, %c0_14, %c2] : memref<4x18x18xf32, #tpu.memory_space<vmem>>, vector<4x16x16xf32>
    %11 = vector.shape_cast %10 : vector<4x16x16xf32> to vector<4x256xf32>
    %c0_15 = arith.constant 0 : index
    %c1_16 = arith.constant 1 : index
    %c0_17 = arith.constant 0 : index
    %12 = vector.load %arg13[%c0_15, %c1_16, %c0_17] : memref<4x18x18xf32, #tpu.memory_space<vmem>>, vector<4x16x16xf32>
    %13 = vector.shape_cast %12 : vector<4x16x16xf32> to vector<4x256xf32>
    %c0_18 = arith.constant 0 : index
    %c1_19 = arith.constant 1 : index
    %c1_20 = arith.constant 1 : index
    %14 = vector.load %arg13[%c0_18, %c1_19, %c1_20] : memref<4x18x18xf32, #tpu.memory_space<vmem>>, vector<4x16x16xf32>
    %15 = vector.shape_cast %14 : vector<4x16x16xf32> to vector<4x256xf32>
    %c0_21 = arith.constant 0 : index
    %c1_22 = arith.constant 1 : index
    %c2_23 = arith.constant 2 : index
    %16 = vector.load %arg13[%c0_21, %c1_22, %c2_23] : memref<4x18x18xf32, #tpu.memory_space<vmem>>, vector<4x16x16xf32>
    %17 = vector.shape_cast %16 : vector<4x16x16xf32> to vector<4x256xf32>
    %c0_24 = arith.constant 0 : index
    %c2_25 = arith.constant 2 : index
    %c0_26 = arith.constant 0 : index
    %18 = vector.load %arg13[%c0_24, %c2_25, %c0_26] : memref<4x18x18xf32, #tpu.memory_space<vmem>>, vector<4x16x16xf32>
    %19 = vector.shape_cast %18 : vector<4x16x16xf32> to vector<4x256xf32>
    %c0_27 = arith.constant 0 : index
    %c2_28 = arith.constant 2 : index
    %c1_29 = arith.constant 1 : index
    %20 = vector.load %arg13[%c0_27, %c2_28, %c1_29] : memref<4x18x18xf32, #tpu.memory_space<vmem>>, vector<4x16x16xf32>
    %21 = vector.shape_cast %20 : vector<4x16x16xf32> to vector<4x256xf32>
    %c0_30 = arith.constant 0 : index
    %c2_31 = arith.constant 2 : index
    %c2_32 = arith.constant 2 : index
    %22 = vector.load %arg13[%c0_30, %c2_31, %c2_32] : memref<4x18x18xf32, #tpu.memory_space<vmem>>, vector<4x16x16xf32>
    %23 = vector.shape_cast %22 : vector<4x16x16xf32> to vector<4x256xf32>
    %24 = tpu.concatenate %7, %9, %11, %13, %15, %17, %19, %21, %23 in 0 : vector<4x256xf32>, vector<4x256xf32>, vector<4x256xf32>, vector<4x256xf32>, vector<4x256xf32>, vector<4x256xf32>, vector<4x256xf32>, vector<4x256xf32>, vector<4x256xf32> -> vector<36x256xf32>
    %c0_33 = arith.constant 0 : index
    %c0_34 = arith.constant 0 : index
    %25 = vector.load %arg2[%c0_33, %c0_34] : memref<16x36xf32, #tpu.memory_space<vmem>>, vector<16x36xf32>
    %cst_35 = arith.constant dense<0.000000e+00> : vector<16x256xf32>
    %26 = tpu.matmul %25, %24, %cst_35 {dimension_numbers = #tpu.dot_dimension_numbers<[1], [0], [0], [1], [0, 0, 1, 1], [], []>} : vector<16x36xf32>, vector<36x256xf32>, vector<16x256xf32> -> vector<16x256xf32>
    %c0_36 = arith.constant 0 : index
    %c0_37 = arith.constant 0 : index
    %27 = vector.load %arg3[%c0_36, %c0_37] : memref<16x1xf32, #tpu.memory_space<vmem>>, vector<16x1xf32>
    %c0_38 = arith.constant 0 : index
    %c0_39 = arith.constant 0 : index
    %28 = vector.load %arg4[%c0_38, %c0_39] : memref<16x1xf32, #tpu.memory_space<vmem>>, vector<16x1xf32>
    %c0_40 = arith.constant 0 : index
    %c0_41 = arith.constant 0 : index
    %29 = vector.load %arg8[%c0_40, %c0_41] : memref<16x16xf32, #tpu.memory_space<vmem>>, vector<16x16xf32>
    %cst_42 = arith.constant dense<0.000000e+00> : vector<16xf32>
    %30 = vector.multi_reduction <add>, %26, %cst_42 [1] : vector<16x256xf32> to vector<16xf32>
    %31 = vector.shape_cast %30 : vector<16xf32> to vector<16x1xf32>
    %cst_43 = arith.constant 3.906250e-03 : f32
    %32 = vector.broadcast %cst_43 : f32 to vector<16x1xf32>
    %33 = arith.mulf %31, %32 : vector<16x1xf32>
    %34 = arith.mulf %26, %26 : vector<16x256xf32>
    %cst_44 = arith.constant dense<0.000000e+00> : vector<16xf32>
    %35 = vector.multi_reduction <add>, %34, %cst_44 [1] : vector<16x256xf32> to vector<16xf32>
    %36 = vector.shape_cast %35 : vector<16xf32> to vector<16x1xf32>
    %cst_45 = arith.constant 3.906250e-03 : f32
    %37 = vector.broadcast %cst_45 : f32 to vector<16x1xf32>
    %38 = arith.mulf %36, %37 : vector<16x1xf32>
    %cst_46 = arith.constant dense<0.000000e+00> : vector<16x1xf32>
    %39 = tpu.matmul %29, %33, %cst_46 {dimension_numbers = #tpu.dot_dimension_numbers<[1], [0], [0], [1], [0, 0, 1, 1], [], []>} : vector<16x16xf32>, vector<16x1xf32>, vector<16x1xf32> -> vector<16x1xf32>
    %cst_47 = arith.constant dense<0.000000e+00> : vector<16x1xf32>
    %40 = tpu.matmul %29, %38, %cst_47 {dimension_numbers = #tpu.dot_dimension_numbers<[1], [0], [0], [1], [0, 0, 1, 1], [], []>} : vector<16x16xf32>, vector<16x1xf32>, vector<16x1xf32> -> vector<16x1xf32>
    %41 = arith.mulf %39, %39 : vector<16x1xf32>
    %42 = arith.subf %40, %41 : vector<16x1xf32>
    %cst_48 = arith.constant 0.000000e+00 : f32
    %43 = vector.broadcast %cst_48 : f32 to vector<16x1xf32>
    %44 = arith.maximumf %42, %43 : vector<16x1xf32>
    %45 = vector.broadcast %39 : vector<16x1xf32> to vector<16x256xf32>
    %46 = arith.subf %26, %45 : vector<16x256xf32>
    %cst_49 = arith.constant 9.99999974E-6 : f32
    %47 = vector.broadcast %cst_49 : f32 to vector<16x1xf32>
    %48 = arith.addf %44, %47 : vector<16x1xf32>
    %49 = math.rsqrt %48 : vector<16x1xf32>
    %50 = vector.broadcast %49 : vector<16x1xf32> to vector<16x256xf32>
    %51 = arith.mulf %46, %50 : vector<16x256xf32>
    %52 = vector.broadcast %27 : vector<16x1xf32> to vector<16x256xf32>
    %53 = arith.mulf %51, %52 : vector<16x256xf32>
    %54 = vector.broadcast %28 : vector<16x1xf32> to vector<16x256xf32>
    %55 = arith.addf %53, %54 : vector<16x256xf32>
    %56 = tpu.iota {dimensions = array<i32: 1>} : vector<1x2xi32>
    %57 = vector.broadcast %arg0 : i32 to vector<1x2xi32>
    %58 = arith.cmpi eq, %56, %57 : vector<1x2xi32>
    %59 = arith.extui %58 : vector<1x2xi1> to vector<1x2xi32>
    %60 = arith.sitofp %59 : vector<1x2xi32> to vector<1x2xf32>
    %c0_50 = arith.constant 0 : index
    %c0_51 = arith.constant 0 : index
    %61 = vector.load %arg9[%c0_50, %c0_51] : memref<32x2xf32, #tpu.memory_space<vmem>>, vector<32x2xf32>
    %62 = vector.broadcast %60 : vector<1x2xf32> to vector<32x2xf32>
    %63 = arith.mulf %61, %62 : vector<32x2xf32>
    %cst_52 = arith.constant dense<0.000000e+00> : vector<32xf32>
    %64 = vector.multi_reduction <add>, %63, %cst_52 [1] : vector<32x2xf32> to vector<32xf32>
    %65 = vector.shape_cast %64 : vector<32xf32> to vector<32x1xf32>
    %c0_53 = arith.constant 0 : index
    %c0_54 = arith.constant 0 : index
    %66 = vector.load %arg10[%c0_53, %c0_54] : memref<32x32xf32, #tpu.memory_space<vmem>>, vector<32x32xf32>
    %cst_55 = arith.constant dense<0.000000e+00> : vector<32x1xf32>
    %67 = tpu.matmul %66, %65, %cst_55 {dimension_numbers = #tpu.dot_dimension_numbers<[1], [0], [0], [1], [0, 0, 1, 1], [], []>} : vector<32x32xf32>, vector<32x1xf32>, vector<32x1xf32> -> vector<32x1xf32>
    %c0_56 = arith.constant 0 : index
    %c0_57 = arith.constant 0 : index
    %68 = vector.load %arg11[%c0_56, %c0_57] : memref<32x1xf32, #tpu.memory_space<vmem>>, vector<32x1xf32>
    %69 = arith.addf %67, %68 : vector<32x1xf32>
    %70 = vector.extract_strided_slice %69 {offsets = [0, 0], sizes = [16, 1], strides = [1, 1]} : vector<32x1xf32> to vector<16x1xf32>
    %71 = vector.extract_strided_slice %69 {offsets = [16, 0], sizes = [16, 1], strides = [1, 1]} : vector<32x1xf32> to vector<16x1xf32>
    %cst_58 = arith.constant 1.000000e+00 : f32
    %72 = vector.broadcast %cst_58 : f32 to vector<16x1xf32>
    %73 = arith.addf %72, %70 : vector<16x1xf32>
    %74 = vector.broadcast %73 : vector<16x1xf32> to vector<16x256xf32>
    %75 = arith.mulf %55, %74 : vector<16x256xf32>
    %76 = vector.broadcast %71 : vector<16x1xf32> to vector<16x256xf32>
    %77 = arith.mulf %75, %76 : vector<16x256xf32>
    %78 = arith.negf %77 : vector<16x256xf32>
    %79 = math.exp %78 : vector<16x256xf32>
    %cst_59 = arith.constant 1.000000e+00 : f32
    %80 = vector.broadcast %cst_59 : f32 to vector<16x256xf32>
    %81 = arith.addf %80, %79 : vector<16x256xf32>
    %82 = arith.divf %80, %81 : vector<16x256xf32>
    %83 = arith.mulf %77, %82 : vector<16x256xf32>
    %cst_60 = arith.constant 0.000000e+00 : f32
    %84 = vector.broadcast %cst_60 : f32 to vector<16x18x18xf32>
    %c0_61 = arith.constant 0 : index
    %c0_62 = arith.constant 0 : index
    %c0_63 = arith.constant 0 : index
    %85 = vector.load %arg14[%c0_61, %c0_62, %c0_63] : memref<16x18x18xf32, #tpu.memory_space<vmem>>, vector<16x18x18xf32>
    tpu.vector_store %arg14[%c0_61, %c0_62, %c0_63], %84 {strides = array<i32>} : memref<16x18x18xf32, #tpu.memory_space<vmem>>, vector<16x18x18xf32>,
    %86 = vector.shape_cast %83 : vector<16x256xf32> to vector<16x16x16xf32>
    %c0_64 = arith.constant 0 : index
    %c1_65 = arith.constant 1 : index
    %c1_66 = arith.constant 1 : index
    %87 = vector.load %arg14[%c0_64, %c1_65, %c1_66] : memref<16x18x18xf32, #tpu.memory_space<vmem>>, vector<16x16x16xf32>
    tpu.vector_store %arg14[%c0_64, %c1_65, %c1_66], %86 {strides = array<i32>} : memref<16x18x18xf32, #tpu.memory_space<vmem>>, vector<16x16x16xf32>,
    %c0_67 = arith.constant 0 : index
    %c0_68 = arith.constant 0 : index
    %c0_69 = arith.constant 0 : index
    %88 = vector.load %arg14[%c0_67, %c0_68, %c0_69] : memref<16x18x18xf32, #tpu.memory_space<vmem>>, vector<16x16x16xf32>
    %89 = vector.shape_cast %88 : vector<16x16x16xf32> to vector<16x256xf32>
    %c0_70 = arith.constant 0 : index
    %c0_71 = arith.constant 0 : index
    %c1_72 = arith.constant 1 : index
    %90 = vector.load %arg14[%c0_70, %c0_71, %c1_72] : memref<16x18x18xf32, #tpu.memory_space<vmem>>, vector<16x16x16xf32>
    %91 = vector.shape_cast %90 : vector<16x16x16xf32> to vector<16x256xf32>
    %c0_73 = arith.constant 0 : index
    %c0_74 = arith.constant 0 : index
    %c2_75 = arith.constant 2 : index
    %92 = vector.load %arg14[%c0_73, %c0_74, %c2_75] : memref<16x18x18xf32, #tpu.memory_space<vmem>>, vector<16x16x16xf32>
    %93 = vector.shape_cast %92 : vector<16x16x16xf32> to vector<16x256xf32>
    %c0_76 = arith.constant 0 : index
    %c1_77 = arith.constant 1 : index
    %c0_78 = arith.constant 0 : index
    %94 = vector.load %arg14[%c0_76, %c1_77, %c0_78] : memref<16x18x18xf32, #tpu.memory_space<vmem>>, vector<16x16x16xf32>
    %95 = vector.shape_cast %94 : vector<16x16x16xf32> to vector<16x256xf32>
    %c0_79 = arith.constant 0 : index
    %c1_80 = arith.constant 1 : index
    %c1_81 = arith.constant 1 : index
    %96 = vector.load %arg14[%c0_79, %c1_80, %c1_81] : memref<16x18x18xf32, #tpu.memory_space<vmem>>, vector<16x16x16xf32>
    %97 = vector.shape_cast %96 : vector<16x16x16xf32> to vector<16x256xf32>
    %c0_82 = arith.constant 0 : index
    %c1_83 = arith.constant 1 : index
    %c2_84 = arith.constant 2 : index
    %98 = vector.load %arg14[%c0_82, %c1_83, %c2_84] : memref<16x18x18xf32, #tpu.memory_space<vmem>>, vector<16x16x16xf32>
    %99 = vector.shape_cast %98 : vector<16x16x16xf32> to vector<16x256xf32>
    %c0_85 = arith.constant 0 : index
    %c2_86 = arith.constant 2 : index
    %c0_87 = arith.constant 0 : index
    %100 = vector.load %arg14[%c0_85, %c2_86, %c0_87] : memref<16x18x18xf32, #tpu.memory_space<vmem>>, vector<16x16x16xf32>
    %101 = vector.shape_cast %100 : vector<16x16x16xf32> to vector<16x256xf32>
    %c0_88 = arith.constant 0 : index
    %c2_89 = arith.constant 2 : index
    %c1_90 = arith.constant 1 : index
    %102 = vector.load %arg14[%c0_88, %c2_89, %c1_90] : memref<16x18x18xf32, #tpu.memory_space<vmem>>, vector<16x16x16xf32>
    %103 = vector.shape_cast %102 : vector<16x16x16xf32> to vector<16x256xf32>
    %c0_91 = arith.constant 0 : index
    %c2_92 = arith.constant 2 : index
    %c2_93 = arith.constant 2 : index
    %104 = vector.load %arg14[%c0_91, %c2_92, %c2_93] : memref<16x18x18xf32, #tpu.memory_space<vmem>>, vector<16x16x16xf32>
    %105 = vector.shape_cast %104 : vector<16x16x16xf32> to vector<16x256xf32>
    %106 = tpu.concatenate %89, %91, %93, %95, %97, %99, %101, %103, %105 in 0 : vector<16x256xf32>, vector<16x256xf32>, vector<16x256xf32>, vector<16x256xf32>, vector<16x256xf32>, vector<16x256xf32>, vector<16x256xf32>, vector<16x256xf32>, vector<16x256xf32> -> vector<144x256xf32>
    %c0_94 = arith.constant 0 : index
    %c0_95 = arith.constant 0 : index
    %107 = vector.load %arg5[%c0_94, %c0_95] : memref<16x144xf32, #tpu.memory_space<vmem>>, vector<16x144xf32>
    %cst_96 = arith.constant dense<0.000000e+00> : vector<16x256xf32>
    %108 = tpu.matmul %107, %106, %cst_96 {dimension_numbers = #tpu.dot_dimension_numbers<[1], [0], [0], [1], [0, 0, 1, 1], [], []>} : vector<16x144xf32>, vector<144x256xf32>, vector<16x256xf32> -> vector<16x256xf32>
    %c0_97 = arith.constant 0 : index
    %c0_98 = arith.constant 0 : index
    %109 = vector.load %arg6[%c0_97, %c0_98] : memref<16x1xf32, #tpu.memory_space<vmem>>, vector<16x1xf32>
    %c0_99 = arith.constant 0 : index
    %c0_100 = arith.constant 0 : index
    %110 = vector.load %arg7[%c0_99, %c0_100] : memref<16x1xf32, #tpu.memory_space<vmem>>, vector<16x1xf32>
    %c0_101 = arith.constant 0 : index
    %c0_102 = arith.constant 0 : index
    %111 = vector.load %arg8[%c0_101, %c0_102] : memref<16x16xf32, #tpu.memory_space<vmem>>, vector<16x16xf32>
    %cst_103 = arith.constant dense<0.000000e+00> : vector<16xf32>
    %112 = vector.multi_reduction <add>, %108, %cst_103 [1] : vector<16x256xf32> to vector<16xf32>
    %113 = vector.shape_cast %112 : vector<16xf32> to vector<16x1xf32>
    %cst_104 = arith.constant 3.906250e-03 : f32
    %114 = vector.broadcast %cst_104 : f32 to vector<16x1xf32>
    %115 = arith.mulf %113, %114 : vector<16x1xf32>
    %116 = arith.mulf %108, %108 : vector<16x256xf32>
    %cst_105 = arith.constant dense<0.000000e+00> : vector<16xf32>
    %117 = vector.multi_reduction <add>, %116, %cst_105 [1] : vector<16x256xf32> to vector<16xf32>
    %118 = vector.shape_cast %117 : vector<16xf32> to vector<16x1xf32>
    %cst_106 = arith.constant 3.906250e-03 : f32
    %119 = vector.broadcast %cst_106 : f32 to vector<16x1xf32>
    %120 = arith.mulf %118, %119 : vector<16x1xf32>
    %cst_107 = arith.constant dense<0.000000e+00> : vector<16x1xf32>
    %121 = tpu.matmul %111, %115, %cst_107 {dimension_numbers = #tpu.dot_dimension_numbers<[1], [0], [0], [1], [0, 0, 1, 1], [], []>} : vector<16x16xf32>, vector<16x1xf32>, vector<16x1xf32> -> vector<16x1xf32>
    %cst_108 = arith.constant dense<0.000000e+00> : vector<16x1xf32>
    %122 = tpu.matmul %111, %120, %cst_108 {dimension_numbers = #tpu.dot_dimension_numbers<[1], [0], [0], [1], [0, 0, 1, 1], [], []>} : vector<16x16xf32>, vector<16x1xf32>, vector<16x1xf32> -> vector<16x1xf32>
    %123 = arith.mulf %121, %121 : vector<16x1xf32>
    %124 = arith.subf %122, %123 : vector<16x1xf32>
    %cst_109 = arith.constant 0.000000e+00 : f32
    %125 = vector.broadcast %cst_109 : f32 to vector<16x1xf32>
    %126 = arith.maximumf %124, %125 : vector<16x1xf32>
    %127 = vector.broadcast %121 : vector<16x1xf32> to vector<16x256xf32>
    %128 = arith.subf %108, %127 : vector<16x256xf32>
    %cst_110 = arith.constant 9.99999974E-6 : f32
    %129 = vector.broadcast %cst_110 : f32 to vector<16x1xf32>
    %130 = arith.addf %126, %129 : vector<16x1xf32>
    %131 = math.rsqrt %130 : vector<16x1xf32>
    %132 = vector.broadcast %131 : vector<16x1xf32> to vector<16x256xf32>
    %133 = arith.mulf %128, %132 : vector<16x256xf32>
    %134 = vector.broadcast %109 : vector<16x1xf32> to vector<16x256xf32>
    %135 = arith.mulf %133, %134 : vector<16x256xf32>
    %136 = vector.broadcast %110 : vector<16x1xf32> to vector<16x256xf32>
    %137 = arith.addf %135, %136 : vector<16x256xf32>
    %138 = arith.negf %137 : vector<16x256xf32>
    %139 = math.exp %138 : vector<16x256xf32>
    %cst_111 = arith.constant 1.000000e+00 : f32
    %140 = vector.broadcast %cst_111 : f32 to vector<16x256xf32>
    %141 = arith.addf %140, %139 : vector<16x256xf32>
    %142 = arith.divf %140, %141 : vector<16x256xf32>
    %143 = arith.mulf %137, %142 : vector<16x256xf32>
    %144 = vector.shape_cast %143 : vector<16x256xf32> to vector<1x16x256xf32>
    %c0_112 = arith.constant 0 : index
    %c0_113 = arith.constant 0 : index
    %c0_114 = arith.constant 0 : index
    %145 = vector.load %arg12[%c0_112, %c0_113, %c0_114] : memref<1x16x256xf32, #tpu.memory_space<vmem>>, vector<1x16x256xf32>
    tpu.vector_store %arg12[%c0_112, %c0_113, %c0_114], %144 {strides = array<i32>} : memref<1x16x256xf32, #tpu.memory_space<vmem>>, vector<1x16x256xf32>,
    return
  }
  func.func @transform_0(%arg0: i32) -> (i32, i32, i32) {
    %c0_i32 = arith.constant 0 : i32
    %c0_i32_0 = arith.constant 0 : i32
    %c0_i32_1 = arith.constant 0 : i32
    return %arg0, %c0_i32, %c0_i32_0 : i32, i32, i32
  }
  func.func @transform_1(%arg0: i32) -> (i32, i32) {
    %c0_i32 = arith.constant 0 : i32
    %c0_i32_0 = arith.constant 0 : i32
    %c0_i32_1 = arith.constant 0 : i32
    return %c0_i32, %c0_i32_0 : i32, i32
  }
  func.func @transform_2(%arg0: i32) -> (i32, i32) {
    %c0_i32 = arith.constant 0 : i32
    %c0_i32_0 = arith.constant 0 : i32
    %c0_i32_1 = arith.constant 0 : i32
    return %c0_i32, %c0_i32_0 : i32, i32
  }
  func.func @transform_3(%arg0: i32) -> (i32, i32) {
    %c0_i32 = arith.constant 0 : i32
    %c0_i32_0 = arith.constant 0 : i32
    %c0_i32_1 = arith.constant 0 : i32
    return %c0_i32, %c0_i32_0 : i32, i32
  }
  func.func @transform_4(%arg0: i32) -> (i32, i32) {
    %c0_i32 = arith.constant 0 : i32
    %c0_i32_0 = arith.constant 0 : i32
    %c0_i32_1 = arith.constant 0 : i32
    return %c0_i32, %c0_i32_0 : i32, i32
  }
  func.func @transform_5(%arg0: i32) -> (i32, i32) {
    %c0_i32 = arith.constant 0 : i32
    %c0_i32_0 = arith.constant 0 : i32
    %c0_i32_1 = arith.constant 0 : i32
    return %c0_i32, %c0_i32_0 : i32, i32
  }
  func.func @transform_6(%arg0: i32) -> (i32, i32) {
    %c0_i32 = arith.constant 0 : i32
    %c0_i32_0 = arith.constant 0 : i32
    %c0_i32_1 = arith.constant 0 : i32
    return %c0_i32, %c0_i32_0 : i32, i32
  }
  func.func @transform_7(%arg0: i32) -> (i32, i32) {
    %c0_i32 = arith.constant 0 : i32
    %c0_i32_0 = arith.constant 0 : i32
    %c0_i32_1 = arith.constant 0 : i32
    return %c0_i32, %c0_i32_0 : i32, i32
  }
  func.func @transform_8(%arg0: i32) -> (i32, i32) {
    %c0_i32 = arith.constant 0 : i32
    %c0_i32_0 = arith.constant 0 : i32
    %c0_i32_1 = arith.constant 0 : i32
    return %c0_i32, %c0_i32_0 : i32, i32
  }
  func.func @transform_9(%arg0: i32) -> (i32, i32) {
    %c0_i32 = arith.constant 0 : i32
    %c0_i32_0 = arith.constant 0 : i32
    %c0_i32_1 = arith.constant 0 : i32
    return %c0_i32, %c0_i32_0 : i32, i32
  }
  func.func @transform_10(%arg0: i32) -> (i32, i32) {
    %c0_i32 = arith.constant 0 : i32
    %c0_i32_0 = arith.constant 0 : i32
    %c0_i32_1 = arith.constant 0 : i32
    return %c0_i32, %c0_i32_0 : i32, i32
  }
  func.func @transform_11(%arg0: i32) -> (i32, i32, i32) {
    %c0_i32 = arith.constant 0 : i32
    %c0_i32_0 = arith.constant 0 : i32
    %c0_i32_1 = arith.constant 0 : i32
    return %arg0, %c0_i32, %c0_i32_0 : i32, i32, i32
  }
}

</mosaic_0001>

<bundles_post_ra>
// kernel: residual_block_forward.1
= control target key start
LH: loop header
LB: loop body
LE: loop exit
PB: predicated region body
PF: predicated region fallthrough
CT: control target
= control target key end

     0   :  { %s12802_s17 = smov 0   ;;  %s20268_s0 = inlined_call_operand.vmem [shape: f32[2,4,256], index: 0, kind: input, shape index: {}]   ;;  %s20269_s1 = inlined_call_operand.vmem [shape: f32[16,36], index: 1, kind: input, shape index: {}]   ;;  %s20270_s2 = inlined_call_operand.vmem [shape: f32[16,1], index: 2, kind: input, shape index: {}]   ;;  %s20271_s3 = inlined_call_operand.vmem [shape: f32[16,1], index: 3, kind: input, shape index: {}]   ;;  %s20272_s4 = inlined_call_operand.vmem [shape: f32[16,144], index: 4, kind: input, shape index: {}]   ;;  %s20273_s5 = inlined_call_operand.vmem [shape: f32[16,1], index: 5, kind: input, shape index: {}]   ;;  %s20274_s6 = inlined_call_operand.vmem [shape: f32[16,1], index: 6, kind: input, shape index: {}]   ;;  %s20275_s7 = inlined_call_operand.vmem [shape: f32[16,16], index: 7, kind: input, shape index: {}]   ;;  %s20276_s8 = inlined_call_operand.vmem [shape: f32[32,2], index: 8, kind: input, shape index: {}]   ;;  %s20277_s9 = inlined_call_operand.vmem [shape: f32[32,32], index: 9, kind: input, shape index: {}]   ;;  %s20278_s10 = inlined_call_operand.vmem [shape: f32[32,1], index: 10, kind: input, shape index: {}]   ;;  %s20279_s11 = inlined_call_operand.vmem [shape: f32[2,16,256], index: 11, kind: output, shape index: {}]  }
   0x1 LB: > { %s12808_s18 = sadd.s32 4294967295, %s12726_s17   ;;  %p11439_p0 = scmp.ge.s32.totalorder %s12726_s17, 1  ;;  %s12726_s17 = sphi %s12802_s17, %s21_s17  }
   0x2   : > { %p337_p1 = scmp.lt.s32.totalorder %s12726_s17, 3 }
   0x4   : > { %p338_p2 = pnand %p11439_p0, %p337_p1 }
   0x6   : > { %341 = sbr.rel (%p338_p2) target bundleno = 3342 (0xd0e), region = 64 }
   0xd   : > { %p377_p3 = scmp.lt.s32.totalorder %s12808_s18, 1  ;;  %s12728_s24 = smov 80   ;;  %vm387_vm0 = vcmask 146432   ;;  %v20281_v1 = vmov 0.0   ;;  %v12736_v3 = vmov 1983009808   ;;  %v20280_v5 = vlaneseq }
   0xe   : > { %s12729_s25 = smov 112   ;;  %s12730_s26 = smov 64   ;;  %388 = vst.msk [vmem:[#allocation2] sm:$0xff] %vm387_vm0, %v20281_v1  ;;  %389 = vst.msk [vmem:[#allocation2 + $0x8] sm:$0xff] %vm387_vm0, %v20281_v1  ;;  %2798 = vmatprep.mubr.f32.mxu1 %v20281_v1  ;;  %v442_v4 = vunpack.c.l.s4 %v12736_v3  ;;  %v12737_v15 = vmov 1934713408  }
   0xf   : > { %s12814_s19 = scalar_select %p377_p3, %s12808_s18, 1  ;;  %392 = vst.msk [vmem:[#allocation2 + $0x18] sm:$0xff] %vm387_vm0, %v20281_v1  ;;  %393 = vst.msk [vmem:[#allocation2 + $0x20] sm:$0xff] %vm387_vm0, %v20281_v1  ;;  %v445_v8 = vshrl.u32 %v20280_v5, 7  ;;  %v459_v16 = vunpack.c.l.s4 %v12737_v15  ;;  %vm390_vm1 = vcmask 140288   ;;  %vm624_vm2 = vcmask 138248  }
  0x10   : > { %s12731_s27 = smov 96   ;;  %s12732_s28 = smov 32   ;;  %395 = vst.msk [vmem:[#allocation2 + $0x30] sm:$0xff] %vm387_vm0, %v20281_v1  ;;  %396 = vst.msk [vmem:[#allocation2 + $0x38] sm:$0xff] %vm387_vm0, %v20281_v1  ;;  %v443_v7 = vunpack.c.0.s8 %v442_v4  ;;  %vm3073_vm4 = vcmask 15360   ;;  %vm833_vm5 = vcmask 130048  }
  0x11   : > { %s11477_s20 = sshll.u32 %s12814_s19, 3  ;;  %s12733_s29 = smov 48   ;;  %398 = vst.msk [vmem:[#allocation2 + $0x48] sm:$0xff] %vm387_vm0, %v20281_v1  ;;  %399 = vst.msk [vmem:[#allocation2 + $0x50] sm:$0xff] %vm387_vm0, %v20281_v1  ;;  %v460_v26 = vunpack.c.0.s8 %v459_v16  ;;  %vm835_vm6 = vcmask 261120   ;;  %vm837_vm7 = vcmask 392192  }
  0x12   : > { %s381_s23 = scalar_lea.vmem %s20268_s0, %s11477_s20  ;;  %s12734_s30 = smov 16   ;;  %3249 = vst.msk [vmem:[#allocation3] sm:$0xff] %vm387_vm0, %v20281_v1  ;;  %3250 = vst.msk [vmem:[#allocation3 + $0x8] sm:$0xff] %vm387_vm0, %v20281_v1  ;;  %v12920_v18 = vsub.s32 %v443_v7, %v445_v8  ;;  %vm839_vm8 = vcmask 523264   ;;  %vm841_vm9 = vcmask 654336   ;;  %vm843_vm10 = vcmask 785408  }
  0x13   : > { %v12820_v0 = vld [vmem:[%s381_s23] sm:$0xff]  ;;  %3252 = vst.msk [vmem:[#allocation3 + $0x18] sm:$0xff] %vm387_vm0, %v20281_v1  ;;  %3253 = vst.msk [vmem:[#allocation3 + $0x20] sm:$0xff] %vm387_vm0, %v20281_v1  ;;  %v12966_v37 = vsub.s32 %v460_v26, %v445_v8  ;;  %s12738_s12 = smov 1   ;;  %s12739_s13 = smov 127   ;;  %vm845_vm11 = vcmask 916480  }
  0x14   : > { %413 = vrot.lane.b32.xlu1 %v12820_v0, %s12728_s24  ;;  %405 = vrot.lane.b32.xlu0 %v12820_v0, %s12729_s25  ;;  %3255 = vst.msk [vmem:[#allocation3 + $0x30] sm:$0xff] %vm387_vm0, %v20281_v1  ;;  %3256 = vst.msk [vmem:[#allocation3 + $0x38] sm:$0xff] %vm387_vm0, %v20281_v1  ;;  %v403_v11 = vrot.slane %v12820_v0, 4  ;;  %s12740_s14 = smov 126   ;;  %vm2710_vm12 = vcmask 1043456   ;;  %vm2721_vm13 = vcmask 293888  }
  0x15   : > { %3258 = vst.msk [vmem:[#allocation3 + $0x48] sm:$0xff] %vm387_vm0, %v20281_v1  ;;  %3259 = vst.msk [vmem:[#allocation3 + $0x50] sm:$0xff] %vm387_vm0, %v20281_v1 }
  0x16   : > { %3261 = vst.msk [vmem:[#allocation3 + $0x60] sm:$0xff] %vm387_vm0, %v20281_v1  ;;  %3262 = vst.msk [vmem:[#allocation3 + $0x68] sm:$0xff] %vm387_vm0, %v20281_v1 }
  0x17   : > { %3264 = vst.msk [vmem:[#allocation3 + $0x78] sm:$0xff] %vm387_vm0, %v20281_v1  ;;  %3265 = vst.msk [vmem:[#allocation3 + $0x80] sm:$0xff] %vm387_vm0, %v20281_v1 }
  0x18   : > { %417 = vrot.lane.b32.xlu1 %v12820_v0, %s12730_s26  ;;  %409 = vrot.lane.b32.xlu0 %v12820_v0, %s12731_s27  ;;  %3267 = vst.msk [vmem:[#allocation3 + $0x90] sm:$0xff] %vm387_vm0, %v20281_v1  ;;  %3268 = vst.msk [vmem:[#allocation3 + $0x98] sm:$0xff] %vm387_vm0, %v20281_v1 }
  0x19   : > { %3270 = vst.msk [vmem:[#allocation3 + $0xa8] sm:$0xff] %vm387_vm0, %v20281_v1  ;;  %3271 = vst.msk [vmem:[#allocation3 + $0xb0] sm:$0xff] %vm387_vm0, %v20281_v1 }
  0x1a   : > { %3273 = vst.msk [vmem:[#allocation3 + $0xc0] sm:$0xff] %vm387_vm0, %v20281_v1  ;;  %3274 = vst.msk [vmem:[#allocation3 + $0xc8] sm:$0xff] %vm387_vm0, %v20281_v1 }
  0x1b   : > { %3276 = vst.msk [vmem:[#allocation3 + $0xd8] sm:$0xff] %vm387_vm0, %v20281_v1  ;;  %3277 = vst.msk [vmem:[#allocation3 + $0xe0] sm:$0xff] %vm387_vm0, %v20281_v1 }
  0x1c   : > { %425 = vrot.lane.b32.xlu1 %v12820_v0, %s12732_s28  ;;  %421 = vrot.lane.b32.xlu0 %v12820_v0, %s12733_s29  ;;  %3279 = vst.msk [vmem:[#allocation3 + $0xf0] sm:$0xff] %vm387_vm0, %v20281_v1  ;;  %3280 = vst.msk [vmem:[#allocation3 + $0xf8] sm:$0xff] %vm387_vm0, %v20281_v1 }
  0x1d   : > { %3282 = vst.msk [vmem:[#allocation3 + $0x108] sm:$0xff] %vm387_vm0, %v20281_v1  ;;  %3283 = vst.msk [vmem:[#allocation3 + $0x110] sm:$0xff] %vm387_vm0, %v20281_v1 }
  0x1e   : > { %3285 = vst.msk [vmem:[#allocation3 + $0x120] sm:$0xff] %vm387_vm0, %v20281_v1  ;;  %3286 = vst.msk [vmem:[#allocation3 + $0x128] sm:$0xff] %vm387_vm0, %v20281_v1 }
  0x1f   : > { %3288 = vst.msk [vmem:[#allocation3 + $0x138] sm:$0xff] %vm387_vm0, %v20281_v1  ;;  %3289 = vst.msk [vmem:[#allocation3 + $0x140] sm:$0xff] %vm387_vm0, %v20281_v1 }
  0x20   : > { %429 = vrot.lane.b32.xlu0 %v12820_v0, %s12734_s30  ;;  %3291 = vst.msk [vmem:[#allocation3 + $0x150] sm:$0xff] %vm387_vm0, %v20281_v1  ;;  %3292 = vst.msk [vmem:[#allocation3 + $0x158] sm:$0xff] %vm387_vm0, %v20281_v1 }
  0x21   : > { %3294 = vst.msk [vmem:[#allocation3 + $0x168] sm:$0xff] %vm387_vm0, %v20281_v1  ;;  %3295 = vst.msk [vmem:[#allocation3 + $0x170] sm:$0xff] %vm387_vm0, %v20281_v1 }
  0x22   : > { %21098 = vst [vmem:[#allocation4_spill] sm:$0xff] %v12920_v18  ;;  %391 = vst.msk [vmem:[#allocation2 + $0x10] sm:$0x3] %vm390_vm1, %v20281_v1 }
  0x23   : > { %394 = vst.msk [vmem:[#allocation2 + $0x28] sm:$0x3] %vm390_vm1, %v20281_v1  ;;  %397 = vst.msk [vmem:[#allocation2 + $0x40] sm:$0x3] %vm390_vm1, %v20281_v1 }
  0x24   : > { %400 = vst.msk [vmem:[#allocation2 + $0x58] sm:$0x3] %vm390_vm1, %v20281_v1  ;;  %3251 = vst.msk [vmem:[#allocation3 + $0x10] sm:$0x3] %vm390_vm1, %v20281_v1 }
  0x25   : > { %3254 = vst.msk [vmem:[#allocation3 + $0x28] sm:$0x3] %vm390_vm1, %v20281_v1  ;;  %3257 = vst.msk [vmem:[#allocation3 + $0x40] sm:$0x3] %vm390_vm1, %v20281_v1 }
  0x26   : > { %3260 = vst.msk [vmem:[#allocation3 + $0x58] sm:$0x3] %vm390_vm1, %v20281_v1  ;;  %3263 = vst.msk [vmem:[#allocation3 + $0x70] sm:$0x3] %vm390_vm1, %v20281_v1 }
  0x27   : > { %3266 = vst.msk [vmem:[#allocation3 + $0x88] sm:$0x3] %vm390_vm1, %v20281_v1  ;;  %3269 = vst.msk [vmem:[#allocation3 + $0xa0] sm:$0x3] %vm390_vm1, %v20281_v1 }
  0x28   : > { %3272 = vst.msk [vmem:[#allocation3 + $0xb8] sm:$0x3] %vm390_vm1, %v20281_v1  ;;  %3275 = vst.msk [vmem:[#allocation3 + $0xd0] sm:$0x3] %vm390_vm1, %v20281_v1 }
  0x29   : > { %3278 = vst.msk [vmem:[#allocation3 + $0xe8] sm:$0x3] %vm390_vm1, %v20281_v1  ;;  %3281 = vst.msk [vmem:[#allocation3 + $0x100] sm:$0x3] %vm390_vm1, %v20281_v1 }
  0x2a   : > { %3284 = vst.msk [vmem:[#allocation3 + $0x118] sm:$0x3] %vm390_vm1, %v20281_v1  ;;  %3287 = vst.msk [vmem:[#allocation3 + $0x130] sm:$0x3] %vm390_vm1, %v20281_v1 }
  0x2b   : > { %3290 = vst.msk [vmem:[#allocation3 + $0x148] sm:$0x3] %vm390_vm1, %v20281_v1  ;;  %3293 = vst.msk [vmem:[#allocation3 + $0x160] sm:$0x3] %vm390_vm1, %v20281_v1 }
  0x2c   : > { %3296 = vst.msk [vmem:[#allocation3 + $0x178] sm:$0x3] %vm390_vm1, %v20281_v1  ;;  %21099 = vst [vmem:[#allocation5_spill] sm:$0xff] %v12966_v37 }
  0x86   : > { %v414_v2 = vpop.permute.xlu1 %413  ;;  %v406_v6 = vpop.permute.xlu0 %405 }
  0x87   : > { %v415_v13 = vrot.slane %v414_v2, 4  ;;  %v407_v14 = vrot.slane %v406_v6, 4  ;;  %v448_v19 = vcombine.low %v406_v6, %v414_v2 }
  0x89   : > { %v516_v25 = vcombine.low %v407_v14, %v415_v13  ;;  %v455_v29 = vrot.slane %v448_v19, %v12920_v18 }
  0x8a   : > { %v418_v9 = vpop.permute.xlu1 %417  ;;  %v410_v10 = vpop.permute.xlu0 %409 }
  0x8b   : > { %v411_v12 = vrot.slane %v410_v10, 4  ;;  %v440_v17 = vcombine.low %v12820_v0, %v410_v10  ;;  %v419_v23 = vrot.slane %v418_v9, 4  ;;  %v523_v36 = vrot.slane %v516_v25, %v12920_v18 }
  0x8d   : > { %v508_v20 = vcombine.low %v403_v11, %v411_v12  ;;  %v447_v27 = vrot.slane %v440_v17, %v12920_v18 }
  0x8e   : > { %v426_v21 = vpop.permute.xlu1 %425  ;;  %v422_v22 = vpop.permute.xlu0 %421 }
  0x8f   : > { %v427_v24 = vrot.slane %v426_v21, 4  ;;  %v474_v28 = vcombine.low %v418_v9, %v426_v21  ;;  %v515_v30 = vrot.slane %v508_v20, %v12920_v18  ;;  %v423_v33 = vrot.slane %v422_v22, 4 }
  0x90   : > { %v456_v38 = vcombine.low %v447_v27, %v455_v29  ;;  %v457_v53 = vcombine.high %v447_v27, %v455_v29 }
  0x91   : > { %v542_v32 = vcombine.low %v419_v23, %v427_v24  ;;  %v481_v39 = vrot.slane %v474_v28, %v12920_v18  ;;  %v524_v45 = vcombine.low %v515_v30, %v523_v36  ;;  %v525_v58 = vcombine.high %v515_v30, %v523_v36 }
  0x92   : > { %v430_v31 = vpop.permute.xlu0 %429  ;;  %v464_v46 = vrot.slane %v456_v38, %v12966_v37  ;;  %v471_v60 = vrot.slane %v457_v53, %v12966_v37 }
  0x93   : > { %v431_v34 = vrot.slane %v430_v31, 4  ;;  %v482_v35 = vcombine.low %v422_v22, %v430_v31  ;;  %v549_v42 = vrot.slane %v542_v32, %v12920_v18  ;;  %v532_v51 = vrot.slane %v524_v45, %v12966_v37 }
  0x94   : > { %v539_v63 = vrot.slane %v525_v58, %v12966_v37 }
  0x95   : > { %v489_v40 = vrot.slane %v482_v35, %v12920_v18  ;;  %v550_v41 = vcombine.low %v423_v33, %v431_v34 }
  0x97   : > { %v490_v43 = vcombine.low %v481_v39, %v489_v40  ;;  %v557_v44 = vrot.slane %v550_v41, %v12920_v18  ;;  %v491_v49 = vcombine.high %v481_v39, %v489_v40 }
  0x99   : > { %v498_v47 = vrot.slane %v490_v43, %v12966_v37  ;;  %v558_v48 = vcombine.low %v549_v42, %v557_v44  ;;  %v559_v55 = vcombine.high %v549_v42, %v557_v44  ;;  %v505_v57 = vrot.slane %v491_v49, %v12966_v37 }
  0x9b   : > { %v592_v50 = vcombine.low %v464_v46, %v498_v47  ;;  %v566_v52 = vrot.slane %v558_v48, %v12966_v37  ;;  %v11444_v56 = vcombine.high %v464_v46, %v498_v47  ;;  %v573_v61 = vrot.slane %v559_v55, %v12966_v37 }
  0x9c   : > { %v596_v62 = vcombine.low %v471_v60, %v505_v57  ;;  %v11446_v2 = vcombine.high %v471_v60, %v505_v57 }
  0x9d   : > { %600 = vrot.lane.b32.xlu1 %v592_v50, %s12738_s12  ;;  %v593_v54 = vcombine.low %v532_v51, %v566_v52  ;;  %v11445_v59 = vcombine.high %v532_v51, %v566_v52  ;;  %v597_v0 = vcombine.low %v539_v63, %v573_v61  ;;  %v11447_v3 = vcombine.high %v539_v63, %v573_v61 }
  0x9f   : > { %602 = vrot.lane.b32.xlu0 %v593_v54, %s12738_s12 }
  0xa1   : > { %604 = vrot.lane.b32.xlu1 %v11444_v56, %s12738_s12 }
  0xa3   : > { %606 = vrot.lane.b32.xlu0 %v11445_v59, %s12738_s12 }
  0xa5   : > { %608 = vrot.lane.b32.xlu1 %v596_v62, %s12738_s12 }
  0xa7   : > { %610 = vrot.lane.b32.xlu0 %v597_v0, %s12738_s12 }
  0xa9   : > { %612 = vrot.lane.b32.xlu1 %v11446_v2, %s12738_s12 }
  0xab   : > { %614 = vrot.lane.b32.xlu0 %v11447_v3, %s12738_s12 }
 0x10f   : > { %v601_v4 = vpop.permute.xlu1 %600 }
 0x110   : > { %625 = vst.msk [vmem:[#allocation2 + $0x1] sm:$0xff] %vm624_vm2, %v601_v4 }
 0x111   : > { %v603_v6 = vpop.permute.xlu0 %602 }
 0x112   : > { %626 = vst.msk [vmem:[#allocation2 + $0x9] sm:$0xff] %vm624_vm2, %v603_v6 }
 0x113   : > { %v605_v7 = vpop.permute.xlu1 %604 }
 0x114   : > { %627 = vst.msk [vmem:[#allocation2 + $0x19] sm:$0xff] %vm624_vm2, %v605_v7 }
 0x115   : > { %v607_v8 = vpop.permute.xlu0 %606 }
 0x116   : > { %628 = vst.msk [vmem:[#allocation2 + $0x21] sm:$0xff] %vm624_vm2, %v607_v8 }
 0x117   : > { %v609_v9 = vpop.permute.xlu1 %608  ;;  %v633_v10 = vld [vmem:[#allocation2] sm:$0xff] }
 0x118   : > { %629 = vst.msk [vmem:[#allocation2 + $0x31] sm:$0xff] %vm624_vm2, %v609_v9  ;;  %862 = vrot.lane.b32.xlu1 %v633_v10, %s12739_s13  ;;  %v1322_v16 = vld [vmem:[#allocation2 + $0x1] sm:$0xff] }
 0x119   : > { %v611_v11 = vpop.permute.xlu0 %610  ;;  %v13005_v24 = vld [vmem:[#allocation2 + $0x8] sm:$0xff] }
 0x11a   : > { %630 = vst.msk [vmem:[#allocation2 + $0x39] sm:$0xff] %vm624_vm2, %v611_v11  ;;  %v13015_v34 = vld [vmem:[#allocation2 + $0x9] sm:$0xff] }
 0x11b   : > { %v613_v12 = vpop.permute.xlu1 %612  ;;  %v635_v13 = vld [vmem:[#allocation2 + $0x18] sm:$0xff] }
 0x11c   : > { %631 = vst.msk [vmem:[#allocation2 + $0x49] sm:$0xff] %vm624_vm2, %v613_v12  ;;  %866 = vrot.lane.b32.xlu0 %v635_v13, %s12739_s13  ;;  %v1324_v27 = vld [vmem:[#allocation2 + $0x19] sm:$0xff] }
 0x11d   : > { %v615_v14 = vpop.permute.xlu0 %614  ;;  %v636_v36 = vld [vmem:[#allocation2 + $0x20] sm:$0xff] }
 0x11e   : > { %632 = vst.msk [vmem:[#allocation2 + $0x51] sm:$0xff] %vm624_vm2, %v615_v14  ;;  %v13021_v42 = vld [vmem:[#allocation2 + $0x21] sm:$0xff] }
 0x11f   : > { %v637_v15 = vld [vmem:[#allocation2 + $0x30] sm:$0xff]  ;;  %v13132_v12 = vld [vmem:[#allocation2 + $0x22] sm:$0xff] }
 0x120   : > { %v12998_v17 = vld [vmem:[#allocation2 + $0x31] sm:$0xff]  ;;  %870 = vrot.lane.b32.xlu1 %v637_v15, %s12739_s13  ;;  %v641_v19 = vcombine.low %v633_v10, %v637_v15  ;;  %v642_v20 = vcombine.high %v633_v10, %v637_v15 }
 0x121   : > { %v1330_v21 = vcombine.low %v1322_v16, %v12998_v17  ;;  %v1331_v22 = vcombine.high %v1322_v16, %v12998_v17  ;;  %v13003_v23 = vld [vmem:[#allocation2 + $0x38] sm:$0xff] }
 0x122   : > { %v13007_v25 = vld [vmem:[#allocation2 + $0x39] sm:$0xff]  ;;  %v709_v29 = vcombine.low %v13005_v24, %v13003_v23  ;;  %v710_v30 = vcombine.high %v13005_v24, %v13003_v23  ;;  %v13059_v56 = vrot.slane %v641_v19, %v12920_v18  ;;  %v13062_v57 = vrot.slane %v642_v20, %v12920_v18 }
 0x123   : > { %v639_v26 = vld [vmem:[#allocation2 + $0x48] sm:$0xff]  ;;  %v1398_v39 = vcombine.low %v13015_v34, %v13007_v25  ;;  %v13051_v53 = vrot.slane %v1330_v21, %v12920_v18  ;;  %v13067_v58 = vrot.slane %v1331_v22, %v12920_v18  ;;  %v13130_v11 = vld [vmem:[#allocation2 + $0x3a] sm:$0xff] }
 0x124   : > { %v1328_v28 = vld [vmem:[#allocation2 + $0x49] sm:$0xff]  ;;  %1092 = vrot.lane.b32.xlu1 %v633_v10, %s12740_s14  ;;  %v657_v31 = vcombine.low %v635_v13, %v639_v26  ;;  %v658_v32 = vcombine.high %v635_v13, %v639_v26  ;;  %874 = vrot.lane.b32.xlu0 %v639_v26, %s12739_s13  ;;  %v13028_v45 = vrot.slane %v709_v29, %v12920_v18 }
 0x125   : > { %v1346_v33 = vcombine.low %v1324_v27, %v1328_v28  ;;  %v1347_v35 = vcombine.high %v1324_v27, %v1328_v28  ;;  %v640_v38 = vld [vmem:[#allocation2 + $0x50] sm:$0xff]  ;;  %v13037_v48 = vrot.slane %v1398_v39, %v12920_v18  ;;  %v13090_v4 = vrot.slane %v710_v30, %v12920_v18 }
 0x126   : > { %v13019_v40 = vld [vmem:[#allocation2 + $0x51] sm:$0xff]  ;;  %v725_v41 = vcombine.low %v636_v36, %v640_v38  ;;  %v726_v43 = vcombine.high %v636_v36, %v640_v38  ;;  %v13043_v50 = vrot.slane %v657_v31, %v12920_v18  ;;  %v13046_v51 = vrot.slane %v658_v32, %v12920_v18 }
 0x127   : > { %v1414_v44 = vcombine.low %v13021_v42, %v13019_v40  ;;  %v13034_v47 = vrot.slane %v1346_v33, %v12920_v18  ;;  %21100 = vst [vmem:[#allocation6_spill] sm:$0xff] %v13037_v48  ;;  %v13054_v54 = vrot.slane %v1347_v35, %v12920_v18  ;;  %v13124_v10 = vld [vmem:[#allocation2 + $0xa] sm:$0xff]  ;;  %v13140_v14 = vld [vmem:[#allocation2 + $0x52] sm:$0xff] }
 0x128   : > { %1100 = vrot.lane.b32.xlu1 %v637_v15, %s12740_s14  ;;  %1096 = vrot.lane.b32.xlu0 %v635_v13, %s12740_s14  ;;  %v13031_v46 = vrot.slane %v725_v41, %v12920_v18  ;;  %v689_v60 = vcombine.low %v13062_v57, %v13046_v51  ;;  %v674_v61 = vcombine.high %v13059_v56, %v13043_v50  ;;  %v13138_v13 = vld [vmem:[#allocation2 + $0x2] sm:$0xff]  ;;  %v13146_v15 = vld [vmem:[#allocation2 + $0x32] sm:$0xff] }
 0x129   : > { %v13040_v49 = vrot.slane %v1414_v44, %v12920_v18  ;;  %v1363_v59 = vcombine.high %v13051_v53, %v13034_v47  ;;  %v1379_v62 = vcombine.high %v13067_v58, %v13054_v54  ;;  %v1378_v63 = vcombine.low %v13067_v58, %v13054_v54 }
 0x12a   : > { %v690_v0 = vcombine.high %v13062_v57, %v13046_v51  ;;  %v13085_v2 = vrot.slane %v726_v43, %v12920_v18  ;;  %v1362_v3 = vcombine.low %v13051_v53, %v13034_v47  ;;  %v1415_v47 = vcombine.high %v13021_v42, %v13019_v40 }
 0x12b   : > { %21101 = vst [vmem:[#allocation7_spill] sm:$0xff] %v13040_v49  ;;  %v13197_v39 = vrot.slane %v1363_v59, %v12966_v37 }
 0x12c   : > { %1774 = vrot.lane.b32.xlu1 %v1322_v16, %s12740_s14  ;;  %1104 = vrot.lane.b32.xlu0 %v639_v26, %s12740_s14 }
 0x130   : > { %1782 = vrot.lane.b32.xlu1 %v12998_v17, %s12740_s14  ;;  %1778 = vrot.lane.b32.xlu0 %v1324_v27, %s12740_s14 }
 0x134   : > { %1544 = vrot.lane.b32.xlu1 %v1322_v16, %s12739_s13  ;;  %1786 = vrot.lane.b32.xlu0 %v1328_v28, %s12740_s14  ;;  %v13148_v16 = vld [vmem:[#allocation2 + $0x1a] sm:$0xff] }
 0x138   : > { %1552 = vrot.lane.b32.xlu1 %v12998_v17, %s12739_s13  ;;  %1548 = vrot.lane.b32.xlu0 %v1324_v27, %s12739_s13  ;;  %v13154_v17 = vld [vmem:[#allocation2 + $0x4a] sm:$0xff] }
 0x13c   : > { %1556 = vrot.lane.b32.xlu0 %v1328_v28, %s12739_s13  ;;  %864 = vrot.lane.b32.xlu1 %v13005_v24, %s12739_s13 }
 0x140   : > { %868 = vrot.lane.b32.xlu0 %v636_v36, %s12739_s13  ;;  %872 = vrot.lane.b32.xlu1 %v13003_v23, %s12739_s13 }
 0x144   : > { %1094 = vrot.lane.b32.xlu1 %v13005_v24, %s12740_s14  ;;  %876 = vrot.lane.b32.xlu0 %v640_v38, %s12739_s13 }
 0x148   : > { %1102 = vrot.lane.b32.xlu1 %v13003_v23, %s12740_s14  ;;  %1098 = vrot.lane.b32.xlu0 %v636_v36, %s12740_s14 }
 0x14c   : > { %1776 = vrot.lane.b32.xlu1 %v13015_v34, %s12740_s14  ;;  %1106 = vrot.lane.b32.xlu0 %v640_v38, %s12740_s14 }
 0x150   : > { %1784 = vrot.lane.b32.xlu1 %v13007_v25, %s12740_s14  ;;  %1780 = vrot.lane.b32.xlu0 %v13021_v42, %s12740_s14 }
 0x154   : > { %2228 = vrot.lane.b32.xlu1 %v13124_v10, %s12739_s13  ;;  %1788 = vrot.lane.b32.xlu0 %v13019_v40, %s12740_s14 }
 0x158   : > { %2236 = vrot.lane.b32.xlu1 %v13130_v11, %s12739_s13  ;;  %2232 = vrot.lane.b32.xlu0 %v13132_v12, %s12739_s13 }
 0x15c   : > { %2226 = vrot.lane.b32.xlu1 %v13138_v13, %s12739_s13  ;;  %2240 = vrot.lane.b32.xlu0 %v13140_v14, %s12739_s13 }
 0x160   : > { %2234 = vrot.lane.b32.xlu1 %v13146_v15, %s12739_s13  ;;  %2230 = vrot.lane.b32.xlu0 %v13148_v16, %s12739_s13 }
 0x164   : > { %1546 = vrot.lane.b32.xlu1 %v13015_v34, %s12739_s13  ;;  %2238 = vrot.lane.b32.xlu0 %v13154_v17, %s12739_s13 }
 0x168   : > { %1554 = vrot.lane.b32.xlu1 %v13007_v25, %s12739_s13  ;;  %1550 = vrot.lane.b32.xlu0 %v13021_v42, %s12739_s13 }
 0x16c   : > { %2458 = vrot.lane.b32.xlu1 %v13124_v10, %s12740_s14  ;;  %1558 = vrot.lane.b32.xlu0 %v13019_v40, %s12739_s13 }
 0x170   : > { %2466 = vrot.lane.b32.xlu1 %v13130_v11, %s12740_s14  ;;  %2462 = vrot.lane.b32.xlu0 %v13132_v12, %s12740_s14 }
 0x174   : > { %2456 = vrot.lane.b32.xlu1 %v13138_v13, %s12740_s14  ;;  %2470 = vrot.lane.b32.xlu0 %v13140_v14, %s12740_s14 }
 0x178   : > { %2464 = vrot.lane.b32.xlu1 %v13146_v15, %s12740_s14  ;;  %2460 = vrot.lane.b32.xlu0 %v13148_v16, %s12740_s14 }
 0x17c   : > { %2468 = vrot.lane.b32.xlu0 %v13154_v17, %s12740_s14 }
 0x18a   : > { %v863_v19 = vpop.permute.xlu1 %862 }
 0x18e   : > { %v867_v20 = vpop.permute.xlu0 %866 }
 0x192   : > { %v871_v21 = vpop.permute.xlu1 %870 }
 0x193   : > { %v886_v22 = vcombine.low %v863_v19, %v871_v21  ;;  %v887_v33 = vcombine.high %v863_v19, %v871_v21 }
 0x195   : > { %v13183_v27 = vrot.slane %v886_v22, %v12920_v18  ;;  %v901_v21 = vrot.slane %v887_v33, %v12920_v18 }
 0x196   : > { %v1093_v23 = vpop.permute.xlu1 %1092  ;;  %v875_v24 = vpop.permute.xlu0 %874 }
 0x197   : > { %v902_v26 = vcombine.low %v867_v20, %v875_v24  ;;  %v903_v29 = vcombine.high %v867_v20, %v875_v24 }
 0x199   : > { %v13186_v28 = vrot.slane %v902_v26, %v12920_v18  ;;  %v917_v41 = vrot.slane %v903_v29, %v12920_v18 }
 0x19a   : > { %v1101_v30 = vpop.permute.xlu1 %1100  ;;  %v1097_v31 = vpop.permute.xlu0 %1096 }
 0x19b   : > { %v919_v32 = vcombine.high %v13183_v27, %v13186_v28  ;;  %v1116_v35 = vcombine.low %v1093_v23, %v1101_v30  ;;  %v1117_v36 = vcombine.high %v1093_v23, %v1101_v30  ;;  %v935_v29 = vcombine.high %v901_v21, %v917_v41 }
 0x19d   : > { %v13191_v38 = vrot.slane %v919_v32, %v12966_v37  ;;  %v13206_v23 = vrot.slane %v1116_v35, %v12920_v18  ;;  %v1131_v24 = vrot.slane %v1117_v36, %v12920_v18  ;;  %v934_v32 = vcombine.low %v901_v21, %v917_v41 }
 0x19e   : > { %v13200_v43 = vpop.permute.xlu1 %1774  ;;  %v1105_v44 = vpop.permute.xlu0 %1104  ;;  %v13224_v36 = vrot.slane %v689_v60, %v12966_v37  ;;  %v13241_v21 = vrot.slane %v935_v29, %v12966_v37  ;;  %v2012_v29 = vcombine.low %v13138_v13, %v13146_v15 }
 0x19f   : > { %v1132_v20 = vcombine.low %v1097_v31, %v1105_v44  ;;  %v1133_v22 = vcombine.high %v1097_v31, %v1105_v44  ;;  %v11635_v19 = vpack.i.bf16 %v13197_v39, %v13191_v38  ;;  %v13248_v55 = vrot.slane %v934_v32, %v12966_v37 }
 0x1a1   : > { %v13210_v59 = vrot.slane %v1132_v20, %v12920_v18  ;;  %v1147_v26 = vrot.slane %v1133_v22, %v12920_v18  ;;  %11636 = vrot.lane.b32.xlu1 %v11635_v19, %s12732_s28  ;;  %v13233_v20 = vrot.slane %v674_v61, %v12966_v37  ;;  %v2028_v61 = vcombine.low %v13148_v16, %v13154_v17 }
 0x1a2   : > { %v13214_v30 = vpop.permute.xlu1 %1782  ;;  %v13216_v31 = vpop.permute.xlu0 %1778 }
 0x1a3   : > { %v1149_v33 = vcombine.high %v13206_v23, %v13210_v59  ;;  %v1164_v35 = vcombine.low %v1131_v24, %v1147_v26  ;;  %v1165_v60 = vcombine.high %v1131_v24, %v1147_v26  ;;  %v13260_v24 = vrot.slane %v1379_v62, %v12966_v37 }
 0x1a4   : > { %v13266_v26 = vrot.slane %v1378_v63, %v12966_v37  ;;  %v13280_v54 = vrot.slane %v2028_v61, %v12920_v18 }
 0x1a5   : > { %v13227_v44 = vrot.slane %v1164_v35, %v12966_v37  ;;  %v13236_v41 = vrot.slane %v1149_v33, %v12966_v37  ;;  %v2029_v33 = vcombine.high %v13148_v16, %v13154_v17  ;;  %v2013_v16 = vcombine.high %v13138_v13, %v13146_v15 }
 0x1a6   : > { %v1545_v22 = vpop.permute.xlu1 %1544  ;;  %v13238_v19 = vpop.permute.xlu0 %1786  ;;  %v11655_v32 = vpack.i.bf16 %v13260_v24, %v13241_v21  ;;  %v11645_v62 = vpack.i.bf16 %v13266_v26, %v13248_v55  ;;  %v13289_v13 = vrot.slane %v690_v0, %v12966_v37  ;;  %v13292_v15 = vrot.slane %v2012_v29, %v12920_v18 }
 0x1a7   : > { %v11650_v35 = vpack.i.bf16 %v13227_v44, %v13224_v36  ;;  %v11640_v5 = vpack.i.bf16 %v13236_v41, %v13233_v20  ;;  %v2043_v58 = vrot.slane %v2029_v33, %v12920_v18 }
 0x1a9   : > { %11651 = vrot.lane.b32.xlu0 %v11650_v35, %s12730_s26  ;;  %11641 = vrot.lane.b32.xlu1 %v11640_v5, %s12732_s28  ;;  %v13277_v35 = vrot.slane %v1165_v60, %v12966_v37  ;;  %v2027_v60 = vrot.slane %v2013_v16, %v12920_v18  ;;  %v918_v16 = vcombine.low %v13183_v27, %v13186_v28 }
 0x1aa   : > { %v1553_v17 = vpop.permute.xlu1 %1552  ;;  %v1549_v5 = vpop.permute.xlu0 %1548  ;;  %v1148_v28 = vcombine.low %v13206_v23, %v13210_v59  ;;  %v13343_v23 = vrot.slane %v1362_v3, %v12966_v37  ;;  %v1431_v59 = vcombine.high %v13037_v48, %v13040_v49 }
 0x1ab   : > { %v1568_v63 = vcombine.low %v1545_v22, %v1553_v17  ;;  %v1569_v52 = vcombine.high %v1545_v22, %v1553_v17  ;;  %v11660_v17 = vpack.i.bf16 %v13277_v35, %v13289_v13 }
 0x1ac   : > { %21103 = vst [vmem:[#allocation9_spill] sm:$0xff] %v13343_v23 }
 0x1ad   : > { %11656 = vrot.lane.b32.xlu0 %v11655_v32, %s12731_s27  ;;  %11646 = vrot.lane.b32.xlu1 %v11645_v62, %s12730_s26  ;;  %v2060_v32 = vcombine.low %v2027_v60, %v2043_v58  ;;  %v2045_v62 = vcombine.high %v13292_v15, %v13280_v54  ;;  %v13302_v51 = vrot.slane %v1568_v63, %v12920_v18 }
 0x1ae   : > { %v13295_v61 = vpop.permute.xlu1 %864  ;;  %v1557_v33 = vpop.permute.xlu0 %1556  ;;  %v1583_v57 = vrot.slane %v1569_v52, %v12920_v18  ;;  %v2061_v52 = vcombine.high %v2027_v60, %v2043_v58 }
 0x1af   : > { %v1584_v9 = vcombine.low %v1549_v5, %v1557_v33  ;;  %v1585_v22 = vcombine.high %v1549_v5, %v1557_v33  ;;  %v13315_v6 = vrot.slane %v2060_v32, %v12966_v37  ;;  %v13325_v27 = vrot.slane %v2045_v62, %v12966_v37 }
 0x1b0   : > { %v13330_v32 = vrot.slane %v918_v16, %v12966_v37  ;;  %v13356_v16 = vrot.slane %v2061_v52, %v12966_v37 }
 0x1b1   : > { %v13306_v0 = vrot.slane %v1584_v9, %v12920_v18  ;;  %v1599_v29 = vrot.slane %v1585_v22, %v12920_v18  ;;  %11661 = vrot.lane.b32.xlu0 %v11660_v17, %s12731_s27 }
 0x1b2   : > { %v873_v5 = vpop.permute.xlu1 %872  ;;  %v869_v33 = vpop.permute.xlu0 %868  ;;  %21102 = vst [vmem:[#allocation8_spill] sm:$0xff] %v13330_v32 }
 0x1b3   : > { %v1601_v8 = vcombine.high %v13302_v51, %v13306_v0  ;;  %v1616_v7 = vcombine.low %v1583_v57, %v1599_v29  ;;  %v1617_v63 = vcombine.high %v1583_v57, %v1599_v29  ;;  %v954_v9 = vcombine.low %v13295_v61, %v873_v5 }
 0x1b4   : > { %v955_v40 = vcombine.high %v13295_v61, %v873_v5  ;;  %v1399_v61 = vcombine.high %v13015_v34, %v13007_v25 }
 0x1b5   : > { %v13319_v22 = vrot.slane %v1616_v7, %v12966_v37  ;;  %v13322_v17 = vrot.slane %v1601_v8, %v12966_v37  ;;  %v13337_v8 = vrot.slane %v1617_v63, %v12966_v37  ;;  %v13348_v62 = vrot.slane %v954_v9, %v12920_v18 }
 0x1b6   : > { %v1095_v1 = vpop.permute.xlu1 %1094  ;;  %v877_v57 = vpop.permute.xlu0 %876  ;;  %v21105_v63 = vmov 0.0   ;;  %v13363_v9 = vrot.slane %v1148_v28, %v12966_v37  ;;  %v21107_v28 = vcombine.low %v13059_v56, %v13043_v50 }
 0x1b7   : > { %v970_v58 = vcombine.low %v869_v33, %v877_v57  ;;  %v11670_v60 = vpack.i.bf16 %v13315_v6, %v13319_v22  ;;  %v11665_v7 = vpack.i.bf16 %v13325_v27, %v13322_v17  ;;  %v950_v49 = vcombine.high %v13330_v32, %v21105_v63 }
 0x1b8   : > { %21106 = vst [vmem:[#allocation11_spill] sm:$0xff] %v13363_v9  ;;  %v11675_v52 = vpack.i.bf16 %v13356_v16, %v13337_v8  ;;  %v1394_v48 = vcombine.high %v13343_v23, %v21105_v63  ;;  %v13385_v32 = vrot.slane %v1431_v59, %v12966_v37  ;;  %v1180_v50 = vcombine.high %v13363_v9, %v21105_v63 }
 0x1b9   : > { %v13351_v29 = vrot.slane %v970_v58, %v12920_v18  ;;  %11671 = vrot.lane.b32.xlu1 %v11670_v60, %s12730_s26  ;;  %11666 = vrot.lane.b32.xlu0 %v11665_v7, %s12732_s28  ;;  %v971_v58 = vcombine.high %v869_v33, %v877_v57  ;;  %v13378_v33 = vrot.slane %v21107_v28, %v12966_v37 }
 0x1ba   : > { %v1103_v53 = vpop.permute.xlu1 %1102  ;;  %v1099_v3 = vpop.permute.xlu0 %1098  ;;  %21109 = vst [vmem:[#allocation13_spill] sm:$0xff] %v13385_v32  ;;  %v1429_v59 = vrot.slane %v1415_v47, %v12920_v18  ;;  %v1413_v47 = vrot.slane %v1399_v61, %v12920_v18  ;;  %v21110_v61 = vcombine.high %v13028_v45, %v13031_v46 }
 0x1bb   : > { %21104 = vst [vmem:[#allocation10_spill] sm:$0xff] %v13351_v29  ;;  %v987_v7 = vcombine.high %v13348_v62, %v13351_v29  ;;  %v1184_v42 = vcombine.low %v1095_v1, %v1103_v53  ;;  %21108 = vst [vmem:[#allocation12_spill] sm:$0xff] %v13378_v33  ;;  %v1185_v57 = vcombine.high %v1095_v1, %v1103_v53 }
 0x1bc   : > { %v11680_v29 = vpack.i.bf16 %v1394_v48, %v950_v49  ;;  %v985_v1 = vrot.slane %v971_v58, %v12920_v18  ;;  %v705_v34 = vcombine.high %v13378_v33, %v21105_v63 }
 0x1bd   : > { %11676 = vrot.lane.b32.xlu0 %v11675_v52, %s12731_s27  ;;  %v13382_v60 = vrot.slane %v987_v7, %v12966_v37  ;;  %v969_v52 = vrot.slane %v955_v40, %v12920_v18  ;;  %v13399_v25 = vrot.slane %v1184_v42, %v12920_v18  ;;  %v13404_v48 = vrot.slane %v1185_v57, %v12920_v18 }
 0x1be   : > { %v13389_v5 = vpop.permute.xlu1 %1776  ;;  %v1107_v23 = vpop.permute.xlu0 %1106  ;;  %v951_v40 = vcombine.high %v13191_v38, %v21105_v63 }
 0x1bf   : > { %v1200_v56 = vcombine.low %v1099_v3, %v1107_v23  ;;  %v1201_v53 = vcombine.high %v1099_v3, %v1107_v23  ;;  %v11685_v7 = vpack.i.bf16 %v13385_v32, %v13382_v60  ;;  %v1002_v42 = vcombine.low %v969_v52, %v985_v1 }
 0x1c1   : > { %v13407_v49 = vrot.slane %v1200_v56, %v12920_v18  ;;  %v13410_v23 = vrot.slane %v1201_v53, %v12920_v18  ;;  %11681 = vrot.lane.b32.xlu0 %v11680_v29, %s12734_s30  ;;  %11686 = vrot.lane.b32.xlu1 %v11685_v7, %s12732_s28  ;;  %v11690_v56 = vpack.i.bf16 %v1180_v50, %v705_v34 }
 0x1c2   : > { %v13415_v3 = vpop.permute.xlu1 %1784  ;;  %v13417_v58 = vpop.permute.xlu0 %1780  ;;  %v1395_v29 = vcombine.high %v13197_v39, %v21105_v63  ;;  %v13432_v53 = vrot.slane %v21110_v61, %v12966_v37  ;;  %v1446_v7 = vcombine.low %v1413_v47, %v1429_v59  ;;  %v1003_v34 = vcombine.high %v969_v52, %v985_v1 }
 0x1c3   : > { %v1217_v28 = vcombine.high %v13399_v25, %v13407_v49  ;;  %v1232_v57 = vcombine.low %v13404_v48, %v13410_v23  ;;  %v13447_v32 = vrot.slane %v1002_v42, %v12966_v37  ;;  %v1447_v61 = vcombine.high %v1413_v47, %v1429_v59 }
 0x1c4   : > { %21111 = vst [vmem:[#allocation14_spill] sm:$0xff] %v13432_v53  ;;  %v11700_v50 = vpack.i.bf16 %v1395_v29, %v951_v40  ;;  %v21114_v1 = vcombine.low %v13090_v4, %v13085_v2  ;;  %v13460_v40 = vrot.slane %v1446_v7, %v12966_v37  ;;  %v1866_v59 = vcombine.low %v13389_v5, %v13415_v3 }
 0x1c5   : > { %11691 = vrot.lane.b32.xlu1 %v11690_v56, %s12734_s30  ;;  %v13435_v38 = vrot.slane %v1217_v28, %v12966_v37  ;;  %v13444_v56 = vrot.slane %v1232_v57, %v12966_v37  ;;  %v2081_v57 = vcombine.high %v13124_v10, %v13130_v11  ;;  %v2096_v42 = vcombine.low %v13132_v12, %v13140_v14 }
 0x1c6   : > { %v13437_v33 = vpop.permute.xlu1 %2228  ;;  %v13439_v9 = vpop.permute.xlu0 %1788  ;;  %v13457_v52 = vrot.slane %v21114_v1, %v12966_v37  ;;  %21116 = vst [vmem:[#allocation18_spill] sm:$0xff] %v13460_v40  ;;  %v11705_v7 = vpack.i.bf16 %v13460_v40, %v13447_v32  ;;  %v1181_v1 = vcombine.high %v13236_v41, %v21105_v63  ;;  %v706_v41 = vcombine.high %v13233_v20, %v21105_v63 }
 0x1c7   : > { %21112 = vst [vmem:[#allocation15_spill] sm:$0xff] %v13435_v38  ;;  %v11695_v39 = vpack.i.bf16 %v13435_v38, %v13432_v53  ;;  %21113 = vst [vmem:[#allocation16_spill] sm:$0xff] %v13444_v56  ;;  %v1882_v28 = vcombine.low %v13417_v58, %v13439_v9  ;;  %v2097_v53 = vcombine.high %v13132_v12, %v13140_v14 }
 0x1c8   : > { %21115 = vst [vmem:[#allocation17_spill] sm:$0xff] %v13457_v52  ;;  %v1815_v12 = vcombine.high %v13216_v31, %v13238_v19  ;;  %v1600_v14 = vcombine.low %v13302_v51, %v13306_v0  ;;  %v952_v40 = vcombine.high %v13248_v55, %v21105_v63  ;;  %v13517_v51 = vrot.slane %v2081_v57, %v12920_v18 }
 0x1c9   : > { %11701 = vrot.lane.b32.xlu1 %v11700_v50, %s12733_s29  ;;  %11696 = vrot.lane.b32.xlu0 %v11695_v39, %s12732_s28  ;;  %v11715_v50 = vpack.i.bf16 %v13444_v56, %v13457_v52  ;;  %v13477_v39 = vrot.slane %v1003_v34, %v12966_v37  ;;  %v13486_v38 = vrot.slane %v1882_v28, %v12920_v18 }
 0x1ca   : > { %v13468_v47 = vpop.permute.xlu1 %2236  ;;  %v13470_v29 = vpop.permute.xlu0 %2232  ;;  %v13489_v52 = vrot.slane %v1447_v61, %v12966_v37  ;;  %v2044_v34 = vcombine.low %v13292_v15, %v13280_v54  ;;  %v1233_v28 = vcombine.high %v13404_v48, %v13410_v23  ;;  %v13506_v61 = vrot.slane %v1866_v59, %v12920_v18 }
 0x1cb   : > { %21117 = vst [vmem:[#allocation19_spill] sm:$0xff] %v13477_v39  ;;  %v2318_v56 = vcombine.low %v13437_v33, %v13468_v47  ;;  %v11710_v15 = vpack.i.bf16 %v1181_v1, %v706_v41  ;;  %v1799_v0 = vcombine.high %v13200_v43, %v13214_v30  ;;  %v1814_v48 = vcombine.low %v13216_v31, %v13238_v19 }
 0x1cc   : > { %21118 = vst [vmem:[#allocation20_spill] sm:$0xff] %v13489_v52  ;;  %v11725_v54 = vpack.i.bf16 %v13489_v52, %v13477_v39  ;;  %v1899_v23 = vcombine.high %v13506_v61, %v13486_v38  ;;  %v1396_v55 = vcombine.high %v13266_v26, %v21105_v63  ;;  %v1798_v57 = vcombine.low %v13200_v43, %v13214_v30 }
 0x1cd   : > { %11716 = vrot.lane.b32.xlu1 %v11715_v50, %s12730_s26  ;;  %11706 = vrot.lane.b32.xlu0 %v11705_v7, %s12730_s26  ;;  %v13526_v59 = vrot.slane %v2318_v56, %v12920_v18  ;;  %v13538_v31 = vrot.slane %v1815_v12, %v12920_v18  ;;  %v13541_v56 = vrot.slane %v1233_v28, %v12966_v37 }
 0x1ce   : > { %v2227_v50 = vpop.permute.xlu1 %2226  ;;  %v13508_v7 = vpop.permute.xlu0 %2240  ;;  %v21121_v26 = vcombine.high %v13090_v4, %v13085_v2  ;;  %v13555_v30 = vrot.slane %v2044_v34, %v12966_v37  ;;  %v13558_v12 = vrot.slane %v1799_v0, %v12920_v18  ;;  %v13561_v28 = vrot.slane %v1814_v48, %v12920_v18 }
 0x1cf   : > { %v2334_v20 = vcombine.low %v13470_v29, %v13508_v7  ;;  %21119 = vst [vmem:[#allocation21_spill] sm:$0xff] %v13541_v56  ;;  %v1913_v52 = vrot.slane %v1899_v23, %v12966_v37  ;;  %v13573_v34 = vrot.slane %v1798_v57, %v12920_v18 }
 0x1d0   : > { %v13552_v43 = vrot.slane %v21121_v26, %v12966_v37  ;;  %21123 = vst [vmem:[#allocation24_spill] sm:$0xff] %v13555_v30  ;;  %v1846_v0 = vcombine.low %v13558_v12, %v13538_v31 }
 0x1d1   : > { %v13529_v1 = vrot.slane %v2334_v20, %v12920_v18  ;;  %11726 = vrot.lane.b32.xlu1 %v11725_v54, %s12731_s27  ;;  %11711 = vrot.lane.b32.xlu0 %v11710_v15, %s12733_s29  ;;  %v13544_v20 = vrot.slane %v1600_v14, %v12966_v37  ;;  %v11720_v15 = vpack.i.bf16 %v1396_v55, %v952_v40 }
 0x1d2   : > { %v2235_v19 = vpop.permute.xlu1 %2234  ;;  %v2231_v41 = vpop.permute.xlu0 %2230  ;;  %21122 = vst [vmem:[#allocation23_spill] sm:$0xff] %v13552_v43  ;;  %v13565_v40 = vrot.slane %v2096_v42, %v12920_v18  ;;  %v13568_v55 = vrot.slane %v2097_v53, %v12920_v18  ;;  %v11745_v42 = vpack.i.bf16 %v13541_v56, %v13552_v43  ;;  %v1831_v57 = vcombine.high %v13573_v34, %v13561_v28 }
 0x1d3   : > { %21120 = vst [vmem:[#allocation22_spill] sm:$0xff] %v13544_v20  ;;  %v2351_v54 = vcombine.high %v13526_v59, %v13529_v1  ;;  %v2250_v14 = vcombine.low %v2227_v50, %v2235_v19  ;;  %v2251_v2 = vcombine.high %v2227_v50, %v2235_v19  ;;  %v1632_v53 = vcombine.high %v13544_v20, %v21105_v63 }
 0x1d4   : > { %v13590_v39 = vcombine.high %v1913_v52, %v21105_v63  ;;  %v2076_v43 = vcombine.high %v13555_v30, %v21105_v63  ;;  %v1854_v30 = vrot.slane %v1846_v0, %v12966_v37  ;;  %v2319_v0 = vcombine.high %v13437_v33, %v13468_v47 }
 0x1d5   : > { %11721 = vrot.lane.b32.xlu0 %v11720_v15, %s12728_s24  ;;  %v2365_v4 = vrot.slane %v2351_v54, %v12966_v37  ;;  %v13587_v54 = vrot.slane %v2250_v14, %v12920_v18  ;;  %v13595_v20 = vrot.slane %v2251_v2, %v12920_v18  ;;  %v708_v2 = vcombine.high %v13289_v13, %v21105_v63 }
 0x1d6   : > { %v1547_v48 = vpop.permute.xlu1 %1546  ;;  %v2239_v26 = vpop.permute.xlu0 %2238  ;;  %21125 = vst [vmem:[#allocation26_spill] sm:$0xff] %v13590_v39  ;;  %v1183_v13 = vcombine.high %v13277_v35, %v21105_v63  ;;  %v2333_v56 = vrot.slane %v2319_v0, %v12920_v18  ;;  %v707_v0 = vcombine.high %v13224_v36, %v21105_v63  ;;  %v953_v36 = vcombine.high %v13241_v21, %v21105_v63 }
 0x1d7   : > { %v2266_v23 = vcombine.low %v2231_v41, %v2239_v26  ;;  %v2267_v50 = vcombine.high %v2231_v41, %v2239_v26  ;;  %v11730_v19 = vpack.i.bf16 %v2365_v4, %v1913_v52  ;;  %v13582_v15 = vcombine.high %v2365_v4, %v21105_v63 }
 0x1d8   : > { %v2335_v52 = vcombine.high %v13470_v29, %v13508_v7  ;;  %v2128_v29 = vcombine.low %v13517_v51, %v13568_v55  ;;  %v1883_v7 = vcombine.high %v13417_v58, %v13439_v9  ;;  %v1867_v9 = vcombine.high %v13389_v5, %v13415_v3 }
 0x1d9   : > { %21124 = vst [vmem:[#allocation25_spill] sm:$0xff] %v13582_v15  ;;  %v13598_v41 = vrot.slane %v2266_v23, %v12920_v18  ;;  %v13601_v4 = vrot.slane %v2267_v50, %v12920_v18  ;;  %11746 = vrot.lane.b32.xlu0 %v11745_v42, %s12731_s27  ;;  %11731 = vrot.lane.b32.xlu1 %v11730_v19, %s12732_s28 }
 0x1da   : > { %v1555_v14 = vpop.permute.xlu1 %1554  ;;  %v1551_v26 = vpop.permute.xlu0 %1550  ;;  %v11755_v19 = vpack.i.bf16 %v2076_v43, %v1632_v53  ;;  %v2129_v23 = vcombine.high %v13517_v51, %v13568_v55  ;;  %v13629_v53 = vrot.slane %v1831_v57, %v12966_v37  ;;  %v2349_v33 = vrot.slane %v2335_v52, %v12920_v18 }
 0x1db   : > { %v2283_v50 = vcombine.high %v13587_v54, %v13598_v41  ;;  %v2298_v42 = vcombine.low %v13595_v20, %v13601_v4  ;;  %v1637_v39 = vcombine.high %v1547_v48, %v1555_v14  ;;  %v1636_v35 = vcombine.low %v1547_v48, %v1555_v14 }
 0x1dc   : > { %v13640_v51 = vcombine.high %v1854_v30, %v21105_v63  ;;  %v1182_v3 = vcombine.high %v13227_v44, %v21105_v63 }
 0x1dd   : > { %11756 = vrot.lane.b32.xlu0 %v11755_v19, %s12734_s30  ;;  %v2306_v43 = vrot.slane %v2298_v42, %v12966_v37  ;;  %v13632_v15 = vrot.slane %v2283_v50, %v12966_v37  ;;  %v1897_v50 = vrot.slane %v1883_v7, %v12920_v18  ;;  %v1651_v48 = vrot.slane %v1637_v39, %v12920_v18 }
 0x1de   : > { %v13637_v58 = vpop.permute.xlu1 %2458  ;;  %v1559_v47 = vpop.permute.xlu0 %1558  ;;  %21126 = vst [vmem:[#allocation27_spill] sm:$0xff] %v13640_v51  ;;  %v11775_v39 = vpack.i.bf16 %v1183_v13, %v708_v2  ;;  %v11740_v2 = vpack.i.bf16 %v1182_v3, %v707_v0  ;;  %v1397_v3 = vcombine.high %v13260_v24, %v21105_v63  ;;  %v2366_v0 = vcombine.low %v2333_v56, %v2349_v33 }
 0x1df   : > { %v1652_v55 = vcombine.low %v1551_v26, %v1559_v47  ;;  %v1653_v42 = vcombine.high %v1551_v26, %v1559_v47  ;;  %v11770_v19 = vpack.i.bf16 %v2306_v43, %v1854_v30  ;;  %v13643_v57 = vcombine.high %v2306_v43, %v21105_v63 }
 0x1e0   : > { %v11735_v5 = vpack.i.bf16 %v13632_v15, %v13629_v53  ;;  %v13660_v26 = vrot.slane %v1636_v35, %v12920_v18  ;;  %v2143_v43 = vrot.slane %v2129_v23, %v12966_v37  ;;  %v1881_v47 = vrot.slane %v1867_v9, %v12920_v18 }
 0x1e1   : > { %21127 = vst [vmem:[#allocation28_spill] sm:$0xff] %v13643_v57  ;;  %v13653_v52 = vrot.slane %v1652_v55, %v12920_v18  ;;  %v1667_v30 = vrot.slane %v1653_v42, %v12920_v18  ;;  %11771 = vrot.lane.b32.xlu0 %v11770_v19, %s12730_s26  ;;  %v2367_v55 = vcombine.high %v2333_v56, %v2349_v33 }
 0x1e2   : > { %11736 = vrot.lane.b32.xlu1 %v11735_v5, %s12732_s28  ;;  %v13663_v7 = vpop.permute.xlu1 %2466  ;;  %v13665_v44 = vpop.permute.xlu0 %2462  ;;  %v21128_v35 = vcombine.low %v13124_v10, %v13130_v11  ;;  %v1915_v13 = vcombine.high %v1881_v47, %v1897_v50  ;;  %v13686_v9 = vrot.slane %v2128_v29, %v12966_v37  ;;  %v13702_v29 = vcombine.high %v2143_v43, %v21105_v63 }
 0x1e3   : > { %v1684_v42 = vcombine.low %v1651_v48, %v1667_v30  ;;  %v1685_v19 = vcombine.high %v1651_v48, %v1667_v30  ;;  %v1669_v14 = vcombine.high %v13660_v26, %v13653_v52  ;;  %v2299_v56 = vcombine.high %v13595_v20, %v13601_v4 }
 0x1e4   : > { %v13675_v5 = vrot.slane %v21128_v35, %v12920_v18  ;;  %v13712_v24 = vrot.slane %v1915_v13, %v12966_v37  ;;  %v1847_v20 = vcombine.high %v13558_v12, %v13538_v31 }
 0x1e5   : > { %11776 = vrot.lane.b32.xlu0 %v11775_v39, %s12729_s25  ;;  %v13683_v23 = vrot.slane %v1684_v42, %v12966_v37  ;;  %v1699_v10 = vrot.slane %v1685_v19, %v12966_v37  ;;  %v13699_v39 = vrot.slane %v2367_v55, %v12966_v37  ;;  %v11750_v42 = vpack.i.bf16 %v1397_v3, %v953_v36 }
 0x1e6   : > { %11741 = vrot.lane.b32.xlu1 %v11740_v2, %s12728_s24  ;;  %v2457_v11 = vpop.permute.xlu1 %2456  ;;  %v13690_v48 = vpop.permute.xlu0 %2470  ;;  %v2113_v21 = vcombine.high %v13675_v5, %v13565_v40  ;;  %v13705_v19 = vrot.slane %v1669_v14, %v12966_v37  ;;  %v1914_v2 = vcombine.low %v1881_v47, %v1897_v50  ;;  %v13725_v36 = vrot.slane %v2366_v0, %v12966_v37 }
 0x1e7   : > { %v11785_v30 = vpack.i.bf16 %v13686_v9, %v13683_v23  ;;  %v13708_v35 = vcombine.high %v1699_v10, %v21105_v63  ;;  %v11790_v33 = vpack.i.bf16 %v13699_v39, %v13712_v24  ;;  %v1635_v3 = vcombine.high %v13337_v8, %v21105_v63 }
 0x1e8   : > { %v13716_v57 = vrot.slane %v2113_v21, %v12966_v37  ;;  %v13730_v13 = vrot.slane %v1914_v2, %v12966_v37  ;;  %v13768_v12 = vrot.slane %v1847_v20, %v12966_v37 }
 0x1e9   : > { %21129 = vst [vmem:[#allocation29_spill] sm:$0xff] %v13708_v35  ;;  %11786 = vrot.lane.b32.xlu0 %v11785_v30, %s12730_s26 }
 0x1ea   : > { %11751 = vrot.lane.b32.xlu1 %v11750_v42, %s12729_s25  ;;  %v2465_v55 = vpop.permute.xlu1 %2464  ;;  %v2461_v51 = vpop.permute.xlu0 %2460  ;;  %v11760_v14 = vpack.i.bf16 %v13716_v57, %v13705_v19  ;;  %v11805_v42 = vpack.i.bf16 %v2143_v43, %v1699_v10  ;;  %v11765_v0 = vpack.i.bf16 %v13725_v36, %v13730_v13  ;;  %v2564_v43 = vcombine.low %v13665_v44, %v13690_v48 }
 0x1eb   : > { %v2480_v50 = vcombine.low %v2457_v11, %v2465_v55  ;;  %v2481_v2 = vcombine.high %v2457_v11, %v2465_v55  ;;  %v13760_v11 = vrot.slane %v2299_v56, %v12966_v37  ;;  %v1216_v55 = vcombine.low %v13399_v25, %v13407_v49 }
 0x1ec   : > { %v2565_v56 = vcombine.high %v13665_v44, %v13690_v48  ;;  %v2549_v25 = vcombine.high %v13637_v58, %v13663_v7  ;;  %v2078_v44 = vcombine.high %v13315_v6, %v21105_v63  ;;  %v21130_v6 = vcombine.low %v13028_v45, %v13031_v46 }
 0x1ed   : > { %11791 = vrot.lane.b32.xlu0 %v11790_v33, %s12731_s27  ;;  %v1633_v33 = vcombine.high %v13322_v17, %v21105_v63  ;;  %v13743_v35 = vrot.slane %v2480_v50, %v12920_v18  ;;  %v2077_v17 = vcombine.high %v13325_v27, %v21105_v63  ;;  %v2495_v31 = vrot.slane %v2481_v2, %v12920_v18 }
 0x1ee   : > { %11761 = vrot.lane.b32.xlu1 %v11760_v14, %s12732_s28  ;;  %v2469_v47 = vpop.permute.xlu0 %2468  ;;  %v2079_v14 = vcombine.high %v13356_v16, %v21105_v63  ;;  %v2548_v27 = vcombine.low %v13637_v58, %v13663_v7  ;;  %v13795_v48 = vrot.slane %v1216_v55, %v12966_v37  ;;  %v1019_v46 = vcombine.high %v13382_v60, %v21105_v63 }
 0x1ef   : > { %v2496_v21 = vcombine.low %v2461_v51, %v2469_v47  ;;  %v2497_v30 = vcombine.high %v2461_v51, %v2469_v47  ;;  %v11780_v10 = vpack.i.bf16 %v2077_v17, %v1633_v33  ;;  %v13809_v33 = vrot.slane %v21130_v6, %v12966_v37 }
 0x1f0   : > { %v11810_v51 = vpack.i.bf16 %v2079_v14, %v1635_v3  ;;  %v13778_v3 = vrot.slane %v2564_v43, %v12920_v18  ;;  %v13789_v49 = vrot.slane %v2548_v27, %v12920_v18  ;;  %v2563_v14 = vrot.slane %v2549_v25, %v12920_v18 }
 0x1f1   : > { %v13746_v8 = vrot.slane %v2496_v21, %v12920_v18  ;;  %11806 = vrot.lane.b32.xlu0 %v11805_v42, %s12731_s27  ;;  %v2511_v4 = vrot.slane %v2497_v30, %v12920_v18  ;;  %v11795_v21 = vpack.i.bf16 %v13760_v11, %v13768_v12  ;;  %v1634_v30 = vcombine.high %v13319_v22, %v21105_v63 }
 0x1f2   : > { %11766 = vrot.lane.b32.xlu1 %v11765_v0, %s12730_s26  ;;  %v2579_v0 = vrot.slane %v2565_v56, %v12920_v18  ;;  %v2581_v58 = vcombine.high %v13789_v49, %v13778_v3  ;;  %v1248_v20 = vcombine.high %v13795_v48, %v21105_v63  ;;  %v773_v45 = vcombine.high %v13809_v33, %v21105_v63  ;;  %v21161_v18 = vld [vmem:[#allocation8_spill] sm:$0xff] }
 0x1f3   : > { %v2513_v16 = vcombine.high %v13743_v35, %v13746_v8  ;;  %v2528_v50 = vcombine.low %v2495_v31, %v2511_v4  ;;  %v2529_v42 = vcombine.high %v2495_v31, %v2511_v4  ;;  %v11800_v7 = vpack.i.bf16 %v2078_v44, %v1634_v30 }
 0x1f4   : > { %v2596_v17 = vcombine.low %v2563_v14, %v2579_v0  ;;  %v13819_v4 = vrot.slane %v2581_v58, %v12966_v37  ;;  %v2350_v31 = vcombine.low %v13526_v59, %v13529_v1  ;;  %v2597_v27 = vcombine.high %v2563_v14, %v2579_v0  ;;  %v21137_v1 = vld [vmem:[#allocation15_spill] sm:$0xff] }
 0x1f5   : > { %11811 = vrot.lane.b32.xlu0 %v11810_v51, %s12729_s25  ;;  %v13773_v47 = vrot.slane %v2513_v16, %v12966_v37  ;;  %v13798_v22 = vrot.slane %v2528_v50, %v12966_v37  ;;  %v13814_v2 = vrot.slane %v2529_v42, %v12966_v37  ;;  %v11820_v16 = vpack.i.bf16 %v1248_v20, %v773_v45  ;;  %v21131_v51 = vld [vmem:[#allocation10_spill] sm:$0xff]  ;;  %v21133_v50 = vld [vmem:[#allocation13_spill] sm:$0xff] }
 0x1f6   : > { %11781 = vrot.lane.b32.xlu1 %v11780_v10, %s12733_s29  ;;  %v21132_v43 = vcombine.low %v13348_v62, %v21131_v51  ;;  %v13838_v55 = vrot.slane %v2596_v17, %v12966_v37  ;;  %v1463_v56 = vcombine.high %v21133_v50, %v21105_v63  ;;  %v1898_v60 = vcombine.low %v13506_v61, %v13486_v38  ;;  %v21134_v62 = vld [vmem:[#allocation6_spill] sm:$0xff] }
 0x1f7   : > { %v1249_v25 = vcombine.high %v21137_v1, %v21105_v63  ;;  %v2282_v44 = vcombine.low %v13587_v54, %v13598_v41  ;;  %v13858_v0 = vrot.slane %v2350_v31, %v12966_v37  ;;  %v13861_v38 = vrot.slane %v2597_v27, %v12966_v37  ;;  %v21139_v51 = vld [vmem:[#allocation18_spill] sm:$0xff]  ;;  %v21142_v1 = vld [vmem:[#allocation19_spill] sm:$0xff] }
 0x1f8   : > { %v13833_v10 = vrot.slane %v21132_v43, %v12966_v37  ;;  %v11825_v42 = vpack.i.bf16 %v1463_v56, %v1019_v46  ;;  %v1830_v58 = vcombine.low %v13573_v34, %v13561_v28  ;;  %v13871_v54 = vrot.slane %v1898_v60, %v12966_v37  ;;  %v21141_v60 = vld [vmem:[#allocation17_spill] sm:$0xff] }
 0x1f9   : > { %2621 = vrot.lane.b32.xlu0 %v13773_v47, %s12732_s28  ;;  %v1020_v14 = vcombine.high %v13447_v32, %v21105_v63  ;;  %v13880_v20 = vrot.slane %v2282_v44, %v12966_v37  ;;  %v1668_v28 = vcombine.low %v13660_v26, %v13653_v52  ;;  %v2382_v45 = vcombine.high %v13858_v0, %v21105_v63 }
 0x1fa   : > { %11796 = vrot.lane.b32.xlu1 %v11795_v21, %s12731_s27  ;;  %v21135_v21 = vld [vmem:[#allocation7_spill] sm:$0xff]  ;;  %v1018_v61 = vcombine.high %v13833_v10, %v21105_v63  ;;  %v2112_v46 = vcombine.low %v13675_v5, %v13565_v40  ;;  %v1464_v32 = vcombine.high %v21139_v51, %v21105_v63  ;;  %v1930_v52 = vcombine.high %v13871_v54, %v21105_v63  ;;  %v21140_v5 = vld [vmem:[#allocation16_spill] sm:$0xff] }
 0x1fb   : > { %v21136_v30 = vcombine.low %v21134_v62, %v21135_v21  ;;  %v13898_v26 = vrot.slane %v1668_v28, %v12966_v37  ;;  %v2314_v40 = vcombine.high %v13880_v20, %v21105_v63  ;;  %v1250_v31 = vcombine.high %v21140_v5, %v21105_v63  ;;  %v21145_v28 = vld [vmem:[#allocation23_spill] sm:$0xff] }
 0x1fc   : > { %v11835_v43 = vpack.i.bf16 %v1464_v32, %v1020_v14  ;;  %v11840_v27 = vpack.i.bf16 %v2382_v45, %v1930_v52  ;;  %v13908_v56 = vrot.slane %v2112_v46, %v12966_v37  ;;  %v775_v62 = vcombine.high %v21141_v60, %v21105_v63  ;;  %v21146_v52 = vld [vmem:[#allocation25_spill] sm:$0xff] }
 0x1fd   : > { %2629 = vrot.lane.b32.xlu0 %v13798_v22, %s12730_s26  ;;  %v13851_v59 = vrot.slane %v21136_v30, %v12966_v37  ;;  %v1700_v30 = vcombine.high %v13898_v26, %v21105_v63  ;;  %v1701_v46 = vcombine.high %v13705_v19, %v21105_v63  ;;  %v1863_v32 = vcombine.high %v13629_v53, %v21105_v63 }
 0x1fe   : > { %11801 = vrot.lane.b32.xlu1 %v11800_v7, %s12728_s24  ;;  %v21138_v7 = vld [vmem:[#allocation14_spill] sm:$0xff]  ;;  %v11850_v44 = vpack.i.bf16 %v1250_v31, %v775_v62  ;;  %v2145_v5 = vcombine.high %v13716_v57, %v21105_v63  ;;  %v2384_v19 = vcombine.high %v13725_v36, %v21105_v63  ;;  %v2146_v53 = vcombine.high %v13686_v9, %v21105_v63 }
 0x1ff   : > { %v774_v6 = vcombine.high %v21138_v7, %v21105_v63  ;;  %v1462_v41 = vcombine.high %v13851_v59, %v21105_v63  ;;  %v1932_v57 = vcombine.high %v13730_v13, %v21105_v63  ;;  %v2512_v36 = vcombine.low %v13743_v35, %v13746_v8  ;;  %v21151_v8 = vld [vmem:[#allocation27_spill] sm:$0xff] }
 0x200   : > { %v1933_v9 = vcombine.high %v13712_v24, %v21105_v63  ;;  %v1865_v35 = vcombine.high %v13768_v12, %v21105_v63  ;;  %v21150_v24 = vld [vmem:[#allocation28_spill] sm:$0xff]  ;;  %v2545_v12 = vcombine.high %v13773_v47, %v21105_v63 }
 0x201   : > { %2637 = vrot.lane.b32.xlu0 %v13814_v2, %s12731_s27  ;;  %v11830_v34 = vpack.i.bf16 %v1249_v25, %v774_v6  ;;  %v11815_v17 = vpack.i.bf16 %v1462_v41, %v1018_v61  ;;  %v1021_v25 = vcombine.high %v21142_v1, %v21105_v63  ;;  %v21143_v61 = vld [vmem:[#allocation20_spill] sm:$0xff]  ;;  %v21144_v6 = vld [vmem:[#allocation21_spill] sm:$0xff] }
 0x202   : > { %2649 = vrot.lane.b32.xlu1 %v13819_v4, %s12732_s28  ;;  %v1251_v41 = vcombine.high %v21144_v6, %v21105_v63 }
 0x205   : > { %11821 = vrot.lane.b32.xlu0 %v11820_v16, %s12734_s30  ;;  %v13889_v16 = vrot.slane %v1830_v58, %v12966_v37  ;;  %v1465_v58 = vcombine.high %v21143_v61, %v21105_v63 }
 0x206   : > { %2657 = vrot.lane.b32.xlu1 %v13838_v55, %s12730_s26 }
 0x207   : > { %v1862_v50 = vcombine.high %v13889_v16, %v21105_v63  ;;  %v11855_v14 = vpack.i.bf16 %v1465_v58, %v1021_v25  ;;  %v13971_v25 = vrot.slane %v2512_v36, %v12966_v37  ;;  %v2580_v58 = vcombine.low %v13789_v49, %v13778_v3  ;;  %v21154_v3 = vld [vmem:[#allocation29_spill] sm:$0xff] }
 0x208   : > { %v21155_v49 = vpack.i.bf16 %v13702_v29, %v21154_v3  ;;  %v2613_v29 = vcombine.high %v13819_v4, %v21105_v63 }
 0x209   : > { %11826 = vrot.lane.b32.xlu0 %v11825_v42, %s12733_s29  ;;  %v11845_v21 = vpack.i.bf16 %v2314_v40, %v1862_v50  ;;  %v2144_v42 = vcombine.high %v13908_v56, %v21105_v63  ;;  %21149 = vst [vmem:[#allocation10_spill] sm:$0xff] %v13971_v25  ;;  %v2544_v61 = vcombine.high %v13971_v25, %v21105_v63 }
 0x20a   : > { %2665 = vrot.lane.b32.xlu1 %v13861_v38, %s12731_s27 }
 0x20b   : > { %v11860_v7 = vpack.i.bf16 %v2144_v42, %v1700_v30 }
 0x20d   : > { %11831 = vrot.lane.b32.xlu0 %v11830_v34, %s12733_s29  ;;  %v776_v34 = vcombine.high %v21145_v28, %v21105_v63  ;;  %v2546_v28 = vcombine.high %v13798_v22, %v21105_v63 }
 0x20e   : > { %11816 = vrot.lane.b32.xlu1 %v11815_v17, %s12734_s30  ;;  %v2315_v17 = vcombine.high %v13632_v15, %v21105_v63  ;;  %v1702_v15 = vcombine.high %v13683_v23, %v21105_v63  ;;  %v2385_v23 = vcombine.high %v13699_v39, %v21105_v63  ;;  %v2317_v39 = vcombine.high %v13760_v11, %v21105_v63 }
 0x20f   : > { %v11875_v51 = vpack.i.bf16 %v1251_v41, %v776_v34  ;;  %v13997_v41 = vrot.slane %v2580_v58, %v12966_v37 }
 0x210   : > { %v11870_v31 = vpack.i.bf16 %v2315_v17, %v1863_v32  ;;  %v11895_v62 = vpack.i.bf16 %v2146_v53, %v1702_v15  ;;  %v11900_v1 = vpack.i.bf16 %v2385_v23, %v1933_v9  ;;  %v11905_v11 = vpack.i.bf16 %v2317_v39, %v1865_v35 }
 0x211   : > { %11836 = vrot.lane.b32.xlu0 %v11835_v43, %s12728_s24  ;;  %v21147_v43 = vld [vmem:[#allocation26_spill] sm:$0xff]  ;;  %21153 = vst [vmem:[#allocation13_spill] sm:$0xff] %v13997_v41  ;;  %v2612_v47 = vcombine.high %v13997_v41, %v21105_v63  ;;  %v2614_v32 = vcombine.high %v13838_v55, %v21105_v63  ;;  %v21156_v55 = vlaneseq }
 0x212   : > { %11841 = vrot.lane.b32.xlu1 %v11840_v27, %s12734_s30  ;;  %v21148_v40 = vpack.i.bf16 %v21146_v52, %v21147_v43  ;;  %v11880_v27 = vpack.i.bf16 %v2145_v5, %v1701_v46  ;;  %v2547_v46 = vcombine.high %v13814_v2, %v21105_v63  ;;  %v12741_v52 = vmov 0  }
 0x213   : > { %v13955_v60 = vpop.permute.xlu1 %11636  ;;  %11916 = vset.pattern.permute.xlu0 %v12741_v52  ;;  %11915 = vset.pattern.permute.xlu1 %v12741_v52  ;;  %v2615_v43 = vcombine.high %v13861_v38, %v21105_v63  ;;  %v3065_v38 = vld [vmem:[%s20276_s8] sm:$0xff] }
 0x215   : > { %11846 = vrot.lane.b32.xlu0 %v11845_v21, %s12734_s30  ;;  %v11885_v21 = vpack.i.bf16 %v2384_v19, %v1932_v57  ;;  %v3061_v19 = vstv %s12808_s18 }
 0x216   : > { %11851 = vrot.lane.b32.xlu1 %v11850_v44, %s12728_s24  ;;  %v21152_v44 = vpack.i.bf16 %v21150_v24, %v21151_v8 }
 0x219   : > { %11861 = vrot.lane.b32.xlu0 %v11860_v7, %s12734_s30 }
 0x21a   : > { %11856 = vrot.lane.b32.xlu1 %v11855_v14, %s12729_s25 }
 0x21b   : > { %v13931_v45 = vpop.permute.xlu0 %11651  ;;  %v13965_v30 = vpop.permute.xlu1 %11641 }
 0x21d   : > { %11866 = vrot.lane.b32.xlu0 %v21148_v40, %s12733_s29 }
 0x21e   : > { %11876 = vrot.lane.b32.xlu1 %v11875_v51, %s12729_s25 }
 0x21f   : > { %v13950_v50 = vpop.permute.xlu0 %11656  ;;  %v13988_v7 = vpop.permute.xlu1 %11646 }
 0x221   : > { %11871 = vrot.lane.b32.xlu0 %v11870_v31, %s12733_s29  ;;  %v3060_v31 = vand.u32 127, %v21156_v55 }
 0x222   : > { %11881 = vrot.lane.b32.xlu1 %v11880_v27, %s12733_s29 }
 0x223   : > { %v13968_v13 = vpop.permute.xlu0 %11661  ;;  %vm3062_vm3 = vcmp.eq.s32.totalorder %v3060_v31, %v3061_v19  ;;  %v11639_v19 = vunpack.i.h.bf16 %v13955_v60 }
 0x224   : > { %v11456_v36 = vsel %vm3062_vm3, 1.0, %v21105_v63 }
 0x225   : > { %11896 = vrot.lane.b32.xlu0 %v11895_v62, %s12728_s24  ;;  %v3069_v62 = vmul.f32 %v11456_v36, %v3065_v38  ;;  %v11638_v38 = vunpack.i.l.bf16 %v13955_v60 }
 0x226   : > { %11886 = vrot.lane.b32.xlu1 %v11885_v21, %s12728_s24  ;;  %v3067_v21 = vld [vmem:[%s20276_s8 + $0x10] sm:$0xff] }
 0x227   : > { %v3074_v39 = vsel %vm3073_vm4, %v3069_v62, 0.0  ;;  %v3071_v35 = vmul.f32 %v11456_v36, %v3067_v21 }
 0x229   : > { %11901 = vrot.lane.b32.xlu0 %v11900_v1, %s12729_s25 }
 0x22a   : > { %11891 = vrot.lane.b32.xlu1 %v21152_v44, %s12728_s24  ;;  %v3080_v44 = vsel %vm3073_vm4, %v3071_v35, 0.0  ;;  %v11643_v35 = vunpack.i.l.bf16 %v13965_v30 }
 0x22b   : > { %v13982_v42 = vpop.permute.xlu0 %11666  ;;  %v13994_v6 = vpop.permute.xlu1 %11671 }
 0x22d   : > { %2617 = vrot.lane.b32.xlu0 %v2544_v61, %s12734_s30 }
 0x22e   : > { %11906 = vrot.lane.b32.xlu1 %v11905_v11, %s12729_s25  ;;  %v3066_v11 = vld [vmem:[%s20276_s8 + $0x8] sm:$0xff] }
 0x22f   : > { %v13999_v14 = vpop.permute.xlu0 %11676  ;;  %v3070_v3 = vmul.f32 %v11456_v36, %v3066_v11  ;;  %v21160_v11 = vld [vmem:[#allocation9_spill] sm:$0xff] }
 0x231   : > { %2625 = vrot.lane.b32.xlu0 %v2545_v12, %s12733_s29 }
 0x232   : > { %11911 = vrot.lane.b32.xlu1 %v21155_v49, %s12729_s25 }
 0x233   : > { %v14008_v34 = vpop.permute.xlu1 %11686  ;;  %v14014_v17 = vpop.permute.xlu0 %11681 }
 0x234   : > { %v11683_v62 = vunpack.i.l.bf16 %v14014_v17  ;;  %v11689_v25 = vunpack.i.h.bf16 %v14008_v34 }
 0x235   : > { %2633 = vrot.lane.b32.xlu0 %v2546_v28, %s12728_s24  ;;  %v3068_v28 = vld [vmem:[%s20276_s8 + $0x18] sm:$0xff] }
 0x236   : > { %2645 = vrot.lane.b32.xlu1 %v2612_v47, %s12734_s30 }
 0x237   : > { %v14021_v22 = vpop.permute.xlu1 %11691 }
 0x238   : > { %v11694_v60 = vunpack.i.h.bf16 %v14021_v22 }
 0x239   : > { %2641 = vrot.lane.b32.xlu0 %v2547_v46, %s12729_s25  ;;  %v3077_v46 = vsel %vm3073_vm4, %v3070_v3, 0.0  ;;  %v11649_v3 = vunpack.i.h.bf16 %v13988_v7 }
 0x23a   : > { %2653 = vrot.lane.b32.xlu1 %v2613_v29, %s12733_s29  ;;  %v3072_v29 = vmul.f32 %v11456_v36, %v3068_v28  ;;  %v11684_v36 = vunpack.i.h.bf16 %v14014_v17  ;;  %v11648_v28 = vunpack.i.l.bf16 %v13988_v7  ;;  %v1078_v7 = vsel %vm833_vm5, %v21161_v18, %v11683_v62  ;;  %v21162_v18 = vld [vmem:[#allocation11_spill] sm:$0xff] }
 0x23b   : > { %v14024_v51 = vpop.permute.xlu0 %11696  ;;  %v14031_v4 = vpop.permute.xlu1 %11701  ;;  %v1308_v62 = vsel %vm833_vm5, %v21162_v18, %v11694_v60  ;;  %v11688_v17 = vunpack.i.l.bf16 %v14008_v34 }
 0x23c   : > { %v1522_v37 = vsel %vm833_vm5, %v21160_v11, %v11684_v36  ;;  %v11704_v63 = vunpack.i.h.bf16 %v14031_v4 }
 0x23d   : > { %v1523_v41 = vsel %vm835_vm6, %v1522_v37, %v11639_v19 }
 0x23e   : > { %2661 = vrot.lane.b32.xlu1 %v2614_v32, %s12728_s24  ;;  %v1524_v11 = vsel %vm837_vm7, %v1523_v41, %v11704_v63 }
 0x23f   : > { %v14029_v2 = vpop.permute.xlu0 %11706  ;;  %v14038_v5 = vpop.permute.xlu1 %11716 }
 0x242   : > { %2669 = vrot.lane.b32.xlu1 %v2615_v43, %s12729_s25  ;;  %v3083_v43 = vsel %vm3073_vm4, %v3072_v29, 0.0  ;;  %v11668_v29 = vunpack.i.l.bf16 %v13982_v42 }
 0x243   : > { %v14036_v40 = vpop.permute.xlu0 %11711  ;;  %v14046_v53 = vpop.permute.xlu1 %11726 }
 0x244   : > { %v11713_v60 = vunpack.i.l.bf16 %v14036_v40 }
 0x247   : > { %v14040_v15 = vpop.permute.xlu0 %11721 }
 0x248   : > { %v11723_v37 = vunpack.i.l.bf16 %v14040_v15 }
 0x24b   : > { %v14044_v27 = vpop.permute.xlu0 %11746  ;;  %v14053_v23 = vpop.permute.xlu1 %11731 }
 0x24f   : > { %v14051_v57 = vpop.permute.xlu0 %11756 }
 0x250   : > { %v11759_v63 = vunpack.i.h.bf16 %v14051_v57  ;;  %v11758_v41 = vunpack.i.l.bf16 %v14051_v57 }
 0x253   : > { %v14059_v9 = vpop.permute.xlu0 %11771 }
 0x254   : > { %v14061_v1 = vpop.permute.xlu1 %11736 }
 0x257   : > { %v14064_v24 = vpop.permute.xlu0 %11776 }
 0x258   : > { %v14066_v8 = vpop.permute.xlu1 %11741  ;;  %3075 = vadd.xlane.f32.xlu0 %v3074_v39  ;;  %v11644_v39 = vunpack.i.h.bf16 %v13965_v30  ;;  %v11669_v30 = vunpack.i.h.bf16 %v13982_v42 }
 0x25b   : > { %v14069_v61 = vpop.permute.xlu0 %11786 }
 0x25c   : > { %v14071_v58 = vpop.permute.xlu1 %11751  ;;  %3081 = vadd.xlane.f32.xlu0 %v3080_v44 }
 0x25f   : > { %v14076_v12 = vpop.permute.xlu0 %11791 }
 0x260   : > { %v14078_v49 = vpop.permute.xlu1 %11761 }
 0x263   : > { %v14083_v47 = vpop.permute.xlu0 %11806 }
 0x264   : > { %21157 = vst [vmem:[#allocation6_spill] sm:$0xff] %v14083_v47  ;;  %v14086_v32 = vpop.permute.xlu1 %11766  ;;  %v11714_v47 = vunpack.i.h.bf16 %v14036_v40  ;;  %v2811_v40 = vld [vmem:[%s20270_s2] sm:$0xff] }
 0x266   : > { %3078 = vadd.xlane.f32.xlu1 %v3077_v46  ;;  %v11693_v46 = vunpack.i.l.bf16 %v14021_v22  ;;  %v11703_v22 = vunpack.i.l.bf16 %v14031_v4 }
 0x267   : > { %v14088_v52 = vpop.permute.xlu0 %11811 }
 0x268   : > { %v14091_v55 = vpop.permute.xlu1 %11781 }
 0x26a   : > { %3084 = vadd.xlane.f32.xlu1 %v3083_v43  ;;  %v1079_v43 = vsel %vm835_vm6, %v1078_v7, %v11638_v38  ;;  %v11724_v38 = vunpack.i.h.bf16 %v14040_v15  ;;  %v21164_v7 = vld [vmem:[#allocation24_spill] sm:$0xff]  ;;  %v21166_v15 = vunpack.i.l.bf16 %v13931_v45 }
 0x26b   : > { %v14093_v31 = vpop.permute.xlu0 %2621  ;;  %v1080_v36 = vsel %vm837_vm7, %v1079_v43, %v11703_v22  ;;  %v2204_v43 = vsel %vm833_vm5, %v21164_v7, %v11759_v63 }
 0x26c   : > { %21158 = vst [vmem:[#allocation7_spill] sm:$0xff] %v14093_v31  ;;  %v14099_v21 = vpop.permute.xlu1 %11796 }
 0x26f   : > { %v14113_v44 = vpop.permute.xlu0 %2629 }
 0x270   : > { %21159 = vst [vmem:[#allocation15_spill] sm:$0xff] %v14113_v44  ;;  %v14121_v31 = vpop.permute.xlu1 %11801  ;;  %v21163_v44 = vld [vmem:[#allocation12_spill] sm:$0xff] }
 0x271   : > { %v834_v4 = vsel %vm833_vm5, %v21163_v44, %v11693_v46  ;;  %v1309_v46 = vsel %vm835_vm6, %v1308_v62, %v11644_v39  ;;  %v1525_v39 = vsel %vm839_vm8, %v1524_v11, %v11649_v3  ;;  %v11708_v62 = vunpack.i.l.bf16 %v14029_v2 }
 0x272   : > { %v836_v44 = vsel %vm835_vm6, %v834_v4, %v11643_v35  ;;  %v1081_v35 = vsel %vm839_vm8, %v1080_v36, %v11648_v28  ;;  %v1310_v4 = vsel %vm837_vm7, %v1309_v46, %v11714_v47  ;;  %v1526_v11 = vsel %vm841_vm9, %v1525_v39, %v11724_v38  ;;  %v21165_v47 = vld [vmem:[#allocation22_spill] sm:$0xff] }
 0x273   : > { %v14137_v42 = vpop.permute.xlu0 %2637  ;;  %v838_v19 = vsel %vm837_vm7, %v836_v44, %v11713_v60  ;;  %v1082_v36 = vsel %vm841_vm9, %v1081_v35, %v11723_v37  ;;  %v1760_v60 = vsel %vm833_vm5, %v21165_v47, %v11758_v41  ;;  %v11744_v44 = vunpack.i.h.bf16 %v14066_v8 }
 0x274   : > { %v14143_v18 = vpop.permute.xlu1 %2649  ;;  %v11743_v46 = vunpack.i.l.bf16 %v14066_v8  ;;  %v840_v28 = vsel %vm839_vm8, %v838_v19, %v21166_v15  ;;  %v21167_v3 = vunpack.i.h.bf16 %v13931_v45  ;;  %v11754_v38 = vunpack.i.h.bf16 %v14071_v58 }
 0x275   : > { %v11753_v35 = vunpack.i.l.bf16 %v14071_v58  ;;  %v21168_v8 = vunpack.i.l.bf16 %v13950_v50  ;;  %v21169_v45 = vunpack.i.h.bf16 %v13950_v50  ;;  %v2812_v58 = vld [vmem:[%s20270_s2 + $0x8] sm:$0xff]  ;;  %v14205_v47 = vsel %vm835_vm6, %v2204_v43, %v11669_v30 }
 0x276   : > { %v1311_v37 = vsel %vm839_vm8, %v1310_v4, %v21167_v3  ;;  %v14202_v3 = vsel %vm835_vm6, %v1760_v60, %v11668_v29  ;;  %v11779_v30 = vunpack.i.h.bf16 %v14064_v24  ;;  %v11778_v43 = vunpack.i.l.bf16 %v14064_v24 }
 0x277   : > { %v14157_v22 = vpop.permute.xlu0 %11821  ;;  %v1083_v19 = vsel %vm843_vm10, %v1082_v36, %v21168_v8  ;;  %v1527_v15 = vsel %vm843_vm10, %v1526_v11, %v21169_v45  ;;  %v842_v11 = vsel %vm841_vm9, %v840_v28, %v11743_v46  ;;  %v1312_v8 = vsel %vm841_vm9, %v1311_v37, %v11744_v44  ;;  %v2813_v44 = vld [vmem:[%s20271_s3] sm:$0xff] }
 0x278   : > { %v14163_v57 = vpop.permute.xlu1 %2657  ;;  %v1528_v29 = vsel %vm845_vm11, %v1527_v15, %v11754_v38  ;;  %v11824_v24 = vunpack.i.h.bf16 %v14157_v22 }
 0x279   : > { %v2694_v28 = vrot.slane %v1528_v29, 4 }
 0x27a   : > { %v1315_v34 = vsel %vm833_vm5, %v13795_v48, %v11824_v24  ;;  %v11783_v48 = vunpack.i.l.bf16 %v14091_v55  ;;  %v11769_v24 = vunpack.i.h.bf16 %v14086_v32 }
 0x27b   : > { %v11827_v63 = vpop.permute.xlu0 %11826  ;;  %3033 = vperm.xlu1 %11915, %v2811_v40   ;;  %v1084_v40 = vsel %vm845_vm11, %v1083_v19, %v11753_v35  ;;  %v21170_v35 = vunpack.i.l.bf16 %v13968_v13  ;;  %v21171_v19 = vunpack.i.h.bf16 %v13968_v13 }
 0x27c   : > { %v14188_v39 = vpop.permute.xlu1 %2665  ;;  %v2688_v60 = vrot.slane %v1084_v40, 4  ;;  %v11829_v50 = vunpack.i.h.bf16 %v11827_v63  ;;  %v11828_v45 = vunpack.i.l.bf16 %v11827_v63 }
 0x27d   : > { %v844_v38 = vsel %vm843_vm10, %v842_v11, %v21170_v35  ;;  %v1313_v15 = vsel %vm843_vm10, %v1312_v8, %v21171_v19 }
 0x27e   : > { %v846_v11 = vsel %vm845_vm11, %v844_v38, %v11778_v43  ;;  %v1314_v63 = vsel %vm845_vm11, %v1313_v15, %v11779_v30  ;;  %v11763_v38 = vunpack.i.l.bf16 %v14078_v49  ;;  %v21174_v15 = vunpack.i.h.bf16 %v14024_v51 }
 0x27f   : > { %v11832_v7 = vpop.permute.xlu0 %11831  ;;  %3038 = vperm.xlu1 %11915, %v2812_v58   ;;  %v11823_v58 = vunpack.i.l.bf16 %v14157_v22  ;;  %v14259_v35 = vsel %vm2710_vm12, %v1314_v63, %v2694_v28  ;;  %v21173_v28 = vunpack.i.l.bf16 %v14024_v51  ;;  %v11768_v51 = vunpack.i.l.bf16 %v14086_v32 }
 0x280   : > { %v11817_v46 = vpop.permute.xlu1 %11816  ;;  %v11833_v29 = vunpack.i.l.bf16 %v11832_v7 }
 0x281   : > { %v11819_v37 = vunpack.i.h.bf16 %v11817_v46  ;;  %v11818_v36 = vunpack.i.l.bf16 %v11817_v46 }
 0x283   : > { %v1529_v41 = vsel %vm833_vm5, %v13851_v59, %v11819_v37  ;;  %v1085_v46 = vsel %vm833_vm5, %v13833_v10, %v11818_v36  ;;  %v11837_v4 = vpop.permute.xlu0 %11836  ;;  %3047 = vperm.xlu1 %11915, %v2813_v44   ;;  %v2814_v59 = vld [vmem:[%s20271_s3 + $0x8] sm:$0xff]  ;;  %v11794_v10 = vunpack.i.h.bf16 %v14076_v12  ;;  %v11793_v36 = vunpack.i.l.bf16 %v14076_v12 }
 0x284   : > { %v1530_v13 = vsel %vm835_vm6, %v1529_v41, %v11689_v25  ;;  %v1086_v22 = vsel %vm835_vm6, %v1085_v46, %v11688_v17  ;;  %v11842_v40 = vpop.permute.xlu1 %11841  ;;  %v847_v17 = vsel %vm833_vm5, %v13809_v33, %v11823_v58  ;;  %v11834_v41 = vunpack.i.h.bf16 %v11832_v7 }
 0x285   : > { %v1087_v8 = vsel %vm837_vm7, %v1086_v22, %v11828_v45  ;;  %v1531_v25 = vsel %vm837_vm7, %v1530_v13, %v11829_v50  ;;  %v11839_v30 = vunpack.i.h.bf16 %v11837_v4  ;;  %v11838_v43 = vunpack.i.l.bf16 %v11837_v4 }
 0x286   : > { %v14256_v37 = vsel %vm2710_vm12, %v846_v11, %v2688_v60  ;;  %v11784_v50 = vunpack.i.h.bf16 %v14091_v55  ;;  %v1088_v33 = vsel %vm839_vm8, %v1087_v8, %v11708_v62  ;;  %v21172_v7 = vunpack.i.h.bf16 %v14029_v2 }
 0x287   : > { %v14253_v44 = vpop.permute.xlu0 %11846  ;;  %3052 = vperm.xlu1 %11915, %v2814_v59   ;;  %v11764_v60 = vunpack.i.h.bf16 %v14078_v49  ;;  %v848_v19 = vsel %vm835_vm6, %v847_v17, %v21173_v28  ;;  %v1316_v55 = vsel %vm835_vm6, %v1315_v34, %v21174_v15  ;;  %v11547_v58 = vpack.c.bf16 %v14259_v35, %v14256_v37 }
 0x288   : > { %v1532_v4 = vsel %vm839_vm8, %v1531_v25, %v21172_v7  ;;  %v11852_v45 = vpop.permute.xlu1 %11851  ;;  %v849_v62 = vsel %vm837_vm7, %v848_v19, %v11833_v29  ;;  %v1317_v2 = vsel %vm837_vm7, %v1316_v55, %v11834_v41  ;;  %v1089_v46 = vsel %vm841_vm9, %v1088_v33, %v11838_v43 }
 0x289   : > { %v1533_v13 = vsel %vm841_vm9, %v1532_v4, %v11839_v30  ;;  %v11854_v22 = vunpack.i.h.bf16 %v11852_v45  ;;  %v11853_v11 = vunpack.i.l.bf16 %v11852_v45  ;;  %v1762_v59 = vsel %vm837_vm7, %v14202_v3, %v11783_v48 }
 0x28a   : > { %v2206_v8 = vsel %vm837_vm7, %v14205_v47, %v11784_v50  ;;  %v11814_v25 = vunpack.i.h.bf16 %v14088_v52  ;;  %v11844_v17 = vunpack.i.h.bf16 %v11842_v40  ;;  %v11843_v41 = vunpack.i.l.bf16 %v11842_v40 }
 0x28b   : > { %v11862_v63 = vpop.permute.xlu0 %11861  ;;  %v21175_v30 = vunpack.i.l.bf16 %v14038_v5  ;;  %v21176_v7 = vunpack.i.l.bf16 %v14046_v53  ;;  %v21177_v3 = vunpack.i.h.bf16 %v14038_v5  ;;  %v21178_v47 = vunpack.i.h.bf16 %v14046_v53 }
 0x28c   : > { %v11857_v34 = vpop.permute.xlu1 %11856  ;;  %v11813_v55 = vunpack.i.l.bf16 %v14088_v52  ;;  %v21179_v5 = vunpack.i.l.bf16 %v13994_v6  ;;  %v21180_v53 = vunpack.i.h.bf16 %v13994_v6 }
 0x28d   : > { %v11859_v29 = vunpack.i.h.bf16 %v11857_v34  ;;  %v11858_v43 = vunpack.i.l.bf16 %v11857_v34  ;;  %v850_v33 = vsel %vm839_vm8, %v849_v62, %v21175_v30  ;;  %v1090_v4 = vsel %vm843_vm10, %v1089_v46, %v21176_v7 }
 0x28e   : > { %v1318_v48 = vsel %vm839_vm8, %v1317_v2, %v21177_v3  ;;  %v1534_v50 = vsel %vm843_vm10, %v1533_v13, %v21178_v47  ;;  %v851_v40 = vsel %vm841_vm9, %v850_v33, %v11853_v11  ;;  %v11804_v62 = vunpack.i.h.bf16 %v14121_v31 }
 0x28f   : > { %v11867_v45 = vpop.permute.xlu0 %11866  ;;  %v1091_v28 = vsel %vm845_vm11, %v1090_v4, %v11858_v43  ;;  %v1319_v19 = vsel %vm841_vm9, %v1318_v48, %v11854_v22  ;;  %v1535_v15 = vsel %vm845_vm11, %v1534_v50, %v11859_v29  ;;  %v1763_v2 = vsel %vm839_vm8, %v1762_v59, %v21179_v5 }
 0x290   : > { %v2207_v46 = vsel %vm839_vm8, %v2206_v8, %v21180_v53  ;;  %v11877_v13 = vpop.permute.xlu1 %11876  ;;  %v2449_v11 = vsel %vm833_vm5, %v13858_v0, %v11844_v17  ;;  %v1997_v22 = vsel %vm833_vm5, %v13871_v54, %v11843_v41  ;;  %v21181_v43 = vunpack.i.l.bf16 %v14044_v27 }
 0x291   : > { %v11879_v34 = vunpack.i.h.bf16 %v11877_v13  ;;  %v11878_v29 = vunpack.i.l.bf16 %v11877_v13  ;;  %v21182_v33 = vunpack.i.h.bf16 %v14044_v27  ;;  %v2689_v6 = vrot.slane %v1091_v28, 4 }
 0x292   : > { %v852_v30 = vsel %vm843_vm10, %v851_v40, %v21181_v43  ;;  %v2695_v7 = vrot.slane %v1535_v15, 4  ;;  %v11849_v8 = vunpack.i.h.bf16 %v14253_v44  ;;  %v11848_v4 = vunpack.i.l.bf16 %v14253_v44 }
 0x293   : > { %v1320_v59 = vsel %vm843_vm10, %v1319_v19, %v21182_v33  ;;  %v11872_v0 = vpop.permute.xlu0 %11871  ;;  %v853_v17 = vsel %vm845_vm11, %v852_v30, %v11878_v29  ;;  %v11864_v41 = vunpack.i.h.bf16 %v11862_v63  ;;  %v11863_v3 = vunpack.i.l.bf16 %v11862_v63 }
 0x294   : > { %v1321_v54 = vsel %vm845_vm11, %v1320_v59, %v11879_v34  ;;  %v11882_v48 = vpop.permute.xlu1 %11881  ;;  %v2712_v47 = vsel %vm2710_vm12, %v853_v17, %v2689_v6  ;;  %v11803_v50 = vunpack.i.l.bf16 %v14121_v31  ;;  %v11869_v40 = vunpack.i.h.bf16 %v11867_v45 }
 0x295   : > { %v2714_v27 = vsel %vm2710_vm12, %v1321_v54, %v2695_v7  ;;  %v11868_v28 = vunpack.i.l.bf16 %v11867_v45  ;;  %v11799_v15 = vunpack.i.h.bf16 %v14099_v21  ;;  %v11798_v44 = vunpack.i.l.bf16 %v14099_v21 }
 0x296   : > { %v11545_v19 = vpack.c.bf16 %v2714_v27, %v2712_v47  ;;  %v21183_v5 = vunpack.i.l.bf16 %v14053_v23  ;;  %v21184_v63 = vunpack.i.h.bf16 %v14053_v23  ;;  %v2442_v34 = vsel %vm833_vm5, %v13880_v20, %v11849_v8 }
 0x297   : > { %v1990_v31 = vsel %vm833_vm5, %v13889_v16, %v11848_v4  ;;  %v11874_v45 = vunpack.i.h.bf16 %v11872_v0  ;;  %v11873_v29 = vunpack.i.l.bf16 %v11872_v0  ;;  %v11897_v43 = vpop.permute.xlu0 %11896  ;;  %v2211_v21 = vsel %vm833_vm5, %v13908_v56, %v11864_v41 }
 0x298   : > { %v1998_v53 = vsel %vm835_vm6, %v1997_v22, %v21183_v5  ;;  %v2450_v13 = vsel %vm835_vm6, %v2449_v11, %v21184_v63  ;;  %11546 = vmatprep.subr.bf16.mxu1 %v11545_v19  ;;  %v1767_v22 = vsel %vm833_vm5, %v13898_v26, %v11863_v3  ;;  %v11884_v30 = vunpack.i.h.bf16 %v11882_v48  ;;  %v11887_v33 = vpop.permute.xlu1 %11886 }
 0x299   : > { %v11883_v23 = vunpack.i.l.bf16 %v11882_v48  ;;  %11548 = vmatpush1.bf16.msra.mxu1 %v11547_v58  ;;  %v1764_v20 = vsel %vm841_vm9, %v1763_v2, %v11803_v50  ;;  %v2208_v16 = vsel %vm841_vm9, %v2207_v46, %v11804_v62  ;;  %v2451_v11 = vsel %vm837_vm7, %v2450_v13, %v11869_v40 }
 0x29a   : > { %v1999_v59 = vsel %vm837_vm7, %v1998_v53, %v11868_v28  ;;  %v21185_v56 = vunpack.i.l.bf16 %v14061_v1  ;;  %v21186_v26 = vunpack.i.h.bf16 %v14061_v1  ;;  %v11889_v8 = vunpack.i.h.bf16 %v11887_v33 }
 0x29b   : > { %v11888_v4 = vunpack.i.l.bf16 %v11887_v33  ;;  %v1768_v37 = vsel %vm835_vm6, %v1767_v22, %v11763_v38  ;;  %v2212_v35 = vsel %vm835_vm6, %v2211_v21, %v11764_v60  ;;  %v11902_v2 = vpop.permute.xlu0 %11901  ;;  %v2000_v0 = vsel %vm839_vm8, %v1999_v59, %v11768_v51 }
 0x29c   : > { %v1991_v6 = vsel %vm835_vm6, %v1990_v31, %v21185_v56  ;;  %v2443_v7 = vsel %vm835_vm6, %v2442_v34, %v21186_v26  ;;  %v1769_v46 = vsel %vm837_vm7, %v1768_v37, %v11883_v23  ;;  %v2213_v1 = vsel %vm837_vm7, %v2212_v35, %v11884_v30  ;;  %v11892_v49 = vpop.permute.xlu1 %11891  ;;  %v21193_v56 = vld [vmem:[#allocation6_spill] sm:$0xff] }
 0x29d   : > { %v1992_v58 = vsel %vm837_vm7, %v1991_v6, %v11873_v29  ;;  %v2444_v62 = vsel %vm837_vm7, %v2443_v7, %v11874_v45  ;;  %v2452_v38 = vsel %vm839_vm8, %v2451_v11, %v11769_v24  ;;  %v11899_v17 = vunpack.i.h.bf16 %v11897_v43 }
 0x29e   : > { %v11898_v60 = vunpack.i.l.bf16 %v11897_v43  ;;  %v11894_v54 = vunpack.i.h.bf16 %v11892_v49  ;;  %v11893_v41 = vunpack.i.l.bf16 %v11892_v49  ;;  %v2001_v3 = vsel %vm841_vm9, %v2000_v0, %v11888_v4 }
 0x29f   : > { %v2453_v48 = vsel %vm841_vm9, %v2452_v38, %v11889_v8  ;;  %v21187_v47 = vunpack.i.l.bf16 %v14059_v9  ;;  %v21188_v50 = vunpack.i.h.bf16 %v14059_v9  ;;  %v11904_v40 = vunpack.i.h.bf16 %v11902_v2  ;;  %v2618_v30 = vpop.permute.xlu0 %2617  ;;  %v21194_v38 = vld [vmem:[#allocation13_spill] sm:$0xff] }
 0x2a0   : > { %v11903_v28 = vunpack.i.l.bf16 %v11902_v2  ;;  %v21189_v19 = vunpack.i.l.bf16 %v14069_v61  ;;  %v21190_v53 = vunpack.i.h.bf16 %v14069_v61  ;;  %v11907_v13 = vpop.permute.xlu1 %11906  ;;  %v21191_v34 = vunpack.i.l.bf16 %v13999_v14 }
 0x2a1   : > { %v1993_v27 = vsel %vm839_vm8, %v1992_v58, %v21187_v47  ;;  %v2445_v51 = vsel %vm839_vm8, %v2444_v62, %v21188_v50  ;;  %v21192_v31 = vunpack.i.h.bf16 %v13999_v14  ;;  %v11909_v21 = vunpack.i.h.bf16 %v11907_v13  ;;  %v21196_v47 = vld [vmem:[#allocation7_spill] sm:$0xff] }
 0x2a2   : > { %v1994_v32 = vsel %vm841_vm9, %v1993_v27, %v11893_v41  ;;  %v2446_v24 = vsel %vm841_vm9, %v2445_v51, %v11894_v54  ;;  %v1770_v5 = vsel %vm839_vm8, %v1769_v46, %v21189_v19  ;;  %v2214_v63 = vsel %vm839_vm8, %v2213_v1, %v21190_v53 }
 0x2a3   : > { %v1765_v9 = vsel %vm843_vm10, %v1764_v20, %v21191_v34  ;;  %v2209_v45 = vsel %vm843_vm10, %v2208_v16, %v21192_v31  ;;  %v1771_v29 = vsel %vm841_vm9, %v1770_v5, %v11898_v60  ;;  %v2215_v43 = vsel %vm841_vm9, %v2214_v63, %v11899_v17  ;;  %v2626_v62 = vpop.permute.xlu0 %2625  ;;  %v21195_v60 = vld [vmem:[#allocation10_spill] sm:$0xff] }
 0x2a4   : > { %v11908_v22 = vunpack.i.l.bf16 %v11907_v13  ;;  %v2002_v61 = vsel %vm843_vm10, %v2001_v3, %v11793_v36  ;;  %v2454_v23 = vsel %vm843_vm10, %v2453_v48, %v11794_v10  ;;  %v1995_v33 = vsel %vm843_vm10, %v1994_v32, %v11798_v44  ;;  %v11912_v7 = vpop.permute.xlu1 %11911 }
 0x2a5   : > { %v2447_v14 = vsel %vm843_vm10, %v2446_v24, %v11799_v15  ;;  %v2003_v20 = vsel %vm845_vm11, %v2002_v61, %v11903_v28  ;;  %v2455_v16 = vsel %vm845_vm11, %v2454_v23, %v11904_v40  ;;  %v11809_v6 = vunpack.i.h.bf16 %v21193_v56  ;;  %v21197_v28 = vld [vmem:[#allocation15_spill] sm:$0xff] }
 0x2a6   : > { %v1996_v11 = vsel %vm845_vm11, %v1995_v33, %v11908_v22  ;;  %v2448_v59 = vsel %vm845_vm11, %v2447_v14, %v11909_v21  ;;  %v11808_v36 = vunpack.i.l.bf16 %v21193_v56  ;;  %v11914_v10 = vunpack.i.h.bf16 %v11912_v7 }
 0x2a7   : > { %v2700_v26 = vrot.slane %v1996_v11, 4  ;;  %v2706_v12 = vrot.slane %v2448_v59, 4  ;;  %v11913_v8 = vunpack.i.l.bf16 %v11912_v7  ;;  %v1766_v15 = vsel %vm845_vm11, %v1765_v9, %v11813_v55  ;;  %v2634_v50 = vpop.permute.xlu0 %2633  ;;  %v2815_v11 = vld [vmem:[%s20275_s7] sm:$0xff] }
 0x2a8   : > { %v2210_v44 = vsel %vm845_vm11, %v2209_v45, %v11814_v25  ;;  %v2701_v4 = vrot.slane %v2003_v20, 4  ;;  %v2707_v37 = vrot.slane %v2455_v16, 4  ;;  %v1772_v35 = vsel %vm843_vm10, %v1771_v29, %v11808_v36  ;;  %v2646_v55 = vpop.permute.xlu1 %2645 }
 0x2a9   : > { %v2216_v58 = vsel %vm843_vm10, %v2215_v43, %v11809_v6  ;;  %v1773_v2 = vsel %vm845_vm11, %v1772_v35, %v11913_v8  ;;  %v2715_v1 = vsel %vm2710_vm12, %v1766_v15, %v2700_v26  ;;  %v2717_v0 = vsel %vm2710_vm12, %v2210_v44, %v2706_v12 }
 0x2aa   : > { %v2217_v46 = vsel %vm845_vm11, %v2216_v58, %v11914_v10  ;;  %v2716_v52 = vsel %vm2710_vm12, %v1773_v2, %v2701_v4  ;;  %v2679_v49 = vsel %vm833_vm5, %v21194_v38, %v2646_v55  ;;  %v2672_v54 = vsel %vm833_vm5, %v21195_v60, %v2618_v30  ;;  %v3086_v55 = vld [vmem:[%s20277_s9] sm:$0xff]  ;;  %v3088_v38 = vld [vmem:[%s20277_s9 + $0x10] sm:$0xff] }
 0x2ab   : > { %v2718_v25 = vsel %vm2710_vm12, %v2217_v46, %v2707_v37  ;;  %v11551_v41 = vpack.c.bf16 %v2717_v0, %v2715_v1  ;;  %v2680_v3 = vsel %vm835_vm6, %v2679_v49, %v14143_v18  ;;  %v2673_v27 = vsel %vm835_vm6, %v2672_v54, %v21196_v47  ;;  %v2642_v53 = vpop.permute.xlu0 %2641  ;;  %v2816_v1 = vld [vmem:[%s20275_s7 + $0x8] sm:$0xff]  ;;  %v3089_v49 = vld [vmem:[%s20277_s9 + $0x18] sm:$0xff] }
 0x2ac   : > { %v11549_v17 = vpack.c.bf16 %v2718_v25, %v2716_v52  ;;  %v2654_v48 = vpop.permute.xlu1 %2653  ;;  %v2674_v32 = vsel %vm837_vm7, %v2673_v27, %v2626_v62  ;;  %v21198_v45 = vmov 0.0   ;;  %v3087_v25 = vld [vmem:[%s20277_s9 + $0x8] sm:$0xff] }
 0x2ad   : > { %v2681_v51 = vsel %vm837_vm7, %v2680_v3, %v2654_v48  ;;  %v2675_v19 = vsel %vm839_vm8, %v2674_v32, %v21197_v28 }
 0x2ae   : > { %11550 = vmatprep.subr.bf16.mxu1 %v11549_v17  ;;  %v2682_v24 = vsel %vm839_vm8, %v2681_v51, %v14163_v57  ;;  %v2676_v18 = vsel %vm841_vm9, %v2675_v19, %v2634_v50  ;;  %v2719_v57 = vld [vmem:[%s20269_s1] sm:$0xff]  ;;  %v3091_v51 = vld [vmem:[%s20278_s10 + $0x8] sm:$0xff] }
 0x2af   : > { %11552 = vmatpush1.bf16.msra.mxu1 %v11551_v41  ;;  %v2677_v34 = vsel %vm843_vm10, %v2676_v18, %v14137_v42  ;;  %v2720_v42 = vld [vmem:[%s20269_s1 + $0x8] sm:$0xff] }
 0x2b0   : > { %v2662_v40 = vpop.permute.xlu1 %2661  ;;  %v2678_v31 = vsel %vm845_vm11, %v2677_v34, %v2642_v53  ;;  %v3093_v53 = vld [vmem:[%s20278_s10 + $0x18] sm:$0xff]  ;;  %v3092_v34 = vld [vmem:[%s20278_s10 + $0x10] sm:$0xff] }
 0x2b1   : > { %v2683_v5 = vsel %vm841_vm9, %v2682_v24, %v2662_v40  ;;  %v3090_v40 = vld [vmem:[%s20278_s10] sm:$0xff] }
 0x2b2   : > { %v2684_v63 = vsel %vm843_vm10, %v2683_v5, %v14188_v39 }
 0x2b4   : > { %v2670_v13 = vpop.permute.xlu1 %2669 }
 0x2b5   : > { %v2685_v9 = vsel %vm845_vm11, %v2684_v63, %v2670_v13 }
 0x2b6   : > { %11448 = vmatprep.subr.msk.mxu1 %vm2710_vm12, %v2685_v9 }
 0x2b7   : > { %11449 = vmatpush1.msk.msra.mxu1 %vm2710_vm12, %v2678_v31 }
 0x2b8   : > { %11450 = vmatmul.mubr.msk.f32.vlgmr.msra.gmra.mrb[0].mxu1 %vm2721_vm13, %v2719_v57 }
 0x2b9   : > { %2804 = vmatprep.mubr.f32.mxu1 %v21198_v45 }
 0x2bc   : > { %11451 = vmatmul.mubr.msk.f32.gmra.mrb[2].mxu1 %vm2721_vm13, %v2720_v42 }
 0x2bd   : > { %11507 = vmatprep.mubr.msk.f32.mxu1 %vm833_vm5, %v2815_v11 }
 0x2e5   : > { %v3076_v26 = vpop.xlane.xlu0 %3075 }
 0x2e9   : > { %v3082_v7 = vpop.xlane.xlu0 %3081 }
 0x2f3   : > { %v3079_v59 = vpop.xlane.xlu1 %3078 }
 0x2f4   : > { %v11561_v0 = vpack.c.bf16 %v3079_v59, %v3076_v26 }
 0x2f7   : > { %v3085_v56 = vpop.xlane.xlu1 %3084 }
 0x2f8   : > { %v11565_v52 = vpack.c.bf16 %v3085_v56, %v3082_v7 }
 0x2fb   : > { %v14483_v6 = vpop.permute.xlu1 %3033 }
 0x2ff   : > { %v14485_v36 = vpop.permute.xlu1 %3038 }
 0x303   : > { %v14487_v12 = vpop.permute.xlu1 %3047 }
 0x307   : > { %v14489_v10 = vpop.permute.xlu1 %3052 }
 0x38b   : > { %v14459_v39 = vpop.f32.mrb[0].mxu1 }
 0x38c   : > { %v2825_v29 = vmul.f32 %v14459_v39, %v14459_v39  ;;  %v14463_v43 = vpop.f32.mrb[1].mxu1 }
 0x38d   : > { %v2817_v21 = vadd.f32 %v14463_v43, %v14459_v39  ;;  %v2826_v22 = vmul.f32 %v14463_v43, %v14463_v43 }
 0x38f   : > { %2818 = vadd.xlane.f32.xlu1 %v2817_v21  ;;  %v14469_v30 = vpop.f32.mrb[2].mxu1  ;;  %v2829_v61 = vadd.f32 %v2826_v22, %v2825_v29 }
 0x390   : > { %v2827_v23 = vmul.f32 %v14469_v30, %v14469_v30  ;;  %v14473_v33 = vpop.f32.mrb[3].mxu1 }
 0x391   : > { %v2820_v14 = vadd.f32 %v14473_v33, %v14469_v30  ;;  %v2828_v20 = vmul.f32 %v14473_v33, %v14473_v33  ;;  %2830 = vadd.xlane.f32.xlu0 %v2829_v61 }
 0x393   : > { %v2832_v16 = vadd.f32 %v2828_v20, %v2827_v23 }
 0x395   : > { %2833 = vadd.xlane.f32.xlu1 %v2832_v16  ;;  %2821 = vadd.xlane.f32.xlu0 %v2820_v14 }
 0x41c   : > { %v2819_v8 = vpop.xlane.xlu1 %2818 }
 0x41d   : > { %v2823_v37 = vmul.f32 0.00390625, %v2819_v8 }
 0x41e   : > { %v2831_v15 = vpop.xlane.xlu0 %2830 }
 0x41f   : > { %v2835_v62 = vmul.f32 0.00390625, %v2831_v15 }
 0x422   : > { %v2834_v44 = vpop.xlane.xlu1 %2833  ;;  %v2822_v4 = vpop.xlane.xlu0 %2821 }
 0x423   : > { %v2836_v35 = vmul.f32 0.00390625, %v2834_v44  ;;  %v2824_v58 = vmul.f32 0.00390625, %v2822_v4 }
 0x425   : > { %v11553_v2 = vpack.c.bf16 %v2824_v58, %v2823_v37  ;;  %v11557_v46 = vpack.c.bf16 %v2836_v35, %v2835_v62 }
 0x427   : > { %11554 = vmatprep.subr.bf16.mxu1 %v11553_v2 }
 0x428   : > { %11556 = vmatpush3.bf16.msra.mxu1 %v11553_v2 }
 0x429   : > { %11558 = vmatprep.subr.bf16.mxu1 %v11557_v46 }
 0x42b   : > { %11508 = vmatmul.mubr.msk.f32.vlgmr.msra.gmra.mrb[4].mxu1 %vm833_vm5, %v2816_v1 }
 0x42c   : > { %11560 = vmatpush3.bf16.msra.mxu1 %v11557_v46  ;;  %11514 = vmatprep.mubr.msk.f32.mxu1 %vm833_vm5, %v2815_v11 }
 0x42d   : > { %11562 = vmatprep.subr.bf16.mxu1 %v11561_v0 }
 0x42f   : > { %11515 = vmatmul.mubr.msk.f32.vlgmr.msra.gmra.mrb[6].mxu1 %vm833_vm5, %v2816_v1 }
 0x430   : > { %11564 = vmatpush3.bf16.msra.mxu1 %v11561_v0  ;;  %11525 = vmatprep.mubr.msk.f32.mxu1 %vm835_vm6, %v3086_v55 }
 0x431   : > { %11566 = vmatprep.subr.bf16.mxu1 %v11565_v52 }
 0x434   : > { %11568 = vmatpush3.bf16.msra.mxu1 %v11565_v52 }
 0x437   : > { %11526 = vmatmul.mubr.msk.f32.vlgmr.msra.gmra.mrb[8].mxu1 %vm835_vm6, %v3087_v25 }
 0x438   : > { %11528 = vmatprep.mubr.msk.f32.mxu1 %vm835_vm6, %v3088_v38 }
 0x43b   : > { %11529 = vmatmul.mubr.msk.f32.gmra.mrb[10].mxu1 %vm835_vm6, %v3089_v49 }
 0x4fe   : > { %v11509_v17 = vpop.f32.mrb[4].mxu1 }
 0x4ff   : > { %v2994_v60 = vmul.f32 %v11509_v17, %v11509_v17  ;;  %3006 = vperm.xlu1 %11915, %v11509_v17   ;;  %v2909_v54 = vpop.f32.mrb[5].mxu1 }
 0x500   : > { %3001 = vperm.xlu0 %11916, %v2909_v54   ;;  %v2993_v41 = vmul.f32 %v2909_v54, %v2909_v54 }
 0x502   : > { %v11516_v3 = vpop.f32.mrb[6].mxu1 }
 0x503   : > { %v2996_v48 = vsub.f32 %v11516_v3, %v2994_v60  ;;  %v2984_v47 = vpop.f32.mrb[7].mxu1 }
 0x504   : > { %v2995_v27 = vsub.f32 %v2984_v47, %v2993_v41 }
 0x505   : > { %v2998_v50 = vmax.f32 %v2996_v48, 0.0 }
 0x506   : > { %v2997_v24 = vmax.f32 %v2995_v27, 0.0 }
 0x507   : > { %v3014_v32 = vadd.f32 1e-05, %v2998_v50 }
 0x508   : > { %v3013_v63 = vadd.f32 1e-05, %v2997_v24 }
 0x509   : > { %12645 = vrsqrt.f32 %v3014_v32 }
 0x50a   : > { %v11527_v28 = vpop.f32.mrb[8].mxu1  ;;  %12647 = vrsqrt.f32 %v3013_v63 }
 0x50b   : > { %v3178_v19 = vadd.f32 %v11527_v28, %v3091_v51  ;;  %v3172_v5 = vpop.f32.mrb[9].mxu1 }
 0x50c   : > { %v3173_v18 = vadd.f32 %v3172_v5, %v3090_v40 }
 0x50d   : > { %v3192_v13 = vadd.f32 1.0, %v3178_v19 }
 0x50e   : > { %v3191_v9 = vadd.f32 1.0, %v3173_v18  ;;  %v11530_v57 = vpop.f32.mrb[10].mxu1 }
 0x50f   : > { %3200 = vperm.xlu0 %11916, %v3192_v13   ;;  %v3188_v31 = vadd.f32 %v11530_v57, %v3093_v53  ;;  %v3182_v45 = vpop.f32.mrb[11].mxu1 }
 0x510   : > { %v3183_v42 = vadd.f32 %v3182_v45, %v3092_v34  ;;  %3195 = vperm.xlu1 %11915, %v3191_v9  }
 0x513   : > { %3214 = vperm.xlu0 %11916, %v3188_v31   ;;  %v12646_v29 = vpop.eup %12645 }
 0x514   : > { %3209 = vperm.xlu1 %11915, %v3183_v42   ;;  %v12648_v21 = vpop.eup %12647 }
 0x518   : > { %3024 = vperm.xlu1 %11915, %v12646_v29  }
 0x51c   : > { %3019 = vperm.xlu1 %11915, %v12648_v21  }
 0x57e   : > { %v3007_v22 = vpop.permute.xlu1 %3006 }
 0x57f   : > { %v3002_v14 = vpop.permute.xlu0 %3001  ;;  %v3011_v20 = vsub.f32 %v14469_v30, %v3007_v22  ;;  %v3012_v35 = vsub.f32 %v14473_v33, %v3007_v22 }
 0x580   : > { %v3009_v56 = vsub.f32 %v14459_v39, %v3002_v14  ;;  %v3010_v39 = vsub.f32 %v14463_v43, %v3002_v14 }
 0x58e   : > { %v3201_v59 = vpop.permute.xlu0 %3200 }
 0x58f   : > { %v3196_v61 = vpop.permute.xlu1 %3195 }
 0x592   : > { %v3215_v37 = vpop.permute.xlu0 %3214 }
 0x593   : > { %v3210_v23 = vpop.permute.xlu1 %3209 }
 0x597   : > { %v3025_v16 = vpop.permute.xlu1 %3024 }
 0x598   : > { %v3029_v11 = vmul.f32 %v3025_v16, %v3011_v20  ;;  %v3030_v62 = vmul.f32 %v3025_v16, %v3012_v35 }
 0x59a   : > { %v3043_v26 = vmul.f32 %v14485_v36, %v3029_v11  ;;  %v3044_v0 = vmul.f32 %v14485_v36, %v3030_v62 }
 0x59b   : > { %v3020_v7 = vpop.permute.xlu1 %3019 }
 0x59c   : > { %v3057_v8 = vadd.f32 %v14489_v10, %v3043_v26  ;;  %v3027_v15 = vmul.f32 %v3020_v7, %v3009_v56  ;;  %v3028_v55 = vmul.f32 %v3020_v7, %v3010_v39  ;;  %v3058_v25 = vadd.f32 %v14489_v10, %v3044_v0 }
 0x59e   : > { %v3205_v44 = vmul.f32 %v3201_v59, %v3057_v8  ;;  %v3041_v4 = vmul.f32 %v14483_v6, %v3027_v15  ;;  %v3042_v38 = vmul.f32 %v14483_v6, %v3028_v55  ;;  %v3206_v49 = vmul.f32 %v3201_v59, %v3058_v25 }
 0x5a0   : > { %v3219_v58 = vmul.f32 %v3215_v37, %v3205_v44  ;;  %v3055_v30 = vadd.f32 %v14487_v12, %v3041_v4  ;;  %v3056_v17 = vadd.f32 %v14487_v12, %v3042_v38  ;;  %v3220_v41 = vmul.f32 %v3215_v37, %v3206_v49  ;;  %v21200_v44 = vld [vmem:[#allocation5_spill] sm:$0xff] }
 0x5a2   : > { %v11463_v2 = vmul.f32 -1.442695, %v3219_v58  ;;  %v3203_v46 = vmul.f32 %v3196_v61, %v3055_v30  ;;  %v3204_v43 = vmul.f32 %v3196_v61, %v3056_v17  ;;  %v11464_v48 = vmul.f32 -1.442695, %v3220_v41  ;;  %v21199_v61 = vld [vmem:[#allocation4_spill] sm:$0xff] }
 0x5a4   : > { %12649 = vpow2.f32 %v11463_v2  ;;  %v3217_v1 = vmul.f32 %v3210_v23, %v3203_v46  ;;  %v3218_v36 = vmul.f32 %v3210_v23, %v3204_v43 }
 0x5a6   : > { %v11461_v52 = vmul.f32 -1.442695, %v3217_v1  ;;  %v11462_v47 = vmul.f32 -1.442695, %v3218_v36 }
 0x5a8   : > { %12651 = vpow2.f32 %v11461_v52 }
 0x5ae   : > { %v12650_v33 = vpop.eup %12649 }
 0x5af   : > { %v3235_v60 = vadd.f32 1.0, %v12650_v33 }
 0x5b1   : > { %12653 = vrcp.f32 %v3235_v60 }
 0x5b2   : > { %v12652_v54 = vpop.eup %12651 }
 0x5b3   : > { %v3233_v3 = vadd.f32 1.0, %v12652_v54 }
 0x5b5   : > { %12655 = vrcp.f32 %v3233_v3 }
 0x5b6   : > { %12657 = vpow2.f32 %v11464_v48 }
 0x5b7   : > { %12659 = vpow2.f32 %v11462_v47 }
 0x5bb   : > { %v12654_v27 = vpop.eup %12653 }
 0x5bc   : > { %v14537_v50 = vmul.f32 %v12654_v27, %v3219_v58 }
 0x5be   : > { %3301 = vrot.lane.b32.xlu0 %v14537_v50, %s12729_s25 }
 0x5bf   : > { %v12656_v6 = vpop.eup %12655 }
 0x5c0   : > { %v14541_v12 = vmul.f32 %v12656_v6, %v3217_v1  ;;  %v12658_v10 = vpop.eup %12657 }
 0x5c1   : > { %v3236_v51 = vadd.f32 1.0, %v12658_v10  ;;  %v12660_v32 = vpop.eup %12659 }
 0x5c2   : > { %3307 = vrot.lane.b32.xlu0 %v14537_v50, %s12731_s27  ;;  %3299 = vrot.lane.b32.xlu1 %v14541_v12, %s12729_s25  ;;  %v3234_v24 = vadd.f32 1.0, %v12660_v32 }
 0x5c3   : > { %12661 = vrcp.f32 %v3236_v51 }
 0x5c4   : > { %12663 = vrcp.f32 %v3234_v24 }
 0x5c6   : > { %3313 = vrot.lane.b32.xlu0 %v14537_v50, %s12728_s24  ;;  %3305 = vrot.lane.b32.xlu1 %v14541_v12, %s12731_s27 }
 0x5ca   : > { %3319 = vrot.lane.b32.xlu0 %v14537_v50, %s12730_s26  ;;  %3311 = vrot.lane.b32.xlu1 %v14541_v12, %s12728_s24 }
 0x5cd   : > { %v12662_v40 = vpop.eup %12661 }
 0x5ce   : > { %3325 = vrot.lane.b32.xlu0 %v14537_v50, %s12733_s29  ;;  %3317 = vrot.lane.b32.xlu1 %v14541_v12, %s12730_s26  ;;  %v14567_v28 = vmul.f32 %v12662_v40, %v3220_v41  ;;  %v12664_v19 = vpop.eup %12663 }
 0x5cf   : > { %v14573_v5 = vmul.f32 %v12664_v19, %v3218_v36 }
 0x5d2   : > { %3331 = vrot.lane.b32.xlu0 %v14537_v50, %s12732_s28  ;;  %3323 = vrot.lane.b32.xlu1 %v14541_v12, %s12733_s29 }
 0x5d6   : > { %3337 = vrot.lane.b32.xlu0 %v14537_v50, %s12734_s30  ;;  %3329 = vrot.lane.b32.xlu1 %v14541_v12, %s12732_s28 }
 0x5da   : > { %3345 = vrot.lane.b32.xlu0 %v14567_v28, %s12729_s25  ;;  %3335 = vrot.lane.b32.xlu1 %v14541_v12, %s12734_s30 }
 0x5de   : > { %3351 = vrot.lane.b32.xlu0 %v14567_v28, %s12731_s27  ;;  %3343 = vrot.lane.b32.xlu1 %v14573_v5, %s12729_s25 }
 0x5e2   : > { %3357 = vrot.lane.b32.xlu0 %v14567_v28, %s12728_s24  ;;  %3349 = vrot.lane.b32.xlu1 %v14573_v5, %s12731_s27 }
 0x5e6   : > { %3363 = vrot.lane.b32.xlu0 %v14567_v28, %s12730_s26  ;;  %3355 = vrot.lane.b32.xlu1 %v14573_v5, %s12728_s24 }
 0x5ea   : > { %3369 = vrot.lane.b32.xlu0 %v14567_v28, %s12733_s29  ;;  %3361 = vrot.lane.b32.xlu1 %v14573_v5, %s12730_s26 }
 0x5ee   : > { %3375 = vrot.lane.b32.xlu0 %v14567_v28, %s12732_s28  ;;  %3367 = vrot.lane.b32.xlu1 %v14573_v5, %s12733_s29 }
 0x5f2   : > { %3381 = vrot.lane.b32.xlu0 %v14567_v28, %s12734_s30  ;;  %3373 = vrot.lane.b32.xlu1 %v14573_v5, %s12732_s28 }
 0x5f6   : > { %3379 = vrot.lane.b32.xlu1 %v14573_v5, %s12734_s30 }
 0x630   : > { %v3302_v18 = vpop.permute.xlu0 %3301 }
 0x634   : > { %v3308_v53 = vpop.permute.xlu0 %3307  ;;  %v14601_v63 = vpop.permute.xlu1 %3299 }
 0x635   : > { %v3657_v22 = vcombine.low %v14537_v50, %v3308_v53  ;;  %v3658_v55 = vcombine.high %v14537_v50, %v3308_v53 }
 0x637   : > { %v3665_v16 = vrot.slane %v3657_v22, %v21199_v61  ;;  %v3672_v41 = vrot.slane %v3658_v55, %v21199_v61 }
 0x638   : > { %v3314_v13 = vpop.permute.xlu0 %3313  ;;  %v14603_v34 = vpop.permute.xlu1 %3305 }
 0x639   : > { %v3673_v42 = vcombine.low %v3302_v18, %v3314_v13  ;;  %v3674_v46 = vcombine.high %v3302_v18, %v3314_v13 }
 0x63b   : > { %v3681_v23 = vrot.slane %v3673_v42, %v21199_v61  ;;  %v3688_v49 = vrot.slane %v3674_v46, %v21199_v61 }
 0x63c   : > { %v3320_v9 = vpop.permute.xlu0 %3319  ;;  %v14605_v57 = vpop.permute.xlu1 %3311 }
 0x63d   : > { %v3721_v56 = vcombine.low %v3665_v16, %v3681_v23  ;;  %v3722_v39 = vcombine.high %v3665_v16, %v3681_v23  ;;  %v3737_v48 = vcombine.low %v3672_v41, %v3688_v49  ;;  %v3738_v18 = vcombine.high %v3672_v41, %v3688_v49 }
 0x63e   : > { %v3401_v53 = vcombine.low %v14601_v63, %v14605_v57 }
 0x63f   : > { %v3729_v4 = vrot.slane %v3721_v56, %v21200_v44  ;;  %v3736_v60 = vrot.slane %v3722_v39, %v21200_v44  ;;  %v3745_v10 = vrot.slane %v3737_v48, %v21200_v44 }
 0x640   : > { %v3326_v31 = vpop.permute.xlu0 %3325  ;;  %v14607_v45 = vpop.permute.xlu1 %3317  ;;  %v3409_v56 = vrot.slane %v3401_v53, %v21199_v61 }
 0x644   : > { %v3332_v29 = vpop.permute.xlu0 %3331  ;;  %v14609_v21 = vpop.permute.xlu1 %3323 }
 0x645   : > { %v3689_v14 = vcombine.low %v3320_v9, %v3332_v29  ;;  %v3690_v1 = vcombine.high %v3320_v9, %v3332_v29  ;;  %v3385_v29 = vcombine.low %v14541_v12, %v14603_v34 }
 0x647   : > { %v3697_v26 = vrot.slane %v3689_v14, %v21199_v61  ;;  %v3704_v17 = vrot.slane %v3690_v1, %v21199_v61 }
 0x648   : > { %v3338_v20 = vpop.permute.xlu0 %3337  ;;  %v14614_v59 = vpop.permute.xlu1 %3329 }
 0x649   : > { %v3705_v11 = vcombine.low %v3326_v31, %v3338_v20  ;;  %v3706_v30 = vcombine.high %v3326_v31, %v3338_v20  ;;  %v3417_v9 = vcombine.low %v14607_v45, %v14614_v59 }
 0x64b   : > { %v3713_v7 = vrot.slane %v3705_v11, %v21199_v61  ;;  %v3720_v52 = vrot.slane %v3706_v30, %v21199_v61  ;;  %v3393_v30 = vrot.slane %v3385_v29, %v21199_v61 }
 0x64c   : > { %v14618_v8 = vpop.permute.xlu0 %3345  ;;  %v14622_v35 = vpop.permute.xlu1 %3335 }
 0x64d   : > { %v3753_v15 = vcombine.low %v3697_v26, %v3713_v7  ;;  %v3754_v62 = vcombine.high %v3697_v26, %v3713_v7  ;;  %v3769_v43 = vcombine.low %v3704_v17, %v3720_v52  ;;  %v3770_v51 = vcombine.high %v3704_v17, %v3720_v52 }
 0x64e   : > { %v3433_v24 = vcombine.low %v14609_v21, %v14622_v35  ;;  %v3752_v26 = vrot.slane %v3738_v18, %v21200_v44  ;;  %v3425_v7 = vrot.slane %v3417_v9, %v21199_v61  ;;  %v3449_v1 = vcombine.low %v3393_v30, %v3409_v56 }
 0x64f   : > { %v3761_v37 = vrot.slane %v3753_v15, %v21200_v44  ;;  %v3768_v38 = vrot.slane %v3754_v62, %v21200_v44  ;;  %v3777_v50 = vrot.slane %v3769_v43, %v21200_v44  ;;  %v3784_v23 = vrot.slane %v3770_v51, %v21200_v44 }
 0x650   : > { %v14624_v58 = vpop.permute.xlu0 %3351  ;;  %v14632_v33 = vpop.permute.xlu1 %3343  ;;  %v3441_v14 = vrot.slane %v3433_v24, %v21199_v61  ;;  %v3457_v43 = vrot.slane %v3449_v1, %v21200_v44 }
 0x651   : > { %v3785_v2 = vcombine.low %v3729_v4, %v3761_v37  ;;  %v3786_v25 = vcombine.high %v3729_v4, %v3761_v37  ;;  %v3787_v3 = vcombine.low %v3736_v60, %v3768_v38  ;;  %v3788_v27 = vcombine.high %v3736_v60, %v3768_v38 }
 0x652   : > { %v3793_v40 = vcombine.low %v14567_v28, %v14624_v58  ;;  %v3789_v19 = vcombine.low %v3745_v10, %v3777_v50  ;;  %v3790_v11 = vcombine.high %v3745_v10, %v3777_v50  ;;  %v3791_v39 = vcombine.low %v3752_v26, %v3784_v23 }
 0x653   : > { %3993 = vrot.lane.b32.xlu1 %v3785_v2, %s12738_s12  ;;  %v3481_v2 = vcombine.low %v3425_v7, %v3441_v14  ;;  %v3482_v50 = vcombine.high %v3425_v7, %v3441_v14 }
 0x654   : > { %v14627_v0 = vpop.permute.xlu0 %3357  ;;  %v14642_v36 = vpop.permute.xlu1 %3349  ;;  %v3801_v20 = vrot.slane %v3793_v40, %v21199_v61 }
 0x655   : > { %v3809_v6 = vcombine.low %v14618_v8, %v14627_v0  ;;  %v3489_v60 = vrot.slane %v3481_v2, %v21200_v44  ;;  %v3496_v18 = vrot.slane %v3482_v50, %v21200_v44 }
 0x657   : > { %3997 = vrot.lane.b32.xlu1 %v3786_v25, %s12738_s12  ;;  %v3817_v31 = vrot.slane %v3809_v6, %v21199_v61  ;;  %v3792_v25 = vcombine.high %v3752_v26, %v3784_v23  ;;  %v3794_v6 = vcombine.high %v14567_v28, %v14624_v58  ;;  %v3513_v24 = vcombine.low %v3457_v43, %v3489_v60 }
 0x658   : > { %v14638_v54 = vpop.permute.xlu0 %3363  ;;  %v14655_v13 = vpop.permute.xlu1 %3355 }
 0x659   : > { %v3857_v15 = vcombine.low %v3801_v20, %v3817_v31  ;;  %v3858_v48 = vcombine.high %v3801_v20, %v3817_v31 }
 0x65b   : > { %4001 = vrot.lane.b32.xlu1 %v3787_v3, %s12738_s12  ;;  %v3865_v55 = vrot.slane %v3857_v15, %v21200_v44  ;;  %v3810_v3 = vcombine.high %v14618_v8, %v14627_v0  ;;  %v3402_v0 = vcombine.high %v14601_v63, %v14605_v57  ;;  %v3872_v28 = vrot.slane %v3858_v48, %v21200_v44 }
 0x65c   : > { %v3370_v47 = vpop.permute.xlu0 %3369  ;;  %v14674_v62 = vpop.permute.xlu1 %3361  ;;  %v3808_v63 = vrot.slane %v3794_v6, %v21199_v61 }
 0x65d   : > { %v3824_v40 = vrot.slane %v3810_v3, %v21199_v61  ;;  %v3416_v53 = vrot.slane %v3402_v0, %v21199_v61 }
 0x65f   : > { %4005 = vrot.lane.b32.xlu1 %v3788_v27, %s12738_s12  ;;  %v3873_v31 = vcombine.low %v3808_v63, %v3824_v40 }
 0x660   : > { %v3376_v32 = vpop.permute.xlu0 %3375  ;;  %v14680_v41 = vpop.permute.xlu1 %3367 }
 0x661   : > { %v3825_v42 = vcombine.low %v14638_v54, %v3376_v32  ;;  %v3826_v27 = vcombine.high %v14638_v54, %v3376_v32  ;;  %v3450_v54 = vcombine.high %v3393_v30, %v3409_v56  ;;  %v3418_v32 = vcombine.high %v14607_v45, %v14614_v59 }
 0x662   : > { %v3537_v30 = vcombine.low %v14632_v33, %v14655_v13 }
 0x663   : > { %4009 = vrot.lane.b32.xlu1 %v3789_v19, %s12738_s12  ;;  %v3833_v4 = vrot.slane %v3825_v42, %v21199_v61  ;;  %v3514_v19 = vcombine.high %v3457_v43, %v3489_v60  ;;  %v3432_v9 = vrot.slane %v3418_v32, %v21199_v61 }
 0x664   : > { %v3382_v22 = vpop.permute.xlu0 %3381  ;;  %v14707_v57 = vpop.permute.xlu1 %3373 }
 0x665   : > { %v3841_v16 = vcombine.low %v3370_v47, %v3382_v22  ;;  %v3842_v38 = vcombine.high %v3370_v47, %v3382_v22  ;;  %v3434_v47 = vcombine.high %v14609_v21, %v14622_v35  ;;  %v3840_v21 = vrot.slane %v3826_v27, %v21199_v61 }
 0x666   : > { %v3386_v35 = vcombine.high %v14541_v12, %v14603_v34  ;;  %v3464_v12 = vrot.slane %v3450_v54, %v21200_v44  ;;  %v3553_v2 = vcombine.low %v14674_v62, %v14707_v57 }
 0x667   : > { %v3849_v37 = vrot.slane %v3841_v16, %v21199_v61  ;;  %4013 = vrot.lane.b32.xlu1 %v3790_v11, %s12738_s12  ;;  %v3856_v10 = vrot.slane %v3842_v38, %v21199_v61  ;;  %v3448_v58 = vrot.slane %v3434_v47, %v21199_v61  ;;  %v3881_v16 = vrot.slane %v3873_v31, %v21200_v44 }
 0x668   : > { %v3400_v34 = vrot.slane %v3386_v35, %v21199_v61  ;;  %v3515_v22 = vcombine.low %v3464_v12, %v3496_v18  ;;  %v3380_v20 = vpop.permute.xlu1 %3379  ;;  %v3516_v15 = vcombine.high %v3464_v12, %v3496_v18  ;;  %v3554_v35 = vcombine.high %v14674_v62, %v14707_v57 }
 0x669   : > { %v3889_v46 = vcombine.low %v3833_v4, %v3849_v37  ;;  %v3890_v49 = vcombine.high %v3833_v4, %v3849_v37  ;;  %v3905_v45 = vcombine.low %v3840_v21, %v3856_v10  ;;  %v3497_v42 = vcombine.low %v3432_v9, %v3448_v58 }
 0x66a   : > { %v3465_v14 = vcombine.low %v3400_v34, %v3416_v53  ;;  %v3906_v56 = vcombine.high %v3840_v21, %v3856_v10  ;;  %v3569_v26 = vcombine.low %v14680_v41, %v3380_v20  ;;  %v3874_v37 = vcombine.high %v3808_v63, %v3824_v40 }
 0x66b   : > { %4017 = vrot.lane.b32.xlu1 %v3791_v39, %s12738_s12  ;;  %v3897_v52 = vrot.slane %v3889_v46, %v21200_v44  ;;  %v3904_v8 = vrot.slane %v3890_v49, %v21200_v44  ;;  %v3913_v23 = vrot.slane %v3905_v45, %v21200_v44  ;;  %v3505_v11 = vrot.slane %v3497_v42, %v21200_v44 }
 0x66c   : > { %v3473_v4 = vrot.slane %v3465_v14, %v21200_v44  ;;  %v3498_v46 = vcombine.high %v3432_v9, %v3448_v58  ;;  %v3521_v39 = vcombine.low %v14573_v5, %v14642_v36  ;;  %v3577_v1 = vrot.slane %v3569_v26, %v21199_v61 }
 0x66d   : > { %v3921_v17 = vcombine.low %v3865_v55, %v3897_v52  ;;  %v3922_v51 = vcombine.high %v3865_v55, %v3897_v52  ;;  %v3923_v59 = vcombine.low %v3872_v28, %v3904_v8  ;;  %v3924_v29 = vcombine.high %v3872_v28, %v3904_v8 }
 0x66e   : > { %v3925_v7 = vcombine.low %v3881_v16, %v3913_v23  ;;  %v3926_v55 = vcombine.high %v3881_v16, %v3913_v23  ;;  %v3517_v52 = vcombine.low %v3473_v4, %v3505_v11  ;;  %v3466_v38 = vcombine.high %v3400_v34, %v3416_v53 }
 0x66f   : > { %3995 = vrot.lane.b32.xlu0 %v3921_v17, %s12738_s12  ;;  %4021 = vrot.lane.b32.xlu1 %v3792_v25, %s12738_s12  ;;  %v3920_v25 = vrot.slane %v3906_v56, %v21200_v44  ;;  %v3545_v49 = vrot.slane %v3537_v30, %v21199_v61  ;;  %v3561_v17 = vrot.slane %v3553_v2, %v21199_v61 }
 0x670   : > { %v3888_v60 = vrot.slane %v3874_v37, %v21200_v44  ;;  %v3512_v43 = vrot.slane %v3498_v46, %v21200_v44  ;;  %v3529_v3 = vrot.slane %v3521_v39, %v21199_v61  ;;  %v3518_v47 = vcombine.high %v3473_v4, %v3505_v11 }
 0x671   : > { %v3617_v48 = vcombine.low %v3561_v17, %v3577_v1  ;;  %v3480_v6 = vrot.slane %v3466_v38, %v21200_v44  ;;  %v3570_v0 = vcombine.high %v14680_v41, %v3380_v20  ;;  %v3618_v54 = vcombine.high %v3561_v17, %v3577_v1 }
 0x672   : > { %v3927_v27 = vcombine.low %v3888_v60, %v3920_v25  ;;  %v3585_v50 = vcombine.low %v3529_v3, %v3545_v49  ;;  %v3928_v10 = vcombine.high %v3888_v60, %v3920_v25  ;;  %v3538_v21 = vcombine.high %v14632_v33, %v14655_v13 }
 0x673   : > { %3999 = vrot.lane.b32.xlu0 %v3922_v51, %s12738_s12  ;;  %3961 = vrot.lane.b32.xlu1 %v3513_v24, %s12738_s12  ;;  %v3519_v51 = vcombine.low %v3480_v6, %v3512_v43  ;;  %v3625_v24 = vrot.slane %v3617_v48, %v21200_v44  ;;  %v3520_v32 = vcombine.high %v3480_v6, %v3512_v43 }
 0x674   : > { %v3593_v8 = vrot.slane %v3585_v50, %v21200_v44  ;;  %v3586_v28 = vcombine.high %v3529_v3, %v3545_v49  ;;  %v3522_v58 = vcombine.high %v14573_v5, %v14642_v36  ;;  %v3584_v63 = vrot.slane %v3570_v0, %v21199_v61 }
 0x675   : > { %v3632_v45 = vrot.slane %v3618_v54, %v21200_v44  ;;  %v3568_v33 = vrot.slane %v3554_v35, %v21199_v61 }
 0x676   : > { %v3649_v40 = vcombine.low %v3593_v8, %v3625_v24  ;;  %v3650_v41 = vcombine.high %v3593_v8, %v3625_v24  ;;  %v3600_v13 = vrot.slane %v3586_v28, %v21200_v44  ;;  %v3536_v62 = vrot.slane %v3522_v58, %v21199_v61 }
 0x677   : > { %4003 = vrot.lane.b32.xlu0 %v3923_v59, %s12738_s12  ;;  %3965 = vrot.lane.b32.xlu1 %v3514_v19, %s12738_s12  ;;  %v3552_v59 = vrot.slane %v3538_v21, %v21199_v61  ;;  %v3633_v57 = vcombine.low %v3568_v33, %v3584_v63  ;;  %v3634_v9 = vcombine.high %v3568_v33, %v3584_v63 }
 0x678   : > { %v3651_v19 = vcombine.low %v3600_v13, %v3632_v45  ;;  %v3652_v5 = vcombine.high %v3600_v13, %v3632_v45 }
 0x679   : > { %v3601_v18 = vcombine.low %v3536_v62, %v3552_v59  ;;  %v3641_v36 = vrot.slane %v3633_v57, %v21200_v44  ;;  %v3602_v12 = vcombine.high %v3536_v62, %v3552_v59  ;;  %v3648_v42 = vrot.slane %v3634_v9, %v21200_v44 }
 0x67b   : > { %4007 = vrot.lane.b32.xlu0 %v3924_v29, %s12738_s12  ;;  %3969 = vrot.lane.b32.xlu1 %v3515_v22, %s12738_s12  ;;  %v3609_v53 = vrot.slane %v3601_v18, %v21200_v44  ;;  %v3616_v29 = vrot.slane %v3602_v12, %v21200_v44 }
 0x67d   : > { %v3653_v31 = vcombine.low %v3609_v53, %v3641_v36  ;;  %v3654_v34 = vcombine.high %v3609_v53, %v3641_v36  ;;  %v3655_v22 = vcombine.low %v3616_v29, %v3648_v42  ;;  %v3656_v23 = vcombine.high %v3616_v29, %v3648_v42 }
 0x67f   : > { %4011 = vrot.lane.b32.xlu0 %v3925_v7, %s12738_s12  ;;  %3973 = vrot.lane.b32.xlu1 %v3516_v15, %s12738_s12 }
 0x683   : > { %4015 = vrot.lane.b32.xlu0 %v3926_v55, %s12738_s12  ;;  %3977 = vrot.lane.b32.xlu1 %v3517_v52, %s12738_s12 }
 0x687   : > { %4019 = vrot.lane.b32.xlu0 %v3927_v27, %s12738_s12  ;;  %3981 = vrot.lane.b32.xlu1 %v3518_v47, %s12738_s12 }
 0x68b   : > { %4023 = vrot.lane.b32.xlu0 %v3928_v10, %s12738_s12  ;;  %3985 = vrot.lane.b32.xlu1 %v3519_v51, %s12738_s12 }
 0x68f   : > { %3989 = vrot.lane.b32.xlu1 %v3520_v32, %s12738_s12  ;;  %3963 = vrot.lane.b32.xlu0 %v3649_v40, %s12738_s12 }
 0x693   : > { %3967 = vrot.lane.b32.xlu0 %v3650_v41, %s12738_s12 }
 0x697   : > { %3971 = vrot.lane.b32.xlu0 %v3651_v19, %s12738_s12 }
 0x69b   : > { %3975 = vrot.lane.b32.xlu0 %v3652_v5, %s12738_s12 }
 0x69f   : > { %3979 = vrot.lane.b32.xlu0 %v3653_v31, %s12738_s12 }
 0x6a3   : > { %3983 = vrot.lane.b32.xlu0 %v3654_v34, %s12738_s12 }
 0x6a7   : > { %3987 = vrot.lane.b32.xlu0 %v3655_v22, %s12738_s12 }
 0x6ab   : > { %3991 = vrot.lane.b32.xlu0 %v3656_v23, %s12738_s12 }
 0x6c5   : > { %v3994_v14 = vpop.permute.xlu1 %3993 }
 0x6c6   : > { %4073 = vst.msk [vmem:[#allocation3 + $0xc1] sm:$0xff] %vm624_vm2, %v3994_v14 }
 0x6c9   : > { %v3998_v20 = vpop.permute.xlu1 %3997 }
 0x6ca   : > { %4075 = vst.msk [vmem:[#allocation3 + $0xd9] sm:$0xff] %vm624_vm2, %v3998_v20 }
 0x6cd   : > { %v4002_v16 = vpop.permute.xlu1 %4001  ;;  %v14775_v11 = vld [vmem:[#allocation3 + $0xc0] sm:$0xff] }
 0x6ce   : > { %4077 = vst.msk [vmem:[#allocation3 + $0xf1] sm:$0xff] %vm624_vm2, %v4002_v16  ;;  %4869 = vrot.lane.b32.xlu1 %v14775_v11, %s12739_s13 }
 0x6d1   : > { %v4006_v56 = vpop.permute.xlu1 %4005  ;;  %v14780_v26 = vld [vmem:[#allocation3 + $0xd8] sm:$0xff] }
 0x6d2   : > { %4079 = vst.msk [vmem:[#allocation3 + $0x109] sm:$0xff] %vm624_vm2, %v4006_v56  ;;  %4873 = vrot.lane.b32.xlu1 %v14780_v26, %s12739_s13 }
 0x6d5   : > { %v4010_v7 = vpop.permute.xlu1 %4009  ;;  %v14785_v15 = vld [vmem:[#allocation3 + $0xf0] sm:$0xff] }
 0x6d6   : > { %4081 = vst.msk [vmem:[#allocation3 + $0x121] sm:$0xff] %vm624_vm2, %v4010_v7  ;;  %4877 = vrot.lane.b32.xlu1 %v14785_v15, %s12739_s13  ;;  %v4257_v4 = vcombine.low %v14775_v11, %v14785_v15  ;;  %v4258_v37 = vcombine.high %v14775_v11, %v14785_v15 }
 0x6d9   : > { %v4014_v30 = vpop.permute.xlu1 %4013  ;;  %v14794_v2 = vld [vmem:[#allocation3 + $0x108] sm:$0xff] }
 0x6da   : > { %4083 = vst.msk [vmem:[#allocation3 + $0x139] sm:$0xff] %vm624_vm2, %v4014_v30  ;;  %4881 = vrot.lane.b32.xlu1 %v14794_v2, %s12739_s13 }
 0x6dd   : > { %v4018_v46 = vpop.permute.xlu1 %4017  ;;  %v14799_v39 = vld [vmem:[#allocation3 + $0x120] sm:$0xff] }
 0x6de   : > { %4085 = vst.msk [vmem:[#allocation3 + $0x151] sm:$0xff] %vm624_vm2, %v4018_v46  ;;  %4885 = vrot.lane.b32.xlu1 %v14799_v39, %s12739_s13 }
 0x6e1   : > { %v3996_v1 = vpop.permute.xlu0 %3995  ;;  %v4022_v55 = vpop.permute.xlu1 %4021  ;;  %v14804_v52 = vld [vmem:[#allocation3 + $0x138] sm:$0xff] }
 0x6e2   : > { %4074 = vst.msk [vmem:[#allocation3 + $0xc9] sm:$0xff] %vm624_vm2, %v3996_v1  ;;  %4087 = vst.msk [vmem:[#allocation3 + $0x169] sm:$0xff] %vm624_vm2, %v4022_v55  ;;  %4889 = vrot.lane.b32.xlu1 %v14804_v52, %s12739_s13 }
 0x6e5   : > { %v4000_v25 = vpop.permute.xlu0 %3999  ;;  %v3962_v38 = vpop.permute.xlu1 %3961  ;;  %v14810_v49 = vld [vmem:[#allocation3 + $0x150] sm:$0xff] }
 0x6e6   : > { %4076 = vst.msk [vmem:[#allocation3 + $0xe1] sm:$0xff] %vm624_vm2, %v4000_v25  ;;  %4057 = vst.msk [vmem:[#allocation3 + $0x1] sm:$0xff] %vm624_vm2, %v3962_v38  ;;  %4893 = vrot.lane.b32.xlu1 %v14810_v49, %s12739_s13  ;;  %v4289_v17 = vcombine.low %v14799_v39, %v14810_v49  ;;  %v4290_v60 = vcombine.high %v14799_v39, %v14810_v49 }
 0x6e8   : > { %v14832_v6 = vrot.slane %v4289_v17, %v21199_v61  ;;  %v14835_v10 = vrot.slane %v4290_v60, %v21199_v61 }
 0x6e9   : > { %v4004_v43 = vpop.permute.xlu0 %4003  ;;  %v3966_v3 = vpop.permute.xlu1 %3965  ;;  %v4106_v48 = vld [vmem:[#allocation3 + $0xc8] sm:$0xff] }
 0x6ea   : > { %v14820_v27 = vld [vmem:[#allocation3 + $0x168] sm:$0xff]  ;;  %4078 = vst.msk [vmem:[#allocation3 + $0xf9] sm:$0xff] %vm624_vm2, %v4004_v43  ;;  %4059 = vst.msk [vmem:[#allocation3 + $0x19] sm:$0xff] %vm624_vm2, %v3966_v3  ;;  %4871 = vrot.lane.b32.xlu0 %v4106_v48, %s12739_s13 }
 0x6eb   : > { %4897 = vrot.lane.b32.xlu1 %v14820_v27, %s12739_s13  ;;  %v4305_v47 = vcombine.low %v14804_v52, %v14820_v27  ;;  %v4306_v50 = vcombine.high %v14804_v52, %v14820_v27  ;;  %21201 = vst [vmem:[#allocation14_spill] sm:$0xff] %v14832_v6 }
 0x6ed   : > { %v14838_v51 = vrot.slane %v4305_v47, %v21199_v61  ;;  %v14841_v24 = vrot.slane %v4306_v50, %v21199_v61  ;;  %v4008_v8 = vpop.permute.xlu0 %4007  ;;  %v3970_v0 = vpop.permute.xlu1 %3969  ;;  %v14843_v54 = vld [vmem:[#allocation3 + $0xe0] sm:$0xff] }
 0x6ee   : > { %4080 = vst.msk [vmem:[#allocation3 + $0x111] sm:$0xff] %vm624_vm2, %v4008_v8  ;;  %4061 = vst.msk [vmem:[#allocation3 + $0x31] sm:$0xff] %vm624_vm2, %v3970_v0  ;;  %4875 = vrot.lane.b32.xlu0 %v14843_v54, %s12739_s13 }
 0x6ef   : > { %21202 = vst [vmem:[#allocation18_spill] sm:$0xff] %v14838_v51  ;;  %v4354_v40 = vcombine.high %v14832_v6, %v14838_v51  ;;  %v4369_v21 = vcombine.low %v14835_v10, %v14841_v24  ;;  %v4370_v28 = vcombine.high %v14835_v10, %v14841_v24  ;;  %5651 = vrot.lane.b32.xlu1 %v4106_v48, %s12740_s14 }
 0x6f1   : > { %v4012_v35 = vpop.permute.xlu0 %4011  ;;  %v3974_v58 = vpop.permute.xlu1 %3973  ;;  %v4110_v63 = vld [vmem:[#allocation3 + $0xf8] sm:$0xff] }
 0x6f2   : > { %4082 = vst.msk [vmem:[#allocation3 + $0x129] sm:$0xff] %vm624_vm2, %v4012_v35  ;;  %4063 = vst.msk [vmem:[#allocation3 + $0x49] sm:$0xff] %vm624_vm2, %v3974_v58  ;;  %4879 = vrot.lane.b32.xlu0 %v4110_v63, %s12739_s13  ;;  %v4529_v41 = vcombine.low %v4106_v48, %v4110_v63  ;;  %v4530_v45 = vcombine.high %v4106_v48, %v4110_v63  ;;  %v14937_v58 = vld [vmem:[#allocation3 + $0xc9] sm:$0xff] }
 0x6f3   : > { %5659 = vrot.lane.b32.xlu1 %v4110_v63, %s12740_s14 }
 0x6f4   : > { %v14868_v19 = vrot.slane %v4529_v41, %v21199_v61  ;;  %v14871_v18 = vrot.slane %v4530_v45, %v21199_v61  ;;  %v4273_v45 = vcombine.low %v14780_v26, %v14794_v2 }
 0x6f5   : > { %v4016_v59 = vpop.permute.xlu0 %4015  ;;  %v3978_v33 = vpop.permute.xlu1 %3977  ;;  %v4112_v13 = vld [vmem:[#allocation3 + $0x110] sm:$0xff] }
 0x6f6   : > { %4084 = vst.msk [vmem:[#allocation3 + $0x141] sm:$0xff] %vm624_vm2, %v4016_v59  ;;  %4065 = vst.msk [vmem:[#allocation3 + $0x61] sm:$0xff] %vm624_vm2, %v3978_v33  ;;  %4883 = vrot.lane.b32.xlu0 %v4112_v13, %s12739_s13  ;;  %v4545_v62 = vcombine.low %v14843_v54, %v4112_v13  ;;  %v4546_v57 = vcombine.high %v14843_v54, %v4112_v13  ;;  %v4274_v59 = vcombine.high %v14780_v26, %v14794_v2  ;;  %v15227_v32 = vld [vmem:[#allocation3 + $0x31] sm:$0xff] }
 0x6f7   : > { %21244 = vst [vmem:[#allocation47_spill] sm:$0xff] %v15227_v32 }
 0x6f8   : > { %v14874_v5 = vrot.slane %v4545_v62, %v21199_v61  ;;  %v14877_v36 = vrot.slane %v4546_v57, %v21199_v61  ;;  %v4288_v62 = vrot.slane %v4274_v59, %v21199_v61  ;;  %v14971_v57 = vld [vmem:[#allocation3 + $0xc1] sm:$0xff] }
 0x6f9   : > { %v4020_v53 = vpop.permute.xlu0 %4019  ;;  %v3982_v9 = vpop.permute.xlu1 %3981  ;;  %v4114_v31 = vld [vmem:[#allocation3 + $0x128] sm:$0xff]  ;;  %21204 = vst [vmem:[#allocation17_spill] sm:$0xff] %v14971_v57 }
 0x6fa   : > { %v4593_v12 = vcombine.low %v14868_v19, %v14874_v5  ;;  %v4594_v34 = vcombine.high %v14868_v19, %v14874_v5  ;;  %v4609_v42 = vcombine.low %v14871_v18, %v14877_v36  ;;  %v4610_v29 = vcombine.high %v14871_v18, %v14877_v36  ;;  %4086 = vst.msk [vmem:[#allocation3 + $0x159] sm:$0xff] %vm624_vm2, %v4020_v53  ;;  %v14951_v41 = vld [vmem:[#allocation3 + $0x129] sm:$0xff]  ;;  %v14987_v53 = vld [vmem:[#allocation3 + $0xe1] sm:$0xff]  ;;  %v15128_v5 = vld [vmem:[#allocation3 + $0x139] sm:$0xff] }
 0x6fb   : > { %4067 = vst.msk [vmem:[#allocation3 + $0x79] sm:$0xff] %vm624_vm2, %v3982_v9  ;;  %4887 = vrot.lane.b32.xlu0 %v4114_v31, %s12739_s13  ;;  %5667 = vrot.lane.b32.xlu1 %v4114_v31, %s12740_s14  ;;  %21206 = vst [vmem:[#allocation20_spill] sm:$0xff] %v14987_v53  ;;  %v14991_v9 = vld [vmem:[#allocation3 + $0xf1] sm:$0xff]  ;;  %v15218_v24 = vld [vmem:[#allocation3 + $0x49] sm:$0xff] }
 0x6fc   : > { %21207 = vst [vmem:[#allocation21_spill] sm:$0xff] %v14991_v9  ;;  %v15108_v18 = vrot.slane %v4593_v12, %v21200_v44  ;;  %21228 = vst [vmem:[#allocation31_spill] sm:$0xff] %v15128_v5  ;;  %v15190_v12 = vld [vmem:[#allocation3 + $0x10a] sm:$0xff] }
 0x6fd   : > { %v4024_v22 = vpop.permute.xlu0 %4023  ;;  %v3986_v23 = vpop.permute.xlu1 %3985  ;;  %v4116_v14 = vld [vmem:[#allocation3 + $0x140] sm:$0xff]  ;;  %21238 = vst [vmem:[#allocation41_spill] sm:$0xff] %v15190_v12  ;;  %21242 = vst [vmem:[#allocation45_spill] sm:$0xff] %v15218_v24 }
 0x6fe   : > { %4088 = vst.msk [vmem:[#allocation3 + $0x171] sm:$0xff] %vm624_vm2, %v4024_v22  ;;  %4069 = vst.msk [vmem:[#allocation3 + $0x91] sm:$0xff] %vm624_vm2, %v3986_v23  ;;  %v15023_v23 = vld [vmem:[#allocation3 + $0x121] sm:$0xff] }
 0x6ff   : > { %4891 = vrot.lane.b32.xlu0 %v4116_v14, %s12739_s13  ;;  %21214 = vst [vmem:[#allocation9_spill] sm:$0xff] %v15023_v23  ;;  %v15034_v10 = vld [vmem:[#allocation3 + $0x141] sm:$0xff]  ;;  %21224 = vst [vmem:[#allocation15_spill] sm:$0xff] %v15108_v18 }
 0x701   : > { %v3964_v20 = vpop.permute.xlu0 %3963  ;;  %v3990_v16 = vpop.permute.xlu1 %3989  ;;  %v4118_v56 = vld [vmem:[#allocation3 + $0x158] sm:$0xff] }
 0x702   : > { %4058 = vst.msk [vmem:[#allocation3 + $0x9] sm:$0xff] %vm624_vm2, %v3964_v20  ;;  %4071 = vst.msk [vmem:[#allocation3 + $0xa9] sm:$0xff] %vm624_vm2, %v3990_v16  ;;  %v4561_v7 = vcombine.low %v4114_v31, %v4118_v56  ;;  %v4562_v30 = vcombine.high %v4114_v31, %v4118_v56  ;;  %5675 = vrot.lane.b32.xlu1 %v4118_v56, %s12740_s14  ;;  %v14961_v33 = vld [vmem:[#allocation3 + $0x159] sm:$0xff]  ;;  %v15048_v16 = vrot.slane %v4594_v34, %v21200_v44 }
 0x703   : > { %4895 = vrot.lane.b32.xlu0 %v4118_v56, %s12739_s13  ;;  %v15068_v34 = vrot.slane %v4609_v42, %v21200_v44  ;;  %v15086_v42 = vrot.slane %v4610_v29, %v21200_v44  ;;  %v15116_v29 = vld [vmem:[#allocation3 + $0x109] sm:$0xff] }
 0x704   : > { %v14903_v38 = vrot.slane %v4561_v7, %v21199_v61  ;;  %v14906_v17 = vrot.slane %v4562_v30, %v21199_v61  ;;  %21217 = vst [vmem:[#allocation12_spill] sm:$0xff] %v15048_v16  ;;  %21226 = vst [vmem:[#allocation5_spill] sm:$0xff] %v15116_v29  ;;  %v15210_v7 = vld [vmem:[#allocation3 + $0xda] sm:$0xff] }
 0x705   : > { %v3968_v46 = vpop.permute.xlu0 %3967  ;;  %v4120_v1 = vld [vmem:[#allocation3 + $0x170] sm:$0xff]  ;;  %21219 = vst [vmem:[#allocation22_spill] sm:$0xff] %v15068_v34  ;;  %21221 = vst [vmem:[#allocation13_spill] sm:$0xff] %v15086_v42 }
 0x706   : > { %4060 = vst.msk [vmem:[#allocation3 + $0x21] sm:$0xff] %vm624_vm2, %v3968_v46  ;;  %v4577_v55 = vcombine.low %v4116_v14, %v4120_v1  ;;  %v4578_v25 = vcombine.high %v4116_v14, %v4120_v1  ;;  %5649 = vrot.lane.b32.xlu1 %v14775_v11, %s12740_s14  ;;  %v14999_v11 = vrot.slane %v4354_v40, %v21200_v44  ;;  %v15058_v30 = vld [vmem:[#allocation3 + $0x171] sm:$0xff]  ;;  %21241 = vst [vmem:[#allocation44_spill] sm:$0xff] %v15210_v7 }
 0x707   : > { %4899 = vrot.lane.b32.xlu0 %v4120_v1, %s12739_s13  ;;  %v15019_v40 = vrot.slane %v4370_v28, %v21200_v44  ;;  %v15040_v28 = vld [vmem:[#allocation3 + $0x151] sm:$0xff]  ;;  %v6885_v42 = vcombine.low %v15034_v10, %v15058_v30 }
 0x708   : > { %v14909_v60 = vrot.slane %v4577_v55, %v21199_v61  ;;  %v14912_v43 = vrot.slane %v4578_v25, %v21199_v61  ;;  %21208 = vst [vmem:[#allocation23_spill] sm:$0xff] %v14999_v11  ;;  %21216 = vst [vmem:[#allocation11_spill] sm:$0xff] %v15040_v28  ;;  %v15206_v25 = vld [vmem:[#allocation3 + $0xc2] sm:$0xff] }
 0x709   : > { %v3972_v3 = vpop.permute.xlu0 %3971  ;;  %21213 = vst [vmem:[#allocation29_spill] sm:$0xff] %v15019_v40  ;;  %v15208_v55 = vld [vmem:[#allocation3 + $0xe2] sm:$0xff] }
 0x70a   : > { %v4625_v48 = vcombine.low %v14903_v38, %v14909_v60  ;;  %v4626_v47 = vcombine.high %v14903_v38, %v14909_v60  ;;  %v4641_v50 = vcombine.low %v14906_v17, %v14912_v43  ;;  %v4642_v8 = vcombine.high %v14906_v17, %v14912_v43  ;;  %4062 = vst.msk [vmem:[#allocation3 + $0x39] sm:$0xff] %vm624_vm2, %v3972_v3  ;;  %v15196_v43 = vld [vmem:[#allocation3 + $0xca] sm:$0xff] }
 0x70b   : > { %5655 = vrot.lane.b32.xlu0 %v14843_v54, %s12740_s14  ;;  %5657 = vrot.lane.b32.xlu1 %v14785_v15, %s12740_s14  ;;  %v15005_v15 = vrot.slane %v4369_v21, %v21200_v44  ;;  %21239 = vst [vmem:[#allocation42_spill] sm:$0xff] %v15196_v43  ;;  %v15225_v21 = vld [vmem:[#allocation3 + $0x15a] sm:$0xff] }
 0x70c   : > { %v15054_v56 = vrot.slane %v4626_v47, %v21200_v44  ;;  %v15092_v3 = vrot.slane %v4642_v8, %v21200_v44  ;;  %v15094_v47 = vld [vmem:[#allocation3 + $0xd9] sm:$0xff]  ;;  %v15114_v36 = vrot.slane %v4625_v48, %v21200_v44  ;;  %v15140_v48 = vld [vmem:[#allocation3 + $0x169] sm:$0xff] }
 0x70d   : > { %v3976_v0 = vpop.permute.xlu0 %3975  ;;  %21209 = vst [vmem:[#allocation25_spill] sm:$0xff] %v15005_v15  ;;  %21223 = vst [vmem:[#allocation7_spill] sm:$0xff] %v15094_v47  ;;  %v15256_v15 = vld [vmem:[#allocation3 + $0x172] sm:$0xff]  ;;  %v15260_v11 = vld [vmem:[#allocation3 + $0x20] sm:$0xff] }
 0x70e   : > { %4064 = vst.msk [vmem:[#allocation3 + $0x51] sm:$0xff] %vm624_vm2, %v3976_v0  ;;  %21218 = vst [vmem:[#allocation24_spill] sm:$0xff] %v15054_v56 }
 0x70f   : > { %5663 = vrot.lane.b32.xlu0 %v4112_v13, %s12740_s14  ;;  %5665 = vrot.lane.b32.xlu1 %v14799_v39, %s12740_s14  ;;  %v14944_v39 = vld [vmem:[#allocation3 + $0xf9] sm:$0xff]  ;;  %v14966_v13 = vrot.slane %v4273_v45, %v21199_v61  ;;  %21222 = vst [vmem:[#allocation10_spill] sm:$0xff] %v15092_v3  ;;  %21225 = vst [vmem:[#allocation4_spill] sm:$0xff] %v15114_v36  ;;  %v6597_v45 = vcombine.low %v15023_v23, %v15040_v28 }
 0x710   : > { %v15229_v3 = vld [vmem:[#allocation3 + $0x19] sm:$0xff]  ;;  %21254 = vst [vmem:[#allocation57_spill] sm:$0xff] %v15256_v15  ;;  %21256 = vst [vmem:[#allocation59_spill] sm:$0xff] %v15260_v11 }
 0x711   : > { %v3980_v35 = vpop.permute.xlu0 %3979  ;;  %21203 = vst [vmem:[#allocation16_spill] sm:$0xff] %v14966_v13  ;;  %v15182_v38 = vrot.slane %v6597_v45, %v21199_v61  ;;  %v6837_v45 = vcombine.low %v14937_v58, %v14944_v39  ;;  %21245 = vst [vmem:[#allocation48_spill] sm:$0xff] %v15229_v3  ;;  %v15877_v36 = vld [vmem:[#allocation3 + $0x60] sm:$0xff] }
 0x712   : > { %4066 = vst.msk [vmem:[#allocation3 + $0x69] sm:$0xff] %vm624_vm2, %v3980_v35  ;;  %v6581_v35 = vcombine.low %v15094_v47, %v15116_v29  ;;  %21413 = vst [vmem:[#allocation188_spill] sm:$0xff] %v15877_v36 }
 0x713   : > { %5671 = vrot.lane.b32.xlu0 %v4116_v14, %s12740_s14  ;;  %5673 = vrot.lane.b32.xlu1 %v14810_v49, %s12740_s14  ;;  %21237 = vst [vmem:[#allocation40_spill] sm:$0xff] %v15182_v38  ;;  %v15247_v40 = vrot.slane %v6837_v45, %v21199_v61 }
 0x714   : > { %v15165_v59 = vrot.slane %v6581_v35, %v21199_v61  ;;  %v15186_v35 = vld [vmem:[#allocation3 + $0xf2] sm:$0xff] }
 0x715   : > { %v3984_v54 = vpop.permute.xlu0 %3983  ;;  %v8873_v46 = vcombine.low %v15206_v25, %v15186_v35  ;;  %v15237_v34 = vld [vmem:[#allocation3 + $0x50] sm:$0xff]  ;;  %21251 = vst [vmem:[#allocation54_spill] sm:$0xff] %v15247_v40 }
 0x716   : > { %4068 = vst.msk [vmem:[#allocation3 + $0x81] sm:$0xff] %vm624_vm2, %v3984_v54  ;;  %v6613_v54 = vcombine.low %v15128_v5, %v15140_v48  ;;  %21232 = vst [vmem:[#allocation35_spill] sm:$0xff] %v15165_v59  ;;  %v15241_v56 = vld [vmem:[#allocation3 + $0x51] sm:$0xff] }
 0x717   : > { %5679 = vrot.lane.b32.xlu0 %v4120_v1, %s12740_s14  ;;  %7179 = vrot.lane.b32.xlu1 %v14937_v58, %s12739_s13  ;;  %v15074_v1 = vrot.slane %v4641_v50, %v21200_v44  ;;  %21247 = vst [vmem:[#allocation50_spill] sm:$0xff] %v15237_v34  ;;  %21249 = vst [vmem:[#allocation52_spill] sm:$0xff] %v15241_v56  ;;  %v15270_v45 = vrot.slane %v8873_v46, %v21199_v61 }
 0x719   : > { %v3988_v63 = vpop.permute.xlu0 %3987  ;;  %21220 = vst [vmem:[#allocation6_spill] sm:$0xff] %v15074_v1  ;;  %v15235_v1 = vld [vmem:[#allocation3 + $0x152] sm:$0xff]  ;;  %21258 = vst [vmem:[#allocation61_spill] sm:$0xff] %v15270_v45 }
 0x71a   : > { %4070 = vst.msk [vmem:[#allocation3 + $0x99] sm:$0xff] %vm624_vm2, %v3988_v63  ;;  %21246 = vst [vmem:[#allocation49_spill] sm:$0xff] %v15235_v1 }
 0x71b   : > { %5653 = vrot.lane.b32.xlu0 %v14780_v26, %s12740_s14  ;;  %7187 = vrot.lane.b32.xlu1 %v14944_v39, %s12739_s13  ;;  %v14977_v26 = vrot.slane %v4257_v4, %v21199_v61 }
 0x71d   : > { %v3992_v49 = vpop.permute.xlu0 %3991  ;;  %21205 = vst [vmem:[#allocation19_spill] sm:$0xff] %v14977_v26 }
 0x71e   : > { %4072 = vst.msk [vmem:[#allocation3 + $0xb1] sm:$0xff] %vm624_vm2, %v3992_v49  ;;  %v6565_v49 = vcombine.low %v14971_v57, %v14991_v9 }
 0x71f   : > { %5661 = vrot.lane.b32.xlu0 %v14794_v2, %s12740_s14  ;;  %7195 = vrot.lane.b32.xlu1 %v14951_v41, %s12739_s13  ;;  %v4272_v2 = vrot.slane %v4258_v37, %v21199_v61  ;;  %v15007_v37 = vld [vmem:[#allocation3 + $0x111] sm:$0xff] }
 0x720   : > { %21210 = vst [vmem:[#allocation26_spill] sm:$0xff] %v15007_v37 }
 0x721   : > { %v4338_v4 = vcombine.high %v4272_v2, %v4288_v62 }
 0x723   : > { %5669 = vrot.lane.b32.xlu0 %v14804_v52, %s12740_s14  ;;  %7203 = vrot.lane.b32.xlu1 %v14961_v33, %s12739_s13  ;;  %v4322_v52 = vcombine.high %v14977_v26, %v14966_v13  ;;  %v15032_v20 = vrot.slane %v4338_v4, %v21200_v44  ;;  %v6853_v4 = vcombine.low %v14987_v53, %v15007_v37 }
 0x725   : > { %v15010_v31 = vrot.slane %v4322_v52, %v21200_v44  ;;  %21215 = vst [vmem:[#allocation8_spill] sm:$0xff] %v15032_v20  ;;  %v15175_v52 = vrot.slane %v6565_v49, %v21199_v61  ;;  %v15221_v14 = vrot.slane %v6853_v4, %v21199_v61  ;;  %v15239_v4 = vld [vmem:[#allocation3 + $0x1] sm:$0xff] }
 0x726   : > { %21248 = vst [vmem:[#allocation51_spill] sm:$0xff] %v15239_v4  ;;  %v6429_v46 = vcombine.low %v15239_v4, %v15227_v32  ;;  %v15317_v4 = vld [vmem:[#allocation3 + $0x9] sm:$0xff] }
 0x727   : > { %5677 = vrot.lane.b32.xlu0 %v14820_v27, %s12740_s14  ;;  %7177 = vrot.lane.b32.xlu1 %v14971_v57, %s12739_s13  ;;  %v4337_v27 = vcombine.low %v4272_v2, %v4288_v62  ;;  %21211 = vst [vmem:[#allocation28_spill] sm:$0xff] %v15010_v31  ;;  %v15170_v62 = vrot.slane %v6613_v54, %v21199_v61  ;;  %21235 = vst [vmem:[#allocation38_spill] sm:$0xff] %v15175_v52  ;;  %v15188_v54 = vld [vmem:[#allocation3 + $0x112] sm:$0xff] }
 0x728   : > { %v6629_v49 = vcombine.low %v15175_v52, %v15165_v59  ;;  %21243 = vst [vmem:[#allocation46_spill] sm:$0xff] %v15221_v14  ;;  %21270 = vst [vmem:[#allocation73_spill] sm:$0xff] %v15317_v4 }
 0x729   : > { %v15013_v22 = vrot.slane %v4337_v27, %v21200_v44  ;;  %21233 = vst [vmem:[#allocation36_spill] sm:$0xff] %v15170_v62  ;;  %v15177_v27 = vld [vmem:[#allocation3 + $0xfa] sm:$0xff]  ;;  %v6661_v17 = vcombine.low %v15182_v38, %v15170_v62 }
 0x72a   : > { %21236 = vst [vmem:[#allocation39_spill] sm:$0xff] %v15177_v27  ;;  %v9145_v50 = vcombine.low %v15196_v43, %v15177_v27  ;;  %v15244_v16 = vrot.slane %v6629_v49, %v21200_v44  ;;  %v6445_v49 = vcombine.low %v15229_v3, %v15218_v24  ;;  %v15278_v38 = vld [vmem:[#allocation3 + $0x38] sm:$0xff]  ;;  %v15282_v3 = vld [vmem:[#allocation3 + $0x21] sm:$0xff] }
 0x72b   : > { %7183 = vrot.lane.b32.xlu0 %v14987_v53, %s12739_s13  ;;  %7185 = vrot.lane.b32.xlu1 %v14991_v9, %s12739_s13  ;;  %21212 = vst [vmem:[#allocation27_spill] sm:$0xff] %v15013_v22  ;;  %v15258_v22 = vld [vmem:[#allocation3 + $0x16a] sm:$0xff]  ;;  %v15265_v31 = vrot.slane %v6661_v17, %v21200_v44  ;;  %21261 = vst [vmem:[#allocation64_spill] sm:$0xff] %v15278_v38  ;;  %v15280_v62 = vld [vmem:[#allocation3 + $0x39] sm:$0xff]  ;;  %v15303_v17 = vrot.slane %v6885_v42, %v21199_v61 }
 0x72c   : > { %21250 = vst [vmem:[#allocation53_spill] sm:$0xff] %v15244_v16  ;;  %v15250_v20 = vrot.slane %v9145_v50, %v21199_v61  ;;  %21255 = vst [vmem:[#allocation58_spill] sm:$0xff] %v15258_v22  ;;  %v6869_v50 = vcombine.low %v14951_v41, %v14961_v33  ;;  %v6701_v13 = vcombine.low %v15317_v4, %v15280_v62 }
 0x72d   : > { %21257 = vst [vmem:[#allocation60_spill] sm:$0xff] %v15265_v31  ;;  %21262 = vst [vmem:[#allocation65_spill] sm:$0xff] %v15280_v62  ;;  %v15353_v4 = vrot.slane %v6429_v46, %v21199_v61 }
 0x72e   : > { %21252 = vst [vmem:[#allocation55_spill] sm:$0xff] %v15250_v20  ;;  %21263 = vst [vmem:[#allocation66_spill] sm:$0xff] %v15282_v3 }
 0x72f   : > { %7191 = vrot.lane.b32.xlu0 %v15007_v37, %s12739_s13  ;;  %7193 = vrot.lane.b32.xlu1 %v15023_v23, %s12739_s13  ;;  %21267 = vst [vmem:[#allocation70_spill] sm:$0xff] %v15303_v17  ;;  %21278 = vst [vmem:[#allocation81_spill] sm:$0xff] %v15353_v4 }
 0x733   : > { %7199 = vrot.lane.b32.xlu0 %v15034_v10, %s12739_s13  ;;  %7201 = vrot.lane.b32.xlu1 %v15040_v28, %s12739_s13 }
 0x737   : > { %7207 = vrot.lane.b32.xlu0 %v15058_v30, %s12739_s13  ;;  %7959 = vrot.lane.b32.xlu1 %v14937_v58, %s12740_s14  ;;  %v9161_v58 = vcombine.low %v15208_v55, %v15188_v54 }
 0x739   : > { %v15273_v51 = vrot.slane %v9161_v58, %v21199_v61  ;;  %v6717_v58 = vcombine.low %v15282_v3, %v15241_v56  ;;  %v15313_v56 = vld [vmem:[#allocation3 + $0x13a] sm:$0xff]  ;;  %v15315_v3 = vld [vmem:[#allocation3 + $0x8] sm:$0xff] }
 0x73a   : > { %21268 = vst [vmem:[#allocation71_spill] sm:$0xff] %v15313_v56  ;;  %21269 = vst [vmem:[#allocation72_spill] sm:$0xff] %v15315_v3  ;;  %v8921_v59 = vcombine.low %v15313_v56, %v15258_v22  ;;  %v4393_v26 = vcombine.low %v15315_v3, %v15278_v38  ;;  %v8719_v3 = vld [vmem:[#allocation3 + $0xaa] sm:$0xff]  ;;  %v15393_v56 = vld [vmem:[#allocation3 + $0x98] sm:$0xff] }
 0x73b   : > { %7181 = vrot.lane.b32.xlu0 %v15094_v47, %s12739_s13  ;;  %7967 = vrot.lane.b32.xlu1 %v14944_v39, %s12740_s14  ;;  %v8889_v39 = vcombine.low %v15210_v7, %v15190_v12  ;;  %21259 = vst [vmem:[#allocation62_spill] sm:$0xff] %v15273_v51  ;;  %21293 = vst [vmem:[#allocation96_spill] sm:$0xff] %v15393_v56  ;;  %v15404_v7 = vld [vmem:[#allocation3 + $0xb2] sm:$0xff]  ;;  %v15420_v12 = vld [vmem:[#allocation3 + $0x1a] sm:$0xff] }
 0x73c   : > { %21297 = vst [vmem:[#allocation100_spill] sm:$0xff] %v15404_v7  ;;  %21301 = vst [vmem:[#allocation104_spill] sm:$0xff] %v15420_v12 }
 0x73d   : > { %v15276_v6 = vrot.slane %v8889_v39, %v21199_v61  ;;  %v15298_v39 = vld [vmem:[#allocation3 + $0x91] sm:$0xff] }
 0x73e   : > { %21265 = vst [vmem:[#allocation68_spill] sm:$0xff] %v15298_v39 }
 0x73f   : > { %7189 = vrot.lane.b32.xlu0 %v15116_v29, %s12739_s13  ;;  %7975 = vrot.lane.b32.xlu1 %v14951_v41, %s12740_s14  ;;  %21260 = vst [vmem:[#allocation63_spill] sm:$0xff] %v15276_v6  ;;  %v15290_v41 = vld [vmem:[#allocation3 + $0x142] sm:$0xff] }
 0x740   : > { %v15126_v19 = vpop.permute.xlu1 %4869  ;;  %v9193_v32 = vcombine.low %v15290_v41, %v15256_v15  ;;  %v15418_v15 = vld [vmem:[#allocation3 + $0x92] sm:$0xff] }
 0x741   : > { %21227 = vst [vmem:[#allocation30_spill] sm:$0xff] %v15126_v19  ;;  %21300 = vst [vmem:[#allocation103_spill] sm:$0xff] %v15418_v15 }
 0x743   : > { %7197 = vrot.lane.b32.xlu0 %v15128_v5, %s12739_s13  ;;  %7983 = vrot.lane.b32.xlu1 %v14961_v33, %s12740_s14  ;;  %v4409_v33 = vcombine.low %v15260_v11, %v15237_v34  ;;  %v15381_v11 = vld [vmem:[#allocation3 + $0x4a] sm:$0xff] }
 0x744   : > { %v15138_v60 = vpop.permute.xlu1 %4873  ;;  %21288 = vst [vmem:[#allocation91_spill] sm:$0xff] %v15381_v11 }
 0x745   : > { %21229 = vst [vmem:[#allocation32_spill] sm:$0xff] %v15138_v60  ;;  %v15348_v62 = vrot.slane %v4409_v33, %v21199_v61 }
 0x747   : > { %7205 = vrot.lane.b32.xlu0 %v15140_v48, %s12739_s13  ;;  %7957 = vrot.lane.b32.xlu1 %v14971_v57, %s12740_s14  ;;  %v15332_v57 = vld [vmem:[#allocation3 + $0x79] sm:$0xff]  ;;  %21276 = vst [vmem:[#allocation79_spill] sm:$0xff] %v15348_v62 }
 0x748   : > { %v15146_v8 = vpop.permute.xlu1 %4877  ;;  %21274 = vst [vmem:[#allocation77_spill] sm:$0xff] %v15332_v57 }
 0x749   : > { %21230 = vst [vmem:[#allocation33_spill] sm:$0xff] %v15146_v8 }
 0x74b   : > { %7963 = vrot.lane.b32.xlu0 %v14987_v53, %s12740_s14  ;;  %7965 = vrot.lane.b32.xlu1 %v14991_v9, %s12740_s14  ;;  %v15300_v53 = vld [vmem:[#allocation3 + $0xa9] sm:$0xff]  ;;  %v15335_v9 = vrot.slane %v6869_v50, %v21199_v61 }
 0x74c   : > { %v15156_v63 = vpop.permute.xlu1 %4881  ;;  %21266 = vst [vmem:[#allocation69_spill] sm:$0xff] %v15300_v53  ;;  %v6477_v38 = vcombine.low %v15332_v57, %v15300_v53  ;;  %v15350_v50 = vld [vmem:[#allocation3 + $0xb0] sm:$0xff]  ;;  %v15360_v57 = vld [vmem:[#allocation3 + $0x3a] sm:$0xff] }
 0x74d   : > { %21231 = vst [vmem:[#allocation34_spill] sm:$0xff] %v15156_v63  ;;  %21275 = vst [vmem:[#allocation78_spill] sm:$0xff] %v15335_v9  ;;  %v15362_v53 = vld [vmem:[#allocation3 + $0x52] sm:$0xff] }
 0x74e   : > { %21277 = vst [vmem:[#allocation80_spill] sm:$0xff] %v15350_v50  ;;  %21281 = vst [vmem:[#allocation84_spill] sm:$0xff] %v15360_v57 }
 0x74f   : > { %7971 = vrot.lane.b32.xlu0 %v15007_v37, %s12740_s14  ;;  %7973 = vrot.lane.b32.xlu1 %v15023_v23, %s12740_s14  ;;  %v15327_v23 = vld [vmem:[#allocation3 + $0x61] sm:$0xff]  ;;  %21282 = vst [vmem:[#allocation85_spill] sm:$0xff] %v15362_v53 }
 0x750   : > { %v15172_v2 = vpop.permute.xlu1 %4885  ;;  %21272 = vst [vmem:[#allocation75_spill] sm:$0xff] %v15327_v23  ;;  %v6461_v34 = vcombine.low %v15327_v23, %v15298_v39  ;;  %v15358_v39 = vld [vmem:[#allocation3 + $0xa] sm:$0xff]  ;;  %v15377_v23 = vld [vmem:[#allocation3 + $0x80] sm:$0xff] }
 0x751   : > { %21234 = vst [vmem:[#allocation37_spill] sm:$0xff] %v15172_v2  ;;  %21280 = vst [vmem:[#allocation83_spill] sm:$0xff] %v15358_v39 }
 0x752   : > { %21286 = vst [vmem:[#allocation89_spill] sm:$0xff] %v15377_v23 }
 0x753   : > { %7979 = vrot.lane.b32.xlu0 %v15034_v10, %s12740_s14  ;;  %7981 = vrot.lane.b32.xlu1 %v15040_v28, %s12740_s14  ;;  %v15252_v10 = vld [vmem:[#allocation3 + $0x12a] sm:$0xff]  ;;  %v15330_v28 = vrot.slane %v6445_v49, %v21199_v61 }
 0x754   : > { %v15202_v0 = vpop.permute.xlu1 %4889  ;;  %21253 = vst [vmem:[#allocation56_spill] sm:$0xff] %v15252_v10  ;;  %v9177_v37 = vcombine.low %v15252_v10, %v15225_v21 }
 0x755   : > { %21240 = vst [vmem:[#allocation43_spill] sm:$0xff] %v15202_v0  ;;  %21273 = vst [vmem:[#allocation76_spill] sm:$0xff] %v15330_v28 }
 0x756   : > { %v15369_v33 = vrot.slane %v9177_v37, %v21199_v61  ;;  %v15388_v37 = vrot.slane %v8921_v59, %v21199_v61  ;;  %v4441_v59 = vcombine.low %v15377_v23, %v15350_v50  ;;  %v15426_v23 = vld [vmem:[#allocation3 + $0x68] sm:$0xff] }
 0x757   : > { %7987 = vrot.lane.b32.xlu0 %v15058_v30, %s12740_s14  ;;  %9487 = vrot.lane.b32.xlu1 %v15196_v43, %s12739_s13  ;;  %v15254_v30 = vld [vmem:[#allocation3 + $0x122] sm:$0xff]  ;;  %v15408_v43 = vld [vmem:[#allocation3 + $0x99] sm:$0xff]  ;;  %21302 = vst [vmem:[#allocation105_spill] sm:$0xff] %v15426_v23  ;;  %v4425_v50 = vcombine.low %v15426_v23, %v15393_v56  ;;  %v15458_v56 = vld [vmem:[#allocation3 + $0x6a] sm:$0xff] }
 0x758   : > { %v15286_v24 = vpop.permute.xlu1 %4893  ;;  %v8905_v52 = vcombine.low %v15254_v30, %v15235_v1  ;;  %21283 = vst [vmem:[#allocation86_spill] sm:$0xff] %v15369_v33  ;;  %21291 = vst [vmem:[#allocation94_spill] sm:$0xff] %v15388_v37 }
 0x759   : > { %21264 = vst [vmem:[#allocation67_spill] sm:$0xff] %v15286_v24  ;;  %21308 = vst [vmem:[#allocation111_spill] sm:$0xff] %v15458_v56 }
 0x75a   : > { %v15372_v46 = vrot.slane %v8905_v52, %v21199_v61  ;;  %v15391_v52 = vrot.slane %v4393_v26, %v21199_v61  ;;  %v15411_v26 = vrot.slane %v6461_v34, %v21199_v61  ;;  %v15444_v34 = vld [vmem:[#allocation3 + $0x32] sm:$0xff] }
 0x75b   : > { %7961 = vrot.lane.b32.xlu0 %v15094_v47, %s12740_s14  ;;  %9495 = vrot.lane.b32.xlu1 %v15177_v27, %s12739_s13  ;;  %v15356_v47 = vrot.slane %v6717_v58, %v21199_v61  ;;  %v15375_v58 = vrot.slane %v9193_v32, %v21199_v61  ;;  %v15396_v32 = vrot.slane %v6701_v13, %v21199_v61  ;;  %v15402_v27 = vld [vmem:[#allocation3 + $0x22] sm:$0xff] }
 0x75c   : > { %v15319_v42 = vpop.permute.xlu0 %4871  ;;  %21284 = vst [vmem:[#allocation87_spill] sm:$0xff] %v15372_v46  ;;  %21292 = vst [vmem:[#allocation95_spill] sm:$0xff] %v15391_v52  ;;  %v15414_v13 = vrot.slane %v6477_v38, %v21199_v61 }
 0x75d   : > { %21271 = vst [vmem:[#allocation74_spill] sm:$0xff] %v15319_v42  ;;  %21279 = vst [vmem:[#allocation82_spill] sm:$0xff] %v15356_v47  ;;  %v15383_v49 = vpop.permute.xlu1 %4897  ;;  %v9009_v42 = vcombine.low %v15358_v39, %v15360_v57  ;;  %v15432_v39 = vld [vmem:[#allocation3 + $0x9a] sm:$0xff]  ;;  %v15434_v57 = vld [vmem:[#allocation3 + $0x82] sm:$0xff] }
 0x75e   : > { %21285 = vst [vmem:[#allocation88_spill] sm:$0xff] %v15375_v58  ;;  %21289 = vst [vmem:[#allocation92_spill] sm:$0xff] %v15383_v49  ;;  %v5117_v18 = vcombine.low %v15202_v0, %v15383_v49 }
 0x75f   : > { %7969 = vrot.lane.b32.xlu0 %v15116_v29, %s12740_s14  ;;  %9503 = vrot.lane.b32.xlu1 %v15252_v10, %s12739_s13  ;;  %v15379_v29 = vld [vmem:[#allocation3 + $0xb1] sm:$0xff]  ;;  %21294 = vst [vmem:[#allocation97_spill] sm:$0xff] %v15396_v32  ;;  %v15398_v10 = vld [vmem:[#allocation3 + $0x81] sm:$0xff]  ;;  %21296 = vst [vmem:[#allocation99_spill] sm:$0xff] %v15402_v27 }
 0x760   : > { %21287 = vst [vmem:[#allocation90_spill] sm:$0xff] %v15379_v29  ;;  %v15385_v22 = vpop.permute.xlu0 %4875  ;;  %21295 = vst [vmem:[#allocation98_spill] sm:$0xff] %v15398_v10  ;;  %v6749_v38 = vcombine.low %v15398_v10, %v15379_v29  ;;  %v9025_v29 = vcombine.low %v15402_v27, %v15362_v53  ;;  %v15448_v10 = vld [vmem:[#allocation3 + $0x62] sm:$0xff]  ;;  %v8753_v27 = vcombine.low %v15420_v12, %v15381_v11 }
 0x761   : > { %21290 = vst [vmem:[#allocation93_spill] sm:$0xff] %v15385_v22  ;;  %21298 = vst [vmem:[#allocation101_spill] sm:$0xff] %v15411_v26  ;;  %v8715_v22 = vld [vmem:[#allocation3 + $0x7a] sm:$0xff]  ;;  %v8769_v23 = vcombine.low %v15448_v10, %v15418_v15  ;;  %v5101_v53 = vcombine.low %v15172_v2, %v15286_v24  ;;  %v15477_v15 = vpop.permute.xlu1 %5651 }
 0x762   : > { %21299 = vst [vmem:[#allocation102_spill] sm:$0xff] %v15414_v13  ;;  %21303 = vst [vmem:[#allocation106_spill] sm:$0xff] %v15432_v39  ;;  %v8785_v1 = vcombine.low %v8715_v22, %v8719_v3  ;;  %v9057_v22 = vcombine.low %v15434_v57, %v15404_v7  ;;  %v5085_v3 = vcombine.low %v15138_v60, %v15156_v63  ;;  %v15473_v7 = vld [vmem:[#allocation3 + $0x2] sm:$0xff] }
 0x763   : > { %7977 = vrot.lane.b32.xlu0 %v15128_v5, %s12740_s14  ;;  %21304 = vst [vmem:[#allocation107_spill] sm:$0xff] %v15434_v57  ;;  %9511 = vrot.lane.b32.xlu1 %v15225_v21, %s12739_s13  ;;  %v15442_v5 = vld [vmem:[#allocation3 + $0x69] sm:$0xff]  ;;  %21305 = vst [vmem:[#allocation108_spill] sm:$0xff] %v15444_v34  ;;  %v15467_v57 = vrot.slane %v4441_v59, %v21199_v61  ;;  %v6525_v60 = vcombine.low %v15411_v26, %v15414_v13 }
 0x764   : > { %21306 = vst [vmem:[#allocation109_spill] sm:$0xff] %v15448_v10  ;;  %v15454_v0 = vpop.permute.xlu0 %4879  ;;  %v6733_v49 = vcombine.low %v15442_v5, %v15408_v43  ;;  %v9041_v63 = vcombine.low %v15458_v56, %v15432_v39  ;;  %21310 = vst [vmem:[#allocation113_spill] sm:$0xff] %v15473_v7  ;;  %v5069_v10 = vcombine.low %v15126_v19, %v15146_v8 }
 0x765   : > { %21307 = vst [vmem:[#allocation110_spill] sm:$0xff] %v15454_v0  ;;  %21309 = vst [vmem:[#allocation112_spill] sm:$0xff] %v15467_v57  ;;  %v15482_v2 = vrot.slane %v6749_v38, %v21199_v61  ;;  %v8737_v59 = vcombine.low %v15473_v7, %v15444_v34  ;;  %v15487_v24 = vrot.slane %v8785_v1, %v21199_v61  ;;  %v21363_v34 = vld [vmem:[#allocation74_spill] sm:$0xff] }
 0x766   : > { %21311 = vst [vmem:[#allocation114_spill] sm:$0xff] %v15477_v15  ;;  %v15490_v56 = vrot.slane %v5117_v18, %v21199_v61  ;;  %v15495_v19 = vrot.slane %v4425_v50, %v21199_v61  ;;  %v15498_v8 = vrot.slane %v9025_v29, %v21199_v61  ;;  %v15501_v38 = vrot.slane %v9057_v22, %v21199_v61 }
 0x767   : > { %7985 = vrot.lane.b32.xlu0 %v15140_v48, %s12740_s14  ;;  %21312 = vst [vmem:[#allocation115_spill] sm:$0xff] %v15482_v2  ;;  %21313 = vst [vmem:[#allocation116_spill] sm:$0xff] %v15487_v24  ;;  %9485 = vrot.lane.b32.xlu1 %v15206_v25, %s12739_s13  ;;  %v15504_v39 = vrot.slane %v5085_v3, %v21199_v61  ;;  %v15509_v18 = vrot.slane %v6733_v49, %v21199_v61 }
 0x768   : > { %21314 = vst [vmem:[#allocation117_spill] sm:$0xff] %v15490_v56  ;;  %21315 = vst [vmem:[#allocation118_spill] sm:$0xff] %v15495_v19  ;;  %v15506_v1 = vpop.permute.xlu0 %4883  ;;  %v15512_v12 = vrot.slane %v8769_v23, %v21199_v61  ;;  %v15515_v50 = vrot.slane %v8753_v27, %v21199_v61  ;;  %v15518_v29 = vrot.slane %v5101_v53, %v21199_v61  ;;  %v21361_v7 = vld [vmem:[#allocation93_spill] sm:$0xff] }
 0x769   : > { %21316 = vst [vmem:[#allocation119_spill] sm:$0xff] %v15498_v8  ;;  %21317 = vst [vmem:[#allocation120_spill] sm:$0xff] %v15501_v38  ;;  %v4489_v22 = vcombine.low %v15495_v19, %v15467_v57  ;;  %v15523_v3 = vrot.slane %v9009_v42, %v21199_v61  ;;  %v15526_v11 = vrot.slane %v9041_v63, %v21199_v61 }
 0x76a   : > { %21318 = vst [vmem:[#allocation121_spill] sm:$0xff] %v15504_v39  ;;  %21319 = vst [vmem:[#allocation122_spill] sm:$0xff] %v15506_v1  ;;  %v15529_v49 = vrot.slane %v5069_v10, %v21199_v61  ;;  %v6797_v23 = vcombine.low %v15509_v18, %v15482_v2  ;;  %v15536_v53 = vrot.slane %v8737_v59, %v21199_v61  ;;  %v15552_v2 = vpop.permute.xlu1 %5659 }
 0x76b   : > { %21320 = vst [vmem:[#allocation123_spill] sm:$0xff] %v15509_v18  ;;  %21321 = vst [vmem:[#allocation124_spill] sm:$0xff] %v15512_v12  ;;  %9491 = vrot.lane.b32.xlu0 %v15208_v55, %s12739_s13  ;;  %v8833_v27 = vcombine.low %v15512_v12, %v15487_v24  ;;  %v5165_v42 = vcombine.low %v15518_v29, %v15490_v56  ;;  %9493 = vrot.lane.b32.xlu1 %v15186_v35, %s12739_s13 }
 0x76c   : > { %21322 = vst [vmem:[#allocation125_spill] sm:$0xff] %v15515_v50  ;;  %21323 = vst [vmem:[#allocation126_spill] sm:$0xff] %v15518_v29  ;;  %v9241_v63 = vcombine.low %v15369_v33, %v15375_v58  ;;  %v8969_v10 = vcombine.low %v15372_v46, %v15388_v37  ;;  %v9105_v18 = vcombine.low %v15526_v11, %v15501_v38 }
 0x76d   : > { %21324 = vst [vmem:[#allocation127_spill] sm:$0xff] %v15523_v3  ;;  %21325 = vst [vmem:[#allocation128_spill] sm:$0xff] %v15526_v11  ;;  %v5133_v59 = vcombine.low %v15529_v49, %v15504_v39  ;;  %v15554_v12 = vpop.permute.xlu0 %4887  ;;  %v9073_v29 = vcombine.low %v15523_v3, %v15498_v8  ;;  %v8801_v56 = vcombine.low %v15536_v53, %v15515_v50 }
 0x76e   : > { %21326 = vst [vmem:[#allocation129_spill] sm:$0xff] %v15529_v49  ;;  %21327 = vst [vmem:[#allocation130_spill] sm:$0xff] %v15536_v53  ;;  %v21330_v24 = vcombine.low %v15353_v4, %v15330_v28  ;;  %v15567_v11 = vrot.slane %v6525_v60, %v21200_v44  ;;  %v21333_v49 = vcombine.low %v15391_v52, %v15348_v62 }
 0x76f   : > { %21328 = vst [vmem:[#allocation131_spill] sm:$0xff] %v15552_v2  ;;  %21329 = vst [vmem:[#allocation132_spill] sm:$0xff] %v15554_v12  ;;  %v15576_v38 = vrot.slane %v4489_v22, %v21200_v44  ;;  %v21336_v53 = vcombine.low %v15396_v32, %v15356_v47  ;;  %9499 = vrot.lane.b32.xlu0 %v15188_v54, %s12739_s13  ;;  %v21339_v60 = vcombine.low %v15247_v40, %v15221_v14  ;;  %v21433_v47 = vld [vmem:[#allocation50_spill] sm:$0xff] }
 0x770   : > { %v15564_v19 = vrot.slane %v21330_v24, %v21200_v44  ;;  %21332 = vst [vmem:[#allocation134_spill] sm:$0xff] %v15567_v11  ;;  %v15573_v39 = vrot.slane %v21333_v49, %v21200_v44  ;;  %v15587_v24 = vrot.slane %v6797_v23, %v21200_v44  ;;  %v21341_v22 = vcombine.low %v15335_v9, %v15303_v17  ;;  %v21574_v40 = vld [vmem:[#allocation102_spill] sm:$0xff]  ;;  %v21575_v17 = vld [vmem:[#allocation101_spill] sm:$0xff] }
 0x771   : > { %21335 = vst [vmem:[#allocation136_spill] sm:$0xff] %v15576_v38  ;;  %v15582_v50 = vrot.slane %v21336_v53, %v21200_v44  ;;  %v15593_v49 = vrot.slane %v21339_v60, %v21200_v44  ;;  %v15602_v53 = vrot.slane %v8833_v27, %v21200_v44  ;;  %v15605_v3 = vrot.slane %v5165_v42, %v21200_v44  ;;  %v15621_v27 = vpop.permute.xlu1 %5667  ;;  %v15623_v26 = vpop.permute.xlu0 %4891 }
 0x772   : > { %21331 = vst [vmem:[#allocation133_spill] sm:$0xff] %v15564_v19  ;;  %21334 = vst [vmem:[#allocation135_spill] sm:$0xff] %v15573_v39  ;;  %v15599_v57 = vrot.slane %v21341_v22, %v21200_v44  ;;  %9501 = vrot.lane.b32.xlu1 %v15254_v30, %s12739_s13  ;;  %v15610_v23 = vrot.slane %v8969_v10, %v21200_v44  ;;  %v15613_v60 = vrot.slane %v9105_v18, %v21200_v44 }
 0x773   : > { %21337 = vst [vmem:[#allocation137_spill] sm:$0xff] %v15582_v50  ;;  %21338 = vst [vmem:[#allocation138_spill] sm:$0xff] %v15587_v24  ;;  %v15616_v8 = vrot.slane %v9241_v63, %v21200_v44  ;;  %v15619_v22 = vrot.slane %v5133_v59, %v21200_v44  ;;  %v15626_v42 = vrot.slane %v8801_v56, %v21200_v44  ;;  %9507 = vrot.lane.b32.xlu0 %v15290_v41, %s12739_s13  ;;  %v21358_v56 = vld [vmem:[#allocation49_spill] sm:$0xff] }
 0x774   : > { %21340 = vst [vmem:[#allocation139_spill] sm:$0xff] %v15593_v49  ;;  %21342 = vst [vmem:[#allocation140_spill] sm:$0xff] %v15599_v57  ;;  %v21352_v10 = vcombine.low %v15270_v45, %v15276_v6  ;;  %v15635_v18 = vrot.slane %v9073_v29, %v21200_v44  ;;  %v21355_v63 = vcombine.low %v15250_v20, %v15273_v51  ;;  %v16458_v45 = vld [vmem:[#allocation3 + $0x19] sm:$0xff] }
 0x775   : > { %21343 = vst [vmem:[#allocation141_spill] sm:$0xff] %v15602_v53  ;;  %21344 = vst [vmem:[#allocation142_spill] sm:$0xff] %v15605_v3  ;;  %v15669_v50 = vpop.permute.xlu0 %4895  ;;  %v21362_v53 = vld [vmem:[#allocation57_spill] sm:$0xff] }
 0x776   : > { %21345 = vst [vmem:[#allocation143_spill] sm:$0xff] %v15610_v23  ;;  %21346 = vst [vmem:[#allocation144_spill] sm:$0xff] %v15613_v60  ;;  %v15632_v13 = vrot.slane %v21352_v10, %v21200_v44  ;;  %v15641_v59 = vrot.slane %v21355_v63, %v21200_v44  ;;  %9509 = vrot.lane.b32.xlu1 %v21358_v56, %s12739_s13  ;;  %v15671_v63 = vpop.permute.xlu1 %5675  ;;  %v5373_v16 = vcombine.low %v15554_v12, %v15669_v50  ;;  %v21364_v10 = vld [vmem:[#allocation42_spill] sm:$0xff] }
 0x777   : > { %21347 = vst [vmem:[#allocation145_spill] sm:$0xff] %v15616_v8  ;;  %21348 = vst [vmem:[#allocation146_spill] sm:$0xff] %v15619_v22  ;;  %9515 = vrot.lane.b32.xlu0 %v21362_v53, %s12739_s13  ;;  %v6121_v23 = vcombine.low %v15477_v15, %v15552_v2  ;;  %v6153_v49 = vcombine.low %v15621_v27, %v15671_v63 }
 0x778   : > { %21349 = vst [vmem:[#allocation147_spill] sm:$0xff] %v15621_v27  ;;  %21350 = vst [vmem:[#allocation148_spill] sm:$0xff] %v15623_v26  ;;  %v15698_v12 = vrot.slane %v5373_v16, %v21199_v61 }
 0x779   : > { %21351 = vst [vmem:[#allocation149_spill] sm:$0xff] %v15626_v42  ;;  %21353 = vst [vmem:[#allocation150_spill] sm:$0xff] %v15632_v13  ;;  %v5357_v42 = vcombine.low %v21361_v7, %v15506_v1  ;;  %v5341_v13 = vcombine.low %v21363_v34, %v15454_v0  ;;  %v15683_v32 = vpop.permute.xlu0 %4899  ;;  %v21368_v1 = vld [vmem:[#allocation44_spill] sm:$0xff]  ;;  %v21372_v0 = vld [vmem:[#allocation39_spill] sm:$0xff]  ;;  %v15762_v27 = vrot.slane %v6153_v49, %v21199_v61 }
 0x77a   : > { %21354 = vst [vmem:[#allocation151_spill] sm:$0xff] %v15635_v18  ;;  %21356 = vst [vmem:[#allocation152_spill] sm:$0xff] %v15641_v59  ;;  %10267 = vrot.lane.b32.xlu1 %v21364_v10, %s12740_s14  ;;  %v15685_v22 = vpop.permute.xlu1 %5649  ;;  %v5389_v7 = vcombine.low %v15623_v26, %v15683_v32  ;;  %v9146_v33 = vcombine.high %v21364_v10, %v21372_v0 }
 0x77b   : > { %21359 = vst [vmem:[#allocation49_spill] sm:$0xff] %v15669_v50  ;;  %21360 = vst [vmem:[#allocation153_spill] sm:$0xff] %v15671_v63  ;;  %v15688_v3 = vrot.slane %v5357_v42, %v21199_v61  ;;  %9489 = vrot.lane.b32.xlu0 %v21368_v1, %s12739_s13  ;;  %v15695_v34 = vrot.slane %v5341_v13, %v21199_v61  ;;  %v21375_v13 = vld [vmem:[#allocation41_spill] sm:$0xff] }
 0x77c   : > { %21365 = vst [vmem:[#allocation57_spill] sm:$0xff] %v15683_v32  ;;  %21366 = vst [vmem:[#allocation42_spill] sm:$0xff] %v15685_v22  ;;  %v15701_v50 = vrot.slane %v5389_v7, %v21199_v61  ;;  %v21377_v7 = vld [vmem:[#allocation56_spill] sm:$0xff] }
 0x77d   : > { %21367 = vst [vmem:[#allocation154_spill] sm:$0xff] %v15688_v3  ;;  %21369 = vst [vmem:[#allocation44_spill] sm:$0xff] %v15695_v34  ;;  %v15705_v42 = vpop.permute.xlu0 %5655  ;;  %v5405_v26 = vcombine.low %v15695_v34, %v15688_v3 }
 0x77e   : > { %21370 = vst [vmem:[#allocation155_spill] sm:$0xff] %v15698_v12  ;;  %21371 = vst [vmem:[#allocation156_spill] sm:$0xff] %v15701_v50  ;;  %10275 = vrot.lane.b32.xlu1 %v21372_v0, %s12740_s14  ;;  %v5437_v32 = vcombine.low %v15698_v12, %v15701_v50  ;;  %v15711_v59 = vpop.permute.xlu1 %5657  ;;  %v21381_v12 = vld [vmem:[#allocation71_spill] sm:$0xff] }
 0x77f   : > { %21373 = vst [vmem:[#allocation39_spill] sm:$0xff] %v15705_v42  ;;  %21374 = vst [vmem:[#allocation157_spill] sm:$0xff] %v15711_v59  ;;  %9497 = vrot.lane.b32.xlu0 %v21375_v13, %s12739_s13  ;;  %v15723_v18 = vrot.slane %v5405_v26, %v21200_v44  ;;  %v21384_v26 = vld [vmem:[#allocation58_spill] sm:$0xff]  ;;  %v5849_v2 = vcombine.low %v15685_v22, %v15711_v59 }
 0x780   : > { %v15716_v16 = vrot.slane %v5437_v32, %v21200_v44  ;;  %21389 = vst [vmem:[#allocation164_spill] sm:$0xff] %v15762_v27 }
 0x781   : > { %v15720_v8 = vpop.permute.xlu0 %5663  ;;  %21379 = vst [vmem:[#allocation158_spill] sm:$0xff] %v15723_v18 }
 0x782   : > { %21376 = vst [vmem:[#allocation41_spill] sm:$0xff] %v15716_v16  ;;  %10283 = vrot.lane.b32.xlu1 %v21377_v7, %s12740_s14  ;;  %21378 = vst [vmem:[#allocation56_spill] sm:$0xff] %v15720_v8  ;;  %v15725_v34 = vpop.permute.xlu1 %5665  ;;  %v6137_v3 = vcombine.low %v15705_v42, %v15720_v8  ;;  %v15759_v8 = vrot.slane %v6121_v23, %v21199_v61 }
 0x783   : > { %21380 = vst [vmem:[#allocation159_spill] sm:$0xff] %v15725_v34  ;;  %9505 = vrot.lane.b32.xlu0 %v21381_v12, %s12739_s13 }
 0x784   : > { %v15750_v18 = vrot.slane %v6137_v3, %v21199_v61  ;;  %21388 = vst [vmem:[#allocation163_spill] sm:$0xff] %v15759_v8 }
 0x785   : > { %v15733_v50 = vpop.permute.xlu0 %5671 }
 0x786   : > { %10291 = vrot.lane.b32.xlu1 %v15225_v21, %s12740_s14  ;;  %21382 = vst [vmem:[#allocation71_spill] sm:$0xff] %v15733_v50  ;;  %v15737_v60 = vpop.permute.xlu1 %5673  ;;  %21386 = vst [vmem:[#allocation161_spill] sm:$0xff] %v15750_v18 }
 0x787   : > { %21383 = vst [vmem:[#allocation160_spill] sm:$0xff] %v15737_v60  ;;  %9513 = vrot.lane.b32.xlu0 %v21384_v26, %s12739_s13  ;;  %v5881_v57 = vcombine.low %v15725_v34, %v15737_v60  ;;  %v15827_v34 = vrot.slane %v5849_v2, %v21199_v61 }
 0x789   : > { %v15747_v32 = vpop.permute.xlu0 %5679  ;;  %21402 = vst [vmem:[#allocation177_spill] sm:$0xff] %v15827_v34  ;;  %v15830_v60 = vrot.slane %v5881_v57, %v21199_v61  ;;  %v15847_v57 = vld [vmem:[#allocation3 + $0x30] sm:$0xff] }
 0x78a   : > { %10265 = vrot.lane.b32.xlu1 %v15206_v25, %s12740_s14  ;;  %21385 = vst [vmem:[#allocation58_spill] sm:$0xff] %v15747_v32  ;;  %v6169_v16 = vcombine.low %v15733_v50, %v15747_v32  ;;  %v15754_v42 = vpop.permute.xlu1 %7179  ;;  %v6185_v50 = vcombine.low %v15759_v8, %v15750_v18 }
 0x78b   : > { %21387 = vst [vmem:[#allocation162_spill] sm:$0xff] %v15754_v42  ;;  %10271 = vrot.lane.b32.xlu0 %v15208_v55, %s12740_s14  ;;  %21403 = vst [vmem:[#allocation178_spill] sm:$0xff] %v15830_v60 }
 0x78c   : > { %v15765_v63 = vrot.slane %v6169_v16, %v21199_v61  ;;  %v15787_v16 = vrot.slane %v6185_v50, %v21200_v44  ;;  %v15805_v50 = vld [vmem:[#allocation3] sm:$0xff] }
 0x78d   : > { %v15769_v3 = vpop.permute.xlu0 %5653 }
 0x78e   : > { %21390 = vst [vmem:[#allocation165_spill] sm:$0xff] %v15765_v63  ;;  %10273 = vrot.lane.b32.xlu1 %v15186_v35, %s12740_s14  ;;  %21391 = vst [vmem:[#allocation166_spill] sm:$0xff] %v15769_v3  ;;  %v6217_v32 = vcombine.low %v15762_v27, %v15765_v63  ;;  %v15775_v15 = vpop.permute.xlu1 %7187 }
 0x78f   : > { %21392 = vst [vmem:[#allocation167_spill] sm:$0xff] %v15775_v15  ;;  %10279 = vrot.lane.b32.xlu0 %v15188_v54, %s12740_s14  ;;  %21395 = vst [vmem:[#allocation170_spill] sm:$0xff] %v15787_v16  ;;  %v7649_v29 = vcombine.low %v15754_v42, %v15775_v15  ;;  %v15896_v42 = vld [vmem:[#allocation3 + $0x78] sm:$0xff] }
 0x790   : > { %v15780_v49 = vrot.slane %v6217_v32, %v21200_v44  ;;  %21418 = vst [vmem:[#allocation192_spill] sm:$0xff] %v15896_v42 }
 0x791   : > { %v15784_v23 = vpop.permute.xlu0 %5661 }
 0x792   : > { %21393 = vst [vmem:[#allocation168_spill] sm:$0xff] %v15780_v49  ;;  %10281 = vrot.lane.b32.xlu1 %v15254_v30, %s12740_s14  ;;  %21394 = vst [vmem:[#allocation169_spill] sm:$0xff] %v15784_v23  ;;  %v15789_v8 = vpop.permute.xlu1 %7195  ;;  %v5865_v27 = vcombine.low %v15769_v3, %v15784_v23  ;;  %v15824_v23 = vld [vmem:[#allocation3 + $0x18] sm:$0xff] }
 0x793   : > { %21396 = vst [vmem:[#allocation171_spill] sm:$0xff] %v15789_v8  ;;  %10287 = vrot.lane.b32.xlu0 %v15290_v41, %s12740_s14 }
 0x794   : > { %v15816_v16 = vrot.slane %v5865_v27, %v21199_v61 }
 0x795   : > { %v15797_v18 = vpop.permute.xlu0 %5669 }
 0x796   : > { %10289 = vrot.lane.b32.xlu1 %v21358_v56, %s12740_s14  ;;  %21397 = vst [vmem:[#allocation172_spill] sm:$0xff] %v15797_v18  ;;  %v15801_v63 = vpop.permute.xlu1 %7203  ;;  %21400 = vst [vmem:[#allocation175_spill] sm:$0xff] %v15816_v16 }
 0x797   : > { %21398 = vst [vmem:[#allocation173_spill] sm:$0xff] %v15801_v63  ;;  %10295 = vrot.lane.b32.xlu0 %v21362_v53, %s12740_s14  ;;  %v7681_v31 = vcombine.low %v15789_v8, %v15801_v63  ;;  %v15899_v8 = vrot.slane %v7649_v29, %v21199_v61  ;;  %v21424_v29 = vld [vmem:[#allocation59_spill] sm:$0xff] }
 0x799   : > { %v15813_v32 = vpop.permute.xlu0 %5677  ;;  %21419 = vst [vmem:[#allocation193_spill] sm:$0xff] %v15899_v8  ;;  %v15902_v63 = vrot.slane %v7681_v31, %v21199_v61  ;;  %v15919_v31 = vld [vmem:[#allocation3 + $0x90] sm:$0xff] }
 0x79a   : > { %4837 = vrot.lane.b32.xlu1 %v15805_v50, %s12739_s13  ;;  %21399 = vst [vmem:[#allocation174_spill] sm:$0xff] %v15813_v32  ;;  %v5897_v49 = vcombine.low %v15797_v18, %v15813_v32  ;;  %v15820_v3 = vpop.permute.xlu1 %7177  ;;  %v5913_v18 = vcombine.low %v15827_v34, %v15816_v16  ;;  %21425 = vst [vmem:[#allocation198_spill] sm:$0xff] %v15919_v31 }
 0x79b   : > { %21401 = vst [vmem:[#allocation176_spill] sm:$0xff] %v15820_v3  ;;  %10269 = vrot.lane.b32.xlu0 %v21368_v1, %s12740_s14  ;;  %21420 = vst [vmem:[#allocation194_spill] sm:$0xff] %v15902_v63 }
 0x79c   : > { %v15833_v22 = vrot.slane %v5897_v49, %v21199_v61  ;;  %v15857_v34 = vrot.slane %v5913_v18, %v21200_v44 }
 0x79d   : > { %v15837_v27 = vpop.permute.xlu0 %7183 }
 0x79e   : > { %21404 = vst [vmem:[#allocation179_spill] sm:$0xff] %v15833_v22  ;;  %4841 = vrot.lane.b32.xlu1 %v15824_v23, %s12739_s13  ;;  %21405 = vst [vmem:[#allocation180_spill] sm:$0xff] %v15837_v27  ;;  %v5945_v32 = vcombine.low %v15830_v60, %v15833_v22  ;;  %v15843_v59 = vpop.permute.xlu1 %7185  ;;  %v15863_v60 = vld [vmem:[#allocation3 + $0x48] sm:$0xff] }
 0x79f   : > { %21406 = vst [vmem:[#allocation181_spill] sm:$0xff] %v15843_v59  ;;  %10277 = vrot.lane.b32.xlu0 %v21375_v13, %s12740_s14  ;;  %21409 = vst [vmem:[#allocation184_spill] sm:$0xff] %v15857_v34  ;;  %v7377_v52 = vcombine.low %v15820_v3, %v15843_v59 }
 0x7a0   : > { %v15850_v2 = vrot.slane %v5945_v32, %v21200_v44 }
 0x7a1   : > { %v15854_v49 = vpop.permute.xlu0 %7191  ;;  %v15967_v3 = vrot.slane %v7377_v52, %v21199_v61  ;;  %v21443_v52 = vld [vmem:[#allocation89_spill] sm:$0xff] }
 0x7a2   : > { %21407 = vst [vmem:[#allocation182_spill] sm:$0xff] %v15850_v2  ;;  %4845 = vrot.lane.b32.xlu1 %v15847_v57, %s12739_s13  ;;  %21408 = vst [vmem:[#allocation183_spill] sm:$0xff] %v15854_v49  ;;  %v15859_v16 = vpop.permute.xlu1 %7193  ;;  %v7665_v24 = vcombine.low %v15837_v27, %v15854_v49  ;;  %v21417_v49 = vld [vmem:[#allocation72_spill] sm:$0xff] }
 0x7a3   : > { %21410 = vst [vmem:[#allocation185_spill] sm:$0xff] %v15859_v16  ;;  %10285 = vrot.lane.b32.xlu0 %v21381_v12, %s12740_s14  ;;  %21438 = vst [vmem:[#allocation208_spill] sm:$0xff] %v15967_v3 }
 0x7a4   : > { %v15888_v34 = vrot.slane %v7665_v24, %v21199_v61 }
 0x7a5   : > { %v15869_v22 = vpop.permute.xlu0 %7199 }
 0x7a6   : > { %4849 = vrot.lane.b32.xlu1 %v15863_v60, %s12739_s13  ;;  %21411 = vst [vmem:[#allocation186_spill] sm:$0xff] %v15869_v22  ;;  %v15873_v18 = vpop.permute.xlu1 %7201  ;;  %21415 = vst [vmem:[#allocation190_spill] sm:$0xff] %v15888_v34 }
 0x7a7   : > { %21412 = vst [vmem:[#allocation187_spill] sm:$0xff] %v15873_v18  ;;  %10293 = vrot.lane.b32.xlu0 %v21384_v26, %s12740_s14  ;;  %v7409_v62 = vcombine.low %v15859_v16, %v15873_v18 }
 0x7a9   : > { %v15885_v32 = vpop.permute.xlu0 %7207  ;;  %v15970_v16 = vrot.slane %v7409_v62, %v21199_v61 }
 0x7aa   : > { %4853 = vrot.lane.b32.xlu1 %v15877_v36, %s12739_s13  ;;  %21414 = vst [vmem:[#allocation189_spill] sm:$0xff] %v15885_v32  ;;  %v7697_v2 = vcombine.low %v15869_v22, %v15885_v32  ;;  %v15892_v27 = vpop.permute.xlu1 %7959  ;;  %v7713_v22 = vcombine.low %v15899_v8, %v15888_v34 }
 0x7ab   : > { %21416 = vst [vmem:[#allocation191_spill] sm:$0xff] %v15892_v27  ;;  %4839 = vrot.lane.b32.xlu0 %v21417_v49, %s12739_s13  ;;  %21439 = vst [vmem:[#allocation209_spill] sm:$0xff] %v15970_v16 }
 0x7ac   : > { %v15905_v15 = vrot.slane %v7697_v2, %v21199_v61  ;;  %v15929_v8 = vrot.slane %v7713_v22, %v21200_v44 }
 0x7ad   : > { %v15909_v24 = vpop.permute.xlu0 %7181 }
 0x7ae   : > { %21421 = vst [vmem:[#allocation195_spill] sm:$0xff] %v15905_v15  ;;  %4857 = vrot.lane.b32.xlu1 %v15896_v42, %s12739_s13  ;;  %21422 = vst [vmem:[#allocation196_spill] sm:$0xff] %v15909_v24  ;;  %v7745_v32 = vcombine.low %v15902_v63, %v15905_v15  ;;  %v15915_v39 = vpop.permute.xlu1 %7967  ;;  %v21430_v63 = vld [vmem:[#allocation64_spill] sm:$0xff]  ;;  %v15935_v15 = vld [vmem:[#allocation3 + $0xa8] sm:$0xff] }
 0x7af   : > { %21423 = vst [vmem:[#allocation197_spill] sm:$0xff] %v15915_v39  ;;  %4843 = vrot.lane.b32.xlu0 %v21424_v29, %s12739_s13  ;;  %21428 = vst [vmem:[#allocation201_spill] sm:$0xff] %v15929_v8  ;;  %v8429_v46 = vcombine.low %v15892_v27, %v15915_v39 }
 0x7b0   : > { %v15922_v2 = vrot.slane %v7745_v32, %v21200_v44 }
 0x7b1   : > { %v15926_v38 = vpop.permute.xlu0 %7189 }
 0x7b2   : > { %21426 = vst [vmem:[#allocation199_spill] sm:$0xff] %v15922_v2  ;;  %4861 = vrot.lane.b32.xlu1 %v15919_v31, %s12739_s13  ;;  %21427 = vst [vmem:[#allocation200_spill] sm:$0xff] %v15926_v38  ;;  %v15931_v34 = vpop.permute.xlu1 %7975  ;;  %v7393_v11 = vcombine.low %v15909_v24, %v15926_v38  ;;  %v21437_v38 = vld [vmem:[#allocation105_spill] sm:$0xff] }
 0x7b3   : > { %21429 = vst [vmem:[#allocation202_spill] sm:$0xff] %v15931_v34  ;;  %4847 = vrot.lane.b32.xlu0 %v21430_v63, %s12739_s13 }
 0x7b4   : > { %v15958_v8 = vrot.slane %v7393_v11, %v21199_v61 }
 0x7b5   : > { %v15941_v19 = vpop.permute.xlu0 %7197 }
 0x7b6   : > { %4865 = vrot.lane.b32.xlu1 %v15935_v15, %s12739_s13  ;;  %21431 = vst [vmem:[#allocation203_spill] sm:$0xff] %v15941_v19  ;;  %v15945_v22 = vpop.permute.xlu1 %7983  ;;  %21435 = vst [vmem:[#allocation206_spill] sm:$0xff] %v15958_v8 }
 0x7b7   : > { %21432 = vst [vmem:[#allocation204_spill] sm:$0xff] %v15945_v22  ;;  %4851 = vrot.lane.b32.xlu0 %v21433_v47, %s12739_s13  ;;  %v8461_v37 = vcombine.low %v15931_v34, %v15945_v22 }
 0x7b9   : > { %v15955_v32 = vpop.permute.xlu0 %7205  ;;  %v16034_v34 = vrot.slane %v8461_v37, %v21199_v61 }
 0x7ba   : > { %5617 = vrot.lane.b32.xlu1 %v15805_v50, %s12740_s14  ;;  %21434 = vst [vmem:[#allocation205_spill] sm:$0xff] %v15955_v32  ;;  %v7425_v2 = vcombine.low %v15941_v19, %v15955_v32  ;;  %v15962_v24 = vpop.permute.xlu1 %7957  ;;  %v7441_v19 = vcombine.low %v15967_v3, %v15958_v8  ;;  %v21448_v8 = vld [vmem:[#allocation96_spill] sm:$0xff] }
 0x7bb   : > { %21436 = vst [vmem:[#allocation207_spill] sm:$0xff] %v15962_v24  ;;  %4855 = vrot.lane.b32.xlu0 %v21437_v38, %s12739_s13  ;;  %21456 = vst [vmem:[#allocation221_spill] sm:$0xff] %v16034_v34 }
 0x7bc   : > { %v15973_v18 = vrot.slane %v7425_v2, %v21199_v61  ;;  %v15995_v4 = vrot.slane %v7441_v19, %v21200_v44  ;;  %v21451_v19 = vld [vmem:[#allocation80_spill] sm:$0xff] }
 0x7bd   : > { %v15977_v11 = vpop.permute.xlu0 %7963 }
 0x7be   : > { %21440 = vst [vmem:[#allocation210_spill] sm:$0xff] %v15973_v18  ;;  %5621 = vrot.lane.b32.xlu1 %v15824_v23, %s12740_s14  ;;  %21441 = vst [vmem:[#allocation211_spill] sm:$0xff] %v15977_v11  ;;  %v7473_v32 = vcombine.low %v15970_v16, %v15973_v18  ;;  %v15983_v59 = vpop.permute.xlu1 %7965 }
 0x7bf   : > { %21442 = vst [vmem:[#allocation212_spill] sm:$0xff] %v15983_v59  ;;  %4859 = vrot.lane.b32.xlu0 %v21443_v52, %s12739_s13  ;;  %21446 = vst [vmem:[#allocation214_spill] sm:$0xff] %v15995_v4 }
 0x7c0   : > { %v15988_v62 = vrot.slane %v7473_v32, %v21200_v44 }
 0x7c1   : > { %v15992_v2 = vpop.permute.xlu0 %7971 }
 0x7c2   : > { %21444 = vst [vmem:[#allocation89_spill] sm:$0xff] %v15988_v62  ;;  %5625 = vrot.lane.b32.xlu1 %v15847_v57, %s12740_s14  ;;  %21445 = vst [vmem:[#allocation213_spill] sm:$0xff] %v15992_v2  ;;  %v15997_v3 = vpop.permute.xlu1 %7973  ;;  %v8445_v18 = vcombine.low %v15977_v11, %v15992_v2  ;;  %v16031_v2 = vrot.slane %v8429_v46, %v21199_v61 }
 0x7c3   : > { %21447 = vst [vmem:[#allocation215_spill] sm:$0xff] %v15997_v3  ;;  %4863 = vrot.lane.b32.xlu0 %v21448_v8, %s12739_s13 }
 0x7c4   : > { %v16022_v4 = vrot.slane %v8445_v18, %v21199_v61  ;;  %21455 = vst [vmem:[#allocation220_spill] sm:$0xff] %v16031_v2 }
 0x7c5   : > { %v16005_v16 = vpop.permute.xlu0 %7979 }
 0x7c6   : > { %5629 = vrot.lane.b32.xlu1 %v15863_v60, %s12740_s14  ;;  %21449 = vst [vmem:[#allocation216_spill] sm:$0xff] %v16005_v16  ;;  %v16009_v28 = vpop.permute.xlu1 %7981  ;;  %21453 = vst [vmem:[#allocation218_spill] sm:$0xff] %v16022_v4 }
 0x7c7   : > { %21450 = vst [vmem:[#allocation217_spill] sm:$0xff] %v16009_v28  ;;  %4867 = vrot.lane.b32.xlu0 %v21451_v19, %s12739_s13 }
 0x7c9   : > { %v16019_v32 = vpop.permute.xlu0 %7987 }
 0x7ca   : > { %5633 = vrot.lane.b32.xlu1 %v15877_v36, %s12740_s14  ;;  %21452 = vst [vmem:[#allocation80_spill] sm:$0xff] %v16019_v32  ;;  %v8477_v62 = vcombine.low %v16005_v16, %v16019_v32  ;;  %v16026_v11 = vpop.permute.xlu1 %9487  ;;  %v8493_v16 = vcombine.low %v16031_v2, %v16022_v4 }
 0x7cb   : > { %21454 = vst [vmem:[#allocation219_spill] sm:$0xff] %v16026_v11  ;;  %5619 = vrot.lane.b32.xlu0 %v21417_v49, %s12740_s14  ;;  %v21469_v49 = vld [vmem:[#allocation17_spill] sm:$0xff] }
 0x7cc   : > { %v16037_v22 = vrot.slane %v8477_v62, %v21199_v61  ;;  %v16059_v62 = vrot.slane %v8493_v16, %v21200_v44 }
 0x7cd   : > { %v16041_v18 = vpop.permute.xlu0 %7961 }
 0x7ce   : > { %21457 = vst [vmem:[#allocation222_spill] sm:$0xff] %v16037_v22  ;;  %5637 = vrot.lane.b32.xlu1 %v15896_v42, %s12740_s14  ;;  %21458 = vst [vmem:[#allocation223_spill] sm:$0xff] %v16041_v18  ;;  %v8525_v32 = vcombine.low %v16034_v34, %v16037_v22  ;;  %v16047_v27 = vpop.permute.xlu1 %9495  ;;  %v21464_v34 = vld [vmem:[#allocation5_spill] sm:$0xff]  ;;  %v21465_v22 = vld [vmem:[#allocation7_spill] sm:$0xff] }
 0x7cf   : > { %21459 = vst [vmem:[#allocation224_spill] sm:$0xff] %v16047_v27  ;;  %5623 = vrot.lane.b32.xlu0 %v21424_v29, %s12740_s14  ;;  %21462 = vst [vmem:[#allocation227_spill] sm:$0xff] %v16059_v62  ;;  %v6582_v4 = vcombine.high %v21465_v22, %v21464_v34  ;;  %v21468_v29 = vld [vmem:[#allocation21_spill] sm:$0xff]  ;;  %v8189_v34 = vcombine.low %v15997_v3, %v16009_v28  ;;  %v21472_v62 = vld [vmem:[#allocation11_spill] sm:$0xff] }
 0x7d0   : > { %v16052_v46 = vrot.slane %v8525_v32, %v21200_v44  ;;  %v6566_v36 = vcombine.high %v21469_v49, %v21468_v29  ;;  %v8157_v32 = vcombine.low %v15962_v24, %v15983_v59  ;;  %v21471_v22 = vld [vmem:[#allocation73_spill] sm:$0xff]  ;;  %v21477_v24 = vld [vmem:[#allocation16_spill] sm:$0xff]  ;;  %v21478_v3 = vld [vmem:[#allocation19_spill] sm:$0xff] }
 0x7d1   : > { %v16056_v37 = vpop.permute.xlu0 %7969  ;;  %v6596_v49 = vrot.slane %v6582_v4, %v21199_v61  ;;  %v4321_v28 = vcombine.low %v21478_v3, %v21477_v24 }
 0x7d2   : > { %21460 = vst [vmem:[#allocation225_spill] sm:$0xff] %v16052_v46  ;;  %5643 = vrot.lane.b32.xlu1 %v21448_v8, %s12740_s14  ;;  %21461 = vst [vmem:[#allocation226_spill] sm:$0xff] %v16056_v37  ;;  %v16061_v2 = vpop.permute.xlu1 %9503  ;;  %v8173_v16 = vcombine.low %v16041_v18, %v16056_v37  ;;  %v21473_v46 = vld [vmem:[#allocation9_spill] sm:$0xff]  ;;  %v6580_v59 = vrot.slane %v6566_v36, %v21199_v61 }
 0x7d3   : > { %21463 = vst [vmem:[#allocation228_spill] sm:$0xff] %v16061_v2  ;;  %5627 = vrot.lane.b32.xlu0 %v21430_v63, %s12740_s14  ;;  %v21470_v63 = vld [vmem:[#allocation31_spill] sm:$0xff]  ;;  %v6598_v18 = vcombine.high %v21473_v46, %v21472_v62  ;;  %v21481_v62 = vld [vmem:[#allocation26_spill] sm:$0xff]  ;;  %v21486_v36 = vld [vmem:[#allocation65_spill] sm:$0xff] }
 0x7d4   : > { %v6614_v42 = vcombine.high %v21470_v63, %v15140_v48  ;;  %v16095_v48 = vrot.slane %v8173_v16, %v21199_v61  ;;  %v21482_v16 = vld [vmem:[#allocation20_spill] sm:$0xff]  ;;  %v6646_v24 = vcombine.high %v6580_v59, %v6596_v49 }
 0x7d5   : > { %v16071_v39 = vpop.permute.xlu0 %7977 }
 0x7d6   : > { %5641 = vrot.lane.b32.xlu1 %v15919_v31, %s12740_s14  ;;  %21466 = vst [vmem:[#allocation5_spill] sm:$0xff] %v16071_v39  ;;  %v16075_v8 = vpop.permute.xlu1 %9511  ;;  %21475 = vst [vmem:[#allocation17_spill] sm:$0xff] %v16095_v48  ;;  %v6628_v4 = vrot.slane %v6614_v42, %v21199_v61  ;;  %v6854_v31 = vcombine.high %v21482_v16, %v21481_v62  ;;  %v6645_v42 = vcombine.low %v6580_v59, %v6596_v49  ;;  %v12686_v16 = vld [vmem:[#allocation3 + $0xf9] sm:$0xff] }
 0x7d7   : > { %21467 = vst [vmem:[#allocation7_spill] sm:$0xff] %v16075_v8  ;;  %5631 = vrot.lane.b32.xlu0 %v21433_v47, %s12740_s14  ;;  %v21480_v47 = vld [vmem:[#allocation38_spill] sm:$0xff]  ;;  %v21489_v59 = vld [vmem:[#allocation36_spill] sm:$0xff] }
 0x7d8   : > { %v21490_v49 = vld [vmem:[#allocation40_spill] sm:$0xff] }
 0x7d9   : > { %v16092_v29 = vpop.permute.xlu0 %7985 }
 0x7da   : > { %7147 = vrot.lane.b32.xlu1 %v21471_v22, %s12739_s13  ;;  %21474 = vst [vmem:[#allocation21_spill] sm:$0xff] %v16092_v29  ;;  %v8205_v63 = vcombine.low %v16071_v39, %v16092_v29  ;;  %v16099_v37 = vpop.permute.xlu1 %9485  ;;  %v21479_v22 = vld [vmem:[#allocation35_spill] sm:$0xff]  ;;  %v16112_v39 = vrot.slane %v8157_v32, %v21199_v61  ;;  %v16115_v29 = vrot.slane %v8189_v34, %v21199_v61  ;;  %v12685_v32 = vld [vmem:[#allocation3 + $0xc9] sm:$0xff] }
 0x7db   : > { %21476 = vst [vmem:[#allocation31_spill] sm:$0xff] %v16099_v37  ;;  %v6630_v46 = vcombine.high %v21480_v47, %v21479_v22  ;;  %5635 = vrot.lane.b32.xlu0 %v21437_v38, %s12740_s14  ;;  %v6612_v47 = vrot.slane %v6598_v18, %v21199_v61  ;;  %v9162_v22 = vcombine.high %v15208_v55, %v15188_v54 }
 0x7dc   : > { %21483 = vst [vmem:[#allocation11_spill] sm:$0xff] %v16112_v39  ;;  %21484 = vst [vmem:[#allocation9_spill] sm:$0xff] %v16115_v29  ;;  %v16118_v3 = vrot.slane %v8205_v63, %v21199_v61  ;;  %v6838_v38 = vcombine.high %v12685_v32, %v12686_v16  ;;  %v8890_v34 = vcombine.high %v21368_v1, %v21375_v13  ;;  %v21501_v16 = vld [vmem:[#allocation18_spill] sm:$0xff] }
 0x7dd   : > { %v16125_v62 = vpop.permute.xlu0 %9491  ;;  %v8221_v63 = vcombine.low %v16112_v39, %v16095_v48  ;;  %v6677_v55 = vcombine.low %v6612_v47, %v6628_v4  ;;  %v6678_v54 = vcombine.high %v6612_v47, %v6628_v4  ;;  %v16142_v1 = vrot.slane %v6854_v31, %v21199_v61 }
 0x7de   : > { %21485 = vst [vmem:[#allocation16_spill] sm:$0xff] %v16118_v3  ;;  %7155 = vrot.lane.b32.xlu1 %v21486_v36, %s12739_s13  ;;  %21487 = vst [vmem:[#allocation19_spill] sm:$0xff] %v16125_v62  ;;  %v8253_v37 = vcombine.low %v16115_v29, %v16118_v3  ;;  %v16133_v18 = vpop.permute.xlu1 %9493  ;;  %v6662_v36 = vcombine.high %v21490_v49, %v21489_v59  ;;  %v8874_v13 = vcombine.high %v15206_v25, %v15186_v35  ;;  %v21514_v29 = vld [vmem:[#allocation48_spill] sm:$0xff] }
 0x7df   : > { %21488 = vst [vmem:[#allocation35_spill] sm:$0xff] %v16133_v18  ;;  %5639 = vrot.lane.b32.xlu0 %v21443_v52, %s12740_s14  ;;  %v16152_v4 = vrot.slane %v4321_v28, %v21200_v44  ;;  %v16155_v0 = vrot.slane %v9162_v22, %v21199_v61  ;;  %v16160_v31 = vrot.slane %v6630_v46, %v21200_v44  ;;  %v21500_v46 = vld [vmem:[#allocation14_spill] sm:$0xff] }
 0x7e0   : > { %v16147_v32 = vrot.slane %v8253_v37, %v21200_v44  ;;  %v16163_v47 = vrot.slane %v6645_v42, %v21200_v44  ;;  %v16166_v25 = vrot.slane %v6646_v24, %v21200_v44  ;;  %v16169_v35 = vrot.slane %v6838_v38, %v21199_v61 }
 0x7e1   : > { %21492 = vst [vmem:[#allocation26_spill] sm:$0xff] %v16152_v4  ;;  %21493 = vst [vmem:[#allocation20_spill] sm:$0xff] %v16155_v0  ;;  %v16157_v10 = vpop.permute.xlu0 %9499  ;;  %v16172_v28 = vrot.slane %v8890_v34, %v21199_v61  ;;  %v16175_v37 = vrot.slane %v8221_v63, %v21200_v44  ;;  %v21502_v59 = vcombine.low %v21500_v46, %v21501_v16  ;;  %v12687_v16 = vld [vmem:[#allocation3 + $0x141] sm:$0xff] }
 0x7e2   : > { %21491 = vst [vmem:[#allocation38_spill] sm:$0xff] %v16147_v32  ;;  %7163 = vrot.lane.b32.xlu1 %v15442_v5, %s12739_s13  ;;  %21494 = vst [vmem:[#allocation36_spill] sm:$0xff] %v16157_v10  ;;  %v16186_v24 = vrot.slane %v9146_v33, %v21199_v61  ;;  %v16191_v38 = vrot.slane %v6662_v36, %v21200_v44  ;;  %v16194_v34 = vrot.slane %v6677_v55, %v21200_v44  ;;  %v21512_v55 = vld [vmem:[#allocation47_spill] sm:$0xff]  ;;  %v21544_v0 = vld [vmem:[#allocation68_spill] sm:$0xff] }
 0x7e3   : > { %21495 = vst [vmem:[#allocation40_spill] sm:$0xff] %v16163_v47  ;;  %21496 = vst [vmem:[#allocation229_spill] sm:$0xff] %v16166_v25  ;;  %v16183_v42 = vrot.slane %v21502_v59, %v21200_v44  ;;  %5647 = vrot.lane.b32.xlu0 %v21451_v19, %s12740_s14  ;;  %v16197_v63 = vrot.slane %v6678_v54, %v21200_v44  ;;  %v16204_v33 = vrot.slane %v8874_v13, %v21199_v61  ;;  %v16501_v47 = vld [vmem:[#allocation3 + $0x49] sm:$0xff] }
 0x7e4   : > { %21497 = vst [vmem:[#allocation230_spill] sm:$0xff] %v16172_v28  ;;  %21498 = vst [vmem:[#allocation231_spill] sm:$0xff] %v16175_v37  ;;  %v16177_v22 = vpop.permute.xlu1 %9501  ;;  %v4121_v59 = vcombine.low %v15805_v50, %v15847_v57  ;;  %v9973_v54 = vcombine.low %v16125_v62, %v16157_v10  ;;  %v12688_v37 = vld [vmem:[#allocation3 + $0x171] sm:$0xff]  ;;  %v9194_v39 = vcombine.high %v15290_v41, %v21362_v53 }
 0x7e5   : > { %21499 = vst [vmem:[#allocation232_spill] sm:$0xff] %v16177_v22  ;;  %21503 = vst [vmem:[#allocation14_spill] sm:$0xff] %v16183_v42  ;;  %v16218_v13 = vpop.permute.xlu0 %9507  ;;  %v6886_v32 = vcombine.high %v12687_v16, %v12688_v37  ;;  %v4122_v49 = vcombine.high %v15805_v50, %v15847_v57  ;;  %v4137_v36 = vcombine.low %v15824_v23, %v15863_v60  ;;  %v21510_v53 = vld [vmem:[#allocation51_spill] sm:$0xff]  ;;  %v12689_v50 = vld [vmem:[#allocation3 + $0x129] sm:$0xff] }
 0x7e6   : > { %21504 = vst [vmem:[#allocation18_spill] sm:$0xff] %v16186_v24  ;;  %21505 = vst [vmem:[#allocation233_spill] sm:$0xff] %v16194_v34  ;;  %7171 = vrot.lane.b32.xlu1 %v15408_v43, %s12739_s13  ;;  %v4138_v62 = vcombine.high %v15824_v23, %v15863_v60  ;;  %v9957_v37 = vcombine.low %v16026_v11, %v16047_v27  ;;  %v9989_v41 = vcombine.low %v16061_v2, %v16075_v8  ;;  %v12690_v57 = vld [vmem:[#allocation3 + $0x159] sm:$0xff]  ;;  %v21513_v23 = vld [vmem:[#allocation45_spill] sm:$0xff] }
 0x7e7   : > { %21506 = vst [vmem:[#allocation234_spill] sm:$0xff] %v16197_v63  ;;  %21507 = vst [vmem:[#allocation235_spill] sm:$0xff] %v16204_v33  ;;  %5645 = vrot.lane.b32.xlu0 %v15935_v15, %s12740_s14  ;;  %v6870_v16 = vcombine.high %v12689_v50, %v12690_v57  ;;  %v16249_v10 = vrot.slane %v4121_v59, %v21199_v61  ;;  %v6430_v60 = vcombine.high %v21510_v53, %v21512_v55  ;;  %v21536_v27 = vld [vmem:[#allocation188_spill] sm:$0xff]  ;;  %v21542_v28 = vld [vmem:[#allocation59_spill] sm:$0xff] }
 0x7e8   : > { %21508 = vst [vmem:[#allocation236_spill] sm:$0xff] %v16218_v13  ;;  %v16228_v46 = vpop.permute.xlu1 %9509  ;;  %v6446_v3 = vcombine.high %v21514_v29, %v21513_v23  ;;  %v9178_v2 = vcombine.high %v21377_v7, %v15225_v21  ;;  %v8906_v8 = vcombine.high %v15254_v30, %v21358_v56  ;;  %v16262_v11 = vrot.slane %v9973_v54, %v21199_v61  ;;  %v21518_v30 = vld [vmem:[#allocation66_spill] sm:$0xff] }
 0x7e9   : > { %21509 = vst [vmem:[#allocation237_spill] sm:$0xff] %v16228_v46  ;;  %v16251_v48 = vpop.permute.xlu0 %9515  ;;  %v16269_v57 = vrot.slane %v6886_v32, %v21199_v61  ;;  %v16275_v29 = vrot.slane %v4122_v49, %v21199_v61  ;;  %v16278_v21 = vrot.slane %v4137_v36, %v21199_v61  ;;  %v8922_v56 = vcombine.high %v21381_v12, %v21384_v26  ;;  %v21543_v33 = vld [vmem:[#allocation98_spill] sm:$0xff] }
 0x7ea   : > { %7145 = vrot.lane.b32.xlu1 %v21510_v53, %s12739_s13  ;;  %21511 = vst [vmem:[#allocation51_spill] sm:$0xff] %v16251_v48  ;;  %21515 = vst [vmem:[#allocation47_spill] sm:$0xff] %v16262_v11  ;;  %v10005_v59 = vcombine.low %v16218_v13, %v16251_v48  ;;  %v16272_v53 = vrot.slane %v9194_v39, %v21199_v61  ;;  %v16285_v7 = vrot.slane %v9957_v37, %v21199_v61  ;;  %v21535_v48 = vld [vmem:[#allocation198_spill] sm:$0xff] }
 0x7eb   : > { %7151 = vrot.lane.b32.xlu0 %v21518_v30, %s12739_s13  ;;  %v16288_v32 = vrot.slane %v9989_v41, %v21199_v61  ;;  %v16296_v49 = vrot.slane %v6870_v16, %v21199_v61  ;;  %v16299_v36 = vrot.slane %v4138_v62, %v21199_v61  ;;  %v16302_v12 = vrot.slane %v6430_v60, %v21199_v61  ;;  %v21531_v60 = vld [vmem:[#allocation192_spill] sm:$0xff] }
 0x7ec   : > { %v16266_v50 = vpop.permute.xlu1 %10267  ;;  %21517 = vst [vmem:[#allocation48_spill] sm:$0xff] %v16272_v53  ;;  %21519 = vst [vmem:[#allocation66_spill] sm:$0xff] %v16285_v7  ;;  %v16291_v39 = vrot.slane %v10005_v59, %v21199_v61  ;;  %v16307_v54 = vrot.slane %v6446_v3, %v21199_v61  ;;  %v16310_v37 = vrot.slane %v9178_v2, %v21199_v61  ;;  %v21529_v59 = vld [vmem:[#allocation52_spill] sm:$0xff]  ;;  %v21533_v2 = vld [vmem:[#allocation75_spill] sm:$0xff] }
 0x7ed   : > { %21516 = vst [vmem:[#allocation45_spill] sm:$0xff] %v16266_v50  ;;  %21520 = vst [vmem:[#allocation238_spill] sm:$0xff] %v16288_v32  ;;  %v16304_v26 = vpop.permute.xlu0 %9489  ;;  %v16313_v41 = vrot.slane %v8906_v8, %v21199_v61  ;;  %v4153_v51 = vcombine.low %v21536_v27, %v21535_v48  ;;  %v4154_v23 = vcombine.high %v21536_v27, %v21535_v48  ;;  %v21541_v8 = vld [vmem:[#allocation50_spill] sm:$0xff] }
 0x7ee   : > { %21521 = vst [vmem:[#allocation239_spill] sm:$0xff] %v16291_v39  ;;  %7153 = vrot.lane.b32.xlu1 %v21512_v55, %s12739_s13  ;;  %21522 = vst [vmem:[#allocation240_spill] sm:$0xff] %v16302_v12  ;;  %v10021_v55 = vcombine.low %v16285_v7, %v16262_v11  ;;  %v10053_v62 = vcombine.low %v16288_v32, %v16291_v39  ;;  %v16334_v39 = vrot.slane %v8922_v56, %v21199_v61 }
 0x7ef   : > { %21523 = vst [vmem:[#allocation241_spill] sm:$0xff] %v16304_v26  ;;  %21524 = vst [vmem:[#allocation242_spill] sm:$0xff] %v16307_v54  ;;  %7159 = vrot.lane.b32.xlu0 %v21529_v59, %s12739_s13  ;;  %v4169_v7 = vcombine.low %v21531_v60, %v15935_v15  ;;  %v4170_v56 = vcombine.high %v21531_v60, %v15935_v15  ;;  %v21539_v15 = vld [vmem:[#allocation64_spill] sm:$0xff]  ;;  %v6462_v27 = vcombine.high %v21533_v2, %v21544_v0 }
 0x7f0   : > { %21525 = vst [vmem:[#allocation243_spill] sm:$0xff] %v16310_v37  ;;  %21526 = vst [vmem:[#allocation244_spill] sm:$0xff] %v16313_v41  ;;  %v16319_v16 = vpop.permute.xlu1 %10275  ;;  %v16339_v3 = vrot.slane %v10053_v62, %v21200_v44  ;;  %v16360_v20 = vrot.slane %v10021_v55, %v21200_v44  ;;  %v21540_v60 = vld [vmem:[#allocation72_spill] sm:$0xff]  ;;  %v4410_v62 = vcombine.high %v21542_v28, %v21541_v8 }
 0x7f1   : > { %21527 = vst [vmem:[#allocation245_spill] sm:$0xff] %v16319_v16  ;;  %21530 = vst [vmem:[#allocation52_spill] sm:$0xff] %v16334_v39  ;;  %v16351_v13 = vpop.permute.xlu0 %9497  ;;  %v4394_v58 = vcombine.high %v21540_v60, %v21539_v15  ;;  %v16379_v32 = vrot.slane %v4169_v7, %v21199_v61  ;;  %v21547_v15 = vld [vmem:[#allocation65_spill] sm:$0xff]  ;;  %v6718_v53 = vcombine.high %v21518_v30, %v21529_v59  ;;  %v12692_v55 = vld [vmem:[#allocation3 + $0x39] sm:$0xff] }
 0x7f2   : > { %21532 = vst [vmem:[#allocation192_spill] sm:$0xff] %v16339_v3  ;;  %7161 = vrot.lane.b32.xlu1 %v21533_v2, %s12739_s13  ;;  %21534 = vst [vmem:[#allocation75_spill] sm:$0xff] %v16351_v13  ;;  %v16388_v2 = vrot.slane %v4170_v56, %v21199_v61  ;;  %v21548_v60 = vld [vmem:[#allocation73_spill] sm:$0xff]  ;;  %v16397_v37 = vrot.slane %v4153_v51, %v21199_v61  ;;  %v9701_v28 = vcombine.low %v16304_v26, %v16351_v13  ;;  %v21551_v56 = vld [vmem:[#allocation76_spill] sm:$0xff] }
 0x7f3   : > { %21537 = vst [vmem:[#allocation198_spill] sm:$0xff] %v16360_v20  ;;  %7167 = vrot.lane.b32.xlu0 %v21543_v33, %s12739_s13  ;;  %v6702_v24 = vcombine.high %v21548_v60, %v21547_v15  ;;  %v21552_v20 = vld [vmem:[#allocation81_spill] sm:$0xff]  ;;  %v16409_v15 = vrot.slane %v4394_v58, %v21199_v61  ;;  %v16412_v30 = vrot.slane %v4410_v62, %v21199_v61  ;;  %v21556_v58 = vld [vmem:[#allocation31_spill] sm:$0xff] }
 0x7f4   : > { %v16362_v11 = vpop.permute.xlu1 %10283  ;;  %v16415_v51 = vrot.slane %v6462_v27, %v21199_v61  ;;  %v21554_v59 = vld [vmem:[#allocation69_spill] sm:$0xff]  ;;  %v4217_v13 = vcombine.low %v16397_v37, %v16379_v32  ;;  %v9685_v41 = vcombine.low %v21556_v58, %v16133_v18  ;;  %v9717_v62 = vcombine.low %v16177_v22, %v16228_v46  ;;  %v21561_v46 = vld [vmem:[#allocation95_spill] sm:$0xff] }
 0x7f5   : > { %21538 = vst [vmem:[#allocation188_spill] sm:$0xff] %v16362_v11  ;;  %v16394_v7 = vpop.permute.xlu0 %9505  ;;  %v21555_v39 = vld [vmem:[#allocation77_spill] sm:$0xff]  ;;  %v16439_v3 = vrot.slane %v6718_v53, %v21199_v61  ;;  %v16444_v58 = vrot.slane %v9701_v28, %v21199_v61  ;;  %21578 = vst [vmem:[#allocation69_spill] sm:$0xff] %v16501_v47 }
 0x7f6   : > { %7169 = vrot.lane.b32.xlu1 %v21544_v0, %s12739_s13  ;;  %21549 = vst [vmem:[#allocation64_spill] sm:$0xff] %v16394_v7  ;;  %v16400_v0 = vrot.slane %v4154_v23, %v21199_v61  ;;  %v21553_v23 = vld [vmem:[#allocation90_spill] sm:$0xff]  ;;  %v6478_v26 = vcombine.high %v21555_v39, %v21554_v59  ;;  %v16436_v59 = vrot.slane %v6702_v24, %v21199_v61  ;;  %v21560_v39 = vld [vmem:[#allocation79_spill] sm:$0xff]  ;;  %v21571_v24 = vld [vmem:[#allocation108_spill] sm:$0xff] }
 0x7f7   : > { %7175 = vrot.lane.b32.xlu0 %v21553_v23, %s12739_s13  ;;  %21558 = vst [vmem:[#allocation59_spill] sm:$0xff] %v16444_v58  ;;  %v16470_v48 = vrot.slane %v9685_v41, %v21199_v61  ;;  %v16473_v53 = vrot.slane %v9717_v62, %v21199_v61  ;;  %v21572_v62 = vld [vmem:[#allocation113_spill] sm:$0xff] }
 0x7f8   : > { %v16404_v8 = vpop.permute.xlu1 %10291  ;;  %v16463_v28 = vrot.slane %v6478_v26, %v21199_v61  ;;  %v8738_v25 = vcombine.high %v21572_v62, %v21571_v24  ;;  %v21577_v26 = vld [vmem:[#allocation99_spill] sm:$0xff]  ;;  %v21584_v24 = vld [vmem:[#allocation96_spill] sm:$0xff] }
 0x7f9   : > { %21550 = vst [vmem:[#allocation72_spill] sm:$0xff] %v16404_v8  ;;  %v16441_v6 = vpop.permute.xlu0 %9513  ;;  %21565 = vst [vmem:[#allocation65_spill] sm:$0xff] %v16470_v48  ;;  %v21579_v62 = vld [vmem:[#allocation91_spill] sm:$0xff] }
 0x7fa   : > { %7927 = vrot.lane.b32.xlu1 %v21548_v60, %s12740_s14  ;;  %21557 = vst [vmem:[#allocation50_spill] sm:$0xff] %v16441_v6  ;;  %v9733_v60 = vcombine.low %v16394_v7, %v16441_v6  ;;  %21562 = vst [vmem:[#allocation68_spill] sm:$0xff] %v16463_v28  ;;  %v21563_v7 = vld [vmem:[#allocation84_spill] sm:$0xff]  ;;  %v21564_v6 = vld [vmem:[#allocation83_spill] sm:$0xff]  ;;  %v16529_v9 = vrot.slane %v8738_v25, %v21199_v61 }
 0x7fb   : > { %7149 = vrot.lane.b32.xlu0 %v16458_v45, %s12739_s13  ;;  %v9010_v27 = vcombine.high %v21564_v6, %v21563_v7  ;;  %21566 = vst [vmem:[#allocation73_spill] sm:$0xff] %v16473_v53  ;;  %v21576_v6 = vld [vmem:[#allocation85_spill] sm:$0xff]  ;;  %v4442_v7 = vcombine.high %v21443_v52, %v21451_v19  ;;  %v21595_v25 = vld [vmem:[#allocation111_spill] sm:$0xff] }
 0x7fc   : > { %v16448_v22 = vpop.permute.xlu1 %10265  ;;  %v16476_v18 = vrot.slane %v9733_v60, %v21199_v61  ;;  %v9749_v60 = vcombine.low %v16470_v48, %v16444_v58  ;;  %v9026_v14 = vcombine.high %v21577_v26, %v21576_v6  ;;  %v21580_v48 = vld [vmem:[#allocation104_spill] sm:$0xff]  ;;  %v6750_v26 = vcombine.high %v21543_v33, %v21553_v23  ;;  %21587 = vst [vmem:[#allocation83_spill] sm:$0xff] %v16529_v9  ;;  %v21589_v23 = vld [vmem:[#allocation107_spill] sm:$0xff] }
 0x7fd   : > { %21559 = vst [vmem:[#allocation98_spill] sm:$0xff] %v16448_v22  ;;  %v16485_v41 = vpop.permute.xlu0 %10271  ;;  %v8754_v58 = vcombine.high %v21580_v48, %v21579_v62  ;;  %v16522_v19 = vrot.slane %v9010_v27, %v21199_v61  ;;  %v21585_v48 = vld [vmem:[#allocation105_spill] sm:$0xff]  ;;  %v21588_v33 = vld [vmem:[#allocation100_spill] sm:$0xff]  ;;  %v6734_v27 = vcombine.high %v15442_v5, %v15408_v43 }
 0x7fe   : > { %21567 = vst [vmem:[#allocation76_spill] sm:$0xff] %v16476_v18  ;;  %7935 = vrot.lane.b32.xlu1 %v12692_v55, %s12740_s14  ;;  %21570 = vst [vmem:[#allocation81_spill] sm:$0xff] %v16485_v41  ;;  %v9781_v55 = vcombine.low %v16473_v53, %v16476_v18  ;;  %v16510_v53 = vrot.slane %v4217_v13, %v21200_v44  ;;  %v4426_v62 = vcombine.high %v21585_v48, %v21584_v24  ;;  %v21594_v48 = vld [vmem:[#allocation106_spill] sm:$0xff] }
 0x7ff   : > { %7157 = vrot.lane.b32.xlu0 %v16501_v47, %s12739_s13  ;;  %21583 = vst [vmem:[#allocation95_spill] sm:$0xff] %v16522_v19  ;;  %v21590_v18 = vcombine.low %v16249_v10, %v16278_v21  ;;  %v16542_v52 = vrot.slane %v9749_v60, %v21200_v44  ;;  %v9042_v47 = vcombine.high %v21595_v25, %v21594_v48  ;;  %v12702_v19 = vld [vmem:[#allocation3 + $0x61] sm:$0xff] }
 0x800   : > { %v16493_v63 = vpop.permute.xlu1 %10273  ;;  %21581 = vst [vmem:[#allocation77_spill] sm:$0xff] %v16510_v53  ;;  %v16515_v6 = vrot.slane %v9781_v55, %v21200_v44  ;;  %v9058_v55 = vcombine.high %v21589_v23, %v21588_v33  ;;  %v16549_v54 = vrot.slane %v9026_v14, %v21199_v61  ;;  %v16552_v33 = vrot.slane %v4442_v7, %v21199_v61  ;;  %v16554_v23 = vld [vmem:[#allocation3 + $0x79] sm:$0xff] }
 0x801   : > { %21573 = vst [vmem:[#allocation90_spill] sm:$0xff] %v16493_v63  ;;  %v16526_v13 = vpop.permute.xlu0 %10279  ;;  %v16537_v34 = vrot.slane %v21590_v18, %v21200_v44  ;;  %21592 = vst [vmem:[#allocation113_spill] sm:$0xff] %v16542_v52  ;;  %v21599_v18 = vld [vmem:[#allocation109_spill] sm:$0xff]  ;;  %v16561_v12 = vrot.slane %v8754_v58, %v21199_v61  ;;  %v16566_v14 = vrot.slane %v6750_v26, %v21199_v61  ;;  %v21609_v52 = vld [vmem:[#allocation112_spill] sm:$0xff] }
 0x802   : > { %21582 = vst [vmem:[#allocation79_spill] sm:$0xff] %v16515_v6  ;;  %7943 = vrot.lane.b32.xlu1 %v15442_v5, %s12740_s14  ;;  %21586 = vst [vmem:[#allocation84_spill] sm:$0xff] %v16526_v13  ;;  %v21598_v5 = vld [vmem:[#allocation103_spill] sm:$0xff]  ;;  %v4386_v7 = vcombine.high %v16152_v4, %v16183_v42  ;;  %v21601_v25 = vcombine.high %v16249_v10, %v16278_v21  ;;  %v16588_v28 = vrot.slane %v9058_v55, %v21199_v61  ;;  %v21610_v6 = vld [vmem:[#allocation118_spill] sm:$0xff] }
 0x803   : > { %21591 = vst [vmem:[#allocation108_spill] sm:$0xff] %v16537_v34  ;;  %21596 = vst [vmem:[#allocation101_spill] sm:$0xff] %v16549_v54  ;;  %7165 = vrot.lane.b32.xlu0 %v16554_v23, %s12739_s13  ;;  %v8770_v60 = vcombine.high %v21599_v18, %v21598_v5  ;;  %v16581_v18 = vrot.slane %v4426_v62, %v21199_v61  ;;  %v21606_v10 = vcombine.high %v16397_v37, %v16379_v32  ;;  %v21613_v55 = vld [vmem:[#allocation123_spill] sm:$0xff] }
 0x804   : > { %v16544_v24 = vpop.permute.xlu1 %10281  ;;  %21597 = vst [vmem:[#allocation85_spill] sm:$0xff] %v16554_v23  ;;  %21600 = vst [vmem:[#allocation99_spill] sm:$0xff] %v16561_v12  ;;  %v16576_v5 = vrot.slane %v21601_v25, %v21200_v44  ;;  %v16597_v25 = vrot.slane %v6734_v27, %v21199_v61  ;;  %v16602_v62 = vrot.slane %v9042_v47, %v21199_v61  ;;  %v16614_v27 = vld [vmem:[#allocation3 + $0xa9] sm:$0xff]  ;;  %v16650_v54 = vld [vmem:[#allocation3 + $0x7a] sm:$0xff] }
 0x805   : > { %21593 = vst [vmem:[#allocation102_spill] sm:$0xff] %v16544_v24  ;;  %v16583_v26 = vpop.permute.xlu0 %10287  ;;  %21605 = vst [vmem:[#allocation104_spill] sm:$0xff] %v16588_v28  ;;  %v16594_v21 = vrot.slane %v21606_v10, %v21200_v44  ;;  %v4490_v4 = vcombine.high %v21610_v6, %v21609_v52  ;;  %v4505_v32 = vcombine.low %v16581_v18, %v16552_v33  ;;  %v21612_v52 = vld [vmem:[#allocation115_spill] sm:$0xff] }
 0x806   : > { %7951 = vrot.lane.b32.xlu1 %v15408_v43, %s12740_s14  ;;  %21602 = vst [vmem:[#allocation91_spill] sm:$0xff] %v16583_v26  ;;  %21608 = vst [vmem:[#allocation105_spill] sm:$0xff] %v16602_v62  ;;  %v10753_v37 = vcombine.low %v16485_v41, %v16526_v13  ;;  %v16619_v47 = vrot.slane %v8770_v60, %v21199_v61  ;;  %v4506_v10 = vcombine.high %v16581_v18, %v16552_v33  ;;  %v12696_v13 = vld [vmem:[#allocation3 + $0x1] sm:$0xff]  ;;  %v16648_v60 = vld [vmem:[#allocation3 + $0xaa] sm:$0xff] }
 0x807   : > { %7173 = vrot.lane.b32.xlu0 %v16614_v27, %s12739_s13  ;;  %v10769_v6 = vcombine.low %v16362_v11, %v16404_v8  ;;  %v10737_v42 = vcombine.low %v16266_v50, %v16319_v16  ;;  %21620 = vst [vmem:[#allocation111_spill] sm:$0xff] %v16648_v60  ;;  %21621 = vst [vmem:[#allocation103_spill] sm:$0xff] %v16650_v54  ;;  %v8786_v11 = vcombine.high %v16650_v54, %v16648_v60  ;;  %v12699_v33 = vld [vmem:[#allocation3 + $0x21] sm:$0xff] }
 0x808   : > { %v16599_v58 = vpop.permute.xlu1 %10289  ;;  %21611 = vst [vmem:[#allocation100_spill] sm:$0xff] %v16619_v47  ;;  %v16655_v43 = vrot.slane %v10753_v37, %v21199_v61  ;;  %v16678_v54 = vrot.slane %v4490_v4, %v21200_v44  ;;  %v21633_v12 = vcombine.high %v21561_v46, %v21560_v39  ;;  %v21636_v39 = vcombine.low %v16409_v15, %v16412_v30 }
 0x809   : > { %21607 = vst [vmem:[#allocation96_spill] sm:$0xff] %v16599_v58  ;;  %v16634_v48 = vpop.permute.xlu0 %10295  ;;  %v16669_v60 = vrot.slane %v10769_v6, %v21199_v61  ;;  %v21630_v6 = vcombine.high %v16275_v29, %v16299_v36 }
 0x80a   : > { %7925 = vrot.lane.b32.xlu1 %v12696_v13, %s12740_s14  ;;  %21614 = vst [vmem:[#allocation107_spill] sm:$0xff] %v16634_v48  ;;  %v10785_v41 = vcombine.low %v16583_v26, %v16634_v48  ;;  %21622 = vst [vmem:[#allocation109_spill] sm:$0xff] %v16655_v43  ;;  %v21623_v13 = vcombine.low %v16400_v0, %v16388_v2  ;;  %v21624_v48 = vcombine.high %v16400_v0, %v16388_v2 }
 0x80b   : > { %7931 = vrot.lane.b32.xlu0 %v12699_v33, %s12740_s14  ;;  %21625 = vst [vmem:[#allocation112_spill] sm:$0xff] %v16669_v60  ;;  %v12700_v33 = vld [vmem:[#allocation3 + $0x31] sm:$0xff]  ;;  %v4252_v0 = vcombine.high %v16576_v5, %v16594_v21  ;;  %v16700_v26 = vrot.slane %v8786_v11, %v21199_v61  ;;  %v16706_v9 = vrot.slane %v21633_v12, %v21200_v44 }
 0x80c   : > { %v16642_v8 = vpop.permute.xlu1 %4837  ;;  %v4241_v23 = vrot.slane %v21623_v13, %v21200_v44  ;;  %v4248_v18 = vrot.slane %v21624_v48, %v21200_v44  ;;  %v16672_v37 = vrot.slane %v10785_v41, %v21199_v61  ;;  %v16681_v13 = vrot.slane %v10737_v42, %v21199_v61 }
 0x80d   : > { %21617 = vst [vmem:[#allocation106_spill] sm:$0xff] %v16642_v8  ;;  %v16683_v2 = vpop.permute.xlu0 %10269  ;;  %v21629_v41 = vcombine.low %v16275_v29, %v16299_v36  ;;  %21632 = vst [vmem:[#allocation247_spill] sm:$0xff] %v16700_v26  ;;  %v12701_v36 = vld [vmem:[#allocation3 + $0x51] sm:$0xff]  ;;  %v4523_v46 = vcombine.low %v16706_v9, %v16678_v54  ;;  %v4251_v12 = vcombine.low %v16576_v5, %v16594_v21  ;;  %v21658_v26 = vld [vmem:[#allocation24_spill] sm:$0xff] }
 0x80e   : > { %21626 = vst [vmem:[#allocation118_spill] sm:$0xff] %v16672_v37  ;;  %7933 = vrot.lane.b32.xlu1 %v12700_v33, %s12740_s14  ;;  %21627 = vst [vmem:[#allocation115_spill] sm:$0xff] %v16681_v13  ;;  %v4216_v33 = vrot.slane %v21630_v6, %v21200_v44  ;;  %v10833_v4 = vcombine.low %v16669_v60, %v16672_v37  ;;  %v10801_v29 = vcombine.low %v16681_v13, %v16655_v43  ;;  %v21640_v13 = vld [vmem:[#allocation124_spill] sm:$0xff] }
 0x80f   : > { %21628 = vst [vmem:[#allocation123_spill] sm:$0xff] %v16683_v2  ;;  %v4209_v48 = vrot.slane %v21629_v41, %v21200_v44  ;;  %v16709_v41 = vrot.slane %v4505_v32, %v21200_v44  ;;  %7939 = vrot.lane.b32.xlu0 %v12701_v36, %s12740_s14  ;;  %v21634_v6 = vcombine.high %v16537_v34, %v16510_v53  ;;  %v21642_v34 = vld [vmem:[#allocation23_spill] sm:$0xff] }
 0x810   : > { %v16697_v42 = vpop.permute.xlu1 %4841  ;;  %v4256_v37 = vcombine.high %v4216_v33, %v4248_v18  ;;  %v16728_v32 = vrot.slane %v21636_v39, %v21200_v44  ;;  %v16734_v36 = vrot.slane %v10833_v4, %v21200_v44  ;;  %v21646_v39 = vcombine.high %v16409_v15, %v16412_v30 }
 0x811   : > { %21631 = vst [vmem:[#allocation246_spill] sm:$0xff] %v16697_v42  ;;  %v16717_v11 = vpack.i.bf16 %v4386_v7, %v21634_v6  ;;  %v4254_v60 = vcombine.high %v4209_v48, %v4241_v23  ;;  %v16731_v7 = vrot.slane %v4506_v10, %v21200_v44  ;;  %v16736_v6 = vpop.permute.xlu0 %10277  ;;  %v4253_v53 = vcombine.low %v4209_v48, %v4241_v23  ;;  %v21648_v48 = vld [vmem:[#allocation27_spill] sm:$0xff]  ;;  %v21657_v23 = vld [vmem:[#allocation12_spill] sm:$0xff] }
 0x812   : > { %7941 = vrot.lane.b32.xlu1 %v12702_v19, %s12740_s14  ;;  %21637 = vst [vmem:[#allocation249_spill] sm:$0xff] %v16734_v36  ;;  %21638 = vst [vmem:[#allocation250_spill] sm:$0xff] %v16736_v6  ;;  %v21639_v19 = vld [vmem:[#allocation116_spill] sm:$0xff]  ;;  %v4525_v4 = vcombine.low %v16728_v32, %v16709_v41  ;;  %v16755_v62 = vrot.slane %v21646_v39, %v21200_v44  ;;  %v4255_v43 = vcombine.low %v4216_v33, %v4248_v18  ;;  %v12704_v18 = vld [vmem:[#allocation3 + $0x91] sm:$0xff] }
 0x813   : > { %21635 = vst [vmem:[#allocation248_spill] sm:$0xff] %v16717_v11  ;;  %v21641_v11 = vld [vmem:[#allocation28_spill] sm:$0xff]  ;;  %v16758_v50 = vrot.slane %v10801_v29, %v21200_v44  ;;  %v21652_v15 = vcombine.high %v21575_v17, %v21574_v40  ;;  %v21654_v29 = vld [vmem:[#allocation29_spill] sm:$0xff]  ;;  %v21659_v47 = vcombine.low %v21657_v23, %v21658_v26 }
 0x814   : > { %v21643_v5 = vcombine.high %v21641_v11, %v21642_v34  ;;  %v16745_v28 = vpop.permute.xlu1 %4845  ;;  %v21653_v33 = vld [vmem:[#allocation8_spill] sm:$0xff]  ;;  %v4527_v40 = vcombine.low %v16755_v62, %v16731_v7 }
 0x815   : > { %21645 = vst [vmem:[#allocation124_spill] sm:$0xff] %v16745_v28  ;;  %21647 = vst [vmem:[#allocation28_spill] sm:$0xff] %v16758_v50  ;;  %v16772_v30 = vrot.slane %v21652_v15, %v21200_v44  ;;  %v21655_v39 = vcombine.high %v21653_v33, %v21654_v29  ;;  %v16783_v16 = vpack.i.bf16 %v21659_v47, %v4523_v46  ;;  %v16792_v17 = vpop.permute.xlu0 %10285  ;;  %v21679_v50 = vld [vmem:[#allocation53_spill] sm:$0xff] }
 0x816   : > { %v16743_v21 = vpack.i.bf16 %v21643_v5, %v4252_v0  ;;  %v12703_v0 = vld [vmem:[#allocation3 + $0x81] sm:$0xff]  ;;  %7949 = vrot.lane.b32.xlu1 %v12704_v18, %s12740_s14  ;;  %21663 = vst [vmem:[#allocation29_spill] sm:$0xff] %v16792_v17  ;;  %v21666_v18 = vld [vmem:[#allocation134_spill] sm:$0xff]  ;;  %v21668_v47 = vcombine.high %v21552_v20, %v21551_v56  ;;  %v10481_v46 = vcombine.low %v16683_v2, %v16736_v6  ;;  %v21677_v56 = vld [vmem:[#allocation135_spill] sm:$0xff] }
 0x817   : > { %7947 = vrot.lane.b32.xlu0 %v12703_v0, %s12740_s14  ;;  %v21649_v5 = vld [vmem:[#allocation25_spill] sm:$0xff]  ;;  %v16778_v0 = vpack.i.bf16 %v21655_v39, %v4256_v37  ;;  %v21676_v20 = vld [vmem:[#allocation136_spill] sm:$0xff] }
 0x818   : > { %21644 = vst [vmem:[#allocation116_spill] sm:$0xff] %v16743_v21  ;;  %v21650_v10 = vcombine.high %v21648_v48, %v21649_v5  ;;  %21660 = vst [vmem:[#allocation25_spill] sm:$0xff] %v16783_v16  ;;  %v21664_v15 = vcombine.low %v21648_v48, %v21649_v5  ;;  %v21667_v39 = vld [vmem:[#allocation133_spill] sm:$0xff]  ;;  %v21670_v48 = vld [vmem:[#allocation22_spill] sm:$0xff] }
 0x819   : > { %21656 = vst [vmem:[#allocation27_spill] sm:$0xff] %v16778_v0  ;;  %v6558_v0 = vcombine.high %v21667_v39, %v21666_v18  ;;  %v12705_v39 = vld [vmem:[#allocation3 + $0xb1] sm:$0xff]  ;;  %v17184_v16 = vld [vmem:[#allocation3 + $0x82] sm:$0xff] }
 0x81a   : > { %v16766_v21 = vpack.i.bf16 %v21650_v10, %v4254_v60  ;;  %v21661_v60 = vcombine.low %v21641_v11, %v21642_v34  ;;  %v16797_v37 = vpack.i.bf16 %v21664_v15, %v4253_v53  ;;  %v16805_v34 = vrot.slane %v21668_v47, %v21200_v44  ;;  %v21671_v53 = vld [vmem:[#allocation6_spill] sm:$0xff]  ;;  %v21678_v11 = vld [vmem:[#allocation60_spill] sm:$0xff] }
 0x81b   : > { %v21672_v5 = vcombine.low %v21670_v48, %v21671_v53  ;;  %v21674_v15 = vcombine.low %v21653_v33, %v21654_v29  ;;  %v4522_v47 = vcombine.high %v21677_v56, %v21676_v20  ;;  %7955 = vrot.lane.b32.xlu0 %v12705_v39, %s12740_s14  ;;  %v6694_v36 = vcombine.high %v21679_v50, %v21678_v11  ;;  %v21682_v11 = vld [vmem:[#allocation10_spill] sm:$0xff] }
 0x81c   : > { %21651 = vst [vmem:[#allocation23_spill] sm:$0xff] %v16766_v21  ;;  %v16788_v10 = vpack.i.bf16 %v21661_v60, %v4251_v12  ;;  %21665 = vst [vmem:[#allocation12_spill] sm:$0xff] %v16797_v37  ;;  %v16811_v12 = vpop.permute.xlu1 %4849  ;;  %v6559_v2 = vcombine.low %v16805_v34, %v16772_v30  ;;  %v10465_v29 = vcombine.low %v16448_v22, %v16493_v63  ;;  %v21692_v63 = vld [vmem:[#allocation15_spill] sm:$0xff] }
 0x81d   : > { %21669 = vst [vmem:[#allocation24_spill] sm:$0xff] %v16811_v12  ;;  %v16816_v60 = vpack.i.bf16 %v21672_v5, %v4525_v4  ;;  %v16821_v18 = vpack.i.bf16 %v21674_v15, %v4255_v43  ;;  %v4524_v4 = vcombine.high %v16706_v9, %v16678_v54  ;;  %v21680_v43 = vcombine.low %v16597_v25, %v16566_v14  ;;  %v16840_v5 = vld [vmem:[#allocation3 + $0xa] sm:$0xff] }
 0x81e   : > { %21662 = vst [vmem:[#allocation8_spill] sm:$0xff] %v16788_v10  ;;  %v10497_v39 = vcombine.low %v16544_v24, %v16599_v58  ;;  %9455 = vrot.lane.b32.xlu1 %v16840_v5, %s12739_s13  ;;  %v21681_v15 = vld [vmem:[#allocation13_spill] sm:$0xff]  ;;  %v6695_v54 = vcombine.low %v16160_v31, %v16191_v38  ;;  %v16853_v20 = vpack.i.bf16 %v6694_v36, %v6558_v0 }
 0x81f   : > { %21673 = vst [vmem:[#allocation22_spill] sm:$0xff] %v16816_v60  ;;  %21675 = vst [vmem:[#allocation6_spill] sm:$0xff] %v16821_v18  ;;  %v6821_v33 = vrot.slane %v21680_v43, %v21200_v44  ;;  %v21683_v50 = vcombine.low %v21681_v15, %v21682_v11  ;;  %v16851_v43 = vpop.permute.xlu0 %10293  ;;  %v21687_v56 = vcombine.low %v16436_v59, %v16439_v3  ;;  %7929 = vrot.lane.b32.xlu0 %v16458_v45, %s12740_s14  ;;  %v21702_v45 = vld [vmem:[#allocation68_spill] sm:$0xff] }
 0x820   : > { %21685 = vst [vmem:[#allocation10_spill] sm:$0xff] %v16851_v43  ;;  %21686 = vst [vmem:[#allocation251_spill] sm:$0xff] %v16853_v20  ;;  %v21688_v24 = vcombine.low %v16169_v35, %v16142_v1  ;;  %v16868_v22 = vrot.slane %v10481_v46, %v21199_v61  ;;  %v10513_v36 = vcombine.low %v16792_v17, %v16851_v43  ;;  %v16872_v0 = vpop.permute.xlu1 %4853 }
 0x821   : > { %v16847_v9 = vpack.i.bf16 %v21683_v50, %v4527_v40  ;;  %v6789_v6 = vrot.slane %v21687_v56, %v21200_v44  ;;  %v21689_v50 = vcombine.low %v16296_v49, %v16269_v57  ;;  %21691 = vst [vmem:[#allocation253_spill] sm:$0xff] %v16872_v0  ;;  %v21693_v56 = vld [vmem:[#allocation4_spill] sm:$0xff]  ;;  %v21697_v46 = vcombine.high %v21657_v23, %v21658_v26 }
 0x822   : > { %v6925_v58 = vrot.slane %v21688_v24, %v21200_v44  ;;  %21690 = vst [vmem:[#allocation252_spill] sm:$0xff] %v16868_v22  ;;  %v21694_v20 = vcombine.high %v21692_v63, %v21693_v56  ;;  %v4526_v24 = vcombine.high %v16728_v32, %v16709_v41  ;;  %v16891_v37 = vrot.slane %v10465_v29, %v21199_v61  ;;  %v16899_v32 = vld [vmem:[#allocation3 + $0x3a] sm:$0xff] }
 0x823   : > { %21684 = vst [vmem:[#allocation13_spill] sm:$0xff] %v16847_v9  ;;  %v6957_v40 = vrot.slane %v21689_v50, %v21200_v44  ;;  %v16883_v50 = vpack.i.bf16 %v6695_v54, %v6559_v2  ;;  %v16888_v9 = vpack.i.bf16 %v21697_v46, %v4524_v4  ;;  %v6833_v17 = vcombine.low %v6789_v6, %v6821_v33  ;;  %v21715_v56 = vld [vmem:[#allocation40_spill] sm:$0xff] }
 0x824   : > { %v16877_v18 = vpack.i.bf16 %v21694_v20, %v4522_v47  ;;  %v6834_v43 = vcombine.high %v6789_v6, %v6821_v33  ;;  %21699 = vst [vmem:[#allocation257_spill] sm:$0xff] %v16891_v37  ;;  %v16894_v20 = vrot.slane %v10497_v39, %v21199_v61  ;;  %v16897_v41 = vrot.slane %v10513_v36, %v21199_v61  ;;  %v16909_v6 = vpop.permute.xlu0 %4839  ;;  %v16921_v36 = vpop.permute.xlu1 %4857 }
 0x825   : > { %21696 = vst [vmem:[#allocation255_spill] sm:$0xff] %v16883_v50  ;;  %21698 = vst [vmem:[#allocation256_spill] sm:$0xff] %v16888_v9  ;;  %9463 = vrot.lane.b32.xlu1 %v16899_v32, %s12739_s13  ;;  %v21703_v26 = vcombine.low %v16415_v51, %v21702_v45  ;;  %v6969_v23 = vcombine.low %v6925_v58, %v6957_v40  ;;  %v6970_v47 = vcombine.high %v6925_v58, %v6957_v40  ;;  %v21738_v50 = vld [vmem:[#allocation229_spill] sm:$0xff] }
 0x826   : > { %21695 = vst [vmem:[#allocation254_spill] sm:$0xff] %v16877_v18  ;;  %21700 = vst [vmem:[#allocation258_spill] sm:$0xff] %v16894_v20  ;;  %v4528_v4 = vcombine.high %v16755_v62, %v16731_v7  ;;  %v21705_v33 = vcombine.high %v16415_v51, %v21702_v45  ;;  %v10529_v39 = vcombine.low %v16891_v37, %v16868_v22  ;;  %v21709_v62 = vld [vmem:[#allocation240_spill] sm:$0xff]  ;;  %v21710_v7 = vld [vmem:[#allocation242_spill] sm:$0xff] }
 0x827   : > { %21701 = vst [vmem:[#allocation259_spill] sm:$0xff] %v16897_v41  ;;  %v16907_v2 = vrot.slane %v21703_v26, %v21200_v44  ;;  %21704 = vst [vmem:[#allocation68_spill] sm:$0xff] %v16909_v6  ;;  %v10561_v54 = vcombine.low %v16894_v20, %v16897_v41  ;;  %v21707_v46 = vcombine.high %v21670_v48, %v21671_v53  ;;  %v21712_v51 = vld [vmem:[#allocation69_spill] sm:$0xff]  ;;  %v21726_v41 = vld [vmem:[#allocation82_spill] sm:$0xff] }
 0x828   : > { %v6556_v29 = vrot.slane %v21705_v33, %v21200_v44  ;;  %21706 = vst [vmem:[#allocation260_spill] sm:$0xff] %v16921_v36  ;;  %v21711_v40 = vcombine.low %v21709_v62, %v21710_v7  ;;  %7937 = vrot.lane.b32.xlu0 %v21712_v51, %s12740_s14  ;;  %v16936_v45 = vpack.i.bf16 %v6969_v23, %v6833_v17  ;;  %v21714_v33 = vld [vmem:[#allocation233_spill] sm:$0xff]  ;;  %v16963_v20 = vpop.permute.xlu0 %4843  ;;  %v21729_v22 = vld [vmem:[#allocation70_spill] sm:$0xff] }
 0x829   : > { %v16926_v58 = vpack.i.bf16 %v21707_v46, %v4526_v24  ;;  %v6698_v63 = vcombine.high %v21715_v56, %v21714_v33  ;;  %v21716_v48 = vcombine.high %v21709_v62, %v21710_v7  ;;  %v21717_v24 = vcombine.high %v21613_v55, %v21612_v52  ;;  %v16953_v51 = vld [vmem:[#allocation3 + $0x6a] sm:$0xff]  ;;  %21722 = vst [vmem:[#allocation233_spill] sm:$0xff] %v16963_v20 }
 0x82a   : > { %v16932_v26 = vrot.slane %v21711_v40, %v21200_v44  ;;  %21713 = vst [vmem:[#allocation240_spill] sm:$0xff] %v16936_v45  ;;  %v16951_v40 = vrot.slane %v10561_v54, %v21200_v44  ;;  %9471 = vrot.lane.b32.xlu1 %v16953_v51, %s12739_s13  ;;  %v16957_v17 = vpack.i.bf16 %v6970_v47, %v6834_v43  ;;  %v21720_v62 = vld [vmem:[#allocation138_spill] sm:$0xff]  ;;  %v21721_v7 = vld [vmem:[#allocation137_spill] sm:$0xff] }
 0x82b   : > { %21708 = vst [vmem:[#allocation261_spill] sm:$0xff] %v16926_v58  ;;  %v6524_v53 = vrot.slane %v21716_v48, %v21200_v44  ;;  %v16948_v46 = vrot.slane %v21717_v24, %v21200_v44  ;;  %v6830_v48 = vcombine.high %v21721_v7, %v21720_v62  ;;  %v21723_v55 = vcombine.high %v21681_v15, %v21682_v11  ;;  %v21725_v24 = vld [vmem:[#allocation97_spill] sm:$0xff]  ;;  %v21728_v47 = vld [vmem:[#allocation78_spill] sm:$0xff]  ;;  %v16983_v11 = vpop.permute.xlu1 %4861  ;;  %v21735_v15 = vld [vmem:[#allocation140_spill] sm:$0xff] }
 0x82c   : > { %21718 = vst [vmem:[#allocation242_spill] sm:$0xff] %v16951_v40  ;;  %21719 = vst [vmem:[#allocation69_spill] sm:$0xff] %v16957_v17  ;;  %v6562_v23 = vcombine.high %v16932_v26, %v16907_v2  ;;  %v21727_v37 = vcombine.high %v21725_v24, %v21726_v41  ;;  %v21730_v17 = vcombine.high %v21728_v47, %v21729_v22  ;;  %v21731_v45 = vld [vmem:[#allocation33_spill] sm:$0xff]  ;;  %v21732_v62 = vld [vmem:[#allocation30_spill] sm:$0xff] }
 0x82d   : > { %v16968_v52 = vpack.i.bf16 %v21723_v55, %v4528_v4  ;;  %v6563_v54 = vcombine.low %v6524_v53, %v6556_v29  ;;  %v5070_v7 = vcombine.high %v21732_v62, %v21731_v45  ;;  %v16981_v9 = vrot.slane %v10529_v39, %v21200_v44  ;;  %21734 = vst [vmem:[#allocation82_spill] sm:$0xff] %v16983_v11  ;;  %v21736_v4 = vld [vmem:[#allocation139_spill] sm:$0xff]  ;;  %v21740_v24 = vld [vmem:[#allocation32_spill] sm:$0xff]  ;;  %v21741_v22 = vld [vmem:[#allocation85_spill] sm:$0xff] }
 0x82e   : > { %v6780_v43 = vrot.slane %v21727_v37, %v21200_v44  ;;  %v6948_v58 = vrot.slane %v21730_v17, %v21200_v44  ;;  %v6966_v55 = vcombine.high %v21736_v4, %v21735_v15  ;;  %v21739_v37 = vld [vmem:[#allocation34_spill] sm:$0xff]  ;;  %7945 = vrot.lane.b32.xlu0 %v21741_v22, %s12740_s14  ;;  %v6564_v60 = vcombine.high %v6524_v53, %v6556_v29  ;;  %v17000_v4 = vld [vmem:[#allocation3 + $0x9a] sm:$0xff]  ;;  %v21767_v40 = vld [vmem:[#allocation125_spill] sm:$0xff] }
 0x82f   : > { %21724 = vst [vmem:[#allocation40_spill] sm:$0xff] %v16968_v52  ;;  %21733 = vst [vmem:[#allocation97_spill] sm:$0xff] %v16981_v9  ;;  %v21737_v52 = vld [vmem:[#allocation234_spill] sm:$0xff]  ;;  %v5086_v18 = vcombine.high %v21740_v24, %v21739_v37  ;;  %v4949_v15 = vcombine.low %v16697_v42, %v16811_v12  ;;  %9479 = vrot.lane.b32.xlu1 %v17000_v4, %s12739_s13  ;;  %v17004_v37 = vpack.i.bf16 %v6698_v63, %v6562_v23  ;;  %v17021_v23 = vpop.permute.xlu1 %4865 }
 0x830   : > { %v6699_v41 = vcombine.low %v21738_v50, %v21737_v52  ;;  %v6831_v17 = vcombine.low %v6780_v43, %v16948_v46  ;;  %v21742_v45 = vld [vmem:[#allocation54_spill] sm:$0xff]  ;;  %v17006_v24 = vpack.i.bf16 %v6966_v55, %v6830_v48  ;;  %v5084_v42 = vrot.slane %v5070_v7, %v21199_v61  ;;  %21749 = vst [vmem:[#allocation234_spill] sm:$0xff] %v17021_v23 }
 0x831   : > { %v21743_v39 = vld [vmem:[#allocation46_spill] sm:$0xff]  ;;  %21745 = vst [vmem:[#allocation78_spill] sm:$0xff] %v17004_v37  ;;  %v4933_v63 = vcombine.low %v16642_v8, %v16745_v28  ;;  %v6832_v48 = vcombine.high %v6780_v43, %v16948_v46  ;;  %v5100_v22 = vrot.slane %v5086_v18, %v21199_v61  ;;  %v17034_v7 = vrot.slane %v4949_v15, %v21199_v61  ;;  %v21754_v18 = vld [vmem:[#allocation149_spill] sm:$0xff] }
 0x832   : > { %v21744_v62 = vcombine.high %v21742_v45, %v21743_v39  ;;  %21746 = vst [vmem:[#allocation70_spill] sm:$0xff] %v17006_v24  ;;  %v4965_v45 = vcombine.low %v16872_v0, %v16983_v11  ;;  %v17012_v39 = vpop.permute.xlu0 %4847  ;;  %v17014_v29 = vpack.i.bf16 %v6699_v41, %v6563_v54  ;;  %v4981_v54 = vcombine.low %v16921_v36, %v17021_v23  ;;  %v21766_v9 = vld [vmem:[#allocation130_spill] sm:$0xff]  ;;  %v21770_v0 = vld [vmem:[#allocation63_spill] sm:$0xff] }
 0x833   : > { %21747 = vst [vmem:[#allocation33_spill] sm:$0xff] %v17012_v39  ;;  %7953 = vrot.lane.b32.xlu0 %v16614_v27, %s12740_s14  ;;  %21752 = vst [vmem:[#allocation32_spill] sm:$0xff] %v17034_v7  ;;  %v6560_v43 = vcombine.high %v16805_v34, %v16772_v30  ;;  %v6696_v27 = vcombine.high %v16160_v31, %v16191_v38  ;;  %v21760_v30 = vld [vmem:[#allocation94_spill] sm:$0xff]  ;;  %v17067_v31 = vrot.slane %v4933_v63, %v21199_v61  ;;  %v17069_v38 = vpop.permute.xlu1 %5617  ;;  %v21773_v63 = vld [vmem:[#allocation129_spill] sm:$0xff] }
 0x834   : > { %v6916_v47 = vrot.slane %v21744_v62, %v21200_v44  ;;  %21748 = vst [vmem:[#allocation30_spill] sm:$0xff] %v17014_v29  ;;  %v6700_v62 = vcombine.high %v21738_v50, %v21737_v52  ;;  %v17036_v52 = vld [vmem:[#allocation3 + $0x2] sm:$0xff]  ;;  %v17050_v15 = vrot.slane %v4981_v54, %v21199_v61  ;;  %21763 = vst [vmem:[#allocation94_spill] sm:$0xff] %v17069_v38  ;;  %v21765_v54 = vld [vmem:[#allocation150_spill] sm:$0xff] }
 0x835   : > { %9453 = vrot.lane.b32.xlu1 %v17036_v52, %s12739_s13  ;;  %v5149_v36 = vcombine.low %v5084_v42, %v5100_v22  ;;  %v5150_v23 = vcombine.high %v5084_v42, %v5100_v22  ;;  %v6561_v42 = vcombine.low %v16932_v26, %v16907_v2  ;;  %v6697_v2 = vcombine.low %v21715_v56, %v21714_v33  ;;  %v21783_v26 = vld [vmem:[#allocation243_spill] sm:$0xff] }
 0x836   : > { %v6967_v53 = vcombine.low %v6916_v47, %v6948_v58  ;;  %v6968_v55 = vcombine.high %v6916_v47, %v6948_v58  ;;  %v17031_v50 = vpack.i.bf16 %v6700_v62, %v6564_v60  ;;  %v21753_v58 = vld [vmem:[#allocation141_spill] sm:$0xff]  ;;  %v17047_v60 = vrot.slane %v4965_v45, %v21199_v61  ;;  %21756 = vst [vmem:[#allocation54_spill] sm:$0xff] %v17050_v15  ;;  %v21759_v62 = vld [vmem:[#allocation87_spill] sm:$0xff] }
 0x837   : > { %v8866_v46 = vcombine.high %v21754_v18, %v21753_v58  ;;  %v21758_v47 = vcombine.high %v21640_v13, %v21639_v19  ;;  %v21761_v34 = vcombine.high %v21759_v62, %v21760_v30  ;;  %21762 = vst [vmem:[#allocation87_spill] sm:$0xff] %v17067_v31  ;;  %v21764_v45 = vld [vmem:[#allocation143_spill] sm:$0xff]  ;;  %v21768_v13 = vcombine.high %v21766_v9, %v21767_v40 }
 0x838   : > { %v17029_v41 = vpack.i.bf16 %v6967_v53, %v6831_v17  ;;  %21751 = vst [vmem:[#allocation34_spill] sm:$0xff] %v17031_v50  ;;  %21755 = vst [vmem:[#allocation85_spill] sm:$0xff] %v17047_v60  ;;  %v17052_v17 = vpop.permute.xlu0 %4851  ;;  %v9002_v18 = vcombine.high %v21765_v54, %v21764_v45  ;;  %v5029_v45 = vcombine.low %v17047_v60, %v17050_v15  ;;  %v17089_v54 = vld [vmem:[#allocation3 + $0x22] sm:$0xff]  ;;  %v17095_v40 = vld [vmem:[#allocation3 + $0x32] sm:$0xff] }
 0x839   : > { %21757 = vst [vmem:[#allocation46_spill] sm:$0xff] %v17052_v17  ;;  %v17058_v53 = vrot.slane %v21758_v47, %v21200_v44  ;;  %v17064_v58 = vrot.slane %v21761_v34, %v21200_v44  ;;  %v17077_v19 = vrot.slane %v21768_v13, %v21200_v44  ;;  %v21769_v47 = vld [vmem:[#allocation61_spill] sm:$0xff]  ;;  %9459 = vrot.lane.b32.xlu0 %v17089_v54, %s12739_s13  ;;  %v21779_v60 = vld [vmem:[#allocation104_spill] sm:$0xff]  ;;  %v17141_v56 = vld [vmem:[#allocation3 + $0x52] sm:$0xff] }
 0x83a   : > { %21750 = vst [vmem:[#allocation229_spill] sm:$0xff] %v17029_v41  ;;  %v21771_v62 = vcombine.high %v21769_v47, %v21770_v0  ;;  %v21772_v34 = vld [vmem:[#allocation121_spill] sm:$0xff]  ;;  %v4997_v9 = vcombine.low %v17067_v31, %v17034_v7  ;;  %9461 = vrot.lane.b32.xlu1 %v17095_v40, %s12739_s13  ;;  %v17099_v0 = vpack.i.bf16 %v6968_v55, %v6832_v48  ;;  %v21787_v33 = vld [vmem:[#allocation95_spill] sm:$0xff] }
 0x83b   : > { %v5134_v11 = vcombine.high %v21773_v63, %v21772_v34  ;;  %v17101_v13 = vpack.i.bf16 %v6696_v27, %v6560_v43  ;;  %v17107_v47 = vpack.i.bf16 %v9002_v18, %v8866_v46  ;;  %v21778_v63 = vld [vmem:[#allocation105_spill] sm:$0xff]  ;;  %v17118_v43 = vrot.slane %v5029_v45, %v21200_v44  ;;  %v17120_v27 = vpop.permute.xlu1 %5621  ;;  %v21784_v18 = vld [vmem:[#allocation48_spill] sm:$0xff] }
 0x83c   : > { %v17083_v30 = vrot.slane %v21771_v62, %v21200_v44  ;;  %21774 = vst [vmem:[#allocation130_spill] sm:$0xff] %v17099_v0  ;;  %v17105_v22 = vpop.permute.xlu0 %4855  ;;  %v8867_v62 = vcombine.low %v17077_v19, %v17058_v53  ;;  %v21780_v48 = vcombine.low %v21778_v63, %v21779_v60  ;;  %21782 = vst [vmem:[#allocation129_spill] sm:$0xff] %v17120_v27 }
 0x83d   : > { %21775 = vst [vmem:[#allocation125_spill] sm:$0xff] %v17101_v13  ;;  %21776 = vst [vmem:[#allocation61_spill] sm:$0xff] %v17105_v22  ;;  %v21785_v46 = vcombine.low %v21783_v26, %v21784_v18  ;;  %v21786_v31 = vcombine.high %v16597_v25, %v16566_v14  ;;  %v17136_v45 = vrot.slane %v5149_v36, %v21200_v44  ;;  %9467 = vrot.lane.b32.xlu0 %v17141_v56, %s12739_s13  ;;  %v21791_v36 = vld [vmem:[#allocation18_spill] sm:$0xff] }
 0x83e   : > { %21777 = vst [vmem:[#allocation63_spill] sm:$0xff] %v17107_v47  ;;  %v9003_v34 = vcombine.low %v17083_v30, %v17064_v58  ;;  %v9129_v55 = vrot.slane %v21780_v48, %v21200_v44  ;;  %21781 = vst [vmem:[#allocation121_spill] sm:$0xff] %v17118_v43  ;;  %v17133_v48 = vrot.slane %v5134_v11, %v21200_v44  ;;  %v17152_v11 = vld [vmem:[#allocation3 + $0x62] sm:$0xff] }
 0x83f   : > { %v9265_v15 = vrot.slane %v21785_v46, %v21200_v44  ;;  %v6828_v7 = vrot.slane %v21786_v31, %v21200_v44  ;;  %v17139_v8 = vrot.slane %v5150_v23, %v21200_v44  ;;  %v21788_v46 = vld [vmem:[#allocation101_spill] sm:$0xff]  ;;  %v17150_v25 = vrot.slane %v4997_v9, %v21200_v44  ;;  %9469 = vrot.lane.b32.xlu1 %v17152_v11, %s12739_s13  ;;  %v21792_v23 = vld [vmem:[#allocation20_spill] sm:$0xff]  ;;  %v17176_v37 = vpop.permute.xlu1 %5625 }
 0x840   : > { %v21789_v28 = vcombine.low %v21787_v33, %v21788_v46  ;;  %v21793_v31 = vcombine.low %v21791_v36, %v21792_v23  ;;  %v21794_v13 = vcombine.high %v16436_v59, %v16439_v3  ;;  %v17168_v0 = vpop.permute.xlu0 %4859  ;;  %v17170_v50 = vpack.i.bf16 %v9003_v34, %v8867_v62  ;;  %21799 = vst [vmem:[#allocation48_spill] sm:$0xff] %v17176_v37  ;;  %v21802_v62 = vld [vmem:[#allocation92_spill] sm:$0xff]  ;;  %v21803_v34 = vld [vmem:[#allocation43_spill] sm:$0xff] }
 0x841   : > { %21790 = vst [vmem:[#allocation105_spill] sm:$0xff] %v17150_v25  ;;  %21796 = vst [vmem:[#allocation104_spill] sm:$0xff] %v17168_v0  ;;  %v21798_v29 = vcombine.high %v16169_v35, %v16142_v1  ;;  %9475 = vrot.lane.b32.xlu0 %v17184_v16, %s12739_s13  ;;  %v21804_v35 = vld [vmem:[#allocation100_spill] sm:$0xff] }
 0x842   : > { %v9097_v14 = vrot.slane %v21789_v28, %v21200_v44  ;;  %v9233_v12 = vrot.slane %v21793_v31, %v21200_v44  ;;  %v6796_v47 = vrot.slane %v21794_v13, %v21200_v44  ;;  %v21795_v28 = vcombine.high %v16296_v49, %v16269_v57  ;;  %21797 = vst [vmem:[#allocation243_spill] sm:$0xff] %v17170_v50  ;;  %v21800_v49 = vld [vmem:[#allocation67_spill] sm:$0xff] }
 0x843   : > { %v6932_v31 = vrot.slane %v21798_v29, %v21200_v44  ;;  %v5118_v50 = vcombine.high %v21803_v34, %v21802_v62  ;;  %v21805_v29 = vld [vmem:[#allocation247_spill] sm:$0xff]  ;;  %v21808_v62 = vld [vmem:[#allocation244_spill] sm:$0xff] }
 0x844   : > { %v6964_v9 = vrot.slane %v21795_v28, %v21200_v44  ;;  %v9141_v41 = vcombine.low %v9097_v14, %v9129_v55  ;;  %v9142_v24 = vcombine.high %v9097_v14, %v9129_v55  ;;  %v9277_v3 = vcombine.low %v9233_v12, %v9265_v15  ;;  %v21801_v28 = vld [vmem:[#allocation37_spill] sm:$0xff]  ;;  %v21809_v34 = vld [vmem:[#allocation52_spill] sm:$0xff] }
 0x845   : > { %v6835_v59 = vcombine.low %v6796_v47, %v6828_v7  ;;  %v6836_v13 = vcombine.high %v6796_v47, %v6828_v7  ;;  %v5102_v10 = vcombine.high %v21801_v28, %v21800_v49  ;;  %v9278_v1 = vcombine.high %v9233_v12, %v9265_v15  ;;  %v17194_v47 = vld [vmem:[#allocation3 + $0x92] sm:$0xff] }
 0x846   : > { %v21806_v55 = vcombine.low %v21804_v35, %v21805_v29  ;;  %9477 = vrot.lane.b32.xlu1 %v17194_v47, %s12739_s13  ;;  %v17198_v14 = vpack.i.bf16 %v6697_v2, %v6561_v42  ;;  %v6971_v49 = vcombine.low %v6932_v31, %v6964_v9  ;;  %v6972_v28 = vcombine.high %v6932_v31, %v6964_v9  ;;  %v21814_v42 = vld [vmem:[#allocation83_spill] sm:$0xff]  ;;  %v17220_v31 = vpop.permute.xlu1 %5629 }
 0x847   : > { %v21810_v57 = vcombine.low %v21808_v62, %v21809_v34  ;;  %v5221_v15 = vcombine.low %v16963_v20, %v17052_v17  ;;  %v17210_v25 = vpack.i.bf16 %v9277_v3, %v9141_v41  ;;  %v17212_v43 = vpack.i.bf16 %v9278_v1, %v9142_v24  ;;  %v21815_v2 = vld [vmem:[#allocation99_spill] sm:$0xff]  ;;  %21817 = vst [vmem:[#allocation67_spill] sm:$0xff] %v17220_v31  ;;  %v21821_v17 = vld [vmem:[#allocation230_spill] sm:$0xff] }
 0x848   : > { %v17192_v7 = vrot.slane %v21806_v55, %v21200_v44  ;;  %21807 = vst [vmem:[#allocation95_spill] sm:$0xff] %v17198_v14  ;;  %v17208_v55 = vpop.permute.xlu0 %4863  ;;  %v21816_v14 = vcombine.low %v21814_v42, %v21815_v2  ;;  %v17222_v21 = vpack.i.bf16 %v6971_v49, %v6835_v59  ;;  %v21820_v20 = vld [vmem:[#allocation235_spill] sm:$0xff]  ;;  %v21823_v24 = vcombine.high %v21804_v35, %v21805_v29 }
 0x849   : > { %v17204_v12 = vrot.slane %v21810_v57, %v21200_v44  ;;  %21811 = vst [vmem:[#allocation101_spill] sm:$0xff] %v17208_v55  ;;  %21812 = vst [vmem:[#allocation18_spill] sm:$0xff] %v17210_v25  ;;  %v17224_v57 = vpack.i.bf16 %v6972_v28, %v6836_v13  ;;  %v21822_v38 = vcombine.low %v21820_v20, %v21821_v17  ;;  %v17242_v13 = vld [vmem:[#allocation3 + $0xb2] sm:$0xff] }
 0x84a   : > { %21813 = vst [vmem:[#allocation20_spill] sm:$0xff] %v17212_v43  ;;  %v17218_v9 = vrot.slane %v21816_v14, %v21200_v44  ;;  %21818 = vst [vmem:[#allocation37_spill] sm:$0xff] %v17222_v21  ;;  %v17236_v3 = vrot.slane %v21823_v24, %v21200_v44  ;;  %v5116_v1 = vrot.slane %v5102_v10, %v21199_v61  ;;  %9483 = vrot.lane.b32.xlu0 %v17242_v13, %s12739_s13  ;;  %v21834_v21 = vld [vmem:[#allocation126_spill] sm:$0xff] }
 0x84b   : > { %21819 = vst [vmem:[#allocation92_spill] sm:$0xff] %v17224_v57  ;;  %v17230_v41 = vrot.slane %v21822_v38, %v21200_v44  ;;  %v5132_v14 = vrot.slane %v5118_v50, %v21199_v61  ;;  %v5205_v59 = vcombine.low %v16909_v6, %v17012_v39  ;;  %v5237_v35 = vcombine.low %v17105_v22, %v17208_v55  ;;  %v21828_v55 = vld [vmem:[#allocation144_spill] sm:$0xff]  ;;  %v21830_v39 = vld [vmem:[#allocation145_spill] sm:$0xff] }
 0x84c   : > { %v8870_v38 = vcombine.high %v17218_v9, %v17192_v7  ;;  %10235 = vrot.lane.b32.xlu1 %v16840_v5, %s12740_s14  ;;  %v21824_v50 = vcombine.high %v21814_v42, %v21815_v2  ;;  %v21825_v49 = vcombine.high %v21808_v62, %v21809_v34  ;;  %v17263_v24 = vrot.slane %v5221_v15, %v21199_v61  ;;  %v17265_v22 = vpop.permute.xlu0 %4867  ;;  %v21829_v5 = vld [vmem:[#allocation151_spill] sm:$0xff]  ;;  %v21831_v57 = vld [vmem:[#allocation152_spill] sm:$0xff]  ;;  %v17279_v15 = vpop.permute.xlu1 %5633 }
 0x84d   : > { %v9006_v10 = vcombine.high %v17230_v41, %v17204_v12  ;;  %21827 = vst [vmem:[#allocation100_spill] sm:$0xff] %v17265_v22  ;;  %v9138_v6 = vcombine.high %v21829_v5, %v21828_v55  ;;  %v9274_v43 = vcombine.high %v21831_v57, %v21830_v39  ;;  %v21832_v42 = vcombine.high %v21820_v20, %v21821_v17  ;;  %v21836_v55 = vld [vmem:[#allocation128_spill] sm:$0xff] }
 0x84e   : > { %v8832_v29 = vrot.slane %v21824_v50, %v21200_v44  ;;  %v9000_v28 = vrot.slane %v21825_v49, %v21200_v44  ;;  %21826 = vst [vmem:[#allocation43_spill] sm:$0xff] %v17263_v24  ;;  %v21833_v50 = vld [vmem:[#allocation117_spill] sm:$0xff]  ;;  %v5253_v34 = vcombine.low %v17168_v0, %v17265_v22  ;;  %21835 = vst [vmem:[#allocation247_spill] sm:$0xff] %v17279_v15  ;;  %v21837_v5 = vld [vmem:[#allocation120_spill] sm:$0xff] }
 0x84f   : > { %v8968_v2 = vrot.slane %v21832_v42, %v21200_v44  ;;  %v5166_v62 = vcombine.high %v21834_v21, %v21833_v50  ;;  %v21838_v25 = vcombine.high %v21836_v55, %v21837_v5  ;;  %v5181_v57 = vcombine.low %v5116_v1, %v5132_v14  ;;  %v17289_v17 = vld [vmem:[#allocation3 + $0x1a] sm:$0xff]  ;;  %v21840_v21 = vld [vmem:[#allocation86_spill] sm:$0xff] }
 0x850   : > { %v8871_v49 = vcombine.low %v8832_v29, %v17236_v3  ;;  %v5182_v37 = vcombine.high %v5116_v1, %v5132_v14  ;;  %v17287_v20 = vrot.slane %v5205_v59, %v21199_v61  ;;  %9457 = vrot.lane.b32.xlu0 %v17289_v17, %s12739_s13  ;;  %v21841_v42 = vld [vmem:[#allocation88_spill] sm:$0xff]  ;;  %v17298_v22 = vrot.slane %v5237_v35, %v21199_v61  ;;  %v21845_v1 = vld [vmem:[#allocation127_spill] sm:$0xff] }
 0x851   : > { %v9120_v39 = vrot.slane %v21838_v25, %v21200_v44  ;;  %v21842_v50 = vcombine.high %v21840_v21, %v21841_v42  ;;  %v17301_v25 = vrot.slane %v5253_v34, %v21199_v61  ;;  %10243 = vrot.lane.b32.xlu1 %v16899_v32, %s12740_s14  ;;  %v9007_v55 = vcombine.low %v8968_v2, %v9000_v28  ;;  %v21846_v14 = vld [vmem:[#allocation119_spill] sm:$0xff]  ;;  %v17311_v21 = vpop.permute.xlu0 %5619 }
 0x852   : > { %21839 = vst [vmem:[#allocation244_spill] sm:$0xff] %v17287_v20  ;;  %21843 = vst [vmem:[#allocation52_spill] sm:$0xff] %v17298_v22  ;;  %v21847_v59 = vcombine.high %v21845_v1, %v21846_v14  ;;  %v5269_v15 = vcombine.low %v17287_v20, %v17263_v24  ;;  %v17313_v42 = vpack.i.bf16 %v9006_v10, %v8870_v38  ;;  %v21851_v34 = vld [vmem:[#allocation55_spill] sm:$0xff]  ;;  %v17326_v14 = vpop.permute.xlu1 %5637  ;;  %v21863_v24 = vld [vmem:[#allocation114_spill] sm:$0xff] }
 0x853   : > { %v9256_v0 = vrot.slane %v21842_v50, %v21200_v44  ;;  %21844 = vst [vmem:[#allocation83_spill] sm:$0xff] %v17301_v25  ;;  %21848 = vst [vmem:[#allocation99_spill] sm:$0xff] %v17311_v21  ;;  %v17315_v35 = vpack.i.bf16 %v9274_v43, %v9138_v6  ;;  %v21852_v50 = vld [vmem:[#allocation62_spill] sm:$0xff]  ;;  %v17322_v31 = vrot.slane %v5166_v62, %v21200_v44 }
 0x854   : > { %v9088_v5 = vrot.slane %v21847_v59, %v21200_v44  ;;  %21849 = vst [vmem:[#allocation235_spill] sm:$0xff] %v17313_v42  ;;  %v21853_v27 = vcombine.high %v21851_v34, %v21852_v50  ;;  %v5301_v1 = vcombine.low %v17298_v22, %v17301_v25  ;;  %21854 = vst [vmem:[#allocation117_spill] sm:$0xff] %v17326_v14  ;;  %v17336_v43 = vld [vmem:[#allocation3 + $0x4a] sm:$0xff]  ;;  %v21862_v25 = vld [vmem:[#allocation131_spill] sm:$0xff] }
 0x855   : > { %21850 = vst [vmem:[#allocation230_spill] sm:$0xff] %v17315_v35  ;;  %v17328_v59 = vpack.i.bf16 %v9007_v55, %v8871_v49  ;;  %v17331_v38 = vrot.slane %v5181_v57, %v21200_v44  ;;  %v17334_v6 = vrot.slane %v5182_v37, %v21200_v44  ;;  %21856 = vst [vmem:[#allocation128_spill] sm:$0xff] %v17336_v43  ;;  %9465 = vrot.lane.b32.xlu0 %v17336_v43, %s12739_s13  ;;  %v21857_v62 = vld [vmem:[#allocation110_spill] sm:$0xff]  ;;  %v21860_v55 = vld [vmem:[#allocation93_spill] sm:$0xff] }
 0x856   : > { %v9224_v32 = vrot.slane %v21853_v27, %v21200_v44  ;;  %v9139_v20 = vcombine.low %v9088_v5, %v9120_v39  ;;  %v8872_v10 = vcombine.high %v8832_v29, %v17236_v3  ;;  %v21858_v34 = vld [vmem:[#allocation74_spill] sm:$0xff]  ;;  %v17346_v57 = vrot.slane %v5301_v1, %v21200_v44  ;;  %10251 = vrot.lane.b32.xlu1 %v16953_v51, %s12740_s14  ;;  %v17355_v3 = vpop.permute.xlu0 %5623  ;;  %v21867_v42 = vld [vmem:[#allocation148_spill] sm:$0xff] }
 0x857   : > { %21855 = vst [vmem:[#allocation126_spill] sm:$0xff] %v17328_v59  ;;  %v5342_v50 = vcombine.high %v21858_v34, %v21857_v62  ;;  %v21859_v49 = vld [vmem:[#allocation122_spill] sm:$0xff]  ;;  %v9008_v37 = vcombine.high %v8968_v2, %v9000_v28  ;;  %v6122_v59 = vcombine.high %v21863_v24, %v21862_v25  ;;  %v17353_v35 = vrot.slane %v5269_v15, %v21200_v44  ;;  %v21866_v34 = vld [vmem:[#allocation57_spill] sm:$0xff]  ;;  %v21871_v2 = vld [vmem:[#allocation103_spill] sm:$0xff] }
 0x858   : > { %v9275_v27 = vcombine.low %v9224_v32, %v9256_v0  ;;  %v5358_v22 = vcombine.high %v21860_v55, %v21859_v49  ;;  %21861 = vst [vmem:[#allocation120_spill] sm:$0xff] %v17346_v57  ;;  %21865 = vst [vmem:[#allocation88_spill] sm:$0xff] %v17355_v3  ;;  %v9140_v29 = vcombine.high %v9088_v5, %v9120_v39  ;;  %v17359_v55 = vpop.permute.xlu1 %5643  ;;  %v21869_v43 = vld [vmem:[#allocation142_spill] sm:$0xff]  ;;  %v21888_v25 = vld [vmem:[#allocation71_spill] sm:$0xff] }
 0x859   : > { %21864 = vst [vmem:[#allocation86_spill] sm:$0xff] %v17353_v35  ;;  %v9276_v62 = vcombine.high %v9224_v32, %v9256_v0  ;;  %v5390_v49 = vcombine.high %v21867_v42, %v21866_v34  ;;  %21868 = vst [vmem:[#allocation127_spill] sm:$0xff] %v17359_v55  ;;  %v21870_v51 = vld [vmem:[#allocation146_spill] sm:$0xff]  ;;  %v8868_v24 = vcombine.high %v17077_v19, %v17058_v53  ;;  %9473 = vrot.lane.b32.xlu0 %v21871_v2, %s12739_s13  ;;  %v21873_v19 = vld [vmem:[#allocation49_spill] sm:$0xff] }
 0x85a   : > { %v17361_v1 = vpack.i.bf16 %v9275_v27, %v9139_v20  ;;  %v17369_v15 = vpack.i.bf16 %v9008_v37, %v8872_v10  ;;  %v8869_v39 = vcombine.low %v17218_v9, %v17192_v7  ;;  %v21872_v0 = vcombine.high %v21778_v63, %v21779_v60  ;;  %v21874_v42 = vld [vmem:[#allocation132_spill] sm:$0xff]  ;;  %10259 = vrot.lane.b32.xlu1 %v17000_v4, %s12740_s14  ;;  %v17390_v60 = vpop.permute.xlu0 %5627  ;;  %v21881_v34 = vld [vmem:[#allocation154_spill] sm:$0xff]  ;;  %v21916_v28 = vld [vmem:[#allocation163_spill] sm:$0xff] }
 0x85b   : > { %v5356_v5 = vrot.slane %v5342_v50, %v21199_v61  ;;  %v5372_v53 = vrot.slane %v5358_v22, %v21199_v61  ;;  %v5374_v32 = vcombine.high %v21874_v42, %v21873_v19  ;;  %v9004_v7 = vcombine.high %v17083_v30, %v17064_v58  ;;  %21875 = vst [vmem:[#allocation119_spill] sm:$0xff] %v17390_v60  ;;  %v21884_v19 = vld [vmem:[#allocation155_spill] sm:$0xff]  ;;  %v21921_v35 = vld [vmem:[#allocation162_spill] sm:$0xff] }
 0x85c   : > { %v9136_v20 = vrot.slane %v21872_v0, %v21200_v44  ;;  %v17388_v9 = vrot.slane %v6122_v59, %v21199_v61  ;;  %v17392_v63 = vpack.i.bf16 %v9276_v62, %v9140_v29  ;;  %v9005_v27 = vcombine.low %v17230_v41, %v17204_v12  ;;  %v17401_v50 = vpop.permute.xlu1 %5641  ;;  %v21879_v12 = vld [vmem:[#allocation111_spill] sm:$0xff] }
 0x85d   : > { %v21876_v22 = vcombine.high %v21787_v33, %v21788_v46  ;;  %v5404_v4 = vrot.slane %v5390_v49, %v21199_v61  ;;  %21877 = vst [vmem:[#allocation55_spill] sm:$0xff] %v17401_v50  ;;  %v17403_v58 = vpack.i.bf16 %v9004_v7, %v8868_v24  ;;  %v21878_v59 = vcombine.high %v21783_v26, %v21784_v18  ;;  %v21882_v49 = vld [vmem:[#allocation44_spill] sm:$0xff]  ;;  %v21891_v33 = vld [vmem:[#allocation153_spill] sm:$0xff] }
 0x85e   : > { %9481 = vrot.lane.b32.xlu0 %v21879_v12, %s12739_s13  ;;  %v17413_v41 = vpack.i.bf16 %v9005_v27, %v8869_v39  ;;  %v21880_v29 = vcombine.high %v21791_v36, %v21792_v23  ;;  %v5406_v24 = vcombine.high %v21882_v49, %v21881_v34  ;;  %v5421_v0 = vcombine.low %v5356_v5, %v5372_v53  ;;  %v21883_v18 = vld [vmem:[#allocation156_spill] sm:$0xff]  ;;  %v21886_v27 = vld [vmem:[#allocation39_spill] sm:$0xff]  ;;  %v17432_v23 = vpop.permute.xlu0 %5631 }
 0x85f   : > { %v9104_v10 = vrot.slane %v21876_v22, %v21200_v44  ;;  %v9272_v37 = vrot.slane %v21878_v59, %v21200_v44  ;;  %v5388_v26 = vrot.slane %v5374_v32, %v21199_v61  ;;  %v5438_v42 = vcombine.high %v21884_v19, %v21883_v18  ;;  %10233 = vrot.lane.b32.xlu1 %v17036_v52, %s12740_s14  ;;  %v21885_v7 = vld [vmem:[#allocation56_spill] sm:$0xff]  ;;  %v21887_v59 = vld [vmem:[#allocation58_spill] sm:$0xff]  ;;  %v21892_v52 = vld [vmem:[#allocation147_spill] sm:$0xff] }
 0x860   : > { %v9240_v62 = vrot.slane %v21880_v29, %v21200_v44  ;;  %v5422_v39 = vcombine.high %v5356_v5, %v5372_v53  ;;  %v6138_v22 = vcombine.high %v21886_v27, %v21885_v7  ;;  %v6170_v36 = vcombine.high %v21888_v25, %v21887_v59  ;;  %21889 = vst [vmem:[#allocation62_spill] sm:$0xff] %v17432_v23  ;;  %v17436_v32 = vpop.permute.xlu1 %7147  ;;  %v21910_v25 = vld [vmem:[#allocation166_spill] sm:$0xff] }
 0x861   : > { %v9143_v46 = vcombine.low %v9104_v10, %v9136_v20  ;;  %v5453_v34 = vcombine.low %v5388_v26, %v5404_v4  ;;  %21890 = vst [vmem:[#allocation110_spill] sm:$0xff] %v17436_v32  ;;  %v9144_v18 = vcombine.high %v9104_v10, %v9136_v20  ;;  %v6154_v5 = vcombine.high %v21892_v52, %v21891_v33  ;;  %v21896_v10 = vld [vmem:[#allocation157_spill] sm:$0xff] }
 0x862   : > { %v9279_v49 = vcombine.low %v9240_v62, %v9272_v37  ;;  %v9280_v19 = vcombine.high %v9240_v62, %v9272_v37  ;;  %v5454_v53 = vcombine.high %v5388_v26, %v5404_v4  ;;  %10239 = vrot.lane.b32.xlu0 %v17089_v54, %s12740_s14  ;;  %v17447_v27 = vrot.slane %v5406_v24, %v21200_v44  ;;  %v21897_v4 = vld [vmem:[#allocation42_spill] sm:$0xff]  ;;  %v17464_v24 = vpop.permute.xlu0 %5635 }
 0x863   : > { %v17450_v59 = vrot.slane %v5421_v0, %v21200_v44  ;;  %v17453_v20 = vrot.slane %v5438_v42, %v21200_v44  ;;  %v5850_v37 = vcombine.high %v21897_v4, %v21896_v10  ;;  %10241 = vrot.lane.b32.xlu1 %v17095_v40, %s12740_s14  ;;  %v17460_v54 = vrot.slane %v5422_v39, %v21200_v44  ;;  %v21912_v40 = vld [vmem:[#allocation172_spill] sm:$0xff]  ;;  %v21919_v10 = vld [vmem:[#allocation159_spill] sm:$0xff] }
 0x864   : > { %21893 = vst [vmem:[#allocation74_spill] sm:$0xff] %v17447_v27  ;;  %v6152_v33 = vrot.slane %v6138_v22, %v21199_v61  ;;  %v6184_v62 = vrot.slane %v6170_v36, %v21199_v61  ;;  %21899 = vst [vmem:[#allocation114_spill] sm:$0xff] %v17464_v24  ;;  %v17466_v0 = vpack.i.bf16 %v9279_v49, %v9143_v46  ;;  %v17471_v42 = vpop.permute.xlu1 %7155  ;;  %v21907_v46 = vld [vmem:[#allocation165_spill] sm:$0xff]  ;;  %v21908_v49 = vld [vmem:[#allocation164_spill] sm:$0xff] }
 0x865   : > { %21894 = vst [vmem:[#allocation122_spill] sm:$0xff] %v17450_v59  ;;  %21895 = vst [vmem:[#allocation93_spill] sm:$0xff] %v17453_v20  ;;  %v17469_v26 = vrot.slane %v5453_v34, %v21200_v44  ;;  %v17473_v52 = vpack.i.bf16 %v9280_v19, %v9144_v18  ;;  %v6168_v22 = vrot.slane %v6154_v5, %v21199_v61  ;;  %v21909_v34 = vld [vmem:[#allocation169_spill] sm:$0xff]  ;;  %v21911_v19 = vld [vmem:[#allocation174_spill] sm:$0xff] }
 0x866   : > { %21898 = vst [vmem:[#allocation131_spill] sm:$0xff] %v17460_v54  ;;  %21900 = vst [vmem:[#allocation57_spill] sm:$0xff] %v17466_v0  ;;  %v17481_v36 = vrot.slane %v5454_v53, %v21200_v44  ;;  %v6218_v7 = vcombine.high %v21908_v49, %v21907_v46  ;;  %v5866_v29 = vcombine.high %v21910_v25, %v21909_v34  ;;  %10247 = vrot.lane.b32.xlu0 %v17141_v56, %s12740_s14  ;;  %v21915_v49 = vld [vmem:[#allocation161_spill] sm:$0xff]  ;;  %v21936_v4 = vld [vmem:[#allocation179_spill] sm:$0xff] }
 0x867   : > { %21901 = vst [vmem:[#allocation148_spill] sm:$0xff] %v17469_v26  ;;  %21902 = vst [vmem:[#allocation103_spill] sm:$0xff] %v17471_v42  ;;  %v5864_v18 = vrot.slane %v5850_v37, %v21199_v61  ;;  %v5898_v30 = vcombine.high %v21912_v40, %v21911_v19  ;;  %10249 = vrot.lane.b32.xlu1 %v17152_v11, %s12740_s14  ;;  %v6186_v25 = vcombine.high %v21916_v28, %v21915_v49  ;;  %v17501_v37 = vpop.permute.xlu0 %5639  ;;  %v21918_v19 = vld [vmem:[#allocation160_spill] sm:$0xff]  ;;  %v21935_v46 = vld [vmem:[#allocation177_spill] sm:$0xff] }
 0x868   : > { %21903 = vst [vmem:[#allocation49_spill] sm:$0xff] %v17473_v52  ;;  %21906 = vst [vmem:[#allocation132_spill] sm:$0xff] %v17481_v36  ;;  %v6201_v34 = vcombine.low %v17388_v9, %v6152_v33  ;;  %v6233_v56 = vcombine.low %v6168_v22, %v6184_v62  ;;  %v6234_v39 = vcombine.high %v6168_v22, %v6184_v62  ;;  %v21920_v52 = vld [vmem:[#allocation167_spill] sm:$0xff]  ;;  %v17508_v57 = vpop.permute.xlu1 %7163  ;;  %v21962_v59 = vld [vmem:[#allocation94_spill] sm:$0xff] }
 0x869   : > { %21917 = vst [vmem:[#allocation111_spill] sm:$0xff] %v17501_v37  ;;  %v6202_v40 = vcombine.high %v17388_v9, %v6152_v33  ;;  %v5882_v11 = vcombine.high %v21919_v10, %v21918_v19  ;;  %v7650_v5 = vcombine.high %v21921_v35, %v21920_v52  ;;  %21922 = vst [vmem:[#allocation154_spill] sm:$0xff] %v17508_v57  ;;  %v21937_v33 = vld [vmem:[#allocation178_spill] sm:$0xff]  ;;  %v21938_v9 = vld [vmem:[#allocation248_spill] sm:$0xff] }
 0x86a   : > { %v17513_v28 = vrot.slane %v6218_v7, %v21200_v44  ;;  %v5880_v62 = vrot.slane %v5866_v29, %v21199_v61  ;;  %10255 = vrot.lane.b32.xlu0 %v17184_v16, %s12740_s14  ;;  %v5912_v35 = vrot.slane %v5898_v30, %v21199_v61  ;;  %v17532_v52 = vrot.slane %v6186_v25, %v21200_v44 }
 0x86b   : > { %10257 = vrot.lane.b32.xlu1 %v17194_v47, %s12740_s14  ;;  %v17535_v49 = vrot.slane %v6201_v34, %v21200_v44  ;;  %v17538_v30 = vrot.slane %v6233_v56, %v21200_v44  ;;  %v17541_v47 = vrot.slane %v6234_v39, %v21200_v44  ;;  %v17543_v19 = vpop.permute.xlu0 %5647  ;;  %v17546_v7 = vrot.slane %v6202_v40, %v21200_v44  ;;  %v21934_v56 = vld [vmem:[#allocation175_spill] sm:$0xff]  ;;  %v21946_v34 = vld [vmem:[#allocation189_spill] sm:$0xff] }
 0x86c   : > { %21923 = vst [vmem:[#allocation44_spill] sm:$0xff] %v17513_v28  ;;  %21926 = vst [vmem:[#allocation156_spill] sm:$0xff] %v17532_v52  ;;  %v5896_v29 = vrot.slane %v5882_v11, %v21199_v61  ;;  %v17550_v16 = vrot.slane %v7650_v5, %v21199_v61  ;;  %v17552_v25 = vpop.permute.xlu1 %7171  ;;  %v5914_v53 = vcombine.high %v21935_v46, %v21934_v56  ;;  %v21944_v40 = vld [vmem:[#allocation183_spill] sm:$0xff]  ;;  %v21945_v28 = vld [vmem:[#allocation180_spill] sm:$0xff] }
 0x86d   : > { %21927 = vst [vmem:[#allocation155_spill] sm:$0xff] %v17535_v49  ;;  %21928 = vst [vmem:[#allocation56_spill] sm:$0xff] %v17538_v30  ;;  %v5929_v39 = vcombine.low %v5864_v18, %v5880_v62  ;;  %v5930_v5 = vcombine.high %v5864_v18, %v5880_v62  ;;  %v5946_v10 = vcombine.high %v21937_v33, %v21936_v4  ;;  %v21940_v4 = vld [vmem:[#allocation173_spill] sm:$0xff]  ;;  %v21941_v62 = vld [vmem:[#allocation171_spill] sm:$0xff] }
 0x86e   : > { %21929 = vst [vmem:[#allocation39_spill] sm:$0xff] %v17541_v47  ;;  %21930 = vst [vmem:[#allocation58_spill] sm:$0xff] %v17546_v7  ;;  %10263 = vrot.lane.b32.xlu0 %v17242_v13, %s12740_s14  ;;  %v5961_v36 = vcombine.low %v5896_v29, %v5912_v35  ;;  %v5962_v54 = vcombine.high %v5896_v29, %v5912_v35  ;;  %v7682_v33 = vcombine.high %v21941_v62, %v21940_v4  ;;  %v21942_v35 = vld [vmem:[#allocation181_spill] sm:$0xff]  ;;  %v21943_v29 = vld [vmem:[#allocation176_spill] sm:$0xff] }
 0x86f   : > { %21931 = vst [vmem:[#allocation71_spill] sm:$0xff] %v17552_v25  ;;  %11918 = vrot.lane.b32.xlu1 %v21938_v9, %s12734_s30  ;;  %v17568_v46 = vpop.permute.xlu0 %5645  ;;  %v7378_v9 = vcombine.high %v21943_v29, %v21942_v35  ;;  %v7666_v52 = vcombine.high %v21945_v28, %v21944_v40  ;;  %v21947_v13 = vld [vmem:[#allocation186_spill] sm:$0xff]  ;;  %v17589_v56 = vrot.slane %v5914_v53, %v21200_v44  ;;  %v21955_v40 = vld [vmem:[#allocation116_spill] sm:$0xff]  ;;  %v21957_v35 = vld [vmem:[#allocation129_spill] sm:$0xff] }
 0x870   : > { %21939 = vst [vmem:[#allocation153_spill] sm:$0xff] %v17568_v46  ;;  %v7698_v22 = vcombine.high %v21947_v13, %v21946_v34  ;;  %v17586_v26 = vpop.permute.xlu1 %7145  ;;  %v17592_v11 = vrot.slane %v5929_v39, %v21200_v44  ;;  %v6033_v4 = vcombine.low %v17501_v37, %v17543_v19  ;;  %v5761_v62 = vcombine.low %v17326_v14, %v17568_v46  ;;  %v21956_v13 = vld [vmem:[#allocation67_spill] sm:$0xff]  ;;  %v21961_v49 = vld [vmem:[#allocation48_spill] sm:$0xff]  ;;  %v21972_v46 = vld [vmem:[#allocation190_spill] sm:$0xff] }
 0x871   : > { %21948 = vst [vmem:[#allocation147_spill] sm:$0xff] %v17586_v26  ;;  %21949 = vst [vmem:[#allocation157_spill] sm:$0xff] %v17589_v56  ;;  %v17601_v28 = vrot.slane %v5930_v5, %v21200_v44  ;;  %v17604_v34 = vrot.slane %v5946_v10, %v21200_v44  ;;  %v17607_v53 = vrot.slane %v5961_v36, %v21200_v44  ;;  %v21982_v37 = vld [vmem:[#allocation27_spill] sm:$0xff] }
 0x872   : > { %21950 = vst [vmem:[#allocation42_spill] sm:$0xff] %v17592_v11  ;;  %10237 = vrot.lane.b32.xlu0 %v17289_v17, %s12740_s14  ;;  %v17610_v39 = vrot.slane %v5962_v54, %v21200_v44  ;;  %v5729_v29 = vcombine.low %v21957_v35, %v21956_v13  ;;  %v21958_v17 = vld [vmem:[#allocation247_spill] sm:$0xff]  ;;  %v6001_v5 = vcombine.low %v17355_v3, %v17432_v23  ;;  %v21980_v3 = vld [vmem:[#allocation205_spill] sm:$0xff] }
 0x873   : > { %21951 = vst [vmem:[#allocation165_spill] sm:$0xff] %v17601_v28  ;;  %21952 = vst [vmem:[#allocation164_spill] sm:$0xff] %v17604_v34  ;;  %11928 = vrot.lane.b32.xlu1 %v21955_v40, %s12733_s29  ;;  %v5745_v18 = vcombine.low %v21958_v17, %v17401_v50  ;;  %v6017_v10 = vcombine.low %v17464_v24, %v17359_v55  ;;  %v17622_v36 = vpop.permute.xlu0 %7151  ;;  %v7696_v54 = vrot.slane %v7682_v33, %v21199_v61  ;;  %v21973_v50 = vld [vmem:[#allocation193_spill] sm:$0xff]  ;;  %v21976_v24 = vld [vmem:[#allocation187_spill] sm:$0xff] }
 0x874   : > { %21953 = vst [vmem:[#allocation169_spill] sm:$0xff] %v17607_v53  ;;  %21954 = vst [vmem:[#allocation166_spill] sm:$0xff] %v17610_v39  ;;  %v17626_v47 = vrot.slane %v7378_v9, %v21199_v61  ;;  %v7680_v40 = vrot.slane %v7666_v52, %v21199_v61  ;;  %v7712_v7 = vrot.slane %v7698_v22, %v21199_v61  ;;  %v17630_v30 = vpop.permute.xlu1 %7153  ;;  %v21965_v9 = vld [vmem:[#allocation128_spill] sm:$0xff]  ;;  %v21966_v52 = vld [vmem:[#allocation23_spill] sm:$0xff] }
 0x875   : > { %21959 = vst [vmem:[#allocation174_spill] sm:$0xff] %v17622_v36  ;;  %21960 = vst [vmem:[#allocation172_spill] sm:$0xff] %v17630_v30  ;;  %v5713_v20 = vcombine.low %v21962_v59, %v21961_v49  ;;  %v5985_v27 = vcombine.low %v17311_v21, %v17390_v60  ;;  %v17637_v17 = vrot.slane %v6033_v4, %v21199_v61  ;;  %v21977_v55 = vld [vmem:[#allocation185_spill] sm:$0xff]  ;;  %v21978_v34 = vld [vmem:[#allocation195_spill] sm:$0xff] }
 0x876   : > { %v17640_v33 = vrot.slane %v5761_v62, %v21199_v61  ;;  %10245 = vrot.lane.b32.xlu0 %v21965_v9, %s12740_s14  ;;  %v17655_v62 = vrot.slane %v5729_v29, %v21199_v61  ;;  %v17658_v9 = vrot.slane %v5745_v18, %v21199_v61  ;;  %v17664_v14 = vrot.slane %v6017_v10, %v21199_v61  ;;  %v22004_v39 = vld [vmem:[#allocation209_spill] sm:$0xff] }
 0x877   : > { %21963 = vst [vmem:[#allocation161_spill] sm:$0xff] %v17637_v17  ;;  %11938 = vrot.lane.b32.xlu1 %v21966_v52, %s12728_s24  ;;  %v17661_v52 = vrot.slane %v6001_v5, %v21199_v61  ;;  %v17666_v22 = vpop.permute.xlu0 %7159  ;;  %v7714_v21 = vcombine.high %v21973_v50, %v21972_v46  ;;  %v7729_v60 = vcombine.low %v17550_v16, %v7680_v40 }
 0x878   : > { %21964 = vst [vmem:[#allocation163_spill] sm:$0xff] %v17640_v33  ;;  %21969 = vst [vmem:[#allocation160_spill] sm:$0xff] %v17658_v9  ;;  %v7761_v4 = vcombine.low %v7696_v54, %v7712_v7  ;;  %v17671_v0 = vpop.permute.xlu1 %7161  ;;  %v17676_v29 = vrot.slane %v5713_v20, %v21199_v61  ;;  %v17679_v5 = vrot.slane %v5985_v27, %v21199_v61  ;;  %v21979_v20 = vld [vmem:[#allocation194_spill] sm:$0xff]  ;;  %v21981_v27 = vld [vmem:[#allocation203_spill] sm:$0xff] }
 0x879   : > { %21970 = vst [vmem:[#allocation159_spill] sm:$0xff] %v17664_v14  ;;  %21971 = vst [vmem:[#allocation167_spill] sm:$0xff] %v17666_v22  ;;  %v6081_v10 = vcombine.low %v17664_v14, %v17637_v17  ;;  %v5809_v50 = vcombine.low %v17658_v9, %v17640_v33  ;;  %v7730_v46 = vcombine.high %v17550_v16, %v7680_v40 }
 0x87a   : > { %21974 = vst [vmem:[#allocation162_spill] sm:$0xff] %v17671_v0  ;;  %21975 = vst [vmem:[#allocation175_spill] sm:$0xff] %v17679_v5  ;;  %10253 = vrot.lane.b32.xlu0 %v21871_v2, %s12740_s14  ;;  %v7410_v18 = vcombine.high %v21977_v55, %v21976_v24  ;;  %v7746_v56 = vcombine.high %v21979_v20, %v21978_v34  ;;  %v7426_v23 = vcombine.high %v21981_v27, %v21980_v3  ;;  %v21985_v34 = vld [vmem:[#allocation197_spill] sm:$0xff]  ;;  %v21987_v20 = vld [vmem:[#allocation200_spill] sm:$0xff] }
 0x87b   : > { %11948 = vrot.lane.b32.xlu1 %v21982_v37, %s12729_s25  ;;  %v5777_v9 = vcombine.low %v17676_v29, %v17655_v62  ;;  %v6049_v2 = vcombine.low %v17679_v5, %v17661_v52  ;;  %v17700_v33 = vpop.permute.xlu0 %7167  ;;  %v17707_v16 = vrot.slane %v7714_v21, %v21200_v44  ;;  %v7762_v3 = vcombine.high %v7696_v54, %v7712_v7  ;;  %v21986_v37 = vld [vmem:[#allocation191_spill] sm:$0xff]  ;;  %v21988_v27 = vld [vmem:[#allocation196_spill] sm:$0xff] }
 0x87c   : > { %21983 = vst [vmem:[#allocation177_spill] sm:$0xff] %v17700_v33  ;;  %v8430_v40 = vcombine.high %v21986_v37, %v21985_v34  ;;  %v7394_v14 = vcombine.high %v21988_v27, %v21987_v20  ;;  %v17713_v17 = vpop.permute.xlu1 %7169  ;;  %v17716_v5 = vrot.slane %v7729_v60, %v21200_v44  ;;  %v17719_v55 = vrot.slane %v7761_v4, %v21200_v44  ;;  %v21996_v34 = vld [vmem:[#allocation25_spill] sm:$0xff]  ;;  %v22002_v27 = vld [vmem:[#allocation8_spill] sm:$0xff] }
 0x87d   : > { %21984 = vst [vmem:[#allocation179_spill] sm:$0xff] %v17707_v16  ;;  %21989 = vst [vmem:[#allocation178_spill] sm:$0xff] %v17713_v17  ;;  %v17722_v24 = vrot.slane %v6081_v10, %v21200_v44  ;;  %v17725_v21 = vrot.slane %v5809_v50, %v21200_v44  ;;  %v17730_v7 = vrot.slane %v7730_v46, %v21200_v44 }
 0x87e   : > { %21990 = vst [vmem:[#allocation248_spill] sm:$0xff] %v17716_v5  ;;  %21991 = vst [vmem:[#allocation173_spill] sm:$0xff] %v17719_v55  ;;  %10261 = vrot.lane.b32.xlu0 %v21879_v12, %s12740_s14  ;;  %v7424_v54 = vrot.slane %v7410_v18, %v21199_v61  ;;  %v17734_v60 = vrot.slane %v7746_v56, %v21200_v44  ;;  %v7440_v4 = vrot.slane %v7426_v23, %v21199_v61  ;;  %v22039_v55 = vld [vmem:[#allocation218_spill] sm:$0xff] }
 0x87f   : > { %21992 = vst [vmem:[#allocation171_spill] sm:$0xff] %v17722_v24  ;;  %21993 = vst [vmem:[#allocation181_spill] sm:$0xff] %v17725_v21  ;;  %11958 = vrot.lane.b32.xlu1 %v21996_v34, %s12732_s28  ;;  %v17740_v10 = vrot.slane %v5777_v9, %v21200_v44  ;;  %v17743_v50 = vrot.slane %v6049_v2, %v21200_v44  ;;  %v7545_v12 = vcombine.low %v17508_v57, %v17552_v25  ;;  %v17749_v46 = vpop.permute.xlu0 %7175  ;;  %v22003_v34 = vld [vmem:[#allocation210_spill] sm:$0xff]  ;;  %v22015_v21 = vld [vmem:[#allocation211_spill] sm:$0xff] }
 0x880   : > { %21994 = vst [vmem:[#allocation176_spill] sm:$0xff] %v17730_v7  ;;  %21995 = vst [vmem:[#allocation183_spill] sm:$0xff] %v17734_v60  ;;  %v7529_v18 = vcombine.low %v17622_v36, %v17666_v22  ;;  %v17752_v56 = vrot.slane %v7762_v3, %v21200_v44  ;;  %v17755_v23 = vrot.slane %v8430_v40, %v21199_v61  ;;  %v17760_v37 = vpop.permute.xlu1 %7927  ;;  %v22009_v3 = vld [vmem:[#allocation206_spill] sm:$0xff]  ;;  %v22010_v22 = vld [vmem:[#allocation208_spill] sm:$0xff] }
 0x881   : > { %21997 = vst [vmem:[#allocation180_spill] sm:$0xff] %v17740_v10  ;;  %21998 = vst [vmem:[#allocation189_spill] sm:$0xff] %v17743_v50  ;;  %v7408_v9 = vrot.slane %v7394_v14, %v21199_v61  ;;  %v7561_v2 = vcombine.low %v17700_v33, %v17749_v46  ;;  %v7513_v20 = vcombine.low %v17436_v32, %v17471_v42  ;;  %v22006_v33 = vld [vmem:[#allocation22_spill] sm:$0xff]  ;;  %v22014_v10 = vld [vmem:[#allocation213_spill] sm:$0xff] }
 0x882   : > { %21999 = vst [vmem:[#allocation186_spill] sm:$0xff] %v17749_v46  ;;  %22000 = vst [vmem:[#allocation116_spill] sm:$0xff] %v17752_v56  ;;  %11923 = vrot.lane.b32.xlu0 %v22002_v27, %s12732_s28  ;;  %v7474_v28 = vcombine.high %v22004_v39, %v22003_v34  ;;  %v7489_v53 = vcombine.low %v7424_v54, %v7440_v4  ;;  %v7442_v57 = vcombine.high %v22010_v22, %v22009_v3  ;;  %v22016_v27 = vld [vmem:[#allocation80_spill] sm:$0xff]  ;;  %v22020_v50 = vld [vmem:[#allocation202_spill] sm:$0xff] }
 0x883   : > { %22001 = vst [vmem:[#allocation67_spill] sm:$0xff] %v17760_v37  ;;  %v17775_v11 = vrot.slane %v7561_v2, %v21199_v61  ;;  %11968 = vrot.lane.b32.xlu1 %v22006_v33, %s12730_s26  ;;  %v17784_v40 = vrot.slane %v7545_v12, %v21199_v61  ;;  %v17787_v14 = vrot.slane %v7529_v18, %v21199_v61  ;;  %v17789_v39 = vpop.permute.xlu0 %7149  ;;  %v22017_v46 = vld [vmem:[#allocation216_spill] sm:$0xff] }
 0x884   : > { %22013 = vst [vmem:[#allocation128_spill] sm:$0xff] %v17789_v39  ;;  %v7457_v34 = vcombine.low %v17626_v47, %v7408_v9  ;;  %v7490_v33 = vcombine.high %v7424_v54, %v7440_v4  ;;  %v8446_v36 = vcombine.high %v22015_v21, %v22014_v10  ;;  %v8478_v22 = vcombine.high %v22017_v46, %v22016_v27  ;;  %v17798_v3 = vpop.permute.xlu1 %7935  ;;  %v22019_v18 = vld [vmem:[#allocation204_spill] sm:$0xff] }
 0x885   : > { %22005 = vst [vmem:[#allocation129_spill] sm:$0xff] %v17775_v11  ;;  %22011 = vst [vmem:[#allocation48_spill] sm:$0xff] %v17784_v40  ;;  %v7458_v12 = vcombine.high %v17626_v47, %v7408_v9  ;;  %v8462_v24 = vcombine.high %v22020_v50, %v22019_v18  ;;  %v17804_v25 = vrot.slane %v7513_v20, %v21199_v61  ;;  %v22022_v54 = vld [vmem:[#allocation12_spill] sm:$0xff]  ;;  %v22026_v47 = vld [vmem:[#allocation207_spill] sm:$0xff] }
 0x886   : > { %22012 = vst [vmem:[#allocation94_spill] sm:$0xff] %v17787_v14  ;;  %22018 = vst [vmem:[#allocation23_spill] sm:$0xff] %v17798_v3  ;;  %v7609_v2 = vcombine.low %v17784_v40, %v17775_v11  ;;  %11933 = vrot.lane.b32.xlu0 %v22022_v54, %s12730_s26  ;;  %v17811_v21 = vrot.slane %v7474_v28, %v21200_v44  ;;  %v17814_v4 = vrot.slane %v7489_v53, %v21200_v44  ;;  %v22025_v10 = vld [vmem:[#allocation212_spill] sm:$0xff]  ;;  %v22027_v50 = vld [vmem:[#allocation13_spill] sm:$0xff] }
 0x887   : > { %22021 = vst [vmem:[#allocation190_spill] sm:$0xff] %v17804_v25  ;;  %v8158_v46 = vcombine.high %v22026_v47, %v22025_v10  ;;  %11978 = vrot.lane.b32.xlu1 %v22027_v50, %s12731_s27  ;;  %v17823_v20 = vrot.slane %v7442_v57, %v21200_v44  ;;  %v7577_v27 = vcombine.low %v17804_v25, %v17787_v14  ;;  %v17827_v28 = vpop.permute.xlu0 %7157  ;;  %v22041_v40 = vld [vmem:[#allocation21_spill] sm:$0xff]  ;;  %v22050_v25 = vld [vmem:[#allocation226_spill] sm:$0xff]  ;;  %v22051_v14 = vld [vmem:[#allocation223_spill] sm:$0xff] }
 0x888   : > { %22023 = vst [vmem:[#allocation193_spill] sm:$0xff] %v17811_v21  ;;  %22024 = vst [vmem:[#allocation187_spill] sm:$0xff] %v17814_v4  ;;  %v17834_v54 = vrot.slane %v7457_v34, %v21200_v44  ;;  %v17837_v10 = vrot.slane %v7490_v33, %v21200_v44  ;;  %v8460_v57 = vrot.slane %v8446_v36, %v21199_v61  ;;  %v17841_v50 = vpop.permute.xlu1 %7943  ;;  %v22035_v34 = vld [vmem:[#allocation6_spill] sm:$0xff]  ;;  %v22042_v33 = vld [vmem:[#allocation5_spill] sm:$0xff] }
 0x889   : > { %22028 = vst [vmem:[#allocation185_spill] sm:$0xff] %v17823_v20  ;;  %22029 = vst [vmem:[#allocation195_spill] sm:$0xff] %v17827_v28  ;;  %v8492_v47 = vrot.slane %v8478_v22, %v21199_v61  ;;  %v17844_v9 = vrot.slane %v7458_v12, %v21200_v44  ;;  %v8476_v53 = vrot.slane %v8462_v24, %v21199_v61  ;;  %v22036_v22 = vld [vmem:[#allocation251_spill] sm:$0xff]  ;;  %v22049_v12 = vld [vmem:[#allocation221_spill] sm:$0xff] }
 0x88a   : > { %22030 = vst [vmem:[#allocation194_spill] sm:$0xff] %v17834_v54  ;;  %22031 = vst [vmem:[#allocation205_spill] sm:$0xff] %v17837_v10  ;;  %v17848_v60 = vrot.slane %v7609_v2, %v21200_v44  ;;  %11943 = vrot.lane.b32.xlu0 %v22035_v34, %s12731_s27  ;;  %v17855_v36 = vrot.slane %v8158_v46, %v21199_v61  ;;  %v22040_v34 = vld [vmem:[#allocation220_spill] sm:$0xff]  ;;  %v8206_v56 = vcombine.high %v22042_v33, %v22041_v40  ;;  %v22047_v40 = vld [vmem:[#allocation215_spill] sm:$0xff] }
 0x88b   : > { %22032 = vst [vmem:[#allocation203_spill] sm:$0xff] %v17841_v50  ;;  %22033 = vst [vmem:[#allocation27_spill] sm:$0xff] %v17844_v9  ;;  %11993 = vrot.lane.b32.xlu1 %v22036_v22, %s12734_s30  ;;  %v8494_v5 = vcombine.high %v22040_v34, %v22039_v55  ;;  %v17870_v46 = vrot.slane %v7577_v27, %v21200_v44  ;;  %v17872_v7 = vpop.permute.xlu0 %7165  ;;  %v8509_v16 = vcombine.low %v17755_v23, %v8460_v57  ;;  %v22046_v34 = vld [vmem:[#allocation217_spill] sm:$0xff]  ;;  %v22048_v27 = vld [vmem:[#allocation222_spill] sm:$0xff] }
 0x88c   : > { %22034 = vst [vmem:[#allocation197_spill] sm:$0xff] %v17848_v60  ;;  %22044 = vst [vmem:[#allocation200_spill] sm:$0xff] %v17872_v7  ;;  %v8510_v24 = vcombine.high %v17755_v23, %v8460_v57  ;;  %v8541_v18 = vcombine.low %v8476_v53, %v8492_v47  ;;  %v17878_v2 = vpop.permute.xlu1 %7951  ;;  %v8190_v33 = vcombine.high %v22047_v40, %v22046_v34  ;;  %v22052_v22 = vld [vmem:[#allocation254_spill] sm:$0xff]  ;;  %v22053_v21 = vld [vmem:[#allocation224_spill] sm:$0xff] }
 0x88d   : > { %22043 = vst [vmem:[#allocation191_spill] sm:$0xff] %v17870_v46  ;;  %22045 = vst [vmem:[#allocation196_spill] sm:$0xff] %v17878_v2  ;;  %v8526_v11 = vcombine.high %v22049_v12, %v22048_v27  ;;  %v8174_v32 = vcombine.high %v22051_v14, %v22050_v25  ;;  %v8542_v57 = vcombine.high %v8476_v53, %v8492_v47  ;;  %v22054_v20 = vld [vmem:[#allocation219_spill] sm:$0xff]  ;;  %v22068_v9 = vld [vmem:[#allocation16_spill] sm:$0xff] }
 0x88e   : > { %11953 = vrot.lane.b32.xlu0 %v22052_v22, %s12734_s30  ;;  %v9958_v42 = vcombine.high %v22054_v20, %v22053_v21  ;;  %v22055_v55 = vld [vmem:[#allocation255_spill] sm:$0xff]  ;;  %v17901_v25 = vrot.slane %v8494_v5, %v21200_v44  ;;  %v8220_v14 = vrot.slane %v8206_v56, %v21199_v61  ;;  %v7273_v53 = vcombine.low %v17671_v0, %v17713_v17  ;;  %v22069_v4 = vld [vmem:[#allocation9_spill] sm:$0xff] }
 0x88f   : > { %12003 = vrot.lane.b32.xlu1 %v22055_v55, %s12732_s28  ;;  %v7257_v21 = vcombine.low %v17789_v39, %v17827_v28  ;;  %v17908_v20 = vpop.permute.xlu0 %7173  ;;  %v17911_v47 = vrot.slane %v8509_v16, %v21200_v44  ;;  %v17914_v22 = vrot.slane %v8510_v24, %v21200_v44  ;;  %v17917_v55 = vrot.slane %v8541_v18, %v21200_v44  ;;  %v22062_v24 = vld [vmem:[#allocation256_spill] sm:$0xff]  ;;  %v22074_v60 = vld [vmem:[#allocation11_spill] sm:$0xff] }
 0x890   : > { %22056 = vst [vmem:[#allocation25_spill] sm:$0xff] %v17901_v25  ;;  %22057 = vst [vmem:[#allocation8_spill] sm:$0xff] %v17908_v20  ;;  %v7289_v5 = vcombine.low %v17872_v7, %v17908_v20  ;;  %v17921_v56 = vpop.permute.xlu1 %7925  ;;  %v8204_v40 = vrot.slane %v8190_v33, %v21199_v61  ;;  %v17925_v27 = vrot.slane %v8526_v11, %v21200_v44  ;;  %v22065_v11 = vld [vmem:[#allocation240_spill] sm:$0xff]  ;;  %v22078_v33 = vld [vmem:[#allocation19_spill] sm:$0xff] }
 0x891   : > { %22058 = vst [vmem:[#allocation210_spill] sm:$0xff] %v17911_v47  ;;  %22059 = vst [vmem:[#allocation209_spill] sm:$0xff] %v17914_v22  ;;  %v8188_v23 = vrot.slane %v8174_v32, %v21199_v61  ;;  %v7241_v16 = vcombine.low %v17586_v26, %v17630_v30  ;;  %v17933_v18 = vrot.slane %v8542_v57, %v21200_v44  ;;  %v22076_v7 = vld [vmem:[#allocation236_spill] sm:$0xff]  ;;  %v22084_v0 = vld [vmem:[#allocation31_spill] sm:$0xff] }
 0x892   : > { %22060 = vst [vmem:[#allocation22_spill] sm:$0xff] %v17917_v55  ;;  %22061 = vst [vmem:[#allocation206_spill] sm:$0xff] %v17925_v27  ;;  %11963 = vrot.lane.b32.xlu0 %v22062_v24, %s12733_s29  ;;  %v17936_v12 = vrot.slane %v9958_v42, %v21199_v61  ;;  %v17939_v34 = vrot.slane %v7289_v5, %v21199_v61  ;;  %v8254_v54 = vcombine.high %v22069_v4, %v22068_v9  ;;  %v22073_v5 = vld [vmem:[#allocation17_spill] sm:$0xff]  ;;  %v22083_v4 = vld [vmem:[#allocation35_spill] sm:$0xff] }
 0x893   : > { %22063 = vst [vmem:[#allocation208_spill] sm:$0xff] %v17933_v18  ;;  %12018 = vrot.lane.b32.xlu1 %v22065_v11, %s12730_s26  ;;  %v8269_v46 = vcombine.low %v8204_v40, %v8220_v14  ;;  %v17948_v24 = vrot.slane %v7273_v53, %v21199_v61  ;;  %v17951_v57 = vrot.slane %v7257_v21, %v21199_v61  ;;  %v17953_v42 = vpop.permute.xlu0 %7931  ;;  %v22075_v11 = vld [vmem:[#allocation51_spill] sm:$0xff]  ;;  %v22077_v53 = vld [vmem:[#allocation36_spill] sm:$0xff]  ;;  %v22085_v26 = vld [vmem:[#allocation69_spill] sm:$0xff] }
 0x894   : > { %22064 = vst [vmem:[#allocation213_spill] sm:$0xff] %v17939_v34  ;;  %22072 = vst [vmem:[#allocation216_spill] sm:$0xff] %v17953_v42  ;;  %v8222_v39 = vcombine.high %v22074_v60, %v22073_v5  ;;  %v8270_v28 = vcombine.high %v8204_v40, %v8220_v14  ;;  %v10006_v20 = vcombine.high %v22076_v7, %v22075_v11  ;;  %v17959_v10 = vpop.permute.xlu1 %7933  ;;  %v22080_v14 = vld [vmem:[#allocation261_spill] sm:$0xff]  ;;  %v22081_v40 = vld [vmem:[#allocation7_spill] sm:$0xff] }
 0x895   : > { %22070 = vst [vmem:[#allocation211_spill] sm:$0xff] %v17948_v24  ;;  %22071 = vst [vmem:[#allocation80_spill] sm:$0xff] %v17951_v57  ;;  %v8237_v9 = vcombine.low %v17855_v36, %v8188_v23  ;;  %v9974_v21 = vcombine.high %v22078_v33, %v22077_v53  ;;  %v17967_v32 = vrot.slane %v7241_v16, %v21199_v61  ;;  %v22082_v5 = vld [vmem:[#allocation228_spill] sm:$0xff]  ;;  %v22101_v55 = vld [vmem:[#allocation50_spill] sm:$0xff] }
 0x896   : > { %v7337_v60 = vcombine.low %v17948_v24, %v17939_v34  ;;  %11973 = vrot.lane.b32.xlu0 %v22080_v14, %s12728_s24  ;;  %v8238_v7 = vcombine.high %v17855_v36, %v8188_v23  ;;  %v9990_v11 = vcombine.high %v22082_v5, %v22081_v40  ;;  %v9686_v17 = vcombine.high %v22084_v0, %v22083_v4  ;;  %v22103_v18 = vld [vmem:[#allocation47_spill] sm:$0xff]  ;;  %v22107_v27 = vld [vmem:[#allocation232_spill] sm:$0xff]  ;;  %v22109_v24 = vld [vmem:[#allocation238_spill] sm:$0xff] }
 0x897   : > { %22079 = vst [vmem:[#allocation204_spill] sm:$0xff] %v17967_v32  ;;  %12028 = vrot.lane.b32.xlu1 %v22085_v26, %s12728_s24  ;;  %v17983_v33 = vrot.slane %v8254_v54, %v21200_v44  ;;  %v17986_v53 = vrot.slane %v8269_v46, %v21200_v44  ;;  %v7305_v36 = vcombine.low %v17967_v32, %v17951_v57  ;;  %v17990_v23 = vpop.permute.xlu0 %7939 }
 0x898   : > { %22088 = vst [vmem:[#allocation212_spill] sm:$0xff] %v17990_v23  ;;  %v17995_v4 = vrot.slane %v8270_v28, %v21200_v44  ;;  %v10020_v26 = vrot.slane %v10006_v20, %v21199_v61  ;;  %v17998_v14 = vpop.permute.xlu1 %7941  ;;  %v18005_v40 = vrot.slane %v8222_v39, %v21200_v44  ;;  %v18008_v5 = vrot.slane %v8237_v9, %v21200_v44  ;;  %v22094_v20 = vld [vmem:[#allocation40_spill] sm:$0xff]  ;;  %v22096_v39 = vld [vmem:[#allocation78_spill] sm:$0xff]  ;;  %v22110_v9 = vld [vmem:[#allocation75_spill] sm:$0xff] }
 0x899   : > { %22086 = vst [vmem:[#allocation202_spill] sm:$0xff] %v17983_v33  ;;  %22087 = vst [vmem:[#allocation12_spill] sm:$0xff] %v17986_v53  ;;  %v9988_v0 = vrot.slane %v9974_v21, %v21199_v61  ;;  %v18012_v28 = vrot.slane %v7337_v60, %v21200_v44  ;;  %v18017_v16 = vrot.slane %v8238_v7, %v21200_v44  ;;  %v22104_v7 = vld [vmem:[#allocation66_spill] sm:$0xff]  ;;  %v22111_v33 = vld [vmem:[#allocation241_spill] sm:$0xff] }
 0x89a   : > { %22089 = vst [vmem:[#allocation207_spill] sm:$0xff] %v17995_v4  ;;  %22090 = vst [vmem:[#allocation13_spill] sm:$0xff] %v17998_v14  ;;  %11983 = vrot.lane.b32.xlu0 %v22094_v20, %s12729_s25  ;;  %v10004_v54 = vrot.slane %v9990_v11, %v21199_v61  ;;  %v18021_v46 = vrot.slane %v9686_v17, %v21199_v61  ;;  %v18028_v21 = vrot.slane %v7305_v36, %v21200_v44  ;;  %v22105_v17 = vld [vmem:[#allocation70_spill] sm:$0xff]  ;;  %v22108_v36 = vld [vmem:[#allocation239_spill] sm:$0xff] }
 0x89b   : > { %22091 = vst [vmem:[#allocation6_spill] sm:$0xff] %v18005_v40  ;;  %22092 = vst [vmem:[#allocation251_spill] sm:$0xff] %v18008_v5  ;;  %12033 = vrot.lane.b32.xlu1 %v22096_v39, %s12728_s24  ;;  %v18030_v60 = vpop.permute.xlu0 %7947  ;;  %v22102_v39 = vld [vmem:[#allocation64_spill] sm:$0xff]  ;;  %v10022_v22 = vcombine.high %v22104_v7, %v22103_v18  ;;  %v10037_v11 = vcombine.low %v17936_v12, %v9988_v0  ;;  %v10038_v20 = vcombine.high %v17936_v12, %v9988_v0  ;;  %v22112_v18 = vld [vmem:[#allocation30_spill] sm:$0xff] }
 0x89c   : > { %22093 = vst [vmem:[#allocation218_spill] sm:$0xff] %v18012_v28  ;;  %22095 = vst [vmem:[#allocation220_spill] sm:$0xff] %v18017_v16  ;;  %v10069_v25 = vcombine.low %v10004_v54, %v10020_v26  ;;  %v9734_v47 = vcombine.high %v22102_v39, %v22101_v55  ;;  %v18040_v32 = vpop.permute.xlu1 %7949  ;;  %v22106_v39 = vld [vmem:[#allocation237_spill] sm:$0xff]  ;;  %v10054_v34 = vcombine.high %v22109_v24, %v22108_v36  ;;  %v22129_v5 = vld [vmem:[#allocation107_spill] sm:$0xff] }
 0x89d   : > { %22097 = vst [vmem:[#allocation21_spill] sm:$0xff] %v18028_v21  ;;  %22098 = vst [vmem:[#allocation5_spill] sm:$0xff] %v18030_v60  ;;  %v9718_v57 = vcombine.high %v22107_v27, %v22106_v39  ;;  %v9702_v40 = vcombine.high %v22111_v33, %v22110_v9  ;;  %v10070_v0 = vcombine.high %v10004_v54, %v10020_v26  ;;  %v22113_v7 = vld [vmem:[#allocation245_spill] sm:$0xff]  ;;  %v22131_v28 = vld [vmem:[#allocation84_spill] sm:$0xff] }
 0x89e   : > { %11988 = vrot.lane.b32.xlu0 %v22105_v17, %s12734_s30  ;;  %v22114_v17 = vld [vmem:[#allocation45_spill] sm:$0xff]  ;;  %v8325_v55 = vcombine.low %v17841_v50, %v17878_v2  ;;  %v8309_v27 = vcombine.low %v17953_v42, %v17990_v23  ;;  %v18073_v33 = vrot.slane %v10069_v25, %v21200_v44  ;;  %v9748_v9 = vrot.slane %v9734_v47, %v21199_v61  ;;  %v22138_v23 = vld [vmem:[#allocation72_spill] sm:$0xff] }
 0x89f   : > { %12043 = vrot.lane.b32.xlu1 %v22112_v18, %s12731_s27  ;;  %v10738_v30 = vcombine.high %v22114_v17, %v22113_v7  ;;  %v18070_v24 = vpop.permute.xlu0 %7955  ;;  %v18083_v39 = vrot.slane %v10022_v22, %v21200_v44  ;;  %v18086_v18 = vrot.slane %v10037_v11, %v21200_v44  ;;  %v18089_v7 = vrot.slane %v10038_v20, %v21200_v44  ;;  %v22120_v47 = vld [vmem:[#allocation229_spill] sm:$0xff]  ;;  %v22123_v11 = vld [vmem:[#allocation34_spill] sm:$0xff] }
 0x8a0   : > { %22115 = vst [vmem:[#allocation217_spill] sm:$0xff] %v18070_v24  ;;  %22116 = vst [vmem:[#allocation215_spill] sm:$0xff] %v18073_v33  ;;  %v8341_v36 = vcombine.low %v18030_v60, %v18070_v24  ;;  %v18078_v26 = vpop.permute.xlu1 %9455  ;;  %v8293_v25 = vcombine.low %v17760_v37, %v17798_v3  ;;  %v9732_v17 = vrot.slane %v9718_v57, %v21199_v61  ;;  %v22137_v2 = vld [vmem:[#allocation65_spill] sm:$0xff]  ;;  %v22139_v37 = vld [vmem:[#allocation188_spill] sm:$0xff] }
 0x8a1   : > { %22117 = vst [vmem:[#allocation222_spill] sm:$0xff] %v18083_v39  ;;  %22118 = vst [vmem:[#allocation221_spill] sm:$0xff] %v18086_v18  ;;  %v18097_v12 = vrot.slane %v10054_v34, %v21200_v44  ;;  %v9716_v22 = vrot.slane %v9702_v40, %v21199_v61  ;;  %v18106_v20 = vrot.slane %v10070_v0, %v21200_v44  ;;  %v22127_v40 = vld [vmem:[#allocation76_spill] sm:$0xff]  ;;  %v22142_v3 = vld [vmem:[#allocation98_spill] sm:$0xff] }
 0x8a2   : > { %22119 = vst [vmem:[#allocation226_spill] sm:$0xff] %v18089_v7  ;;  %11998 = vrot.lane.b32.xlu0 %v22120_v47, %s12732_s28  ;;  %v18101_v54 = vrot.slane %v8341_v36, %v21199_v61  ;;  %v18109_v4 = vrot.slane %v10738_v30, %v21199_v61  ;;  %v18112_v47 = vrot.slane %v8325_v55, %v21199_v61  ;;  %v22128_v36 = vld [vmem:[#allocation73_spill] sm:$0xff]  ;;  %v22162_v33 = vld [vmem:[#allocation118_spill] sm:$0xff]  ;;  %v22163_v18 = vld [vmem:[#allocation112_spill] sm:$0xff] }
 0x8a3   : > { %22121 = vst [vmem:[#allocation223_spill] sm:$0xff] %v18097_v12  ;;  %12053 = vrot.lane.b32.xlu1 %v22123_v11, %s12729_s25  ;;  %22124 = vst [vmem:[#allocation224_spill] sm:$0xff] %v18106_v20  ;;  %v18115_v34 = vrot.slane %v8309_v27, %v21199_v61  ;;  %v18117_v57 = vpop.permute.xlu0 %7929  ;;  %v9782_v16 = vcombine.high %v22128_v36, %v22127_v40  ;;  %v9797_v53 = vcombine.low %v9732_v17, %v9748_v9  ;;  %v22130_v11 = vld [vmem:[#allocation91_spill] sm:$0xff]  ;;  %v22132_v55 = vld [vmem:[#allocation81_spill] sm:$0xff] }
 0x8a4   : > { %22122 = vst [vmem:[#allocation254_spill] sm:$0xff] %v18101_v54  ;;  %22125 = vst [vmem:[#allocation219_spill] sm:$0xff] %v18112_v47  ;;  %v10786_v21 = vcombine.high %v22130_v11, %v22129_v5  ;;  %v18123_v0 = vpop.permute.xlu1 %9463  ;;  %v10754_v60 = vcombine.high %v22132_v55, %v22131_v28  ;;  %v18130_v27 = vrot.slane %v8293_v25, %v21199_v61  ;;  %v22133_v40 = vld [vmem:[#allocation130_spill] sm:$0xff]  ;;  %v22136_v11 = vld [vmem:[#allocation59_spill] sm:$0xff] }
 0x8a5   : > { %22126 = vst [vmem:[#allocation255_spill] sm:$0xff] %v18117_v57  ;;  %v8389_v24 = vcombine.low %v18112_v47, %v18101_v54  ;;  %v9750_v42 = vcombine.high %v22137_v2, %v22136_v11  ;;  %v9765_v30 = vcombine.low %v18021_v46, %v9716_v22  ;;  %v10770_v28 = vcombine.high %v22139_v37, %v22138_v23  ;;  %v22140_v25 = vld [vmem:[#allocation63_spill] sm:$0xff]  ;;  %v22141_v54 = vld [vmem:[#allocation90_spill] sm:$0xff]  ;;  %v22160_v12 = vld [vmem:[#allocation109_spill] sm:$0xff] }
 0x8a6   : > { %12008 = vrot.lane.b32.xlu0 %v22133_v40, %s12733_s29  ;;  %v9798_v55 = vcombine.high %v9732_v17, %v9748_v9  ;;  %v9766_v47 = vcombine.high %v18021_v46, %v9716_v22  ;;  %v10466_v40 = vcombine.high %v22142_v3, %v22141_v54  ;;  %v8357_v5 = vcombine.low %v18130_v27, %v18115_v34  ;;  %v22148_v17 = vld [vmem:[#allocation125_spill] sm:$0xff]  ;;  %v22164_v20 = vld [vmem:[#allocation95_spill] sm:$0xff] }
 0x8a7   : > { %12063 = vrot.lane.b32.xlu1 %v22140_v25, %s12734_s30  ;;  %v18150_v36 = vpop.permute.xlu0 %7937  ;;  %v18155_v11 = vrot.slane %v9782_v16, %v21200_v44  ;;  %v18158_v37 = vrot.slane %v9797_v53, %v21200_v44  ;;  %v10800_v23 = vrot.slane %v10786_v21, %v21199_v61  ;;  %v10768_v9 = vrot.slane %v10754_v60, %v21199_v61  ;;  %v22152_v25 = vld [vmem:[#allocation243_spill] sm:$0xff] }
 0x8a8   : > { %22143 = vst [vmem:[#allocation256_spill] sm:$0xff] %v18150_v36  ;;  %v18161_v46 = vpop.permute.xlu1 %9471  ;;  %v18167_v54 = vrot.slane %v8389_v24, %v21200_v44  ;;  %v18176_v21 = vrot.slane %v9750_v42, %v21200_v44  ;;  %v18179_v22 = vrot.slane %v9765_v30, %v21200_v44  ;;  %v10784_v60 = vrot.slane %v10770_v28, %v21199_v61 }
 0x8a9   : > { %22144 = vst [vmem:[#allocation240_spill] sm:$0xff] %v18155_v11  ;;  %22145 = vst [vmem:[#allocation16_spill] sm:$0xff] %v18158_v37  ;;  %v18183_v24 = vrot.slane %v9798_v55, %v21200_v44  ;;  %v18191_v16 = vrot.slane %v10466_v40, %v21199_v61  ;;  %v18194_v42 = vrot.slane %v8357_v5, %v21200_v44  ;;  %v22161_v5 = vld [vmem:[#allocation115_spill] sm:$0xff]  ;;  %v22170_v11 = vld [vmem:[#allocation24_spill] sm:$0xff] }
 0x8aa   : > { %22146 = vst [vmem:[#allocation9_spill] sm:$0xff] %v18161_v46  ;;  %22147 = vst [vmem:[#allocation17_spill] sm:$0xff] %v18167_v54  ;;  %12013 = vrot.lane.b32.xlu0 %v22148_v17, %s12733_s29  ;;  %v18188_v17 = vrot.slane %v9766_v47, %v21200_v44  ;;  %v10849_v28 = vcombine.low %v10784_v60, %v10800_v23  ;;  %v10802_v39 = vcombine.high %v22161_v5, %v22160_v12  ;;  %v22165_v47 = vld [vmem:[#allocation18_spill] sm:$0xff] }
 0x8ab   : > { %22149 = vst [vmem:[#allocation11_spill] sm:$0xff] %v18176_v21  ;;  %22150 = vst [vmem:[#allocation51_spill] sm:$0xff] %v18179_v22  ;;  %12073 = vrot.lane.b32.xlu1 %v22152_v25, %s12732_s28  ;;  %v18196_v53 = vpop.permute.xlu0 %7945  ;;  %v10817_v50 = vcombine.low %v18109_v4, %v10768_v9  ;;  %v10834_v30 = vcombine.high %v22163_v18, %v22162_v33  ;;  %v10818_v7 = vcombine.high %v18109_v4, %v10768_v9  ;;  %v22168_v25 = vld [vmem:[#allocation102_spill] sm:$0xff] }
 0x8ac   : > { %22151 = vst [vmem:[#allocation236_spill] sm:$0xff] %v18183_v24  ;;  %22153 = vst [vmem:[#allocation36_spill] sm:$0xff] %v18188_v17  ;;  %v18200_v55 = vpop.permute.xlu1 %9479  ;;  %v10850_v18 = vcombine.high %v10784_v60, %v10800_v23  ;;  %v8037_v5 = vcombine.low %v18117_v57, %v18150_v36  ;;  %v18237_v12 = vrot.slane %v10849_v28, %v21200_v44  ;;  %v22171_v33 = vld [vmem:[#allocation246_spill] sm:$0xff]  ;;  %v22206_v36 = vld [vmem:[#allocation85_spill] sm:$0xff] }
 0x8ad   : > { %22154 = vst [vmem:[#allocation19_spill] sm:$0xff] %v18191_v16  ;;  %22155 = vst [vmem:[#allocation261_spill] sm:$0xff] %v18194_v42  ;;  %v4950_v23 = vcombine.high %v22171_v33, %v22170_v11  ;;  %v18246_v22 = vrot.slane %v10802_v39, %v21200_v44  ;;  %v18249_v21 = vrot.slane %v10817_v50, %v21200_v44  ;;  %v22178_v33 = vld [vmem:[#allocation250_spill] sm:$0xff]  ;;  %v22180_v39 = vld [vmem:[#allocation124_spill] sm:$0xff] }
 0x8ae   : > { %22156 = vst [vmem:[#allocation7_spill] sm:$0xff] %v18196_v53  ;;  %22157 = vst [vmem:[#allocation228_spill] sm:$0xff] %v18200_v55  ;;  %12023 = vrot.lane.b32.xlu0 %v22164_v20, %s12730_s26  ;;  %v8053_v20 = vcombine.low %v17998_v14, %v18040_v32  ;;  %v18252_v9 = vrot.slane %v10834_v30, %v21200_v44  ;;  %v8021_v28 = vcombine.low %v17921_v56, %v17959_v10  ;;  %v22181_v17 = vld [vmem:[#allocation106_spill] sm:$0xff]  ;;  %v22183_v30 = vld [vmem:[#allocation20_spill] sm:$0xff] }
 0x8af   : > { %12088 = vrot.lane.b32.xlu1 %v22165_v47, %s12730_s26  ;;  %v18230_v4 = vpop.permute.xlu0 %7953  ;;  %v22167_v47 = vld [vmem:[#allocation96_spill] sm:$0xff]  ;;  %22169 = vst [vmem:[#allocation31_spill] sm:$0xff] %v18237_v12  ;;  %22173 = vst [vmem:[#allocation40_spill] sm:$0xff] %v18246_v22  ;;  %v18259_v11 = vrot.slane %v10818_v7, %v21200_v44  ;;  %v4934_v3 = vcombine.high %v22181_v17, %v22180_v39  ;;  %v18271_v2 = vrot.slane %v10850_v18, %v21200_v44  ;;  %v22185_v42 = vld [vmem:[#allocation234_spill] sm:$0xff] }
 0x8b0   : > { %22166 = vst [vmem:[#allocation35_spill] sm:$0xff] %v18230_v4  ;;  %v10498_v40 = vcombine.high %v22168_v25, %v22167_v47  ;;  %v8069_v60 = vcombine.low %v18196_v53, %v18230_v4  ;;  %v18243_v37 = vpop.permute.xlu1 %9453  ;;  %22174 = vst [vmem:[#allocation78_spill] sm:$0xff] %v18249_v21  ;;  %v22176_v25 = vld [vmem:[#allocation37_spill] sm:$0xff]  ;;  %v22179_v47 = vld [vmem:[#allocation123_spill] sm:$0xff]  ;;  %v18276_v7 = vrot.slane %v8053_v20, %v21199_v61 }
 0x8b1   : > { %22172 = vst [vmem:[#allocation69_spill] sm:$0xff] %v18243_v37  ;;  %22175 = vst [vmem:[#allocation50_spill] sm:$0xff] %v18252_v9  ;;  %v10482_v24 = vcombine.high %v22179_v47, %v22178_v33  ;;  %v18279_v33 = vrot.slane %v8037_v5, %v21199_v61  ;;  %v22194_v20 = vld [vmem:[#allocation82_spill] sm:$0xff]  ;;  %v18296_v5 = vrot.slane %v8021_v28, %v21199_v61  ;;  %v22199_v18 = vld [vmem:[#allocation252_spill] sm:$0xff] }
 0x8b2   : > { %12038 = vrot.lane.b32.xlu0 %v22176_v25, %s12731_s27  ;;  %22177 = vst [vmem:[#allocation64_spill] sm:$0xff] %v18259_v11  ;;  %v18266_v50 = vrot.slane %v8069_v60, %v21199_v61  ;;  %22184 = vst [vmem:[#allocation66_spill] sm:$0xff] %v18271_v2  ;;  %v22186_v25 = vld [vmem:[#allocation260_spill] sm:$0xff]  ;;  %v18284_v17 = vrot.slane %v10498_v40, %v21199_v61  ;;  %v4964_v60 = vrot.slane %v4950_v23, %v21199_v61  ;;  %v22201_v28 = vld [vmem:[#allocation235_spill] sm:$0xff] }
 0x8b3   : > { %12098 = vrot.lane.b32.xlu1 %v22183_v30, %s12728_s24  ;;  %v4982_v54 = vcombine.high %v22186_v25, %v22185_v42  ;;  %22187 = vst [vmem:[#allocation70_spill] sm:$0xff] %v18276_v7  ;;  %22188 = vst [vmem:[#allocation237_spill] sm:$0xff] %v18279_v33  ;;  %v18281_v47 = vpop.permute.xlu0 %9459  ;;  %v22195_v25 = vld [vmem:[#allocation253_spill] sm:$0xff]  ;;  %v18305_v53 = vrot.slane %v10482_v24, %v21199_v61  ;;  %v8085_v24 = vcombine.low %v18296_v5, %v18279_v33  ;;  %v22209_v12 = vld [vmem:[#allocation258_spill] sm:$0xff] }
 0x8b4   : > { %22182 = vst [vmem:[#allocation47_spill] sm:$0xff] %v18266_v50  ;;  %22189 = vst [vmem:[#allocation232_spill] sm:$0xff] %v18281_v47  ;;  %v18287_v39 = vpop.permute.xlu1 %9461  ;;  %v4966_v4 = vcombine.high %v22195_v25, %v22194_v20  ;;  %v8117_v40 = vcombine.low %v18276_v7, %v18266_v50  ;;  %v22200_v42 = vld [vmem:[#allocation257_spill] sm:$0xff]  ;;  %v4948_v20 = vrot.slane %v4934_v3, %v21199_v61  ;;  %v22202_v7 = vld [vmem:[#allocation32_spill] sm:$0xff] }
 0x8b5   : > { %22190 = vst [vmem:[#allocation239_spill] sm:$0xff] %v18284_v17  ;;  %22191 = vst [vmem:[#allocation238_spill] sm:$0xff] %v18287_v39  ;;  %v22197_v17 = vld [vmem:[#allocation92_spill] sm:$0xff]  ;;  %v10530_v30 = vcombine.high %v22200_v42, %v22199_v18  ;;  %v22203_v50 = vld [vmem:[#allocation87_spill] sm:$0xff]  ;;  %v4996_v57 = vrot.slane %v4982_v54, %v21199_v61  ;;  %v18356_v9 = vrot.slane %v8085_v24, %v21200_v44 }
 0x8b6   : > { %22196 = vst [vmem:[#allocation75_spill] sm:$0xff] %v18296_v5  ;;  %12048 = vrot.lane.b32.xlu0 %v22197_v17, %s12729_s25  ;;  %22198 = vst [vmem:[#allocation241_spill] sm:$0xff] %v18305_v53  ;;  %v4998_v17 = vcombine.high %v22203_v50, %v22202_v7  ;;  %v5013_v3 = vcombine.low %v4948_v20, %v4964_v60  ;;  %v22205_v42 = vld [vmem:[#allocation54_spill] sm:$0xff]  ;;  %v5014_v50 = vcombine.high %v4948_v20, %v4964_v60  ;;  %v22208_v7 = vld [vmem:[#allocation259_spill] sm:$0xff] }
 0x8b7   : > { %12103 = vrot.lane.b32.xlu1 %v22201_v28, %s12728_s24  ;;  %v18319_v23 = vpop.permute.xlu0 %9467  ;;  %v5030_v28 = vcombine.high %v22206_v36, %v22205_v42  ;;  %v10562_v21 = vcombine.high %v22209_v12, %v22208_v7  ;;  %v4980_v5 = vrot.slane %v4966_v4, %v21199_v61  ;;  %v18335_v18 = vrot.slane %v8117_v40, %v21200_v44  ;;  %v22211_v33 = vld [vmem:[#allocation230_spill] sm:$0xff]  ;;  %v22213_v25 = vld [vmem:[#allocation33_spill] sm:$0xff]  ;;  %v22214_v54 = vld [vmem:[#allocation68_spill] sm:$0xff] }
 0x8b8   : > { %22204 = vst [vmem:[#allocation30_spill] sm:$0xff] %v18319_v23  ;;  %v18325_v14 = vpop.permute.xlu1 %9469  ;;  %v18340_v36 = vrot.slane %v10530_v30, %v21200_v44  ;;  %v5206_v60 = vcombine.high %v22214_v54, %v22213_v25  ;;  %v22215_v20 = vld [vmem:[#allocation46_spill] sm:$0xff]  ;;  %v22216_v2 = vld [vmem:[#allocation233_spill] sm:$0xff]  ;;  %v18351_v40 = vrot.slane %v4998_v17, %v21200_v44  ;;  %22220 = vst [vmem:[#allocation34_spill] sm:$0xff] %v18356_v9 }
 0x8b9   : > { %22207 = vst [vmem:[#allocation245_spill] sm:$0xff] %v18325_v14  ;;  %22210 = vst [vmem:[#allocation45_spill] sm:$0xff] %v18335_v18  ;;  %v5222_v12 = vcombine.high %v22216_v2, %v22215_v20  ;;  %v22217_v4 = vld [vmem:[#allocation126_spill] sm:$0xff]  ;;  %v5045_v30 = vcombine.low %v4980_v5, %v4996_v57  ;;  %v18361_v25 = vrot.slane %v5013_v3, %v21200_v44  ;;  %v22222_v54 = vld [vmem:[#allocation100_spill] sm:$0xff] }
 0x8ba   : > { %12058 = vrot.lane.b32.xlu0 %v22211_v33, %s12734_s30  ;;  %22212 = vst [vmem:[#allocation229_spill] sm:$0xff] %v18340_v36  ;;  %v18364_v2 = vrot.slane %v5030_v28, %v21200_v44  ;;  %v22223_v20 = vld [vmem:[#allocation104_spill] sm:$0xff]  ;;  %v22225_v16 = vld [vmem:[#allocation121_spill] sm:$0xff]  ;;  %v18373_v22 = vrot.slane %v5014_v50, %v21200_v44  ;;  %v18376_v24 = vrot.slane %v10562_v21, %v21200_v44  ;;  %v22235_v21 = vld [vmem:[#allocation43_spill] sm:$0xff] }
 0x8bb   : > { %12113 = vrot.lane.b32.xlu1 %v22217_v4, %s12731_s27  ;;  %v18358_v42 = vpop.permute.xlu0 %9475  ;;  %v5254_v4 = vcombine.high %v22223_v20, %v22222_v54  ;;  %v22226_v53 = vld [vmem:[#allocation105_spill] sm:$0xff]  ;;  %v5046_v7 = vcombine.high %v4980_v5, %v4996_v57  ;;  %v5220_v28 = vrot.slane %v5206_v60, %v21199_v61  ;;  %v5236_v54 = vrot.slane %v5222_v12, %v21199_v61 }
 0x8bc   : > { %22221 = vst [vmem:[#allocation76_spill] sm:$0xff] %v18358_v42  ;;  %v18368_v17 = vpop.permute.xlu1 %9477  ;;  %v5062_v11 = vcombine.high %v22226_v53, %v22225_v16  ;;  %22227 = vst [vmem:[#allocation107_spill] sm:$0xff] %v18376_v24  ;;  %v22228_v20 = vld [vmem:[#allocation101_spill] sm:$0xff]  ;;  %v5053_v57 = vrot.slane %v5045_v30, %v21200_v44  ;;  %v9853_v5 = vcombine.low %v18161_v46, %v18200_v55  ;;  %v22387_v55 = vld [vmem:[#allocation204_spill] sm:$0xff] }
 0x8bd   : > { %22224 = vst [vmem:[#allocation73_spill] sm:$0xff] %v18368_v17  ;;  %v22229_v33 = vld [vmem:[#allocation61_spill] sm:$0xff]  ;;  %v9837_v60 = vcombine.low %v18281_v47, %v18319_v23  ;;  %v22234_v30 = vcombine.high %v21870_v51, %v21869_v43  ;;  %v5714_v53 = vcombine.high %v21962_v59, %v21961_v49  ;;  %v22236_v43 = vld [vmem:[#allocation244_spill] sm:$0xff]  ;;  %v5286_v59 = vcombine.high %v5220_v28, %v5236_v54 }
 0x8be   : > { %12068 = vrot.lane.b32.xlu0 %v17361_v1, %s12732_s28  ;;  %v5238_v16 = vcombine.high %v22229_v33, %v22228_v20  ;;  %v5730_v1 = vcombine.high %v21957_v35, %v21956_v13  ;;  %v5268_v33 = vrot.slane %v5254_v4, %v21199_v61  ;;  %v5064_v13 = vcombine.high %v18351_v40, %v18364_v2 }
 0x8bf   : > { %12123 = vrot.lane.b32.xlu1 %v17369_v15, %s12729_s25  ;;  %v18397_v12 = vpop.permute.xlu0 %9483  ;;  %v12127_v3 = vpack.i.bf16 %v22234_v30, %v5062_v11  ;;  %v5060_v35 = vrot.slane %v5046_v7, %v21200_v44  ;;  %v9821_v4 = vcombine.low %v18078_v26, %v18123_v0  ;;  %v5270_v11 = vcombine.high %v22236_v43, %v22235_v21  ;;  %v22241_v43 = vld [vmem:[#allocation83_spill] sm:$0xff]  ;;  %v22242_v21 = vld [vmem:[#allocation52_spill] sm:$0xff] }
 0x8c0   : > { %22232 = vst [vmem:[#allocation91_spill] sm:$0xff] %v18397_v12  ;;  %v9869_v15 = vcombine.low %v18358_v42, %v18397_v12  ;;  %v18402_v20 = vpop.permute.xlu1 %10235  ;;  %v5285_v30 = vcombine.low %v5220_v28, %v5236_v54  ;;  %v5252_v51 = vrot.slane %v5238_v16, %v21199_v61  ;;  %v5744_v49 = vrot.slane %v5730_v1, %v21199_v61  ;;  %v22292_v12 = vld [vmem:[#allocation41_spill] sm:$0xff] }
 0x8c1   : > { %22233 = vst [vmem:[#allocation84_spill] sm:$0xff] %v18402_v20  ;;  %v18427_v42 = vrot.slane %v9853_v5, %v21199_v61  ;;  %v5302_v24 = vcombine.high %v22242_v21, %v22241_v43  ;;  %v5066_v54 = vcombine.high %v18361_v25, %v5053_v57  ;;  %v5728_v1 = vrot.slane %v5714_v53, %v21199_v61 }
 0x8c2   : > { %12078 = vrot.lane.b32.xlu0 %v17392_v63, %s12733_s29  ;;  %v18422_v7 = vrot.slane %v9869_v15, %v21199_v61  ;;  %v18430_v63 = vrot.slane %v9837_v60, %v21199_v61  ;;  %v5317_v16 = vcombine.low %v5252_v51, %v5268_v33  ;;  %v5318_v5 = vcombine.high %v5252_v51, %v5268_v33 }
 0x8c3   : > { %12128 = vrot.lane.b32.xlu1 %v12127_v3, %s12734_s30  ;;  %22238 = vst [vmem:[#allocation130_spill] sm:$0xff] %v18427_v42  ;;  %v18432_v50 = vpop.permute.xlu0 %9457  ;;  %v22244_v3 = vcombine.high %v17133_v48, %v17322_v31  ;;  %v18444_v60 = vrot.slane %v9821_v4, %v21199_v61  ;;  %v5068_v43 = vcombine.high %v18373_v22, %v5060_v35 }
 0x8c4   : > { %22237 = vst [vmem:[#allocation81_spill] sm:$0xff] %v18422_v7  ;;  %22239 = vst [vmem:[#allocation59_spill] sm:$0xff] %v18430_v63  ;;  %v18436_v36 = vpop.permute.xlu1 %10243  ;;  %v9917_v15 = vcombine.low %v18427_v42, %v18422_v7  ;;  %v5065_v21 = vcombine.low %v18361_v25, %v5053_v57  ;;  %v5067_v51 = vcombine.low %v18373_v22, %v5060_v35  ;;  %v22282_v7 = vld [vmem:[#allocation175_spill] sm:$0xff] }
 0x8c5   : > { %22240 = vst [vmem:[#allocation65_spill] sm:$0xff] %v18432_v50  ;;  %22243 = vst [vmem:[#allocation72_spill] sm:$0xff] %v18436_v36  ;;  %v12137_v28 = vpack.i.bf16 %v22244_v3, %v5064_v13  ;;  %v5063_v13 = vcombine.low %v18351_v40, %v18364_v2  ;;  %v18457_v53 = vrot.slane %v5270_v11, %v21200_v44 }
 0x8c6   : > { %22245 = vst [vmem:[#allocation188_spill] sm:$0xff] %v18444_v60  ;;  %12083 = vrot.lane.b32.xlu0 %v17403_v58, %s12733_s29  ;;  %v5778_v33 = vcombine.high %v17676_v29, %v17655_v62  ;;  %v5793_v4 = vcombine.low %v5728_v1, %v5744_v49  ;;  %v9885_v58 = vcombine.low %v18444_v60, %v18430_v63 }
 0x8c7   : > { %12138 = vrot.lane.b32.xlu1 %v12137_v28, %s12733_s29  ;;  %v18463_v3 = vpop.permute.xlu0 %9465  ;;  %v5794_v28 = vcombine.high %v5728_v1, %v5744_v49  ;;  %v18466_v42 = vrot.slane %v5302_v24, %v21200_v44  ;;  %v18469_v40 = vrot.slane %v5317_v16, %v21200_v44  ;;  %v22248_v25 = vcombine.high %v17136_v45, %v17331_v38 }
 0x8c8   : > { %22246 = vst [vmem:[#allocation63_spill] sm:$0xff] %v18463_v3  ;;  %v18471_v22 = vpop.permute.xlu1 %10251  ;;  %v18477_v62 = vrot.slane %v5285_v30, %v21200_v44  ;;  %v18480_v29 = vrot.slane %v5286_v59, %v21200_v44  ;;  %v18483_v57 = vrot.slane %v5318_v5, %v21200_v44  ;;  %v18486_v24 = vrot.slane %v9917_v15, %v21200_v44  ;;  %v22254_v15 = vld [vmem:[#allocation111_spill] sm:$0xff] }
 0x8c9   : > { %22247 = vst [vmem:[#allocation90_spill] sm:$0xff] %v18471_v22  ;;  %v12147_v2 = vpack.i.bf16 %v22248_v25, %v5066_v54  ;;  %v22250_v35 = vcombine.high %v17139_v8, %v17334_v6  ;;  %v22251_v30 = vcombine.low %v17133_v48, %v17322_v31  ;;  %v22252_v49 = vcombine.low %v17136_v45, %v17331_v38  ;;  %v22263_v25 = vld [vmem:[#allocation120_spill] sm:$0xff] }
 0x8ca   : > { %22249 = vst [vmem:[#allocation98_spill] sm:$0xff] %v18486_v24  ;;  %12093 = vrot.lane.b32.xlu0 %v17413_v41, %s12730_s26  ;;  %v22253_v54 = vcombine.low %v17139_v8, %v17334_v6  ;;  %v18508_v41 = vrot.slane %v5778_v33, %v21200_v44  ;;  %v18511_v5 = vrot.slane %v5793_v4, %v21200_v44  ;;  %v22257_v8 = vld [vmem:[#allocation62_spill] sm:$0xff]  ;;  %v22258_v6 = vld [vmem:[#allocation88_spill] sm:$0xff]  ;;  %v22276_v24 = vld [vmem:[#allocation161_spill] sm:$0xff] }
 0x8cb   : > { %12148 = vrot.lane.b32.xlu1 %v12147_v2, %s12728_s24  ;;  %v12157_v11 = vpack.i.bf16 %v22250_v35, %v5068_v43  ;;  %v12132_v59 = vpack.i.bf16 %v22251_v30, %v5063_v13  ;;  %v18500_v16 = vpack.i.bf16 %v22252_v49, %v5065_v21  ;;  %v6034_v48 = vcombine.high %v22254_v15, %v17543_v19  ;;  %v18518_v45 = vpop.permute.xlu0 %9473  ;;  %v22260_v19 = vld [vmem:[#allocation127_spill] sm:$0xff]  ;;  %v22261_v33 = vld [vmem:[#allocation114_spill] sm:$0xff] }
 0x8cc   : > { %v18505_v1 = vpack.i.bf16 %v22253_v54, %v5067_v51  ;;  %v18516_v31 = vrot.slane %v9885_v58, %v21200_v44  ;;  %22256 = vst [vmem:[#allocation243_spill] sm:$0xff] %v18518_v45  ;;  %v18521_v38 = vrot.slane %v5794_v28, %v21200_v44  ;;  %v6002_v43 = vcombine.high %v22258_v6, %v22257_v8  ;;  %v18525_v13 = vpop.permute.xlu1 %10259  ;;  %v22262_v58 = vld [vmem:[#allocation57_spill] sm:$0xff]  ;;  %v22264_v2 = vld [vmem:[#allocation86_spill] sm:$0xff]  ;;  %v22265_v49 = vld [vmem:[#allocation119_spill] sm:$0xff] }
 0x8cd   : > { %22259 = vst [vmem:[#allocation109_spill] sm:$0xff] %v18525_v13  ;;  %v5335_v21 = vcombine.low %v18457_v53, %v18466_v42  ;;  %v5337_v51 = vcombine.low %v18477_v62, %v18469_v40  ;;  %v6018_v4 = vcombine.high %v22261_v33, %v22260_v19  ;;  %v5339_v28 = vcombine.low %v18480_v29, %v18483_v57  ;;  %v22266_v54 = vld [vmem:[#allocation99_spill] sm:$0xff] }
 0x8ce   : > { %22255 = vst [vmem:[#allocation125_spill] sm:$0xff] %v18516_v31  ;;  %12108 = vrot.lane.b32.xlu0 %v22262_v58, %s12731_s27  ;;  %v5334_v35 = vcombine.high %v22264_v2, %v22263_v25  ;;  %v5986_v15 = vcombine.high %v22266_v54, %v22265_v49  ;;  %v5336_v8 = vcombine.high %v18457_v53, %v18466_v42  ;;  %v22267_v58 = vld [vmem:[#allocation153_spill] sm:$0xff]  ;;  %v22270_v42 = vld [vmem:[#allocation55_spill] sm:$0xff] }
 0x8cf   : > { %12158 = vrot.lane.b32.xlu1 %v12157_v11, %s12729_s25  ;;  %v5338_v6 = vcombine.high %v18477_v62, %v18469_v40  ;;  %v5340_v19 = vcombine.high %v18480_v29, %v18483_v57  ;;  %v18551_v33 = vrot.slane %v6034_v48, %v21199_v61  ;;  %v22268_v25 = vld [vmem:[#allocation117_spill] sm:$0xff]  ;;  %v9581_v49 = vcombine.low %v18325_v14, %v18368_v17  ;;  %v22271_v53 = vld [vmem:[#allocation247_spill] sm:$0xff]  ;;  %v22273_v48 = vld [vmem:[#allocation74_spill] sm:$0xff] }
 0x8d0   : > { %v5762_v30 = vcombine.high %v22268_v25, %v22267_v58  ;;  %v9565_v11 = vcombine.low %v18432_v50, %v18463_v3  ;;  %v18559_v54 = vpop.permute.xlu0 %9481  ;;  %v5746_v40 = vcombine.high %v22271_v53, %v22270_v42  ;;  %v6016_v62 = vrot.slane %v6002_v43, %v21199_v61  ;;  %v22274_v25 = vld [vmem:[#allocation93_spill] sm:$0xff]  ;;  %v22277_v50 = vld [vmem:[#allocation159_spill] sm:$0xff]  ;;  %v22279_v43 = vld [vmem:[#allocation122_spill] sm:$0xff] }
 0x8d1   : > { %22269 = vst [vmem:[#allocation115_spill] sm:$0xff] %v18559_v54  ;;  %v9597_v29 = vcombine.low %v18518_v45, %v18559_v54  ;;  %v18566_v57 = vpop.permute.xlu1 %10233  ;;  %v22275_v58 = vcombine.low %v22273_v48, %v22274_v25  ;;  %v6032_v31 = vrot.slane %v6018_v4, %v21199_v61  ;;  %v6082_v3 = vcombine.high %v22277_v50, %v22276_v24  ;;  %v22278_v42 = vld [vmem:[#allocation49_spill] sm:$0xff]  ;;  %v22280_v53 = vld [vmem:[#allocation148_spill] sm:$0xff]  ;;  %v22284_v50 = vld [vmem:[#allocation131_spill] sm:$0xff] }
 0x8d2   : > { %22272 = vst [vmem:[#allocation118_spill] sm:$0xff] %v18566_v57  ;;  %v9549_v14 = vcombine.low %v18243_v37, %v18287_v39  ;;  %12118 = vrot.lane.b32.xlu0 %v22278_v42, %s12729_s25  ;;  %v22281_v17 = vcombine.low %v22279_v43, %v22280_v53  ;;  %v6000_v54 = vrot.slane %v5986_v15, %v21199_v61  ;;  %v22285_v24 = vld [vmem:[#allocation132_spill] sm:$0xff]  ;;  %v22339_v39 = vld [vmem:[#allocation129_spill] sm:$0xff] }
 0x8d3   : > { %v12167_v2 = vpack.i.bf16 %v22275_v58, %v5335_v21  ;;  %v6050_v21 = vcombine.high %v22282_v7, %v17661_v52  ;;  %v18585_v4 = vrot.slane %v9597_v29, %v21199_v61  ;;  %v22286_v58 = vcombine.low %v22284_v50, %v22285_v24  ;;  %v22291_v29 = vld [vmem:[#allocation158_spill] sm:$0xff] }
 0x8d4   : > { %v12177_v45 = vpack.i.bf16 %v22281_v17, %v5337_v51  ;;  %v6097_v42 = vcombine.low %v6032_v31, %v18551_v33  ;;  %v5776_v63 = vrot.slane %v5762_v30, %v21199_v61  ;;  %v18594_v17 = vrot.slane %v9581_v49, %v21199_v61  ;;  %v18599_v52 = vpop.permute.xlu0 %10239 }
 0x8d5   : > { %22283 = vst [vmem:[#allocation112_spill] sm:$0xff] %v18585_v4  ;;  %12168 = vrot.lane.b32.xlu1 %v12167_v2, %s12732_s28  ;;  %v12187_v60 = vpack.i.bf16 %v22286_v58, %v5339_v28  ;;  %v18597_v51 = vrot.slane %v9565_v11, %v21199_v61  ;;  %22289 = vst [vmem:[#allocation96_spill] sm:$0xff] %v18599_v52  ;;  %v5760_v7 = vrot.slane %v5746_v40, %v21199_v61  ;;  %v18602_v2 = vpop.permute.xlu1 %10241 }
 0x8d6   : > { %22287 = vst [vmem:[#allocation95_spill] sm:$0xff] %v18594_v17  ;;  %v6065_v15 = vcombine.low %v6000_v54, %v6016_v62  ;;  %22290 = vst [vmem:[#allocation102_spill] sm:$0xff] %v18602_v2  ;;  %v22293_v28 = vcombine.high %v22291_v29, %v22292_v12  ;;  %v22294_v30 = vcombine.high %v22273_v48, %v22274_v25  ;;  %12133 = vrot.lane.b32.xlu0 %v12132_v59, %s12732_s28  ;;  %v22300_v59 = vld [vmem:[#allocation163_spill] sm:$0xff]  ;;  %v22301_v48 = vld [vmem:[#allocation160_spill] sm:$0xff] }
 0x8d7   : > { %22288 = vst [vmem:[#allocation18_spill] sm:$0xff] %v18597_v51  ;;  %v6066_v47 = vcombine.high %v6000_v54, %v6016_v62  ;;  %v6096_v11 = vrot.slane %v6082_v3, %v21200_v44  ;;  %v18616_v23 = vrot.slane %v9549_v14, %v21199_v61  ;;  %v9645_v40 = vcombine.low %v18594_v17, %v18585_v4  ;;  %v22314_v17 = vld [vmem:[#allocation177_spill] sm:$0xff] }
 0x8d8   : > { %v18607_v58 = vpack.i.bf16 %v22293_v28, %v5334_v35  ;;  %v18612_v49 = vpack.i.bf16 %v22294_v30, %v5336_v8  ;;  %v6064_v12 = vrot.slane %v6050_v21, %v21200_v44  ;;  %v22296_v35 = vld [vmem:[#allocation103_spill] sm:$0xff]  ;;  %v22297_v28 = vld [vmem:[#allocation110_spill] sm:$0xff]  ;;  %v22298_v8 = vcombine.high %v22279_v43, %v22280_v53 }
 0x8d9   : > { %22295 = vst [vmem:[#allocation24_spill] sm:$0xff] %v18616_v23  ;;  %v7514_v29 = vcombine.high %v22297_v28, %v22296_v35  ;;  %12178 = vrot.lane.b32.xlu1 %v12177_v45, %s12730_s26  ;;  %v22299_v14 = vcombine.high %v22284_v50, %v22285_v24  ;;  %v6105_v62 = vrot.slane %v6097_v42, %v21200_v44  ;;  %v18640_v45 = vpop.permute.xlu0 %10247  ;;  %v22304_v53 = vld [vmem:[#allocation154_spill] sm:$0xff]  ;;  %v22305_v28 = vld [vmem:[#allocation167_spill] sm:$0xff]  ;;  %v18647_v24 = vpop.permute.xlu1 %10249 }
 0x8da   : > { %v18628_v54 = vpack.i.bf16 %v22298_v8, %v5338_v6  ;;  %v5810_v25 = vcombine.high %v22301_v48, %v22300_v59  ;;  %v5825_v21 = vcombine.low %v5760_v7, %v5776_v63  ;;  %v9613_v30 = vcombine.low %v18616_v23, %v18597_v51  ;;  %22302 = vst [vmem:[#allocation246_spill] sm:$0xff] %v18640_v45  ;;  %v22303_v6 = vld [vmem:[#allocation71_spill] sm:$0xff]  ;;  %v22306_v50 = vld [vmem:[#allocation174_spill] sm:$0xff]  ;;  %v22309_v8 = vld [vmem:[#allocation189_spill] sm:$0xff] }
 0x8db   : > { %v18633_v3 = vpack.i.bf16 %v22299_v14, %v5340_v19  ;;  %v6073_v43 = vrot.slane %v6065_v15, %v21200_v44  ;;  %v7546_v35 = vcombine.high %v22304_v53, %v22303_v6  ;;  %v7530_v19 = vcombine.high %v22306_v50, %v22305_v28  ;;  %22307 = vst [vmem:[#allocation37_spill] sm:$0xff] %v18647_v24  ;;  %v22308_v42 = vld [vmem:[#allocation171_spill] sm:$0xff]  ;;  %v22311_v53 = vld [vmem:[#allocation172_spill] sm:$0xff]  ;;  %v22313_v51 = vld [vmem:[#allocation186_spill] sm:$0xff] }
 0x8dc   : > { %v6114_v14 = vcombine.high %v22309_v8, %v22308_v42  ;;  %v18652_v59 = vrot.slane %v6066_v47, %v21200_v44  ;;  %v6098_v48 = vcombine.high %v6032_v31, %v18551_v33  ;;  %v18656_v23 = vrot.slane %v9645_v40, %v21200_v44  ;;  %12143 = vrot.lane.b32.xlu0 %v18500_v16, %s12730_s26  ;;  %v22312_v28 = vld [vmem:[#allocation147_spill] sm:$0xff] }
 0x8dd   : > { %v6115_v15 = vcombine.low %v6064_v12, %v6096_v11  ;;  %v5826_v6 = vcombine.high %v5760_v7, %v5776_v63  ;;  %v7242_v50 = vcombine.high %v22312_v28, %v22311_v53  ;;  %v7562_v4 = vcombine.high %v22314_v17, %v22313_v51  ;;  %12188 = vrot.lane.b32.xlu1 %v12187_v60, %s12731_s27  ;;  %v18674_v16 = vpop.permute.xlu0 %10255  ;;  %v22318_v17 = vld [vmem:[#allocation170_spill] sm:$0xff]  ;;  %v22319_v51 = vld [vmem:[#allocation168_spill] sm:$0xff]  ;;  %v22321_v53 = vld [vmem:[#allocation181_spill] sm:$0xff] }
 0x8de   : > { %22310 = vst [vmem:[#allocation250_spill] sm:$0xff] %v18656_v23  ;;  %v6116_v47 = vcombine.high %v6064_v12, %v6096_v11  ;;  %v18666_v42 = vrot.slane %v5810_v25, %v21200_v44  ;;  %v18669_v31 = vrot.slane %v5825_v21, %v21200_v44  ;;  %v18672_v33 = vrot.slane %v9613_v30, %v21200_v44  ;;  %v18681_v12 = vpop.permute.xlu1 %10257 }
 0x8df   : > { %22316 = vst [vmem:[#allocation124_spill] sm:$0xff] %v18674_v16  ;;  %v6117_v63 = vcombine.low %v6073_v43, %v6105_v62  ;;  %v7528_v7 = vrot.slane %v7514_v29, %v21199_v61  ;;  %v18678_v40 = vrot.slane %v7546_v35, %v21199_v61  ;;  %v7544_v60 = vrot.slane %v7530_v19, %v21199_v61  ;;  %v22322_v29 = vld [vmem:[#allocation180_spill] sm:$0xff] }
 0x8e0   : > { %22315 = vst [vmem:[#allocation123_spill] sm:$0xff] %v18672_v33  ;;  %22317 = vst [vmem:[#allocation106_spill] sm:$0xff] %v18681_v12  ;;  %v22320_v11 = vcombine.high %v22318_v17, %v22319_v51  ;;  %v18687_v21 = vrot.slane %v6098_v48, %v21200_v44  ;;  %12153 = vrot.lane.b32.xlu0 %v18505_v1, %s12731_s27  ;;  %v6118_v30 = vcombine.high %v6073_v43, %v6105_v62  ;;  %v22323_v48 = vld [vmem:[#allocation156_spill] sm:$0xff]  ;;  %v22332_v33 = vld [vmem:[#allocation190_spill] sm:$0xff] }
 0x8e1   : > { %v5842_v28 = vcombine.high %v22322_v29, %v22321_v53  ;;  %v18696_v19 = vrot.slane %v5826_v6, %v21200_v44  ;;  %v18699_v8 = vrot.slane %v7242_v50, %v21199_v61  ;;  %v18706_v43 = vpop.permute.xlu0 %10263  ;;  %v22328_v29 = vld [vmem:[#allocation155_spill] sm:$0xff]  ;;  %v22329_v6 = vld [vmem:[#allocation56_spill] sm:$0xff]  ;;  %v5846_v50 = vcombine.high %v18511_v5, %v18669_v31 }
 0x8e2   : > { %v12197_v25 = vpack.i.bf16 %v22320_v11, %v6114_v14  ;;  %v7576_v14 = vrot.slane %v7562_v4, %v21199_v61  ;;  %v22324_v11 = vld [vmem:[#allocation44_spill] sm:$0xff]  ;;  %22326 = vst [vmem:[#allocation20_spill] sm:$0xff] %v18706_v43  ;;  %v22330_v51 = vcombine.low %v22328_v29, %v22329_v6  ;;  %v5843_v4 = vcombine.low %v18508_v41, %v18666_v42 }
 0x8e3   : > { %v22325_v1 = vcombine.low %v22323_v48, %v22324_v11  ;;  %v22327_v53 = vcombine.high %v22323_v48, %v22324_v11  ;;  %v10649_v37 = vcombine.low %v18674_v16, %v18706_v43  ;;  %v18722_v48 = vpop.permute.xlu1 %11918  ;;  %v22338_v16 = vld [vmem:[#allocation162_spill] sm:$0xff] }
 0x8e4   : > { %12198 = vrot.lane.b32.xlu1 %v12197_v25, %s12734_s30  ;;  %v12227_v17 = vpack.i.bf16 %v22330_v51, %v6117_v63  ;;  %v22331_v25 = vld [vmem:[#allocation94_spill] sm:$0xff]  ;;  %v10617_v63 = vcombine.low %v18599_v52, %v18640_v45  ;;  %12163 = vrot.lane.b32.xlu0 %v18607_v58, %s12734_s30  ;;  %v22333_v51 = vcombine.high %v22328_v29, %v22329_v6 }
 0x8e5   : > { %v12207_v62 = vpack.i.bf16 %v22325_v1, %v6115_v15  ;;  %v12217_v35 = vpack.i.bf16 %v22327_v53, %v6116_v47  ;;  %v7578_v23 = vcombine.high %v22332_v33, %v22331_v25  ;;  %v7593_v15 = vcombine.low %v7528_v7, %v7544_v60  ;;  %v22334_v53 = vld [vmem:[#allocation184_spill] sm:$0xff]  ;;  %v22337_v25 = vld [vmem:[#allocation178_spill] sm:$0xff] }
 0x8e6   : > { %v7594_v1 = vcombine.high %v7528_v7, %v7544_v60  ;;  %v10633_v47 = vcombine.low %v18471_v22, %v18525_v13  ;;  %v12237_v33 = vpack.i.bf16 %v22333_v51, %v6118_v30  ;;  %v22335_v7 = vld [vmem:[#allocation182_spill] sm:$0xff]  ;;  %v7274_v43 = vcombine.high %v22338_v16, %v22337_v25  ;;  %v22340_v22 = vld [vmem:[#allocation48_spill] sm:$0xff]  ;;  %v22344_v16 = vld [vmem:[#allocation169_spill] sm:$0xff] }
 0x8e7   : > { %v22336_v60 = vcombine.high %v22334_v53, %v22335_v7  ;;  %v7610_v13 = vcombine.high %v22340_v22, %v22339_v39  ;;  %v7625_v52 = vcombine.low %v18678_v40, %v7576_v14  ;;  %v5847_v58 = vcombine.low %v18521_v38, %v18696_v19  ;;  %v22343_v6 = vld [vmem:[#allocation42_spill] sm:$0xff]  ;;  %v22346_v7 = vld [vmem:[#allocation157_spill] sm:$0xff]  ;;  %v22347_v53 = vld [vmem:[#allocation164_spill] sm:$0xff] }
 0x8e8   : > { %12208 = vrot.lane.b32.xlu1 %v12207_v62, %s12732_s28  ;;  %v10601_v30 = vcombine.low %v18402_v20, %v18436_v36  ;;  %v18749_v29 = vrot.slane %v10649_v37, %v21199_v61  ;;  %v22345_v51 = vcombine.high %v22343_v6, %v22344_v16  ;;  %v5844_v39 = vcombine.high %v18508_v41, %v18666_v42  ;;  %v18767_v37 = vpop.permute.xlu1 %11928  ;;  %v22350_v36 = vld [vmem:[#allocation200_spill] sm:$0xff] }
 0x8e9   : > { %v18736_v11 = vpack.i.bf16 %v22336_v60, %v5842_v28  ;;  %v18751_v28 = vpop.permute.xlu0 %10237  ;;  %v18761_v22 = vrot.slane %v7578_v23, %v21200_v44  ;;  %v7601_v62 = vrot.slane %v7593_v15, %v21200_v44  ;;  %v18765_v25 = vrot.slane %v7594_v1, %v21200_v44  ;;  %12173 = vrot.lane.b32.xlu0 %v18612_v49, %s12733_s29 }
 0x8ea   : > { %22341 = vst [vmem:[#allocation234_spill] sm:$0xff] %v18749_v29  ;;  %22342 = vst [vmem:[#allocation260_spill] sm:$0xff] %v18751_v28  ;;  %v18756_v60 = vpack.i.bf16 %v22345_v51, %v5846_v50  ;;  %v22348_v45 = vcombine.low %v22346_v7, %v22347_v53  ;;  %v7626_v50 = vcombine.high %v18678_v40, %v7576_v14  ;;  %v22349_v51 = vld [vmem:[#allocation8_spill] sm:$0xff]  ;;  %v22353_v40 = vld [vmem:[#allocation195_spill] sm:$0xff] }
 0x8eb   : > { %v7290_v41 = vcombine.high %v22350_v36, %v22349_v51  ;;  %v18778_v23 = vrot.slane %v10633_v47, %v21199_v61  ;;  %v18781_v42 = vrot.slane %v10617_v63, %v21199_v61  ;;  %v18786_v15 = vrot.slane %v7274_v43, %v21199_v61  ;;  %v22354_v14 = vld [vmem:[#allocation128_spill] sm:$0xff]  ;;  %v22358_v63 = vld [vmem:[#allocation67_spill] sm:$0xff] }
 0x8ec   : > { %v18772_v20 = vpack.i.bf16 %v22348_v45, %v5843_v4  ;;  %v7624_v45 = vrot.slane %v7610_v13, %v21200_v44  ;;  %v7633_v4 = vrot.slane %v7625_v52, %v21200_v44  ;;  %12218 = vrot.lane.b32.xlu1 %v12217_v35, %s12733_s29  ;;  %v5848_v36 = vcombine.high %v18521_v38, %v18696_v19  ;;  %v22357_v52 = vld [vmem:[#allocation23_spill] sm:$0xff]  ;;  %v18806_v51 = vpop.permute.xlu1 %11938  ;;  %v22359_v38 = vld [vmem:[#allocation165_spill] sm:$0xff]  ;;  %v22360_v19 = vld [vmem:[#allocation166_spill] sm:$0xff] }
 0x8ed   : > { %22351 = vst [vmem:[#allocation82_spill] sm:$0xff] %v18778_v23  ;;  %22352 = vst [vmem:[#allocation253_spill] sm:$0xff] %v18781_v42  ;;  %v7258_v1 = vcombine.high %v22354_v14, %v22353_v40  ;;  %v18796_v47 = vrot.slane %v10601_v30, %v21199_v61  ;;  %v10697_v49 = vcombine.low %v18778_v23, %v18749_v29  ;;  %v18800_v43 = vpop.permute.xlu0 %10245  ;;  %12183 = vrot.lane.b32.xlu0 %v18628_v54, %s12728_s24 }
 0x8ee   : > { %22356 = vst [vmem:[#allocation252_spill] sm:$0xff] %v18800_v43  ;;  %v5845_v13 = vcombine.low %v18511_v5, %v18669_v31  ;;  %v8294_v35 = vcombine.high %v22358_v63, %v22357_v52  ;;  %v22361_v46 = vcombine.low %v22359_v38, %v22360_v19  ;;  %v6119_v30 = vcombine.low %v18652_v59, %v18687_v21 }
 0x8ef   : > { %22355 = vst [vmem:[#allocation92_spill] sm:$0xff] %v18796_v47  ;;  %v6120_v14 = vcombine.high %v18652_v59, %v18687_v21  ;;  %v18818_v23 = vrot.slane %v7626_v50, %v21200_v44  ;;  %v7304_v5 = vrot.slane %v7290_v41, %v21199_v61  ;;  %v10665_v31 = vcombine.low %v18796_v47, %v18781_v42  ;;  %v22363_v59 = vld [vmem:[#allocation197_spill] sm:$0xff]  ;;  %v22364_v21 = vld [vmem:[#allocation191_spill] sm:$0xff] }
 0x8f0   : > { %v18811_v40 = vpack.i.bf16 %v22361_v46, %v5847_v58  ;;  %v22362_v46 = vcombine.high %v22346_v7, %v22347_v53  ;;  %12228 = vrot.lane.b32.xlu1 %v12227_v17, %s12730_s26  ;;  %v7645_v52 = vcombine.low %v7601_v62, %v7633_v4  ;;  %v7642_v50 = vcombine.high %v22364_v21, %v22363_v59 }
 0x8f1   : > { %v7646_v63 = vcombine.high %v7601_v62, %v7633_v4  ;;  %v7643_v41 = vcombine.low %v18761_v22, %v7624_v45  ;;  %v7272_v29 = vrot.slane %v7258_v1, %v21199_v61  ;;  %v18836_v47 = vrot.slane %v10697_v49, %v21200_v44  ;;  %v18838_v54 = vpop.permute.xlu0 %10253  ;;  %v18853_v4 = vpop.permute.xlu1 %11948  ;;  %v22369_v1 = vld [vmem:[#allocation58_spill] sm:$0xff]  ;;  %v22370_v49 = vld [vmem:[#allocation39_spill] sm:$0xff]  ;;  %12193 = vrot.lane.b32.xlu0 %v18633_v3, %s12729_s25 }
 0x8f2   : > { %v18828_v58 = vpack.i.bf16 %v22362_v46, %v5844_v39  ;;  %22366 = vst [vmem:[#allocation235_spill] sm:$0xff] %v18838_v54  ;;  %v22367_v53 = vcombine.high %v22359_v38, %v22360_v19  ;;  %v22368_v17 = vcombine.low %v22343_v6, %v22344_v16  ;;  %v18851_v62 = vrot.slane %v8294_v35, %v21199_v61  ;;  %v22373_v6 = vld [vmem:[#allocation213_spill] sm:$0xff]  ;;  %v22374_v16 = vld [vmem:[#allocation211_spill] sm:$0xff] }
 0x8f3   : > { %22365 = vst [vmem:[#allocation257_spill] sm:$0xff] %v18836_v47  ;;  %v22371_v46 = vcombine.low %v22369_v1, %v22370_v49  ;;  %v22372_v38 = vcombine.high %v22369_v1, %v22370_v49  ;;  %v7644_v19 = vcombine.high %v18761_v22, %v7624_v45  ;;  %v7353_v35 = vcombine.low %v18786_v15, %v7304_v5  ;;  %v22379_v45 = vld [vmem:[#allocation201_spill] sm:$0xff]  ;;  %v22380_v49 = vld [vmem:[#allocation199_spill] sm:$0xff] }
 0x8f4   : > { %v18843_v7 = vpack.i.bf16 %v22367_v53, %v5848_v36  ;;  %v18848_v39 = vpack.i.bf16 %v22368_v17, %v5845_v13  ;;  %v7338_v13 = vcombine.high %v22374_v16, %v22373_v6  ;;  %v18870_v53 = vrot.slane %v10665_v31, %v21200_v44  ;;  %12238 = vrot.lane.b32.xlu1 %v12237_v33, %s12728_s24  ;;  %v22377_v17 = vld [vmem:[#allocation173_spill] sm:$0xff]  ;;  %v22383_v3 = vld [vmem:[#allocation179_spill] sm:$0xff]  ;;  %v22386_v33 = vld [vmem:[#allocation80_spill] sm:$0xff] }
 0x8f5   : > { %v18858_v59 = vpack.i.bf16 %v22371_v46, %v6119_v30  ;;  %v18863_v36 = vpack.i.bf16 %v22372_v38, %v6120_v14  ;;  %v7647_v30 = vcombine.low %v18765_v25, %v18818_v23  ;;  %v22376_v14 = vld [vmem:[#allocation248_spill] sm:$0xff]  ;;  %v22381_v46 = vcombine.high %v22379_v45, %v22380_v49  ;;  %v22384_v16 = vld [vmem:[#allocation183_spill] sm:$0xff]  ;;  %v18901_v49 = vpop.permute.xlu0 %10261  ;;  %12203 = vrot.lane.b32.xlu0 %v18736_v11, %s12734_s30 }
 0x8f6   : > { %22375 = vst [vmem:[#allocation32_spill] sm:$0xff] %v18870_v53  ;;  %v22378_v1 = vcombine.low %v22376_v14, %v22377_v17  ;;  %v22382_v31 = vcombine.high %v22376_v14, %v22377_v17  ;;  %v22385_v21 = vcombine.low %v22383_v3, %v22384_v16  ;;  %v7306_v9 = vcombine.high %v22387_v55, %v22386_v33  ;;  %v22391_v33 = vld [vmem:[#allocation216_spill] sm:$0xff] }
 0x8f7   : > { %v18885_v38 = vpack.i.bf16 %v22381_v46, %v7642_v50  ;;  %22388 = vst [vmem:[#allocation87_spill] sm:$0xff] %v18901_v49  ;;  %v10345_v14 = vcombine.low %v18751_v28, %v18800_v43  ;;  %v22389_v55 = vcombine.high %v22383_v3, %v22384_v16  ;;  %v7352_v17 = vrot.slane %v7338_v13, %v21200_v44  ;;  %v22392_v45 = vld [vmem:[#allocation196_spill] sm:$0xff]  ;;  %v22393_v28 = vld [vmem:[#allocation203_spill] sm:$0xff] }
 0x8f8   : > { %v18880_v22 = vpack.i.bf16 %v22378_v1, %v7645_v52  ;;  %v18890_v6 = vpack.i.bf16 %v22382_v31, %v7646_v63  ;;  %v18895_v42 = vpack.i.bf16 %v22385_v21, %v7643_v41  ;;  %v7321_v52 = vcombine.low %v18699_v8, %v7272_v29  ;;  %v18911_v41 = vpop.permute.xlu1 %11958  ;;  %v22390_v31 = vld [vmem:[#allocation212_spill] sm:$0xff]  ;;  %12243 = vrot.lane.b32.xlu1 %v18756_v60, %s12728_s24 }
 0x8f9   : > { %v7354_v1 = vcombine.high %v18786_v15, %v7304_v5  ;;  %v10361_v63 = vcombine.low %v18647_v24, %v18681_v12  ;;  %v10377_v21 = vcombine.low %v18838_v54, %v18901_v49  ;;  %v18916_v15 = vpack.i.bf16 %v22389_v55, %v7644_v19  ;;  %v18941_v16 = vpop.permute.xlu0 %11923  ;;  %12213 = vrot.lane.b32.xlu0 %v18772_v20, %s12732_s28  ;;  %v22412_v12 = vld [vmem:[#allocation187_spill] sm:$0xff] }
 0x8fa   : > { %v7322_v5 = vcombine.high %v18699_v8, %v7272_v29  ;;  %v7361_v46 = vrot.slane %v7353_v35, %v21200_v44  ;;  %v8310_v50 = vcombine.high %v22391_v33, %v22390_v31  ;;  %v8326_v43 = vcombine.high %v22393_v28, %v22392_v45  ;;  %v22394_v35 = vld [vmem:[#allocation217_spill] sm:$0xff] }
 0x8fb   : > { %v10329_v3 = vcombine.low %v18566_v57, %v18602_v2  ;;  %v18930_v19 = vrot.slane %v10377_v21, %v21199_v61  ;;  %v7648_v8 = vcombine.high %v18765_v25, %v18818_v23  ;;  %v7320_v29 = vrot.slane %v7306_v9, %v21200_v44  ;;  %v22395_v28 = vld [vmem:[#allocation5_spill] sm:$0xff]  ;;  %v22398_v9 = vld [vmem:[#allocation218_spill] sm:$0xff] }
 0x8fc   : > { %v7329_v13 = vrot.slane %v7321_v52, %v21200_v44  ;;  %v7368_v11 = vrot.slane %v7354_v1, %v21200_v44  ;;  %v8342_v45 = vcombine.high %v22395_v28, %v22394_v35  ;;  %v8022_v21 = vcombine.high %v17921_v56, %v17959_v10  ;;  %v18951_v25 = vpop.permute.xlu1 %11968  ;;  %v22399_v23 = vld [vmem:[#allocation21_spill] sm:$0xff]  ;;  %12253 = vrot.lane.b32.xlu1 %v18811_v40, %s12731_s27  ;;  %v22402_v35 = vld [vmem:[#allocation116_spill] sm:$0xff] }
 0x8fd   : > { %v18946_v55 = vrot.slane %v10361_v63, %v21199_v61  ;;  %v18949_v60 = vrot.slane %v10345_v14, %v21199_v61  ;;  %v7370_v52 = vcombine.high %v22399_v23, %v22398_v9  ;;  %v7336_v1 = vrot.slane %v7322_v5, %v21200_v44  ;;  %v22401_v5 = vld [vmem:[#allocation176_spill] sm:$0xff]  ;;  %v18977_v9 = vpop.permute.xlu0 %11933  ;;  %12223 = vrot.lane.b32.xlu0 %v18828_v58, %s12733_s29  ;;  %v22416_v58 = vld [vmem:[#allocation254_spill] sm:$0xff] }
 0x8fe   : > { %v8324_v31 = vrot.slane %v8310_v50, %v21199_v61  ;;  %v7371_v33 = vcombine.low %v7320_v29, %v7352_v17  ;;  %v7374_v10 = vcombine.high %v7329_v13, %v7361_v46  ;;  %v18960_v56 = vrot.slane %v8326_v43, %v21199_v61 }
 0x8ff   : > { %22396 = vst [vmem:[#allocation54_spill] sm:$0xff] %v18946_v55  ;;  %22397 = vst [vmem:[#allocation85_spill] sm:$0xff] %v18949_v60  ;;  %v18963_v63 = vrot.slane %v10329_v3, %v21199_v61  ;;  %v10425_v14 = vcombine.low %v18946_v55, %v18930_v19  ;;  %v22403_v50 = vcombine.low %v22401_v5, %v22402_v35 }
 0x900   : > { %v18975_v20 = vrot.slane %v8342_v45, %v21199_v61  ;;  %v7372_v43 = vcombine.high %v7320_v29, %v7352_v17  ;;  %v7375_v23 = vcombine.low %v7336_v1, %v7368_v11  ;;  %v22404_v3 = vcombine.high %v22401_v5, %v22402_v35  ;;  %v22406_v45 = vld [vmem:[#allocation89_spill] sm:$0xff]  ;;  %12263 = vrot.lane.b32.xlu1 %v18843_v7, %s12729_s25 }
 0x901   : > { %22400 = vst [vmem:[#allocation259_spill] sm:$0xff] %v18963_v63  ;;  %v18972_v28 = vpack.i.bf16 %v22403_v50, %v7647_v30  ;;  %v18985_v2 = vrot.slane %v8022_v21, %v21199_v61  ;;  %v10393_v40 = vcombine.low %v18963_v63, %v18949_v60  ;;  %v18989_v30 = vpop.permute.xlu1 %11978  ;;  %v22405_v50 = vld [vmem:[#allocation214_spill] sm:$0xff]  ;;  %v7373_v24 = vcombine.low %v7329_v13, %v7361_v46  ;;  %v22409_v21 = vld [vmem:[#allocation193_spill] sm:$0xff] }
 0x902   : > { %v18982_v57 = vpack.i.bf16 %v22404_v3, %v7648_v8  ;;  %v22407_v54 = vcombine.high %v22405_v50, %v22406_v45  ;;  %v8358_v17 = vcombine.high %v18130_v27, %v18115_v34  ;;  %v8373_v29 = vcombine.low %v18851_v62, %v8324_v31  ;;  %v22408_v8 = vld [vmem:[#allocation185_spill] sm:$0xff]  ;;  %v22411_v3 = vld [vmem:[#allocation194_spill] sm:$0xff]  ;;  %12233 = vrot.lane.b32.xlu0 %v18848_v39, %s12730_s26 }
 0x903   : > { %v22410_v5 = vcombine.low %v22408_v8, %v22409_v21  ;;  %v22413_v53 = vcombine.high %v22411_v3, %v22412_v12  ;;  %v22414_v46 = vld [vmem:[#allocation13_spill] sm:$0xff]  ;;  %v19011_v34 = vrot.slane %v10425_v14, %v21200_v44  ;;  %v7376_v27 = vcombine.high %v7336_v1, %v7368_v11 }
 0x904   : > { %v12272_v49 = vpack.i.bf16 %v22407_v54, %v7370_v52  ;;  %v8374_v54 = vcombine.high %v18851_v62, %v8324_v31  ;;  %v8054_v13 = vcombine.high %v22414_v46, %v18040_v32  ;;  %v22417_v52 = vld [vmem:[#allocation219_spill] sm:$0xff]  ;;  %v22418_v62 = vcombine.high %v22408_v8, %v22409_v21 }
 0x905   : > { %v12282_v35 = vpack.i.bf16 %v22410_v5, %v7371_v33  ;;  %v19005_v47 = vpack.i.bf16 %v22413_v53, %v7374_v10  ;;  %22415 = vst [vmem:[#allocation258_spill] sm:$0xff] %v19011_v34  ;;  %v8390_v33 = vcombine.high %v22417_v52, %v22416_v58  ;;  %v8405_v5 = vcombine.low %v18960_v56, %v18975_v20  ;;  %v19019_v53 = vpop.permute.xlu0 %11943  ;;  %v22419_v32 = vld [vmem:[#allocation27_spill] sm:$0xff]  ;;  %v22420_v10 = vld [vmem:[#allocation205_spill] sm:$0xff]  ;;  %v19036_v58 = vpop.permute.xlu1 %11993 }
 0x906   : > { %v19024_v31 = vpack.i.bf16 %v22418_v62, %v7372_v43  ;;  %v22421_v14 = vcombine.low %v22419_v32, %v22420_v10  ;;  %v11921_v7 = vunpack.i.h.bf16 %v18722_v48  ;;  %v11920_v11 = vunpack.i.l.bf16 %v18722_v48  ;;  %12273 = vrot.lane.b32.xlu1 %v12272_v49, %s12734_s30  ;;  %v22426_v62 = vld [vmem:[#allocation14_spill] sm:$0xff]  ;;  %12248 = vrot.lane.b32.xlu0 %v18858_v59, %s12731_s27  ;;  %v22439_v59 = vld [vmem:[#allocation35_spill] sm:$0xff] }
 0x907   : > { %v19034_v1 = vrot.slane %v10393_v40, %v21200_v44  ;;  %v22423_v52 = vcombine.low %v22411_v3, %v22412_v12  ;;  %v19044_v43 = vrot.slane %v8358_v17, %v21200_v44  ;;  %v11926_v21 = vunpack.i.h.bf16 %v18941_v16 }
 0x908   : > { %v19029_v46 = vpack.i.bf16 %v22421_v14, %v7375_v23  ;;  %v19047_v23 = vrot.slane %v8373_v29, %v21200_v44  ;;  %v11925_v48 = vunpack.i.l.bf16 %v18941_v16  ;;  %v19054_v40 = vrot.slane %v8374_v54, %v21200_v44  ;;  %v22429_v14 = vld [vmem:[#allocation77_spill] sm:$0xff] }
 0x909   : > { %22422 = vst [vmem:[#allocation230_spill] sm:$0xff] %v19034_v1  ;;  %v19041_v8 = vpack.i.bf16 %v22423_v52, %v7373_v24  ;;  %v19057_v12 = vrot.slane %v8054_v13, %v21199_v61  ;;  %v22424_v24 = vcombine.high %v22419_v32, %v22420_v10  ;;  %v19068_v16 = vrot.slane %v8390_v33, %v21200_v44  ;;  %v11954_v54 = vpop.permute.xlu0 %11953  ;;  %v22425_v13 = vld [vmem:[#allocation26_spill] sm:$0xff]  ;;  %v22428_v10 = vld [vmem:[#allocation108_spill] sm:$0xff]  ;;  %v19085_v39 = vpop.permute.xlu1 %12003 }
 0x90a   : > { %v19073_v3 = vrot.slane %v8405_v5, %v21200_v44  ;;  %v22430_v52 = vcombine.low %v22428_v10, %v22429_v14  ;;  %v11955_v29 = vunpack.i.l.bf16 %v11954_v54  ;;  %v11936_v49 = vunpack.i.h.bf16 %v18977_v9  ;;  %v22434_v10 = vld [vmem:[#allocation135_spill] sm:$0xff]  ;;  %12283 = vrot.lane.b32.xlu1 %v12282_v35, %s12732_s28  ;;  %12258 = vrot.lane.b32.xlu0 %v18863_v36, %s12729_s25 }
 0x90b   : > { %v19063_v17 = vpack.i.bf16 %v22424_v24, %v7376_v27  ;;  %v22427_v27 = vcombine.low %v22425_v13, %v22426_v62  ;;  %v11956_v24 = vunpack.i.h.bf16 %v11954_v54  ;;  %v11935_v50 = vunpack.i.l.bf16 %v18977_v9  ;;  %v22432_v62 = vld [vmem:[#allocation4_spill] sm:$0xff] }
 0x90c   : > { %v4777_v33 = vsel %vm833_vm5, %v22430_v52, %v11920_v11  ;;  %v11930_v13 = vunpack.i.l.bf16 %v18767_v37  ;;  %v22431_v11 = vld [vmem:[#allocation15_spill] sm:$0xff]  ;;  %v22437_v9 = vld [vmem:[#allocation256_spill] sm:$0xff]  ;;  %v11960_v60 = vunpack.i.l.bf16 %v18911_v41 }
 0x90d   : > { %v4778_v32 = vsel %vm833_vm5, %v22427_v27, %v11921_v7  ;;  %v4779_v5 = vsel %vm835_vm6, %v4777_v33, %v11925_v48  ;;  %v11931_v7 = vunpack.i.h.bf16 %v18767_v37  ;;  %v22433_v54 = vcombine.low %v22431_v11, %v22432_v62  ;;  %v22435_v48 = vld [vmem:[#allocation136_spill] sm:$0xff]  ;;  %v22440_v33 = vld [vmem:[#allocation7_spill] sm:$0xff]  ;;  %v11964_v11 = vpop.permute.xlu0 %11963 }
 0x90e   : > { %v4780_v45 = vsel %vm835_vm6, %v4778_v32, %v11926_v21  ;;  %v22436_v14 = vcombine.low %v22434_v10, %v22435_v48  ;;  %v22438_v32 = vld [vmem:[#allocation255_spill] sm:$0xff]  ;;  %v8070_v63 = vcombine.high %v22440_v33, %v22439_v59  ;;  %v11961_v37 = vunpack.i.h.bf16 %v18911_v41  ;;  %12298 = vrot.lane.b32.xlu1 %v18880_v22, %s12730_s26  ;;  %12268 = vrot.lane.b32.xlu0 %v18885_v38, %s12734_s30 }
 0x90f   : > { %v4792_v27 = vsel %vm833_vm5, %v22433_v54, %v11956_v24  ;;  %v8038_v52 = vcombine.high %v22438_v32, %v22437_v9  ;;  %v4781_v24 = vsel %vm837_vm7, %v4779_v5, %v11930_v13  ;;  %v4782_v62 = vsel %vm837_vm7, %v4780_v45, %v11931_v7 }
 0x910   : > { %v4791_v21 = vsel %vm833_vm5, %v22436_v14, %v11955_v29  ;;  %v11966_v54 = vunpack.i.h.bf16 %v11964_v11  ;;  %v11965_v10 = vunpack.i.l.bf16 %v11964_v11  ;;  %v19112_v29 = vpop.permute.xlu1 %12018  ;;  %v4783_v35 = vsel %vm839_vm8, %v4781_v24, %v11935_v50 }
 0x911   : > { %v4784_v48 = vsel %vm839_vm8, %v4782_v62, %v11936_v49  ;;  %v4793_v14 = vsel %vm835_vm6, %v4791_v21, %v11960_v60  ;;  %v4794_v9 = vsel %vm835_vm6, %v4792_v27, %v11961_v37  ;;  %v11946_v41 = vunpack.i.h.bf16 %v19019_v53  ;;  %v11974_v36 = vpop.permute.xlu0 %11973 }
 0x912   : > { %v11945_v5 = vunpack.i.l.bf16 %v19019_v53  ;;  %v4795_v45 = vsel %vm837_vm7, %v4793_v14, %v11965_v10  ;;  %v4796_v7 = vsel %vm837_vm7, %v4794_v9, %v11966_v54  ;;  %v11941_v50 = vunpack.i.h.bf16 %v18806_v51  ;;  %12308 = vrot.lane.b32.xlu1 %v18890_v6, %s12728_s24  ;;  %12278 = vrot.lane.b32.xlu0 %v18895_v42, %s12732_s28 }
 0x913   : > { %v11940_v60 = vunpack.i.l.bf16 %v18806_v51  ;;  %v11971_v49 = vunpack.i.h.bf16 %v18951_v25  ;;  %v11970_v13 = vunpack.i.l.bf16 %v18951_v25  ;;  %v19131_v27 = vrot.slane %v8038_v52, %v21199_v61 }
 0x914   : > { %v8084_v53 = vrot.slane %v8070_v63, %v21199_v61  ;;  %v11976_v21 = vunpack.i.h.bf16 %v11974_v36  ;;  %v11975_v32 = vunpack.i.l.bf16 %v11974_v36  ;;  %v19134_v59 = vpop.permute.xlu1 %12028  ;;  %v4786_v25 = vsel %vm841_vm9, %v4784_v48, %v11941_v50  ;;  %v22442_v48 = vld [vmem:[#allocation70_spill] sm:$0xff] }
 0x915   : > { %v4797_v22 = vsel %vm839_vm8, %v4795_v45, %v11970_v13  ;;  %v4798_v51 = vsel %vm839_vm8, %v4796_v7, %v11971_v49  ;;  %v4785_v33 = vsel %vm841_vm9, %v4783_v35, %v11940_v60  ;;  %v4788_v11 = vsel %vm843_vm10, %v4786_v25, %v11946_v41  ;;  %v11984_v10 = vpop.permute.xlu0 %11983  ;;  %v22441_v35 = vld [vmem:[#allocation47_spill] sm:$0xff]  ;;  %v22444_v60 = vld [vmem:[#allocation237_spill] sm:$0xff] }
 0x916   : > { %v4799_v63 = vsel %vm841_vm9, %v4797_v22, %v11975_v32  ;;  %v4800_v52 = vsel %vm841_vm9, %v4798_v51, %v11976_v21  ;;  %v4787_v37 = vsel %vm843_vm10, %v4785_v33, %v11945_v5  ;;  %v11951_v38 = vunpack.i.h.bf16 %v18853_v4  ;;  %v22443_v5 = vld [vmem:[#allocation34_spill] sm:$0xff]  ;;  %v22445_v49 = vld [vmem:[#allocation75_spill] sm:$0xff]  ;;  %12318 = vrot.lane.b32.xlu1 %v19005_v47, %s12728_s24  ;;  %12288 = vrot.lane.b32.xlu0 %v18916_v15, %s12733_s29 }
 0x917   : > { %v11950_v24 = vunpack.i.l.bf16 %v18853_v4  ;;  %v11981_v62 = vunpack.i.h.bf16 %v18989_v30  ;;  %v11980_v54 = vunpack.i.l.bf16 %v18989_v30  ;;  %v8118_v6 = vcombine.high %v22442_v48, %v22441_v35 }
 0x918   : > { %v11986_v14 = vunpack.i.h.bf16 %v11984_v10  ;;  %v11985_v9 = vunpack.i.l.bf16 %v11984_v10  ;;  %v19154_v45 = vpop.permute.xlu1 %12033  ;;  %v8150_v7 = vcombine.high %v22443_v5, %v18335_v18  ;;  %v4790_v50 = vsel %vm845_vm11, %v4788_v11, %v11951_v38 }
 0x919   : > { %v4801_v4 = vsel %vm843_vm10, %v4799_v63, %v11980_v54  ;;  %v4802_v41 = vsel %vm843_vm10, %v4800_v52, %v11981_v62  ;;  %v4789_v30 = vsel %vm845_vm11, %v4787_v37, %v11950_v24  ;;  %v8086_v13 = vcombine.high %v22445_v49, %v22444_v60  ;;  %v19176_v33 = vpop.permute.xlu0 %11988  ;;  %v22447_v63 = vld [vmem:[#allocation17_spill] sm:$0xff]  ;;  %v22449_v24 = vld [vmem:[#allocation231_spill] sm:$0xff]  ;;  %v22450_v62 = vld [vmem:[#allocation38_spill] sm:$0xff] }
 0x91a   : > { %v8133_v36 = vcombine.low %v19057_v12, %v8084_v53  ;;  %v4803_v21 = vsel %vm845_vm11, %v4801_v4, %v11985_v9  ;;  %v4804_v42 = vsel %vm845_vm11, %v4802_v41, %v11986_v14  ;;  %v22446_v32 = vcombine.high %v18960_v56, %v18975_v20  ;;  %v22448_v52 = vld [vmem:[#allocation261_spill] sm:$0xff]  ;;  %12293 = vrot.lane.b32.xlu0 %v19024_v31, %s12733_s29 }
 0x91b   : > { %v8134_v51 = vcombine.high %v19057_v12, %v8084_v53  ;;  %v11569_v25 = vpack.c.bf16 %v4804_v42, %v4803_v21  ;;  %v8422_v37 = vcombine.high %v22448_v52, %v22447_v63  ;;  %v8101_v47 = vcombine.low %v18985_v2, %v19131_v27  ;;  %v22460_v21 = vld [vmem:[#allocation210_spill] sm:$0xff] }
 0x91c   : > { %v8420_v22 = vrot.slane %v22446_v32, %v21200_v44  ;;  %v19183_v11 = vrot.slane %v8118_v6, %v21200_v44  ;;  %v19185_v38 = vpop.permute.xlu1 %12043  ;;  %v22451_v56 = vcombine.high %v22449_v24, %v22450_v62  ;;  %v11571_v54 = vpack.c.bf16 %v4790_v50, %v4789_v30  ;;  %v22456_v50 = vld [vmem:[#allocation225_spill] sm:$0xff]  ;;  %v22461_v42 = vld [vmem:[#allocation22_spill] sm:$0xff] }
 0x91d   : > { %v8102_v12 = vcombine.high %v18985_v2, %v19131_v27  ;;  %11570 = vmatprep.subr.bf16.mxu0 %v11569_v25  ;;  %v8425_v53 = vcombine.low %v19047_v23, %v19073_v3  ;;  %v8423_v10 = vcombine.low %v19044_v43, %v19068_v16  ;;  %v19199_v35 = vrot.slane %v8086_v13, %v21200_v44  ;;  %v19216_v14 = vpop.permute.xlu0 %11998 }
 0x91e   : > { %v12327_v20 = vpack.i.bf16 %v22451_v56, %v8150_v7  ;;  %v19202_v48 = vrot.slane %v8133_v36, %v21200_v44  ;;  %11572 = vmatpush1.bf16.msra.mxu0 %v11571_v54  ;;  %v8426_v2 = vcombine.high %v19047_v23, %v19073_v3  ;;  %v22452_v15 = vcombine.high %v18078_v26, %v18123_v0  ;;  %v22453_v23 = vld [vmem:[#allocation228_spill] sm:$0xff]  ;;  %v22454_v3 = vld [vmem:[#allocation9_spill] sm:$0xff]  ;;  %v22455_v0 = vld [vmem:[#allocation227_spill] sm:$0xff] }
 0x91f   : > { %v19214_v6 = vrot.slane %v8134_v51, %v21200_v44  ;;  %v8424_v9 = vcombine.high %v19044_v43, %v19068_v16  ;;  %v8427_v7 = vcombine.low %v19054_v40, %v8420_v22  ;;  %v19222_v4 = vrot.slane %v8101_v47, %v21200_v44  ;;  %v22458_v43 = vld [vmem:[#allocation238_spill] sm:$0xff]  ;;  %v22459_v16 = vld [vmem:[#allocation69_spill] sm:$0xff]  ;;  %v22464_v56 = vld [vmem:[#allocation232_spill] sm:$0xff]  ;;  %12303 = vrot.lane.b32.xlu0 %v19041_v8, %s12730_s26 }
 0x920   : > { %12328 = vrot.lane.b32.xlu1 %v12327_v20, %s12734_s30  ;;  %v19211_v27 = vrot.slane %v22452_v15, %v21199_v61  ;;  %v9854_v41 = vcombine.high %v22454_v3, %v22453_v23  ;;  %v19226_v30 = vpop.permute.xlu1 %12053  ;;  %v8151_v26 = vcombine.low %v19199_v35, %v19183_v11  ;;  %v22457_v60 = vcombine.high %v22455_v0, %v22456_v50  ;;  %v22463_v47 = vld [vmem:[#allocation30_spill] sm:$0xff]  ;;  %v22479_v8 = vld [vmem:[#allocation251_spill] sm:$0xff] }
 0x921   : > { %v19234_v13 = vrot.slane %v8102_v12, %v21200_v44  ;;  %v9550_v36 = vcombine.high %v22459_v16, %v22458_v43  ;;  %v22462_v32 = vcombine.low %v22460_v21, %v22461_v42  ;;  %v8428_v25 = vcombine.high %v19054_v40, %v8420_v22  ;;  %v22466_v54 = vld [vmem:[#allocation206_spill] sm:$0xff]  ;;  %v22469_v40 = vld [vmem:[#allocation91_spill] sm:$0xff]  ;;  %v22470_v22 = vld [vmem:[#allocation76_spill] sm:$0xff] }
 0x922   : > { %v12312_v49 = vpack.i.bf16 %v22457_v60, %v8422_v37  ;;  %v9838_v20 = vcombine.high %v22464_v56, %v22463_v47  ;;  %v22465_v37 = vld [vmem:[#allocation25_spill] sm:$0xff]  ;;  %v22468_v31 = vcombine.high %v22460_v21, %v22461_v42  ;;  %v9870_v3 = vcombine.high %v22470_v22, %v22469_v40  ;;  %v12009_v60 = vpop.permute.xlu0 %12008 }
 0x923   : > { %v19243_v51 = vpack.i.bf16 %v22462_v32, %v8425_v53  ;;  %v22467_v12 = vcombine.low %v22465_v37, %v22466_v54  ;;  %v8154_v53 = vcombine.high %v19222_v4, %v19202_v48  ;;  %v22472_v16 = vld [vmem:[#allocation209_spill] sm:$0xff]  ;;  %v22473_v32 = vld [vmem:[#allocation208_spill] sm:$0xff]  ;;  %v19277_v42 = vrot.slane %v9854_v41, %v21199_v61 }
 0x924   : > { %12338 = vrot.lane.b32.xlu1 %v19029_v46, %s12731_s27  ;;  %v19258_v23 = vpack.i.bf16 %v22468_v31, %v8426_v2  ;;  %v22471_v46 = vcombine.high %v22465_v37, %v22466_v54  ;;  %v22474_v21 = vcombine.low %v22472_v16, %v22473_v32  ;;  %v11996_v47 = vunpack.i.h.bf16 %v19036_v58  ;;  %v22475_v37 = vld [vmem:[#allocation6_spill] sm:$0xff]  ;;  %12313 = vrot.lane.b32.xlu0 %v12312_v49, %s12734_s30 }
 0x925   : > { %v19253_v15 = vpack.i.bf16 %v22467_v12, %v8423_v10  ;;  %v8155_v10 = vcombine.low %v19234_v13, %v19214_v6  ;;  %v11995_v56 = vunpack.i.l.bf16 %v19036_v58  ;;  %v19281_v12 = vpop.permute.xlu1 %12063  ;;  %v19287_v40 = vrot.slane %v9550_v36, %v21199_v61 }
 0x926   : > { %v19267_v43 = vpack.i.bf16 %v22471_v46, %v8424_v9  ;;  %v19274_v2 = vpack.i.bf16 %v22474_v21, %v8427_v7  ;;  %v22476_v9 = vld [vmem:[#allocation202_spill] sm:$0xff]  ;;  %v22478_v58 = vcombine.high %v22472_v16, %v22473_v32  ;;  %v19301_v46 = vrot.slane %v9838_v20, %v21199_v61  ;;  %v22480_v21 = vld [vmem:[#allocation12_spill] sm:$0xff]  ;;  %v12014_v20 = vpop.permute.xlu0 %12013 }
 0x927   : > { %v22477_v54 = vcombine.low %v22475_v37, %v22476_v9  ;;  %v12005_v36 = vunpack.i.l.bf16 %v19085_v39  ;;  %v19312_v41 = vrot.slane %v9870_v3, %v21199_v61  ;;  %v11990_v16 = vunpack.i.l.bf16 %v19176_v33  ;;  %v22482_v32 = vld [vmem:[#allocation220_spill] sm:$0xff] }
 0x928   : > { %v19298_v22 = vpack.i.bf16 %v22478_v58, %v8428_v25  ;;  %v11991_v25 = vunpack.i.h.bf16 %v19176_v33  ;;  %v22483_v58 = vld [vmem:[#allocation207_spill] sm:$0xff]  ;;  %v12001_v5 = vunpack.i.h.bf16 %v19216_v14  ;;  %v12000_v33 = vunpack.i.l.bf16 %v19216_v14  ;;  %12323 = vrot.lane.b32.xlu0 %v18972_v28, %s12731_s27 }
 0x929   : > { %v12347_v31 = vpack.i.bf16 %v22477_v54, %v8151_v26  ;;  %v12006_v26 = vunpack.i.h.bf16 %v19085_v39  ;;  %v22481_v54 = vcombine.high %v22479_v8, %v22480_v21  ;;  %v22484_v63 = vcombine.low %v22482_v32, %v22483_v58  ;;  %v22485_v39 = vld [vmem:[#allocation53_spill] sm:$0xff]  ;;  %v19331_v62 = vpop.permute.xlu1 %12073 }
 0x92a   : > { %v12011_v24 = vunpack.i.h.bf16 %v12009_v60  ;;  %v12010_v1 = vunpack.i.l.bf16 %v12009_v60  ;;  %v12036_v14 = vunpack.i.h.bf16 %v19154_v45  ;;  %v22491_v60 = vld [vmem:[#allocation139_spill] sm:$0xff] }
 0x92b   : > { %12348 = vrot.lane.b32.xlu1 %v12347_v31, %s12732_s28  ;;  %v19309_v7 = vpack.i.bf16 %v22481_v54, %v8154_v53  ;;  %v19319_v52 = vpack.i.bf16 %v22484_v63, %v8155_v10  ;;  %v22486_v31 = vld [vmem:[#allocation60_spill] sm:$0xff]  ;;  %v22488_v53 = vld [vmem:[#allocation133_spill] sm:$0xff]  ;;  %v22489_v54 = vld [vmem:[#allocation134_spill] sm:$0xff]  ;;  %v12016_v63 = vunpack.i.h.bf16 %v12014_v20  ;;  %v12015_v10 = vunpack.i.l.bf16 %v12014_v20 }
 0x92c   : > { %v22487_v50 = vcombine.low %v22485_v39, %v22486_v31  ;;  %v22490_v18 = vcombine.low %v22488_v53, %v22489_v54  ;;  %v22492_v31 = vld [vmem:[#allocation140_spill] sm:$0xff]  ;;  %v22494_v53 = vld [vmem:[#allocation137_spill] sm:$0xff]  ;;  %12333 = vrot.lane.b32.xlu0 %v19253_v15, %s12732_s28  ;;  %v22497_v15 = vld [vmem:[#allocation59_spill] sm:$0xff] }
 0x92d   : > { %v22493_v20 = vcombine.low %v22491_v60, %v22492_v31  ;;  %v19352_v55 = vpop.permute.xlu1 %12088 }
 0x92e   : > { %v7086_v0 = vsel %vm833_vm5, %v22487_v50, %v11996_v47  ;;  %v7085_v3 = vsel %vm833_vm5, %v22490_v18, %v11995_v56  ;;  %v12021_v47 = vunpack.i.h.bf16 %v19112_v29  ;;  %v12020_v18 = vunpack.i.l.bf16 %v19112_v29 }
 0x92f   : > { %v7087_v39 = vsel %vm835_vm6, %v7085_v3, %v12005_v36  ;;  %v7088_v50 = vsel %vm835_vm6, %v7086_v0, %v12006_v26  ;;  %12358 = vrot.lane.b32.xlu1 %v19063_v17, %s12729_s25  ;;  %v12035_v56 = vunpack.i.l.bf16 %v19154_v45  ;;  %v7100_v49 = vsel %vm833_vm5, %v22493_v20, %v11991_v25  ;;  %v22495_v36 = vld [vmem:[#allocation138_spill] sm:$0xff]  ;;  %v12024_v26 = vpop.permute.xlu0 %12023 }
 0x930   : > { %v22496_v54 = vcombine.low %v22494_v53, %v22495_v36  ;;  %v7102_v3 = vsel %vm835_vm6, %v7100_v49, %v12001_v5  ;;  %v12026_v17 = vunpack.i.h.bf16 %v12024_v26  ;;  %v12025_v34 = vunpack.i.l.bf16 %v12024_v26  ;;  %12343 = vrot.lane.b32.xlu0 %v18982_v57, %s12729_s25  ;;  %v22543_v36 = vld [vmem:[#allocation150_spill] sm:$0xff] }
 0x931   : > { %v7104_v60 = vsel %vm837_vm7, %v7102_v3, %v12011_v24  ;;  %v7089_v25 = vsel %vm837_vm7, %v7087_v39, %v12015_v10  ;;  %v7090_v31 = vsel %vm837_vm7, %v7088_v50, %v12016_v63  ;;  %v12055_v24 = vunpack.i.l.bf16 %v19226_v30  ;;  %v19372_v50 = vpop.permute.xlu1 %12098  ;;  %v22500_v3 = vld [vmem:[#allocation130_spill] sm:$0xff] }
 0x932   : > { %v7099_v0 = vsel %vm833_vm5, %v22496_v54, %v11990_v16  ;;  %v12046_v16 = vunpack.i.h.bf16 %v19185_v38  ;;  %v7091_v5 = vsel %vm839_vm8, %v7089_v25, %v12025_v34  ;;  %v7092_v20 = vsel %vm839_vm8, %v7090_v31, %v12026_v17  ;;  %v22498_v54 = vld [vmem:[#allocation188_spill] sm:$0xff] }
 0x933   : > { %v7101_v29 = vsel %vm835_vm6, %v7099_v0, %v12000_v33  ;;  %v12045_v33 = vunpack.i.l.bf16 %v19185_v38  ;;  %12368 = vrot.lane.b32.xlu1 %v19243_v51, %s12730_s26  ;;  %v12039_v10 = vpop.permute.xlu0 %12038  ;;  %v7093_v63 = vsel %vm841_vm9, %v7091_v5, %v12035_v56  ;;  %v7094_v28 = vsel %vm841_vm9, %v7092_v20, %v12036_v14  ;;  %v22503_v20 = vld [vmem:[#allocation73_spill] sm:$0xff] }
 0x934   : > { %v7103_v45 = vsel %vm837_vm7, %v7101_v29, %v12010_v1  ;;  %v12056_v1 = vunpack.i.h.bf16 %v19226_v30  ;;  %v7106_v38 = vsel %vm839_vm8, %v7104_v60, %v12021_v47  ;;  %v7096_v49 = vsel %vm843_vm10, %v7094_v28, %v12046_v16  ;;  %v22499_v29 = vld [vmem:[#allocation81_spill] sm:$0xff]  ;;  %v22502_v60 = vld [vmem:[#allocation243_spill] sm:$0xff]  ;;  %12353 = vrot.lane.b32.xlu0 %v19267_v43, %s12733_s29 }
 0x935   : > { %v7105_v39 = vsel %vm839_vm8, %v7103_v45, %v12020_v18  ;;  %v7095_v34 = vsel %vm843_vm10, %v7093_v63, %v12045_v33  ;;  %v12041_v51 = vunpack.i.h.bf16 %v12039_v10  ;;  %v12040_v53 = vunpack.i.l.bf16 %v12039_v10  ;;  %v22501_v45 = vld [vmem:[#allocation115_spill] sm:$0xff]  ;;  %v19400_v33 = vpop.permute.xlu1 %12103  ;;  %v22506_v63 = vld [vmem:[#allocation65_spill] sm:$0xff] }
 0x936   : > { %v19379_v30 = vsel %vm845_vm11, %v7095_v34, %v12055_v24  ;;  %v19382_v14 = vsel %vm845_vm11, %v7096_v49, %v12056_v1  ;;  %v9933_v47 = vcombine.low %v19277_v42, %v19312_v41  ;;  %v12031_v18 = vunpack.i.h.bf16 %v19134_v59  ;;  %v22504_v1 = vld [vmem:[#allocation245_spill] sm:$0xff]  ;;  %v22505_v10 = vld [vmem:[#allocation63_spill] sm:$0xff] }
 0x937   : > { %v12030_v56 = vunpack.i.l.bf16 %v19134_v59  ;;  %12378 = vrot.lane.b32.xlu1 %v19258_v23, %s12728_s24  ;;  %v9886_v0 = vcombine.high %v22498_v54, %v22497_v15  ;;  %v9901_v26 = vcombine.low %v19211_v27, %v19301_v46  ;;  %v9918_v17 = vcombine.high %v22500_v3, %v22499_v29  ;;  %v12049_v31 = vpop.permute.xlu0 %12048 }
 0x938   : > { %v9598_v25 = vcombine.high %v22502_v60, %v22501_v45  ;;  %v12051_v59 = vunpack.i.h.bf16 %v12049_v31  ;;  %v12050_v16 = vunpack.i.l.bf16 %v12049_v31  ;;  %v7108_v5 = vsel %vm841_vm9, %v7106_v38, %v12031_v18 }
 0x939   : > { %v7107_v23 = vsel %vm841_vm9, %v7105_v39, %v12030_v56  ;;  %v9582_v24 = vcombine.high %v22504_v1, %v22503_v20  ;;  %v9566_v28 = vcombine.high %v22506_v63, %v22505_v10  ;;  %v7110_v49 = vsel %vm843_vm10, %v7108_v5, %v12041_v51  ;;  %v22507_v56 = vld [vmem:[#allocation112_spill] sm:$0xff]  ;;  %v19440_v60 = vpop.permute.xlu1 %12113  ;;  %v22520_v10 = vld [vmem:[#allocation250_spill] sm:$0xff]  ;;  %v22521_v63 = vld [vmem:[#allocation123_spill] sm:$0xff] }
 0x93a   : > { %v7109_v34 = vsel %vm843_vm10, %v7107_v23, %v12040_v53  ;;  %v9934_v15 = vcombine.high %v19277_v42, %v19312_v41  ;;  %v9941_v39 = vrot.slane %v9933_v47, %v21200_v44  ;;  %v19421_v18 = vsel %vm845_vm11, %v7110_v49, %v12051_v59  ;;  %v22508_v53 = vld [vmem:[#allocation95_spill] sm:$0xff]  ;;  %v22516_v59 = vld [vmem:[#allocation84_spill] sm:$0xff] }
 0x93b   : > { %12383 = vrot.lane.b32.xlu1 %v19309_v7, %s12728_s24  ;;  %v19418_v38 = vsel %vm845_vm11, %v7109_v34, %v12050_v16  ;;  %v9612_v57 = vrot.slane %v9598_v25, %v21199_v61  ;;  %v9646_v54 = vcombine.high %v22508_v53, %v22507_v56  ;;  %v19426_v51 = vpop.permute.xlu0 %12058  ;;  %v22509_v42 = vcombine.high %v19199_v35, %v19183_v11  ;;  %v22544_v47 = vld [vmem:[#allocation143_spill] sm:$0xff] }
 0x93c   : > { %v22510_v41 = vcombine.high %v22475_v37, %v22476_v9  ;;  %v9902_v29 = vcombine.high %v19211_v27, %v19301_v46  ;;  %v9909_v3 = vrot.slane %v9901_v26, %v21200_v44  ;;  %v9932_v45 = vrot.slane %v9918_v17, %v21200_v44  ;;  %v22511_v37 = vld [vmem:[#allocation18_spill] sm:$0xff]  ;;  %v22512_v9 = vld [vmem:[#allocation24_spill] sm:$0xff] }
 0x93d   : > { %v8153_v25 = vcombine.low %v19222_v4, %v19202_v48  ;;  %v9596_v11 = vrot.slane %v9582_v24, %v21199_v61  ;;  %v9580_v35 = vrot.slane %v9566_v28, %v21199_v61  ;;  %v9614_v31 = vcombine.high %v22512_v9, %v22511_v37  ;;  %v22515_v4 = vld [vmem:[#allocation72_spill] sm:$0xff]  ;;  %v19474_v1 = vpop.permute.xlu1 %12123 }
 0x93e   : > { %v12362_v7 = vpack.i.bf16 %v22510_v41, %v22509_v42  ;;  %v22513_v27 = vcombine.high %v19234_v13, %v19214_v6  ;;  %v22514_v46 = vcombine.high %v22482_v32, %v22483_v58  ;;  %v9900_v17 = vrot.slane %v9886_v0, %v21200_v44  ;;  %v22517_v32 = vld [vmem:[#allocation98_spill] sm:$0xff]  ;;  %v22518_v58 = vld [vmem:[#allocation125_spill] sm:$0xff] }
 0x93f   : > { %v19458_v48 = vrot.slane %v9934_v15, %v21200_v44  ;;  %v10602_v16 = vcombine.high %v22516_v59, %v22515_v4  ;;  %12393 = vrot.lane.b32.xlu1 %v19319_v52, %s12731_s27  ;;  %v9953_v23 = vcombine.low %v9909_v3, %v9941_v39  ;;  %v19465_v43 = vrot.slane %v9646_v54, %v21200_v44  ;;  %v19467_v13 = vpop.permute.xlu0 %12068  ;;  %v22532_v59 = vld [vmem:[#allocation222_spill] sm:$0xff] }
 0x940   : > { %v12402_v26 = vpack.i.bf16 %v22514_v46, %v22513_v27  ;;  %v9661_v6 = vcombine.low %v9596_v11, %v9612_v57  ;;  %v9950_v5 = vcombine.high %v22518_v58, %v22517_v32  ;;  %v9954_v0 = vcombine.high %v9909_v3, %v9941_v39  ;;  %12363 = vrot.lane.b32.xlu0 %v12362_v7, %s12733_s29  ;;  %v22529_v46 = vld [vmem:[#allocation113_spill] sm:$0xff] }
 0x941   : > { %v19472_v20 = vrot.slane %v9902_v29, %v21200_v44  ;;  %v22519_v24 = vcombine.low %v22479_v8, %v22480_v21  ;;  %v9678_v28 = vcombine.high %v22521_v63, %v22520_v10  ;;  %v9951_v34 = vcombine.low %v9900_v17, %v9932_v45  ;;  %v22522_v8 = vld [vmem:[#allocation221_spill] sm:$0xff]  ;;  %v22523_v21 = vld [vmem:[#allocation215_spill] sm:$0xff]  ;;  %v19513_v27 = vpop.permute.xlu1 %12128 }
 0x942   : > { %v19482_v49 = vrot.slane %v9614_v31, %v21200_v44  ;;  %v9629_v15 = vcombine.low %v19287_v40, %v9580_v35  ;;  %v9630_v39 = vcombine.high %v19287_v40, %v9580_v35  ;;  %v9952_v56 = vcombine.high %v9900_v17, %v9932_v45  ;;  %v22525_v45 = vld [vmem:[#allocation198_spill] sm:$0xff] }
 0x943   : > { %v12372_v52 = vpack.i.bf16 %v22519_v24, %v8153_v25  ;;  %v19488_v53 = vrot.slane %v10602_v16, %v21199_v61  ;;  %v9662_v54 = vcombine.high %v9596_v11, %v9612_v57  ;;  %12403 = vrot.lane.b32.xlu1 %v12402_v26, %s12729_s25  ;;  %v22524_v42 = vcombine.low %v22522_v8, %v22523_v21  ;;  %v12079_v40 = vpop.permute.xlu0 %12078  ;;  %v22526_v25 = vld [vmem:[#allocation192_spill] sm:$0xff]  ;;  %v22530_v26 = vld [vmem:[#allocation79_spill] sm:$0xff]  ;;  %v22535_v24 = vld [vmem:[#allocation109_spill] sm:$0xff] }
 0x944   : > { %v19497_v3 = vrot.slane %v9661_v6, %v21200_v44  ;;  %v9679_v7 = vcombine.low %v19482_v49, %v19465_v43  ;;  %v22527_v35 = vcombine.high %v22525_v45, %v22526_v25  ;;  %v22528_v11 = vcombine.high %v22522_v8, %v22523_v21  ;;  %v22533_v16 = vld [vmem:[#allocation223_spill] sm:$0xff]  ;;  %v22536_v8 = vld [vmem:[#allocation90_spill] sm:$0xff] }
 0x945   : > { %v12437_v41 = vpack.i.bf16 %v22524_v42, %v9953_v23  ;;  %v12066_v9 = vunpack.i.h.bf16 %v19281_v12  ;;  %v12065_v31 = vunpack.i.l.bf16 %v19281_v12  ;;  %v22531_v17 = vcombine.high %v22529_v46, %v22530_v26  ;;  %12373 = vrot.lane.b32.xlu0 %v12372_v52, %s12730_s26  ;;  %v22547_v12 = vld [vmem:[#allocation141_spill] sm:$0xff]  ;;  %v19562_v25 = vpop.permute.xlu1 %12138 }
 0x946   : > { %v19504_v57 = vpack.i.bf16 %v22527_v35, %v9950_v5  ;;  %v19509_v37 = vpack.i.bf16 %v22528_v11, %v9954_v0  ;;  %v22534_v23 = vcombine.low %v22532_v59, %v22533_v16  ;;  %v19524_v5 = vrot.slane %v9629_v15, %v21200_v44  ;;  %v22539_v35 = vld [vmem:[#allocation96_spill] sm:$0xff] }
 0x947   : > { %v12412_v4 = vpack.i.bf16 %v22531_v17, %v9678_v28  ;;  %v19527_v0 = vrot.slane %v9630_v39, %v21200_v44  ;;  %v22537_v21 = vcombine.high %v22532_v59, %v22533_v16  ;;  %v19538_v42 = vrot.slane %v9662_v54, %v21200_v44  ;;  %v22540_v59 = vld [vmem:[#allocation11_spill] sm:$0xff] }
 0x948   : > { %v19521_v6 = vpack.i.bf16 %v22534_v23, %v9951_v34  ;;  %v22538_v34 = vld [vmem:[#allocation246_spill] sm:$0xff]  ;;  %v12076_v11 = vunpack.i.h.bf16 %v19331_v62  ;;  %v12075_v39 = vunpack.i.l.bf16 %v19331_v62  ;;  %v12061_v17 = vunpack.i.h.bf16 %v19426_v51  ;;  %v12084_v23 = vpop.permute.xlu0 %12083  ;;  %v22546_v62 = vld [vmem:[#allocation149_spill] sm:$0xff] }
 0x949   : > { %v19535_v28 = vpack.i.bf16 %v22537_v21, %v9952_v56  ;;  %12413 = vrot.lane.b32.xlu1 %v12412_v4, %s12734_s30  ;;  %v12060_v52 = vunpack.i.l.bf16 %v19426_v51  ;;  %v22541_v56 = vld [vmem:[#allocation240_spill] sm:$0xff]  ;;  %v9682_v54 = vcombine.high %v19524_v5, %v19497_v3  ;;  %v22545_v29 = vcombine.low %v22543_v36, %v22544_v47  ;;  %12388 = vrot.lane.b32.xlu0 %v19274_v2, %s12731_s27  ;;  %v22552_v2 = vld [vmem:[#allocation151_spill] sm:$0xff]  ;;  %v19583_v26 = vpop.permute.xlu1 %12148 }
 0x94a   : > { %v22542_v16 = vcombine.low %v22540_v59, %v22541_v56  ;;  %v22548_v4 = vcombine.low %v22546_v62, %v22547_v12  ;;  %v12071_v51 = vunpack.i.h.bf16 %v19467_v13  ;;  %v12070_v58 = vunpack.i.l.bf16 %v19467_v13  ;;  %v22550_v12 = vld [vmem:[#allocation145_spill] sm:$0xff] }
 0x94b   : > { %v9394_v15 = vsel %vm833_vm5, %v22545_v29, %v12066_v9  ;;  %v12086_v45 = vunpack.i.h.bf16 %v12084_v23  ;;  %v12085_v10 = vunpack.i.l.bf16 %v12084_v23  ;;  %v12091_v29 = vunpack.i.h.bf16 %v19352_v55 }
 0x94c   : > { %v12422_v21 = vpack.i.bf16 %v22542_v16, %v9679_v7  ;;  %v9393_v32 = vsel %vm833_vm5, %v22548_v4, %v12065_v31  ;;  %v12081_v7 = vunpack.i.h.bf16 %v12079_v40  ;;  %v12080_v16 = vunpack.i.l.bf16 %v12079_v40  ;;  %v22549_v40 = vld [vmem:[#allocation152_spill] sm:$0xff] }
 0x94d   : > { %v9395_v36 = vsel %vm835_vm6, %v9393_v32, %v12075_v39  ;;  %v9396_v47 = vsel %vm835_vm6, %v9394_v15, %v12076_v11  ;;  %v12090_v9 = vunpack.i.l.bf16 %v19352_v55  ;;  %v12106_v13 = vunpack.i.h.bf16 %v19400_v33  ;;  %v22553_v4 = vld [vmem:[#allocation144_spill] sm:$0xff]  ;;  %v12094_v11 = vpop.permute.xlu0 %12093  ;;  %12398 = vrot.lane.b32.xlu0 %v19298_v22, %s12729_s25 }
 0x94e   : > { %12423 = vrot.lane.b32.xlu1 %v12422_v21, %s12732_s28  ;;  %v12105_v31 = vunpack.i.l.bf16 %v19400_v33  ;;  %v22551_v23 = vcombine.low %v22549_v40, %v22550_v12  ;;  %v22554_v32 = vcombine.low %v22552_v2, %v22553_v4  ;;  %v12096_v21 = vunpack.i.h.bf16 %v12094_v11  ;;  %v22614_v4 = vld [vmem:[#allocation252_spill] sm:$0xff] }
 0x94f   : > { %v12095_v63 = vunpack.i.l.bf16 %v12094_v11  ;;  %v9398_v12 = vsel %vm837_vm7, %v9396_v47, %v12086_v45  ;;  %v22557_v11 = vld [vmem:[#allocation54_spill] sm:$0xff] }
 0x950   : > { %v9408_v62 = vsel %vm833_vm5, %v22551_v23, %v12061_v17  ;;  %v9407_v15 = vsel %vm833_vm5, %v22554_v32, %v12060_v52  ;;  %v9397_v17 = vsel %vm837_vm7, %v9395_v36, %v12085_v10  ;;  %v12116_v52 = vunpack.i.h.bf16 %v19440_v60  ;;  %v22556_v32 = vld [vmem:[#allocation124_spill] sm:$0xff] }
 0x951   : > { %v9409_v39 = vsel %vm835_vm6, %v9407_v15, %v12070_v58  ;;  %v9410_v55 = vsel %vm835_vm6, %v9408_v62, %v12071_v51  ;;  %v12115_v58 = vunpack.i.l.bf16 %v19440_v60  ;;  %v9399_v51 = vsel %vm839_vm8, %v9397_v17, %v12095_v63  ;;  %v12109_v10 = vpop.permute.xlu0 %12108  ;;  %v19602_v60 = vpop.permute.xlu1 %12158  ;;  %12408 = vrot.lane.b32.xlu0 %v19504_v57, %s12734_s30  ;;  %v22555_v57 = vld [vmem:[#allocation20_spill] sm:$0xff]  ;;  %v22561_v17 = vld [vmem:[#allocation258_spill] sm:$0xff] }
 0x952   : > { %v9411_v33 = vsel %vm837_vm7, %v9409_v39, %v12080_v16  ;;  %v9412_v40 = vsel %vm837_vm7, %v9410_v55, %v12081_v7  ;;  %v9400_v23 = vsel %vm839_vm8, %v9398_v12, %v12096_v21  ;;  %12438 = vrot.lane.b32.xlu1 %v12437_v41, %s12730_s26  ;;  %v12126_v16 = vunpack.i.h.bf16 %v19474_v1  ;;  %v22558_v21 = vld [vmem:[#allocation51_spill] sm:$0xff]  ;;  %v22562_v12 = vld [vmem:[#allocation230_spill] sm:$0xff] }
 0x953   : > { %v12125_v7 = vunpack.i.l.bf16 %v19474_v1  ;;  %v9401_v45 = vsel %vm841_vm9, %v9399_v51, %v12105_v31  ;;  %v9402_v36 = vsel %vm841_vm9, %v9400_v23, %v12106_v13  ;;  %v9413_v22 = vsel %vm839_vm8, %v9411_v33, %v12090_v9  ;;  %v22559_v33 = vld [vmem:[#allocation16_spill] sm:$0xff] }
 0x954   : > { %v9414_v47 = vsel %vm839_vm8, %v9412_v40, %v12091_v29  ;;  %v9403_v63 = vsel %vm843_vm10, %v9401_v45, %v12115_v58  ;;  %v9404_v62 = vsel %vm843_vm10, %v9402_v36, %v12116_v52  ;;  %v12111_v41 = vunpack.i.h.bf16 %v12109_v10  ;;  %v22564_v45 = vld [vmem:[#allocation85_spill] sm:$0xff]  ;;  %v22565_v36 = vld [vmem:[#allocation259_spill] sm:$0xff] }
 0x955   : > { %v12110_v2 = vunpack.i.l.bf16 %v12109_v10  ;;  %v19609_v1 = vsel %vm845_vm11, %v9403_v63, %v12125_v7  ;;  %v19612_v13 = vsel %vm845_vm11, %v9404_v62, %v12126_v16  ;;  %v12101_v9 = vunpack.i.h.bf16 %v19372_v50  ;;  %v12119_v55 = vpop.permute.xlu0 %12118  ;;  %12418 = vrot.lane.b32.xlu0 %v19521_v6, %s12732_s28 }
 0x956   : > { %v12100_v29 = vunpack.i.l.bf16 %v19372_v50  ;;  %12448 = vrot.lane.b32.xlu1 %v19509_v37, %s12728_s24  ;;  %v9680_v31 = vcombine.high %v19482_v49, %v19465_v43  ;;  %v10650_v15 = vcombine.high %v22556_v32, %v22555_v57  ;;  %v10426_v39 = vcombine.high %v22557_v11, %v18930_v19  ;;  %v19631_v43 = vpop.permute.xlu1 %12168 }
 0x957   : > { %v22560_v40 = vcombine.high %v22558_v21, %v22559_v33  ;;  %v10458_v37 = vcombine.high %v22562_v12, %v22561_v17  ;;  %v12121_v52 = vunpack.i.h.bf16 %v12119_v55  ;;  %v12120_v58 = vunpack.i.l.bf16 %v12119_v55  ;;  %v22571_v55 = vld [vmem:[#allocation142_spill] sm:$0xff] }
 0x958   : > { %v9415_v49 = vsel %vm841_vm9, %v9413_v22, %v12100_v29  ;;  %v9416_v51 = vsel %vm841_vm9, %v9414_v47, %v12101_v9  ;;  %v12131_v23 = vunpack.i.h.bf16 %v19513_v27  ;;  %v12130_v19 = vunpack.i.l.bf16 %v19513_v27 }
 0x959   : > { %v12457_v50 = vpack.i.bf16 %v22560_v40, %v9682_v54  ;;  %v9417_v54 = vsel %vm843_vm10, %v9415_v49, %v12110_v2  ;;  %v9418_v16 = vsel %vm843_vm10, %v9416_v51, %v12111_v41  ;;  %v22563_v7 = vcombine.high %v22536_v8, %v22535_v24  ;;  %v12134_v8 = vpop.permute.xlu0 %12133  ;;  %12428 = vrot.lane.b32.xlu0 %v19535_v28, %s12733_s29 }
 0x95a   : > { %v10394_v22 = vcombine.high %v22565_v36, %v22564_v45  ;;  %v19651_v27 = vsel %vm845_vm11, %v9417_v54, %v12120_v58  ;;  %v19654_v6 = vsel %vm845_vm11, %v9418_v16, %v12121_v52  ;;  %v22566_v47 = vcombine.high %v22539_v35, %v22538_v34  ;;  %v19672_v57 = vpop.permute.xlu1 %12178  ;;  %v22567_v34 = vld [vmem:[#allocation97_spill] sm:$0xff]  ;;  %v22568_v35 = vld [vmem:[#allocation242_spill] sm:$0xff] }
 0x95b   : > { %v19645_v10 = vrot.slane %v22563_v7, %v21199_v61  ;;  %12458 = vrot.lane.b32.xlu1 %v12457_v50, %s12728_s24  ;;  %v19663_v24 = vrot.slane %v10650_v15, %v21199_v61  ;;  %v9683_v62 = vcombine.low %v19527_v0, %v19538_v42  ;;  %v19670_v2 = vrot.slane %v10426_v39, %v21200_v44  ;;  %v22570_v15 = vld [vmem:[#allocation146_spill] sm:$0xff]  ;;  %v22573_v52 = vld [vmem:[#allocation105_spill] sm:$0xff]  ;;  %v22578_v7 = vld [vmem:[#allocation92_spill] sm:$0xff] }
 0x95c   : > { %v19660_v63 = vrot.slane %v22566_v47, %v21199_v61  ;;  %v12136_v9 = vunpack.i.h.bf16 %v12134_v8  ;;  %v12135_v29 = vunpack.i.l.bf16 %v12134_v8  ;;  %v22569_v32 = vcombine.high %v22567_v34, %v22568_v35  ;;  %v22574_v58 = vld [vmem:[#allocation121_spill] sm:$0xff] }
 0x95d   : > { %v22572_v40 = vcombine.low %v22570_v15, %v22571_v55  ;;  %v22575_v49 = vcombine.low %v22573_v52, %v22574_v58  ;;  %v22576_v39 = vcombine.high %v22540_v59, %v22541_v56  ;;  %v22577_v16 = vld [vmem:[#allocation253_spill] sm:$0xff]  ;;  %v12141_v59 = vunpack.i.h.bf16 %v19562_v25  ;;  %v22583_v52 = vld [vmem:[#allocation234_spill] sm:$0xff] }
 0x95e   : > { %v12467_v11 = vpack.i.bf16 %v22569_v32, %v10458_v37  ;;  %v9681_v37 = vcombine.low %v19524_v5, %v19497_v3  ;;  %v10666_v45 = vcombine.high %v22578_v7, %v22577_v16  ;;  %v10681_v28 = vcombine.low %v19488_v53, %v19660_v63  ;;  %v12144_v3 = vpop.permute.xlu0 %12143  ;;  %v22579_v5 = vld [vmem:[#allocation36_spill] sm:$0xff]  ;;  %v22584_v58 = vld [vmem:[#allocation82_spill] sm:$0xff] }
 0x95f   : > { %v5590_v50 = vsel %vm833_vm5, %v22572_v40, %v12131_v23  ;;  %v5589_v51 = vsel %vm833_vm5, %v22575_v49, %v12130_v19  ;;  %v12432_v54 = vpack.i.bf16 %v22576_v39, %v9680_v31  ;;  %v19695_v23 = vrot.slane %v10394_v22, %v21200_v44  ;;  %v22580_v31 = vld [vmem:[#allocation236_spill] sm:$0xff] }
 0x960   : > { %v5591_v36 = vsel %vm835_vm6, %v5589_v51, %v12135_v29  ;;  %v5592_v19 = vsel %vm835_vm6, %v5590_v50, %v12136_v9  ;;  %12468 = vrot.lane.b32.xlu1 %v12467_v11, %s12734_s30  ;;  %v12140_v56 = vunpack.i.l.bf16 %v19562_v25  ;;  %v22581_v47 = vcombine.low %v22579_v5, %v22580_v31  ;;  %v19709_v9 = vpop.permute.xlu1 %12188 }
 0x961   : > { %v10713_v22 = vcombine.low %v19645_v10, %v19663_v24  ;;  %v12146_v29 = vunpack.i.h.bf16 %v12144_v3  ;;  %v12145_v32 = vunpack.i.l.bf16 %v12144_v3  ;;  %v10459_v11 = vcombine.low %v19695_v23, %v19670_v2  ;;  %12433 = vrot.lane.b32.xlu0 %v12432_v54, %s12733_s29 }
 0x962   : > { %v12477_v8 = vpack.i.bf16 %v22581_v47, %v9683_v62  ;;  %v5593_v15 = vsel %vm837_vm7, %v5591_v36, %v12140_v56  ;;  %v5594_v55 = vsel %vm837_vm7, %v5592_v19, %v12141_v59  ;;  %v22582_v25 = vcombine.low %v22558_v21, %v22559_v33  ;;  %v22587_v59 = vld [vmem:[#allocation229_spill] sm:$0xff]  ;;  %v22588_v56 = vld [vmem:[#allocation107_spill] sm:$0xff] }
 0x963   : > { %v9684_v40 = vcombine.high %v19527_v0, %v19538_v42  ;;  %v19722_v50 = vrot.slane %v10666_v45, %v21200_v44  ;;  %v10698_v49 = vcombine.high %v22584_v58, %v22583_v52  ;;  %v5595_v51 = vsel %vm839_vm8, %v5593_v15, %v12145_v32  ;;  %v12154_v0 = vpop.permute.xlu0 %12153  ;;  %v22585_v42 = vld [vmem:[#allocation257_spill] sm:$0xff]  ;;  %v22591_v52 = vld [vmem:[#allocation28_spill] sm:$0xff] }
 0x964   : > { %v12442_v62 = vpack.i.bf16 %v22582_v25, %v9681_v37  ;;  %v5596_v39 = vsel %vm839_vm8, %v5594_v55, %v12146_v29  ;;  %12478 = vrot.lane.b32.xlu1 %v12477_v8, %s12731_s27  ;;  %v19730_v54 = vrot.slane %v10681_v28, %v21200_v44  ;;  %v12151_v21 = vunpack.i.h.bf16 %v19583_v26  ;;  %v22586_v37 = vld [vmem:[#allocation32_spill] sm:$0xff]  ;;  %v19739_v19 = vpop.permute.xlu1 %12198  ;;  %v22592_v58 = vld [vmem:[#allocation249_spill] sm:$0xff] }
 0x965   : > { %v12150_v33 = vunpack.i.l.bf16 %v19583_v26  ;;  %v10730_v16 = vcombine.high %v22586_v37, %v22585_v42  ;;  %v19737_v7 = vrot.slane %v10713_v22, %v21200_v44  ;;  %v12156_v45 = vunpack.i.h.bf16 %v12154_v0 }
 0x966   : > { %v12155_v36 = vunpack.i.l.bf16 %v12154_v0  ;;  %v22589_v3 = vcombine.low %v22587_v59, %v22588_v56  ;;  %v12161_v47 = vunpack.i.h.bf16 %v19602_v60  ;;  %v12160_v8 = vunpack.i.l.bf16 %v19602_v60  ;;  %12443 = vrot.lane.b32.xlu0 %v12442_v62, %s12730_s26 }
 0x967   : > { %v5597_v26 = vsel %vm841_vm9, %v5595_v51, %v12150_v33  ;;  %v5598_v29 = vsel %vm841_vm9, %v5596_v39, %v12151_v21  ;;  %v19750_v22 = vrot.slane %v10698_v49, %v21200_v44  ;;  %v10714_v60 = vcombine.high %v19645_v10, %v19663_v24  ;;  %v12164_v25 = vpop.permute.xlu0 %12163  ;;  %v22594_v24 = vld [vmem:[#allocation29_spill] sm:$0xff]  ;;  %v22617_v10 = vld [vmem:[#allocation118_spill] sm:$0xff] }
 0x968   : > { %v12487_v28 = vpack.i.bf16 %v22589_v3, %v10459_v11  ;;  %v5599_v32 = vsel %vm843_vm10, %v5597_v26, %v12155_v36  ;;  %v5600_v15 = vsel %vm843_vm10, %v5598_v29, %v12156_v45  ;;  %v22590_v11 = vcombine.high %v22579_v5, %v22580_v31  ;;  %v19769_v0 = vpop.permute.xlu1 %12208  ;;  %v22595_v31 = vld [vmem:[#allocation10_spill] sm:$0xff] }
 0x969   : > { %v22593_v62 = vcombine.high %v22591_v52, %v22592_v58  ;;  %v19764_v49 = vsel %vm845_vm11, %v5599_v32, %v12160_v8  ;;  %v19767_v39 = vsel %vm845_vm11, %v5600_v15, %v12161_v47  ;;  %v12166_v21 = vunpack.i.h.bf16 %v12164_v25  ;;  %v22598_v3 = vld [vmem:[#allocation226_spill] sm:$0xff]  ;;  %v22602_v32 = vld [vmem:[#allocation37_spill] sm:$0xff] }
 0x96a   : > { %12488 = vrot.lane.b32.xlu1 %v12487_v28, %s12732_s28  ;;  %v12497_v55 = vpack.i.bf16 %v22590_v11, %v9684_v40  ;;  %v12165_v33 = vunpack.i.l.bf16 %v12164_v25  ;;  %v10733_v5 = vcombine.low %v19730_v54, %v19737_v7  ;;  %v22596_v40 = vcombine.high %v22594_v24, %v22595_v31  ;;  %v22599_v28 = vld [vmem:[#allocation224_spill] sm:$0xff]  ;;  %v22601_v29 = vld [vmem:[#allocation106_spill] sm:$0xff]  ;;  %v22604_v25 = vld [vmem:[#allocation41_spill] sm:$0xff] }
 0x96b   : > { %v12452_v51 = vpack.i.bf16 %v22593_v62, %v10730_v16  ;;  %v10682_v45 = vcombine.high %v19488_v53, %v19660_v63  ;;  %v22597_v36 = vcombine.low %v19472_v20, %v19458_v48  ;;  %v22600_v47 = vcombine.low %v22598_v3, %v22599_v28  ;;  %v22603_v11 = vld [vmem:[#allocation158_spill] sm:$0xff] }
 0x96c   : > { %v19779_v16 = vrot.slane %v22596_v40, %v21199_v61  ;;  %v9956_v26 = vcombine.high %v19472_v20, %v19458_v48  ;;  %v10362_v15 = vcombine.high %v22602_v32, %v22601_v29  ;;  %v22605_v62 = vcombine.low %v22603_v11, %v22604_v25  ;;  %v22606_v63 = vld [vmem:[#allocation86_spill] sm:$0xff]  ;;  %v22609_v20 = vld [vmem:[#allocation87_spill] sm:$0xff]  ;;  %v12174_v32 = vpop.permute.xlu0 %12173 }
 0x96d   : > { %12453 = vrot.lane.b32.xlu0 %v12452_v51, %s12734_s30  ;;  %v12462_v8 = vpack.i.bf16 %v22600_v47, %v22597_v36  ;;  %v22607_v51 = vld [vmem:[#allocation120_spill] sm:$0xff]  ;;  %v10731_v40 = vcombine.low %v19722_v50, %v19750_v22  ;;  %v19806_v48 = vrot.slane %v10714_v60, %v21200_v44  ;;  %v22610_v36 = vld [vmem:[#allocation235_spill] sm:$0xff]  ;;  %v12171_v29 = vunpack.i.h.bf16 %v19631_v43 }
 0x96e   : > { %v5604_v53 = vsel %vm833_vm5, %v22605_v62, %v12166_v21  ;;  %v22608_v24 = vcombine.low %v22606_v63, %v22607_v51  ;;  %12498 = vrot.lane.b32.xlu1 %v12497_v55, %s12729_s25  ;;  %v10378_v47 = vcombine.high %v22610_v36, %v22609_v20  ;;  %v12170_v21 = vunpack.i.l.bf16 %v19631_v43  ;;  %v19812_v62 = vpop.permute.xlu1 %12218  ;;  %v22612_v55 = vld [vmem:[#allocation31_spill] sm:$0xff]  ;;  %v22615_v20 = vld [vmem:[#allocation260_spill] sm:$0xff] }
 0x96f   : > { %v12176_v11 = vunpack.i.h.bf16 %v12174_v32  ;;  %v12175_v25 = vunpack.i.l.bf16 %v12174_v32  ;;  %v10734_v60 = vcombine.high %v19730_v54, %v19737_v7  ;;  %v10346_v36 = vcombine.high %v22615_v20, %v22614_v4  ;;  %v22616_v32 = vld [vmem:[#allocation102_spill] sm:$0xff]  ;;  %v22618_v54 = vld [vmem:[#allocation40_spill] sm:$0xff] }
 0x970   : > { %v5603_v31 = vsel %vm833_vm5, %v22608_v24, %v12165_v33  ;;  %v22611_v33 = vld [vmem:[#allocation78_spill] sm:$0xff]  ;;  %v10696_v24 = vrot.slane %v10682_v45, %v21200_v44  ;;  %v5606_v43 = vsel %vm835_vm6, %v5604_v53, %v12171_v29  ;;  %v10330_v17 = vcombine.high %v22617_v10, %v22616_v32 }
 0x971   : > { %v22613_v63 = vcombine.low %v22611_v33, %v22612_v55  ;;  %v5605_v41 = vsel %vm835_vm6, %v5603_v31, %v12170_v21  ;;  %12463 = vrot.lane.b32.xlu0 %v12462_v8, %s12731_s27  ;;  %v22619_v7 = vld [vmem:[#allocation50_spill] sm:$0xff]  ;;  %v10392_v4 = vrot.slane %v10378_v47, %v21199_v61  ;;  %v12181_v31 = vunpack.i.h.bf16 %v19672_v57  ;;  %v12184_v8 = vpop.permute.xlu0 %12183 }
 0x972   : > { %v5607_v12 = vsel %vm837_vm7, %v5605_v41, %v12175_v25  ;;  %v22620_v45 = vcombine.low %v22618_v54, %v22619_v7  ;;  %v12180_v53 = vunpack.i.l.bf16 %v19672_v57  ;;  %v10735_v29 = vcombine.low %v10696_v24, %v19806_v48  ;;  %v19837_v41 = vpop.permute.xlu1 %12228 }
 0x973   : > { %v12507_v51 = vpack.i.bf16 %v22613_v63, %v10733_v5  ;;  %v5608_v5 = vsel %vm837_vm7, %v5606_v43, %v12176_v11  ;;  %v12186_v10 = vunpack.i.h.bf16 %v12184_v8  ;;  %v12185_v21 = vunpack.i.l.bf16 %v12184_v8  ;;  %v22626_v8 = vld [vmem:[#allocation239_spill] sm:$0xff] }
 0x974   : > { %v12472_v63 = vpack.i.bf16 %v22620_v45, %v10731_v40  ;;  %v22621_v11 = vcombine.high %v22611_v33, %v22612_v55  ;;  %v22622_v40 = vcombine.high %v22598_v3, %v22599_v28  ;;  %v10376_v47 = vrot.slane %v10362_v15, %v21199_v61  ;;  %v22623_v55 = vld [vmem:[#allocation64_spill] sm:$0xff] }
 0x975   : > { %12508 = vrot.lane.b32.xlu1 %v12507_v51, %s12730_s26  ;;  %v10360_v20 = vrot.slane %v10346_v36, %v21199_v61  ;;  %v5609_v57 = vsel %vm839_vm8, %v5607_v12, %v12180_v53  ;;  %v5610_v43 = vsel %vm839_vm8, %v5608_v5, %v12181_v31  ;;  %v10344_v32 = vrot.slane %v10330_v17, %v21199_v61  ;;  %v12194_v15 = vpop.permute.xlu0 %12193 }
 0x976   : > { %v12517_v25 = vpack.i.bf16 %v22621_v11, %v10734_v60  ;;  %v12482_v51 = vpack.i.bf16 %v22622_v40, %v9956_v26  ;;  %12473 = vrot.lane.b32.xlu0 %v12472_v63, %s12732_s28  ;;  %v5611_v45 = vsel %vm841_vm9, %v5609_v57, %v12185_v21  ;;  %v5612_v33 = vsel %vm841_vm9, %v5610_v43, %v12186_v10  ;;  %v22624_v60 = vld [vmem:[#allocation66_spill] sm:$0xff]  ;;  %v19861_v31 = vpop.permute.xlu1 %12238  ;;  %v22628_v57 = vld [vmem:[#allocation241_spill] sm:$0xff] }
 0x977   : > { %v10732_v3 = vcombine.high %v19722_v50, %v19750_v22  ;;  %v10441_v28 = vcombine.low %v10376_v47, %v10392_v4  ;;  %v12191_v26 = vunpack.i.h.bf16 %v19709_v9  ;;  %v12190_v12 = vunpack.i.l.bf16 %v19709_v9 }
 0x978   : > { %v22625_v36 = vcombine.low %v22623_v55, %v22624_v60  ;;  %v10442_v61 = vcombine.high %v10376_v47, %v10392_v4  ;;  %v12196_v17 = vunpack.i.h.bf16 %v12194_v15  ;;  %v12195_v63 = vunpack.i.l.bf16 %v12194_v15 }
 0x979   : > { %12518 = vrot.lane.b32.xlu1 %v12517_v25, %s12728_s24  ;;  %v10736_v53 = vcombine.high %v10696_v24, %v19806_v48  ;;  %v10577_v50 = vcombine.low %v22626_v8, %v19779_v16  ;;  %v10409_v22 = vcombine.low %v10344_v32, %v10360_v20  ;;  %v5613_v9 = vsel %vm843_vm10, %v5611_v45, %v12190_v12  ;;  %v12204_v11 = vpop.permute.xlu0 %12203 }
 0x97a   : > { %v12527_v5 = vpack.i.bf16 %v22625_v36, %v10735_v29  ;;  %12483 = vrot.lane.b32.xlu0 %v12482_v51, %s12729_s25  ;;  %v5614_v10 = vsel %vm843_vm10, %v5612_v33, %v12191_v26  ;;  %v10578_v29 = vcombine.high %v22626_v8, %v19779_v16  ;;  %v10410_v4 = vcombine.high %v10344_v32, %v10360_v20  ;;  %v22629_v16 = vld [vmem:[#allocation19_spill] sm:$0xff]  ;;  %v19885_v32 = vpop.permute.xlu1 %12243 }
 0x97b   : > { %v5615_v21 = vsel %vm845_vm11, %v5613_v9, %v12195_v63  ;;  %v5616_v48 = vsel %vm845_vm11, %v5614_v10, %v12196_v17  ;;  %v10449_v24 = vrot.slane %v10441_v28, %v21200_v44  ;;  %v22627_v25 = vcombine.high %v22618_v54, %v22619_v7 }
 0x97c   : > { %v11573_v51 = vpack.c.bf16 %v5616_v48, %v5615_v21  ;;  %v10460_v47 = vcombine.high %v19695_v23, %v19670_v2  ;;  %v10546_v20 = vcombine.high %v22629_v16, %v22628_v57  ;;  %v19883_v43 = vrot.slane %v10442_v61, %v21200_v44 }
 0x97d   : > { %12528 = vrot.lane.b32.xlu1 %v12527_v5, %s12731_s27  ;;  %v12492_v40 = vpack.i.bf16 %v22627_v25, %v10732_v3  ;;  %v22630_v45 = vcombine.high %v22623_v55, %v22624_v60  ;;  %v10585_v28 = vrot.slane %v10577_v50, %v21200_v44  ;;  %v10417_v54 = vrot.slane %v10409_v22, %v21200_v44  ;;  %v12214_v15 = vpop.permute.xlu0 %12213  ;;  %v22633_v25 = vld [vmem:[#allocation170_spill] sm:$0xff] }
 0x97e   : > { %11574 = vmatprep.subr.bf16.mxu0 %v11573_v51  ;;  %v10596_v2 = vcombine.high %v22587_v59, %v22588_v56  ;;  %v19896_v23 = vrot.slane %v10578_v29, %v21200_v44  ;;  %v19899_v7 = vrot.slane %v10410_v4, %v21200_v44  ;;  %v22631_v3 = vpack.c.bf16 %v19767_v39, %v19764_v49  ;;  %v19912_v60 = vpop.permute.xlu1 %12253 }
 0x97f   : > { %v12537_v33 = vpack.i.bf16 %v22630_v45, %v10736_v53  ;;  %12493 = vrot.lane.b32.xlu0 %v12492_v40, %s12733_s29  ;;  %v22632_v26 = vcombine.low %v22629_v16, %v22628_v57  ;;  %v10461_v59 = vcombine.low %v10417_v54, %v10449_v24  ;;  %v19910_v56 = vrot.slane %v10546_v20, %v21200_v44  ;;  %v22637_v57 = vld [vmem:[#allocation171_spill] sm:$0xff] }
 0x980   : > { %11576 = vmatpush1.bf16.msra.mxu0 %v22631_v3  ;;  %v12502_v55 = vpack.i.bf16 %v10596_v2, %v10460_v47  ;;  %v10462_v36 = vcombine.high %v10417_v54, %v10449_v24  ;;  %v10463_v5 = vcombine.low %v19899_v7, %v19883_v43  ;;  %v12201_v49 = vunpack.i.h.bf16 %v19739_v19  ;;  %v22636_v47 = vld [vmem:[#allocation189_spill] sm:$0xff]  ;;  %v22640_v3 = vld [vmem:[#allocation182_spill] sm:$0xff] }
 0x981   : > { %12538 = vrot.lane.b32.xlu1 %v12537_v33, %s12729_s25  ;;  %v10553_v12 = vrot.slane %v22632_v26, %v21200_v44  ;;  %v12200_v39 = vunpack.i.l.bf16 %v19739_v19  ;;  %v12211_v63 = vunpack.i.h.bf16 %v19769_v0  ;;  %v12210_v53 = vunpack.i.l.bf16 %v19769_v0  ;;  %v12224_v9 = vpop.permute.xlu0 %12223  ;;  %v22634_v0 = vld [vmem:[#allocation168_spill] sm:$0xff] }
 0x982   : > { %v10599_v44 = vcombine.low %v19910_v56, %v19896_v23  ;;  %v10600_v8 = vcombine.high %v19910_v56, %v19896_v23  ;;  %v12206_v50 = vunpack.i.h.bf16 %v12204_v11  ;;  %v12205_v22 = vunpack.i.l.bf16 %v12204_v11  ;;  %v12264_v21 = vpop.permute.xlu1 %12263 }
 0x983   : > { %12503 = vrot.lane.b32.xlu0 %v12502_v55, %s12733_s29  ;;  %v10597_v61 = vcombine.low %v10553_v12, %v10585_v28  ;;  %v10598_v17 = vcombine.high %v10553_v12, %v10585_v28  ;;  %v10464_v19 = vcombine.high %v19899_v7, %v19883_v43  ;;  %v12216_v29 = vunpack.i.h.bf16 %v12214_v15  ;;  %v22639_v7 = vld [vmem:[#allocation184_spill] sm:$0xff]  ;;  %v22643_v55 = vld [vmem:[#allocation181_spill] sm:$0xff] }
 0x984   : > { %v12215_v4 = vunpack.i.l.bf16 %v12214_v15  ;;  %v12532_v24 = vpack.i.bf16 %v10599_v44, %v10463_v5  ;;  %v22635_v40 = vcombine.low %v22633_v25, %v22634_v0  ;;  %v22638_v16 = vcombine.low %v22636_v47, %v22637_v57  ;;  %v22642_v15 = vld [vmem:[#allocation180_spill] sm:$0xff]  ;;  %v11014_v44 = vld [vmem:[%s20272_s4 + $0x8] sm:$0xff] }
 0x985   : > { %v12512_v10 = vpack.i.bf16 %v10597_v61, %v10461_v59  ;;  %v12522_v48 = vpack.i.bf16 %v10598_v17, %v10462_v36  ;;  %v12226_v20 = vunpack.i.h.bf16 %v12224_v9  ;;  %v12225_v45 = vunpack.i.l.bf16 %v12224_v9  ;;  %v12234_v36 = vpop.permute.xlu0 %12233  ;;  %11465 = vmatprep.mubr.msk.f32.mxu0 %vm833_vm5, %v11014_v44 }
 0x986   : > { %v6384_v51 = vsel %vm833_vm5, %v22635_v40, %v12201_v49  ;;  %v6383_v11 = vsel %vm833_vm5, %v22638_v16, %v12200_v39  ;;  %v12221_v28 = vunpack.i.h.bf16 %v19812_v62  ;;  %v12220_v54 = vunpack.i.l.bf16 %v19812_v62  ;;  %v19952_v61 = vpop.permute.xlu1 %12273 }
 0x987   : > { %12513 = vrot.lane.b32.xlu0 %v12512_v10, %s12730_s26  ;;  %v6385_v43 = vsel %vm835_vm6, %v6383_v11, %v12210_v53  ;;  %v6386_v33 = vsel %vm835_vm6, %v6384_v51, %v12211_v63  ;;  %v12231_v2 = vunpack.i.h.bf16 %v19837_v41  ;;  %v12230_v23 = vunpack.i.l.bf16 %v19837_v41 }
 0x988   : > { %v22641_v26 = vcombine.low %v22639_v7, %v22640_v3  ;;  %v22644_v59 = vcombine.low %v22642_v15, %v22643_v55  ;;  %v12236_v62 = vunpack.i.h.bf16 %v12234_v36  ;;  %v12235_v39 = vunpack.i.l.bf16 %v12234_v36 }
 0x989   : > { %v12246_v41 = vunpack.i.h.bf16 %v19885_v32  ;;  %v12245_v17 = vunpack.i.l.bf16 %v19885_v32  ;;  %v12266_v32 = vunpack.i.h.bf16 %v12264_v21  ;;  %v12249_v25 = vpop.permute.xlu0 %12248  ;;  %v12241_v0 = vunpack.i.h.bf16 %v19861_v31 }
 0x98a   : > { %v6370_v12 = vsel %vm833_vm5, %v22641_v26, %v12206_v50  ;;  %v6369_v56 = vsel %vm833_vm5, %v22644_v59, %v12205_v22  ;;  %v12256_v50 = vunpack.i.h.bf16 %v19912_v60  ;;  %v12255_v22 = vunpack.i.l.bf16 %v19912_v60  ;;  %v12284_v51 = vpop.permute.xlu1 %12283 }
 0x98b   : > { %v6371_v5 = vsel %vm835_vm6, %v6369_v56, %v12215_v4  ;;  %v6372_v49 = vsel %vm835_vm6, %v6370_v12, %v12216_v29  ;;  %12523 = vrot.lane.b32.xlu0 %v12522_v48, %s12728_s24  ;;  %v12265_v29 = vunpack.i.l.bf16 %v12264_v21  ;;  %v12240_v40 = vunpack.i.l.bf16 %v19861_v31 }
 0x98c   : > { %v6373_v63 = vsel %vm837_vm7, %v6371_v5, %v12225_v45  ;;  %v6374_v53 = vsel %vm837_vm7, %v6372_v49, %v12226_v20  ;;  %v12251_v57 = vunpack.i.h.bf16 %v12249_v25  ;;  %v12250_v16 = vunpack.i.l.bf16 %v12249_v25 }
 0x98d   : > { %v6375_v9 = vsel %vm839_vm8, %v6373_v63, %v12235_v39  ;;  %v6376_v10 = vsel %vm839_vm8, %v6374_v53, %v12236_v62  ;;  %v6387_v20 = vsel %vm837_vm7, %v6385_v43, %v12220_v54  ;;  %v6388_v45 = vsel %vm837_vm7, %v6386_v33, %v12221_v28  ;;  %v12259_v26 = vpop.permute.xlu0 %12258 }
 0x98e   : > { %v6377_v4 = vsel %vm841_vm9, %v6375_v9, %v12245_v17  ;;  %v6378_v48 = vsel %vm841_vm9, %v6376_v10, %v12246_v41  ;;  %v6389_v31 = vsel %vm839_vm8, %v6387_v20, %v12230_v23  ;;  %v6390_v3 = vsel %vm839_vm8, %v6388_v45, %v12231_v2  ;;  %v19982_v56 = vpop.permute.xlu1 %12298 }
 0x98f   : > { %v6379_v60 = vsel %vm843_vm10, %v6377_v4, %v12255_v22  ;;  %v6380_v47 = vsel %vm843_vm10, %v6378_v48, %v12256_v50  ;;  %12533 = vrot.lane.b32.xlu0 %v12532_v24, %s12731_s27  ;;  %v12542_v12 = vpack.i.bf16 %v10600_v8, %v10464_v19  ;;  %v6391_v15 = vsel %vm841_vm9, %v6389_v31, %v12240_v40 }
 0x990   : > { %v6381_v21 = vsel %vm845_vm11, %v6379_v60, %v12265_v29  ;;  %v6382_v11 = vsel %vm845_vm11, %v6380_v47, %v12266_v32  ;;  %v6392_v55 = vsel %vm841_vm9, %v6390_v3, %v12241_v0  ;;  %v12261_v24 = vunpack.i.h.bf16 %v12259_v26 }
 0x991   : > { %v11579_v7 = vpack.c.bf16 %v6382_v11, %v6381_v21  ;;  %v12260_v59 = vunpack.i.l.bf16 %v12259_v26  ;;  %v6393_v36 = vsel %vm843_vm10, %v6391_v15, %v12250_v16  ;;  %v6394_v43 = vsel %vm843_vm10, %v6392_v55, %v12251_v57  ;;  %v12269_v54 = vpop.permute.xlu0 %12268 }
 0x992   : > { %v6396_v28 = vsel %vm845_vm11, %v6394_v43, %v12261_v24  ;;  %v19989_v19 = vpop.permute.xlu1 %12308  ;;  %v22645_v23 = vpack.c.bf16 %v19421_v18, %v19418_v38  ;;  %v22646_v49 = vpack.c.bf16 %v19382_v14, %v19379_v30  ;;  %v12276_v41 = vunpack.i.h.bf16 %v19952_v61  ;;  %v22647_v38 = vld [vmem:[#allocation214_spill] sm:$0xff]  ;;  %v22648_v18 = vld [vmem:[#allocation89_spill] sm:$0xff] }
 0x993   : > { %12543 = vrot.lane.b32.xlu0 %v12542_v12, %s12729_s25  ;;  %v6395_v33 = vsel %vm845_vm11, %v6393_v36, %v12260_v59  ;;  %v12275_v17 = vunpack.i.l.bf16 %v19952_v61  ;;  %v12286_v53 = vunpack.i.h.bf16 %v12284_v51  ;;  %v12285_v44 = vunpack.i.l.bf16 %v12284_v51  ;;  %v22650_v30 = vld [vmem:[#allocation21_spill] sm:$0xff]  ;;  %v22651_v14 = vld [vmem:[#allocation218_spill] sm:$0xff]  ;;  %s11478_s25 = sshll.u32 %s12814_s19, 5 }
 0x994   : > { %v11577_v8 = vpack.c.bf16 %v6396_v28, %v6395_v33  ;;  %v22649_v10 = vcombine.low %v22647_v38, %v22648_v18  ;;  %v22652_v29 = vcombine.low %v22650_v30, %v22651_v14  ;;  %v12271_v26 = vunpack.i.h.bf16 %v12269_v54  ;;  %s386_s30 = scalar_lea.vmem %s20279_s11, %s11478_s25 }
 0x995   : > { %v12279_v2 = vpop.permute.xlu0 %12278  ;;  %v12270_v12 = vunpack.i.l.bf16 %v12269_v54  ;;  %v12300_v30 = vunpack.i.l.bf16 %v19982_v56 }
 0x996   : > { %11578 = vmatprep.subr.bf16.mxu0 %v11577_v8  ;;  %v12319_v5 = vpop.permute.xlu1 %12318  ;;  %v7898_v32 = vsel %vm833_vm5, %v22649_v10, %v12276_v41  ;;  %v7897_v4 = vsel %vm833_vm5, %v22652_v29, %v12275_v17  ;;  %v12281_v59 = vunpack.i.h.bf16 %v12279_v2  ;;  %v12280_v36 = vunpack.i.l.bf16 %v12279_v2  ;;  %v22653_v41 = vld [vmem:[#allocation201_spill] sm:$0xff]  ;;  %v22654_v17 = vld [vmem:[#allocation199_spill] sm:$0xff] }
 0x997   : > { %11580 = vmatpush1.bf16.msra.mxu0 %v11579_v7  ;;  %v7899_v25 = vsel %vm835_vm6, %v7897_v4, %v12285_v44  ;;  %v7900_v61 = vsel %vm835_vm6, %v7898_v32, %v12286_v53  ;;  %v12321_v60 = vunpack.i.h.bf16 %v12319_v5  ;;  %v12320_v47 = vunpack.i.l.bf16 %v12319_v5  ;;  %v22656_v53 = vld [vmem:[#allocation191_spill] sm:$0xff]  ;;  %v22657_v44 = vld [vmem:[#allocation197_spill] sm:$0xff] }
 0x998   : > { %11582 = vmatprep.subr.bf16.mxu0 %v22645_v23  ;;  %v12301_v32 = vunpack.i.h.bf16 %v19982_v56 }
 0x999   : > { %v12289_v62 = vpop.permute.xlu0 %12288 }
 0x99a   : > { %v19997_v39 = vpop.permute.xlu1 %12328  ;;  %v12291_v28 = vunpack.i.h.bf16 %v12289_v62  ;;  %v12290_v8 = vunpack.i.l.bf16 %v12289_v62 }
 0x99b   : > { %11584 = vmatpush1.bf16.msra.mxu0 %v22646_v49 }
 0x99d   : > { %v12294_v63 = vpop.permute.xlu0 %12293 }
 0x99e   : > { %v12339_v50 = vpop.permute.xlu1 %12338  ;;  %v12296_v22 = vunpack.i.h.bf16 %v12294_v63  ;;  %v12295_v9 = vunpack.i.l.bf16 %v12294_v63  ;;  %v22655_v63 = vcombine.low %v22653_v41, %v22654_v17  ;;  %v22663_v41 = vld [vmem:[#allocation45_spill] sm:$0xff] }
 0x99f   : > { %v12341_v21 = vunpack.i.h.bf16 %v12339_v50  ;;  %v12340_v11 = vunpack.i.l.bf16 %v12339_v50  ;;  %v22658_v50 = vcombine.low %v22656_v53, %v22657_v44 }
 0x9a0   : > { %v7901_v57 = vsel %vm837_vm7, %v7899_v25, %v12295_v9  ;;  %v7902_v16 = vsel %vm837_vm7, %v7900_v61, %v12296_v22  ;;  %v7912_v54 = vsel %vm833_vm5, %v22655_v63, %v12271_v26 }
 0x9a1   : > { %v12304_v48 = vpop.permute.xlu0 %12303  ;;  %v7911_v22 = vsel %vm833_vm5, %v22658_v50, %v12270_v12  ;;  %v7914_v38 = vsel %vm835_vm6, %v7912_v54, %v12281_v59  ;;  %v12330_v12 = vunpack.i.l.bf16 %v19997_v39 }
 0x9a2   : > { %v12306_v0 = vunpack.i.h.bf16 %v12304_v48  ;;  %v12305_v40 = vunpack.i.l.bf16 %v12304_v48  ;;  %v20011_v51 = vpop.permute.xlu1 %12348  ;;  %v7913_v62 = vsel %vm835_vm6, %v7911_v22, %v12280_v36  ;;  %v7916_v10 = vsel %vm837_vm7, %v7914_v38, %v12291_v28 }
 0x9a3   : > { %v7915_v18 = vsel %vm837_vm7, %v7913_v62, %v12290_v8  ;;  %v7918_v48 = vsel %vm839_vm8, %v7916_v10, %v12301_v32  ;;  %v22659_v8 = vld [vmem:[#allocation231_spill] sm:$0xff]  ;;  %v22666_v62 = vld [vmem:[#allocation225_spill] sm:$0xff] }
 0x9a4   : > { %v7903_v20 = vsel %vm839_vm8, %v7901_v57, %v12305_v40  ;;  %v7904_v45 = vsel %vm839_vm8, %v7902_v16, %v12306_v0  ;;  %v7917_v4 = vsel %vm839_vm8, %v7915_v18, %v12300_v30  ;;  %v12311_v0 = vunpack.i.h.bf16 %v19989_v19  ;;  %v22668_v10 = vld [vmem:[#allocation261_spill] sm:$0xff] }
 0x9a5   : > { %v7905_v7 = vsel %vm841_vm9, %v7903_v20, %v12320_v47  ;;  %v7906_v31 = vsel %vm841_vm9, %v7904_v45, %v12321_v60  ;;  %v20019_v3 = vpop.permute.xlu0 %12313  ;;  %v12310_v40 = vunpack.i.l.bf16 %v19989_v19  ;;  %v12331_v19 = vunpack.i.h.bf16 %v19997_v39  ;;  %v22662_v39 = vld [vmem:[#allocation34_spill] sm:$0xff]  ;;  %v22669_v32 = vld [vmem:[#allocation17_spill] sm:$0xff] }
 0x9a6   : > { %v12359_v15 = vpop.permute.xlu1 %12358  ;;  %v7907_v55 = vsel %vm843_vm10, %v7905_v7, %v12340_v11  ;;  %v7908_v24 = vsel %vm843_vm10, %v7906_v31, %v12341_v21  ;;  %v7920_v57 = vsel %vm841_vm9, %v7918_v48, %v12311_v0  ;;  %v12316_v59 = vunpack.i.h.bf16 %v20019_v3 }
 0x9a7   : > { %v12361_v43 = vunpack.i.h.bf16 %v12359_v15  ;;  %v12360_v33 = vunpack.i.l.bf16 %v12359_v15  ;;  %v7919_v47 = vsel %vm841_vm9, %v7917_v4, %v12310_v40  ;;  %v12315_v36 = vunpack.i.l.bf16 %v20019_v3 }
 0x9a8   : > { %v22664_v17 = vcombine.low %v22662_v39, %v22663_v41  ;;  %v22670_v30 = vcombine.low %v22668_v10, %v22669_v32  ;;  %v22671_v10 = vpack.c.bf16 %v19654_v6, %v19651_v27 }
 0x9a9   : > { %v12324_v23 = vpop.permute.xlu0 %12323  ;;  %v7909_v5 = vsel %vm845_vm11, %v7907_v55, %v12360_v33  ;;  %v7910_v49 = vsel %vm845_vm11, %v7908_v24, %v12361_v43  ;;  %v12351_v55 = vunpack.i.h.bf16 %v20011_v51  ;;  %v12350_v24 = vunpack.i.l.bf16 %v20011_v51 }
 0x9aa   : > { %v20033_v2 = vpop.permute.xlu1 %12368  ;;  %v11587_v9 = vpack.c.bf16 %v7910_v49, %v7909_v5  ;;  %v12326_v25 = vunpack.i.h.bf16 %v12324_v23  ;;  %v12325_v61 = vunpack.i.l.bf16 %v12324_v23  ;;  %v22660_v23 = vld [vmem:[#allocation38_spill] sm:$0xff]  ;;  %v8677_v63 = vsel %vm833_vm5, %v22664_v17, %v12330_v12 }
 0x9ab   : > { %v22661_v5 = vcombine.low %v22659_v8, %v22660_v23  ;;  %v8679_v3 = vsel %vm835_vm6, %v8677_v63, %v12350_v24  ;;  %v12371_v4 = vunpack.i.h.bf16 %v20033_v2  ;;  %v12370_v48 = vunpack.i.l.bf16 %v20033_v2 }
 0x9ac   : > { %v7921_v11 = vsel %vm843_vm10, %v7919_v47, %v12325_v61  ;;  %v7922_v20 = vsel %vm843_vm10, %v7920_v57, %v12326_v25 }
 0x9ad   : > { %v12334_v14 = vpop.permute.xlu0 %12333  ;;  %v8678_v49 = vsel %vm833_vm5, %v22661_v5, %v12331_v19 }
 0x9ae   : > { %v20041_v29 = vpop.permute.xlu1 %12378  ;;  %v12336_v43 = vunpack.i.h.bf16 %v12334_v14  ;;  %v12335_v33 = vunpack.i.l.bf16 %v12334_v14  ;;  %v8680_v22 = vsel %vm835_vm6, %v8678_v49, %v12351_v55  ;;  %v8691_v14 = vsel %vm833_vm5, %v22670_v30, %v12315_v36 }
 0x9af   : > { %v12381_v49 = vunpack.i.h.bf16 %v20041_v29  ;;  %v12380_v39 = vunpack.i.l.bf16 %v20041_v29  ;;  %v22672_v30 = vpack.c.bf16 %v19612_v13, %v19609_v1 }
 0x9b0   : > { %v8693_v25 = vsel %vm835_vm6, %v8691_v14, %v12335_v33 }
 0x9b1   : > { %v12344_v60 = vpop.permute.xlu0 %12343 }
 0x9b2   : > { %v12346_v16 = vunpack.i.h.bf16 %v12344_v60  ;;  %v12345_v56 = vunpack.i.l.bf16 %v12344_v60  ;;  %v12384_v21 = vpop.permute.xlu1 %12383 }
 0x9b3   : > { %v12386_v40 = vunpack.i.h.bf16 %v12384_v21  ;;  %v12385_v60 = vunpack.i.l.bf16 %v12384_v21 }
 0x9b4   : > { %v7923_v45 = vsel %vm845_vm11, %v7921_v11, %v12345_v56  ;;  %v7924_v7 = vsel %vm845_vm11, %v7922_v20, %v12346_v16 }
 0x9b5   : > { %v12354_v31 = vpop.permute.xlu0 %12353  ;;  %v11585_v26 = vpack.c.bf16 %v7924_v7, %v7923_v45 }
 0x9b6   : > { %v12394_v15 = vpop.permute.xlu1 %12393  ;;  %v12356_v51 = vunpack.i.h.bf16 %v12354_v31  ;;  %v12355_v53 = vunpack.i.l.bf16 %v12354_v31 }
 0x9b7   : > { %11586 = vmatprep.subr.bf16.mxu0 %v11585_v26  ;;  %v12396_v7 = vunpack.i.h.bf16 %v12394_v15  ;;  %v12395_v2 = vunpack.i.l.bf16 %v12394_v15 }
 0x9b8   : > { %11588 = vmatpush1.bf16.msra.mxu0 %v11587_v9  ;;  %v22665_v9 = vld [vmem:[#allocation227_spill] sm:$0xff]  ;;  %v8695_v56 = vsel %vm837_vm7, %v8693_v25, %v12355_v53 }
 0x9b9   : > { %v12364_v28 = vpop.permute.xlu0 %12363  ;;  %v22667_v38 = vcombine.low %v22665_v9, %v22666_v62 }
 0x9ba   : > { %v12404_v54 = vpop.permute.xlu1 %12403  ;;  %v12366_v44 = vunpack.i.h.bf16 %v12364_v28  ;;  %v12365_v50 = vunpack.i.l.bf16 %v12364_v28 }
 0x9bb   : > { %v8692_v18 = vsel %vm833_vm5, %v22667_v38, %v12316_v59  ;;  %v12406_v19 = vunpack.i.h.bf16 %v12404_v54  ;;  %v12405_v12 = vunpack.i.l.bf16 %v12404_v54  ;;  %v8697_v59 = vsel %vm839_vm8, %v8695_v56, %v12370_v48  ;;  %v22673_v56 = vld [vmem:[#allocation79_spill] sm:$0xff] }
 0x9bc   : > { %v8694_v61 = vsel %vm835_vm6, %v8692_v18, %v12336_v43  ;;  %v8681_v20 = vsel %vm837_vm7, %v8679_v3, %v12365_v50  ;;  %v8682_v45 = vsel %vm837_vm7, %v8680_v22, %v12366_v44  ;;  %v8699_v63 = vsel %vm841_vm9, %v8697_v59, %v12380_v39 }
 0x9bd   : > { %v12374_v0 = vpop.permute.xlu0 %12373  ;;  %v8696_v11 = vsel %vm837_vm7, %v8694_v61, %v12356_v51  ;;  %v22674_v27 = vcombine.low %v22529_v46, %v22673_v56 }
 0x9be   : > { %v12376_v47 = vunpack.i.h.bf16 %v12374_v0  ;;  %v12375_v57 = vunpack.i.l.bf16 %v12374_v0  ;;  %v12414_v16 = vpop.permute.xlu1 %12413  ;;  %v8698_v36 = vsel %vm839_vm8, %v8696_v11, %v12371_v4  ;;  %v22675_v11 = vld [vmem:[#allocation123_spill] sm:$0xff] }
 0x9bf   : > { %v8700_v54 = vsel %vm841_vm9, %v8698_v36, %v12381_v49  ;;  %v12416_v48 = vunpack.i.h.bf16 %v12414_v16  ;;  %v12415_v25 = vunpack.i.l.bf16 %v12414_v16 }
 0x9c0   : > { %v8683_v31 = vsel %vm839_vm8, %v8681_v20, %v12375_v57  ;;  %v8684_v26 = vsel %vm839_vm8, %v8682_v45, %v12376_v47  ;;  %v22676_v20 = vld [vmem:[#allocation250_spill] sm:$0xff] }
 0x9c1   : > { %v8685_v21 = vsel %vm841_vm9, %v8683_v31, %v12385_v60  ;;  %v8686_v55 = vsel %vm841_vm9, %v8684_v26, %v12386_v40  ;;  %v12389_v24 = vpop.permute.xlu0 %12388  ;;  %v10206_v6 = vsel %vm833_vm5, %v22674_v27, %v12416_v48  ;;  %v22677_v1 = vcombine.low %v22675_v11, %v22676_v20 }
 0x9c2   : > { %v12424_v43 = vpop.permute.xlu1 %12423  ;;  %v8687_v33 = vsel %vm843_vm10, %v8685_v21, %v12395_v2  ;;  %v8688_v15 = vsel %vm843_vm10, %v8686_v55, %v12396_v7  ;;  %v12391_v28 = vunpack.i.h.bf16 %v12389_v24  ;;  %v12390_v8 = vunpack.i.l.bf16 %v12389_v24 }
 0x9c3   : > { %v8689_v23 = vsel %vm845_vm11, %v8687_v33, %v12405_v12  ;;  %v8690_v5 = vsel %vm845_vm11, %v8688_v15, %v12406_v19  ;;  %v12426_v0 = vunpack.i.h.bf16 %v12424_v43  ;;  %v12425_v40 = vunpack.i.l.bf16 %v12424_v43 }
 0x9c4   : > { %v11591_v41 = vpack.c.bf16 %v8690_v5, %v8689_v23  ;;  %v8701_v50 = vsel %vm843_vm10, %v8699_v63, %v12390_v8  ;;  %v8702_v3 = vsel %vm843_vm10, %v8700_v54, %v12391_v28  ;;  %v10205_v13 = vsel %vm833_vm5, %v22677_v1, %v12415_v25 }
 0x9c5   : > { %v12399_v17 = vpop.permute.xlu0 %12398  ;;  %v10207_v7 = vsel %vm835_vm6, %v10205_v13, %v12425_v40  ;;  %v10208_v16 = vsel %vm835_vm6, %v10206_v6, %v12426_v0 }
 0x9c6   : > { %v12401_v51 = vunpack.i.h.bf16 %v12399_v17  ;;  %v12400_v53 = vunpack.i.l.bf16 %v12399_v17  ;;  %v20099_v44 = vpop.permute.xlu1 %12438 }
 0x9c8   : > { %v8703_v22 = vsel %vm845_vm11, %v8701_v50, %v12400_v53  ;;  %v8704_v9 = vsel %vm845_vm11, %v8702_v3, %v12401_v51  ;;  %v22678_v53 = vld [vmem:[#allocation198_spill] sm:$0xff]  ;;  %v22679_v50 = vld [vmem:[#allocation192_spill] sm:$0xff] }
 0x9c9   : > { %v12409_v62 = vpop.permute.xlu0 %12408  ;;  %v11589_v29 = vpack.c.bf16 %v8704_v9, %v8703_v22  ;;  %v22680_v3 = vcombine.low %v22678_v53, %v22679_v50  ;;  %v22681_v9 = vld [vmem:[#allocation125_spill] sm:$0xff] }
 0x9ca   : > { %v20105_v38 = vpop.permute.xlu1 %12448  ;;  %v12411_v43 = vunpack.i.h.bf16 %v12409_v62  ;;  %v12410_v33 = vunpack.i.l.bf16 %v12409_v62  ;;  %v22682_v62 = vld [vmem:[#allocation98_spill] sm:$0xff] }
 0x9cb   : > { %11590 = vmatprep.subr.bf16.mxu0 %v11589_v29  ;;  %v22683_v29 = vcombine.low %v22681_v9, %v22682_v62  ;;  %v12451_v11 = vunpack.i.h.bf16 %v20105_v38  ;;  %v12450_v20 = vunpack.i.l.bf16 %v20105_v38 }
 0x9cc   : > { %11592 = vmatpush1.bf16.msra.mxu0 %v11591_v41  ;;  %v10220_v22 = vsel %vm833_vm5, %v22680_v3, %v12411_v43 }
 0x9cd   : > { %v12419_v18 = vpop.permute.xlu0 %12418  ;;  %11594 = vmatprep.subr.bf16.mxu0 %v22671_v10  ;;  %v10219_v10 = vsel %vm833_vm5, %v22683_v29, %v12410_v33  ;;  %v22684_v33 = vcombine.low %v22591_v52, %v22592_v58 }
 0x9ce   : > { %v12459_v32 = vpop.permute.xlu1 %12458  ;;  %v12421_v23 = vunpack.i.h.bf16 %v12419_v18  ;;  %v12420_v5 = vunpack.i.l.bf16 %v12419_v18 }
 0x9cf   : > { %v12461_v19 = vunpack.i.h.bf16 %v12459_v32  ;;  %v12460_v12 = vunpack.i.l.bf16 %v12459_v32 }
 0x9d0   : > { %11596 = vmatpush1.bf16.msra.mxu0 %v22672_v30  ;;  %v10221_v48 = vsel %vm835_vm6, %v10219_v10, %v12420_v5 }
 0x9d1   : > { %v12429_v14 = vpop.permute.xlu0 %12428 }
 0x9d2   : > { %v20113_v4 = vpop.permute.xlu1 %12468  ;;  %v12431_v17 = vunpack.i.h.bf16 %v12429_v14  ;;  %v12430_v63 = vunpack.i.l.bf16 %v12429_v14  ;;  %v10222_v14 = vsel %vm835_vm6, %v10220_v22, %v12421_v23 }
 0x9d4   : > { %v10223_v0 = vsel %vm837_vm7, %v10221_v48, %v12430_v63  ;;  %v10224_v40 = vsel %vm837_vm7, %v10222_v14, %v12431_v17 }
 0x9d5   : > { %v12434_v61 = vpop.permute.xlu0 %12433 }
 0x9d6   : > { %v12479_v60 = vpop.permute.xlu1 %12478  ;;  %v12436_v47 = vunpack.i.h.bf16 %v12434_v61  ;;  %v12435_v57 = vunpack.i.l.bf16 %v12434_v61 }
 0x9d7   : > { %v12481_v55 = vunpack.i.h.bf16 %v12479_v60  ;;  %v12480_v24 = vunpack.i.l.bf16 %v12479_v60  ;;  %v12441_v60 = vunpack.i.h.bf16 %v20099_v44 }
 0x9d8   : > { %v10209_v46 = vsel %vm837_vm7, %v10207_v7, %v12435_v57  ;;  %v10210_v21 = vsel %vm837_vm7, %v10208_v16, %v12436_v47  ;;  %v12440_v47 = vunpack.i.l.bf16 %v20099_v44 }
 0x9d9   : > { %v12444_v45 = vpop.permute.xlu0 %12443  ;;  %v10226_v27 = vsel %vm839_vm8, %v10224_v40, %v12441_v60 }
 0x9da   : > { %v12446_v2 = vunpack.i.h.bf16 %v12444_v45  ;;  %v12445_v31 = vunpack.i.l.bf16 %v12444_v45  ;;  %v10225_v56 = vsel %vm839_vm8, %v10223_v0, %v12440_v47  ;;  %v10228_v7 = vsel %vm841_vm9, %v10226_v27, %v12451_v11 }
 0x9db   : > { %v10227_v45 = vsel %vm841_vm9, %v10225_v56, %v12450_v20  ;;  %v12470_v0 = vunpack.i.l.bf16 %v20113_v4  ;;  %v22686_v11 = vcombine.low %v22567_v34, %v22568_v35 }
 0x9dc   : > { %v20125_v26 = vpop.permute.xlu1 %12488  ;;  %v10211_v59 = vsel %vm839_vm8, %v10209_v46, %v12445_v31  ;;  %v10212_v36 = vsel %vm839_vm8, %v10210_v21, %v12446_v2 }
 0x9dd   : > { %v10213_v15 = vsel %vm841_vm9, %v10211_v59, %v12460_v12  ;;  %v10214_v28 = vsel %vm841_vm9, %v10212_v36, %v12461_v19  ;;  %v12491_v40 = vunpack.i.h.bf16 %v20125_v26  ;;  %v12490_v60 = vunpack.i.l.bf16 %v20125_v26 }
 0x9de   : > { %v10215_v39 = vsel %vm843_vm10, %v10213_v15, %v12480_v24  ;;  %v10216_v41 = vsel %vm843_vm10, %v10214_v28, %v12481_v55  ;;  %v22685_v28 = vcombine.low %v22586_v37, %v22585_v42 }
 0x9df   : > { %v12454_v8 = vpop.permute.xlu0 %12453 }
 0x9e0   : > { %v12499_v49 = vpop.permute.xlu1 %12498  ;;  %v12456_v2 = vunpack.i.h.bf16 %v12454_v8  ;;  %v12455_v31 = vunpack.i.l.bf16 %v12454_v8 }
 0x9e1   : > { %v12501_v54 = vunpack.i.h.bf16 %v12499_v49  ;;  %v12500_v51 = vunpack.i.l.bf16 %v12499_v49 }
 0x9e2   : > { %v11000_v15 = vsel %vm833_vm5, %v22684_v33, %v12456_v2  ;;  %v10999_v8 = vsel %vm833_vm5, %v22685_v28, %v12455_v31  ;;  %v11013_v28 = vld [vmem:[%s20272_s4] sm:$0xff] }
 0x9e3   : > { %v12464_v18 = vpop.permute.xlu0 %12463  ;;  %v10217_v32 = vsel %vm845_vm11, %v10215_v39, %v12500_v51  ;;  %v10218_v30 = vsel %vm845_vm11, %v10216_v41, %v12501_v54 }
 0x9e4   : > { %v11599_v61 = vpack.c.bf16 %v10218_v30, %v10217_v32  ;;  %v12466_v1 = vunpack.i.h.bf16 %v12464_v18  ;;  %v12465_v13 = vunpack.i.l.bf16 %v12464_v18 }
 0x9e6   : > { %v10229_v46 = vsel %vm843_vm10, %v10227_v45, %v12465_v13  ;;  %v10230_v21 = vsel %vm843_vm10, %v10228_v7, %v12466_v1  ;;  %v22687_v1 = vld [vmem:[#allocation230_spill] sm:$0xff] }
 0x9e7   : > { %v12509_v25 = vpop.permute.xlu1 %12508  ;;  %v22688_v13 = vld [vmem:[#allocation258_spill] sm:$0xff] }
 0x9e8   : > { %v12474_v57 = vpop.permute.xlu0 %12473  ;;  %v12511_v49 = vunpack.i.h.bf16 %v12509_v25  ;;  %v12510_v39 = vunpack.i.l.bf16 %v12509_v25  ;;  %v22689_v45 = vcombine.low %v22687_v1, %v22688_v13 }
 0x9e9   : > { %v12476_v55 = vunpack.i.h.bf16 %v12474_v57  ;;  %v12475_v24 = vunpack.i.l.bf16 %v12474_v57 }
 0x9ea   : > { %v10985_v7 = vsel %vm833_vm5, %v22689_v45, %v12470_v0 }
 0x9eb   : > { %v12519_v6 = vpop.permute.xlu1 %12518  ;;  %v11001_v41 = vsel %vm835_vm6, %v10999_v8, %v12475_v24  ;;  %v11002_v17 = vsel %vm835_vm6, %v11000_v15, %v12476_v55  ;;  %v10987_v2 = vsel %vm835_vm6, %v10985_v7, %v12490_v60  ;;  %v11016_v8 = vld [vmem:[%s20272_s4 + $0x18] sm:$0xff]  ;;  %v11103_v7 = vld [vmem:[%s20274_s6 + $0x8] sm:$0xff] }
 0x9ec   : > { %v12484_v16 = vpop.permute.xlu0 %12483  ;;  %v12521_v54 = vunpack.i.h.bf16 %v12519_v6  ;;  %v12520_v51 = vunpack.i.l.bf16 %v12519_v6 }
 0x9ed   : > { %v12486_v44 = vunpack.i.h.bf16 %v12484_v16  ;;  %v12485_v19 = vunpack.i.l.bf16 %v12484_v16 }
 0x9ef   : > { %v12529_v12 = vpop.permute.xlu1 %12528  ;;  %v10231_v38 = vsel %vm845_vm11, %v10229_v46, %v12485_v19  ;;  %v10232_v59 = vsel %vm845_vm11, %v10230_v21, %v12486_v44 }
 0x9f0   : > { %v11597_v43 = vpack.c.bf16 %v10232_v59, %v10231_v38  ;;  %v12531_v42 = vunpack.i.h.bf16 %v12529_v12  ;;  %v12530_v37 = vunpack.i.l.bf16 %v12529_v12 }
 0x9f1   : > { %v12494_v36 = vpop.permute.xlu0 %12493 }
 0x9f2   : > { %v12496_v23 = vunpack.i.h.bf16 %v12494_v36  ;;  %v12495_v5 = vunpack.i.l.bf16 %v12494_v36  ;;  %11598 = vmatprep.subr.bf16.mxu0 %v11597_v43 }
 0x9f3   : > { %v12539_v63 = vpop.permute.xlu1 %12538  ;;  %11600 = vmatpush1.bf16.msra.mxu0 %v11599_v61  ;;  %v12471_v61 = vunpack.i.h.bf16 %v20113_v4 }
 0x9f4   : > { %v11003_v52 = vsel %vm837_vm7, %v11001_v41, %v12495_v5  ;;  %v11004_v58 = vsel %vm837_vm7, %v11002_v17, %v12496_v23  ;;  %v12541_v22 = vunpack.i.h.bf16 %v12539_v63  ;;  %v12540_v9 = vunpack.i.l.bf16 %v12539_v63  ;;  %v11015_v23 = vld [vmem:[%s20272_s4 + $0x10] sm:$0xff] }
 0x9f5   : > { %v11005_v53 = vsel %vm839_vm8, %v11003_v52, %v12510_v39  ;;  %v11006_v50 = vsel %vm839_vm8, %v11004_v58, %v12511_v49  ;;  %v12504_v3 = vpop.permute.xlu0 %12503  ;;  %v10986_v20 = vsel %vm833_vm5, %v22686_v11, %v12471_v61 }
 0x9f6   : > { %v11007_v62 = vsel %vm841_vm9, %v11005_v53, %v12520_v51  ;;  %v11008_v29 = vsel %vm841_vm9, %v11006_v50, %v12521_v54  ;;  %v12506_v47 = vunpack.i.h.bf16 %v12504_v3  ;;  %v12505_v57 = vunpack.i.l.bf16 %v12504_v3  ;;  %v11100_v53 = vld [vmem:[%s20273_s5] sm:$0xff]  ;;  %v11101_v3 = vld [vmem:[%s20273_s5 + $0x8] sm:$0xff] }
 0x9f7   : > { %v11009_v10 = vsel %vm843_vm10, %v11007_v62, %v12530_v37  ;;  %v11010_v18 = vsel %vm843_vm10, %v11008_v29, %v12531_v42  ;;  %v10988_v26 = vsel %vm835_vm6, %v10986_v20, %v12491_v40  ;;  %v11104_v50 = vld [vmem:[%s20275_s7] sm:$0xff] }
 0x9f8   : > { %v11011_v32 = vsel %vm845_vm11, %v11009_v10, %v12540_v9  ;;  %v11012_v30 = vsel %vm845_vm11, %v11010_v18, %v12541_v22  ;;  %v10989_v19 = vsel %vm837_vm7, %v10987_v2, %v12505_v57  ;;  %v10990_v12 = vsel %vm837_vm7, %v10988_v26, %v12506_v47  ;;  %11535 = vmatprep.mubr.msk.f32.mxu1 %vm833_vm5, %v11104_v50 }
 0x9f9   : > { %v12514_v48 = vpop.permute.xlu0 %12513  ;;  %v11601_v14 = vpack.c.bf16 %v11012_v30, %v11011_v32 }
 0x9fa   : > { %v12516_v56 = vunpack.i.h.bf16 %v12514_v48  ;;  %v12515_v27 = vunpack.i.l.bf16 %v12514_v48 }
 0x9fb   : > { %11602 = vmatprep.subr.bf16.mxu0 %v11601_v14  ;;  %v11105_v14 = vld [vmem:[%s20275_s7 + $0x8] sm:$0xff] }
 0x9fc   : > { %v10991_v34 = vsel %vm839_vm8, %v10989_v19, %v12515_v27  ;;  %v10992_v35 = vsel %vm839_vm8, %v10990_v12, %v12516_v56 }
 0x9fd   : > { %v12524_v25 = vpop.permute.xlu0 %12523 }
 0x9fe   : > { %v12526_v4 = vunpack.i.h.bf16 %v12524_v25  ;;  %v12525_v16 = vunpack.i.l.bf16 %v12524_v25 }
 0xa00   : > { %v10993_v21 = vsel %vm841_vm9, %v10991_v34, %v12525_v16  ;;  %v10994_v55 = vsel %vm841_vm9, %v10992_v35, %v12526_v4  ;;  %v11102_v4 = vld [vmem:[%s20274_s6] sm:$0xff] }
 0xa01   : > { %v12534_v6 = vpop.permute.xlu0 %12533 }
 0xa02   : > { %v12536_v31 = vunpack.i.h.bf16 %v12534_v6  ;;  %v12535_v44 = vunpack.i.l.bf16 %v12534_v6 }
 0xa04   : > { %v10995_v59 = vsel %vm843_vm10, %v10993_v21, %v12535_v44  ;;  %v10996_v36 = vsel %vm843_vm10, %v10994_v55, %v12536_v31 }
 0xa05   : > { %v12544_v46 = vpop.permute.xlu0 %12543 }
 0xa06   : > { %v12546_v24 = vunpack.i.h.bf16 %v12544_v46  ;;  %v12545_v38 = vunpack.i.l.bf16 %v12544_v46 }
 0xa08   : > { %v10997_v43 = vsel %vm845_vm11, %v10995_v59, %v12545_v38  ;;  %v10998_v33 = vsel %vm845_vm11, %v10996_v36, %v12546_v24 }
 0xa09   : > { %v11603_v15 = vpack.c.bf16 %v10998_v33, %v10997_v43 }
 0xa0b   : > { %11604 = vmatpush1.bf16.msra.mxu0 %v11603_v15 }
 0xa0e   : > { %11088 = vmatmul.mubr.f32.vlgmr.msra.gmra.mrb[0].mxu0 %v11013_v28 }
 0xa0f   : > { %11466 = vmatprep.mubr.msk.f32.mxu0 %vm833_vm5, %v11016_v8 }
 0xa12   : > { %11094 = vmatmul.mubr.f32.gmra.mrb[2].mxu0 %v11015_v23 }
 0xae1   : > { %v20215_v5 = vpop.f32.mrb[0].mxu0 }
 0xae2   : > { %v11114_v49 = vmul.f32 %v20215_v5, %v20215_v5  ;;  %v20219_v39 = vpop.f32.mrb[1].mxu0 }
 0xae3   : > { %v11106_v41 = vadd.f32 %v20219_v39, %v20215_v5  ;;  %v11115_v17 = vmul.f32 %v20219_v39, %v20219_v39 }
 0xae5   : > { %11107 = vadd.xlane.f32.xlu1 %v11106_v41  ;;  %v20225_v63 = vpop.f32.mrb[2].mxu0  ;;  %v11118_v54 = vadd.f32 %v11115_v17, %v11114_v49 }
 0xae6   : > { %v11116_v51 = vmul.f32 %v20225_v63, %v20225_v63  ;;  %v20229_v52 = vpop.f32.mrb[3].mxu0 }
 0xae7   : > { %v11109_v58 = vadd.f32 %v20229_v52, %v20225_v63  ;;  %v11117_v42 = vmul.f32 %v20229_v52, %v20229_v52 }
 0xae9   : > { %v11121_v37 = vadd.f32 %v11117_v42, %v11116_v51  ;;  %11110 = vadd.xlane.f32.xlu0 %v11109_v58 }
 0xaeb   : > { %11122 = vadd.xlane.f32.xlu1 %v11121_v37 }
 0xaed   : > { %11119 = vadd.xlane.f32.xlu0 %v11118_v54 }
 0xafc   : > { %11322 = vperm.xlu1 %11915, %v11100_v53  }
 0xb03   : > { %11327 = vperm.xlu0 %11916, %v11101_v3  }
 0xb72   : > { %v11108_v22 = vpop.xlane.xlu1 %11107 }
 0xb73   : > { %v11112_v62 = vmul.f32 0.00390625, %v11108_v22 }
 0xb76   : > { %v11111_v9 = vpop.xlane.xlu0 %11110 }
 0xb77   : > { %v11113_v29 = vmul.f32 0.00390625, %v11111_v9 }
 0xb78   : > { %v11123_v10 = vpop.xlane.xlu1 %11122 }
 0xb79   : > { %v11605_v18 = vpack.c.bf16 %v11113_v29, %v11112_v62  ;;  %v11125_v30 = vmul.f32 0.00390625, %v11123_v10 }
 0xb7a   : > { %v11120_v32 = vpop.xlane.xlu0 %11119 }
 0xb7b   : > { %v11124_v48 = vmul.f32 0.00390625, %v11120_v32  ;;  %11606 = vmatprep.subr.bf16.mxu1 %v11605_v18 }
 0xb7c   : > { %11608 = vmatpush3.bf16.msra.mxu1 %v11605_v18  ;;  %v11323_v16 = vpop.permute.xlu1 %11322 }
 0xb7d   : > { %v11609_v25 = vpack.c.bf16 %v11125_v30, %v11124_v48 }
 0xb7f   : > { %11536 = vmatmul.mubr.msk.f32.vlgmr.msra.gmra.mrb[12].mxu1 %vm833_vm5, %v11105_v14  ;;  %11610 = vmatprep.subr.bf16.mxu1 %v11609_v25 }
 0xb80   : > { %11612 = vmatpush3.bf16.msra.mxu1 %v11609_v25  ;;  %11542 = vmatprep.mubr.msk.f32.mxu1 %vm833_vm5, %v11104_v50 }
 0xb82   : > { %v11328_v2 = vpop.permute.xlu0 %11327 }
 0xb83   : > { %11543 = vmatmul.mubr.msk.f32.vlgmr.msra.gmra.mrb[14].mxu1 %vm833_vm5, %v11105_v14 }
 0xc52   : > { %v11537_v61 = vpop.f32.mrb[12].mxu1 }
 0xc53   : > { %11295 = vperm.xlu1 %11915, %v11537_v61   ;;  %v11198_v0 = vpop.f32.mrb[13].mxu1  ;;  %v11283_v40 = vmul.f32 %v11537_v61, %v11537_v61 }
 0xc54   : > { %11290 = vperm.xlu0 %11916, %v11198_v0   ;;  %v11282_v60 = vmul.f32 %v11198_v0, %v11198_v0 }
 0xc56   : > { %v11544_v47 = vpop.f32.mrb[14].mxu1 }
 0xc57   : > { %v11285_v57 = vsub.f32 %v11544_v47, %v11283_v40  ;;  %v11273_v56 = vpop.f32.mrb[15].mxu1 }
 0xc58   : > { %v11284_v27 = vsub.f32 %v11273_v56, %v11282_v60 }
 0xc59   : > { %v11287_v6 = vmax.f32 %v11285_v57, 0.0 }
 0xc5a   : > { %v11286_v11 = vmax.f32 %v11284_v27, 0.0 }
 0xc5b   : > { %v11303_v20 = vadd.f32 1e-05, %v11287_v6 }
 0xc5c   : > { %v11302_v1 = vadd.f32 1e-05, %v11286_v11 }
 0xc5d   : > { %12665 = vrsqrt.f32 %v11303_v20 }
 0xc5e   : > { %12667 = vrsqrt.f32 %v11302_v1 }
 0xc67   : > { %v12666_v13 = vpop.eup %12665 }
 0xc68   : > { %v12668_v45 = vpop.eup %12667  ;;  %11313 = vperm.xlu0 %11916, %v12666_v13  }
 0xc69   : > { %11308 = vperm.xlu1 %11915, %v12668_v45  }
 0xc6c   : > { %11341 = vperm.xlu0 %11916, %v11103_v7  }
 0xc6d   : > { %11336 = vperm.xlu1 %11915, %v11102_v4  }
 0xcd2   : > { %v11296_v26 = vpop.permute.xlu1 %11295 }
 0xcd3   : > { %v11291_v31 = vpop.permute.xlu0 %11290  ;;  %v11300_v44 = vsub.f32 %v20225_v63, %v11296_v26  ;;  %v11301_v19 = vsub.f32 %v20229_v52, %v11296_v26 }
 0xcd4   : > { %v11298_v12 = vsub.f32 %v20215_v5, %v11291_v31  ;;  %v11299_v34 = vsub.f32 %v20219_v39, %v11291_v31 }
 0xce7   : > { %v11314_v35 = vpop.permute.xlu0 %11313 }
 0xce8   : > { %v11318_v46 = vmul.f32 %v11314_v35, %v11300_v44  ;;  %v11319_v21 = vmul.f32 %v11314_v35, %v11301_v19  ;;  %v11309_v55 = vpop.permute.xlu1 %11308 }
 0xce9   : > { %v11316_v24 = vmul.f32 %v11309_v55, %v11298_v12  ;;  %v11317_v38 = vmul.f32 %v11309_v55, %v11299_v34 }
 0xcea   : > { %v11332_v59 = vmul.f32 %v11328_v2, %v11318_v46  ;;  %v11333_v36 = vmul.f32 %v11328_v2, %v11319_v21 }
 0xceb   : > { %v11342_v43 = vpop.permute.xlu0 %11341  ;;  %v11330_v33 = vmul.f32 %v11323_v16, %v11316_v24  ;;  %v11331_v15 = vmul.f32 %v11323_v16, %v11317_v38 }
 0xcec   : > { %v11346_v28 = vadd.f32 %v11342_v43, %v11332_v59  ;;  %v11347_v8 = vadd.f32 %v11342_v43, %v11333_v36  ;;  %v11337_v23 = vpop.permute.xlu1 %11336 }
 0xced   : > { %v11344_v49 = vadd.f32 %v11337_v23, %v11330_v33  ;;  %v11345_v41 = vadd.f32 %v11337_v23, %v11331_v15 }
 0xcee   : > { %v11473_v17 = vmul.f32 -1.442695, %v11346_v28  ;;  %v11474_v5 = vmul.f32 -1.442695, %v11347_v8 }
 0xcef   : > { %v11471_v63 = vmul.f32 -1.442695, %v11344_v49  ;;  %v11472_v39 = vmul.f32 -1.442695, %v11345_v41 }
 0xcf0   : > { %12669 = vpow2.f32 %v11473_v17 }
 0xcf1   : > { %12671 = vpow2.f32 %v11474_v5 }
 0xcf2   : > { %12673 = vpow2.f32 %v11471_v63 }
 0xcf3   : > { %12675 = vpow2.f32 %v11472_v39 }
 0xcfa   : > { %v12670_v54 = vpop.eup %12669 }
 0xcfb   : > { %v12672_v51 = vpop.eup %12671  ;;  %v11362_v52 = vadd.f32 1.0, %v12670_v54 }
 0xcfc   : > { %v12674_v58 = vpop.eup %12673  ;;  %v11363_v42 = vadd.f32 1.0, %v12672_v51 }
 0xcfd   : > { %v12676_v37 = vpop.eup %12675  ;;  %12677 = vrcp.f32 %v11362_v52  ;;  %v11360_v53 = vadd.f32 1.0, %v12674_v58 }
 0xcfe   : > { %12679 = vrcp.f32 %v11363_v42  ;;  %v11361_v50 = vadd.f32 1.0, %v12676_v37 }
 0xcff   : > { %12681 = vrcp.f32 %v11360_v53 }
 0xd00   : > { %12683 = vrcp.f32 %v11361_v50 }
 0xd07   : > { %v12678_v3 = vpop.eup %12677 }
 0xd08   : > { %v12680_v22 = vpop.eup %12679  ;;  %v11374_v9 = vmul.f32 %v12678_v3, %v11346_v28 }
 0xd09   : > { %v12682_v62 = vpop.eup %12681  ;;  %v11375_v29 = vmul.f32 %v12680_v22, %v11347_v8 }
 0xd0a   : > { %v12684_v10 = vpop.eup %12683  ;;  %11378 = vst [vmem:[%s386_s30 + $0x10] sm:$0xff] %v11374_v9  ;;  %v11372_v18 = vmul.f32 %v12682_v62, %v11344_v49 }
 0xd0b   : > { %11379 = vst [vmem:[%s386_s30 + $0x18] sm:$0xff] %v11375_v29  ;;  %v11373_v32 = vmul.f32 %v12684_v10, %v11345_v41 }
 0xd0c   : > { %11376 = vst [vmem:[%s386_s30] sm:$0xff] %v11372_v18 }
 0xd0d   : > { %11377 = vst [vmem:[%s386_s30 + $0x8] sm:$0xff] %v11373_v32 }
 0xd0e PF: > { %s21_s17 = sadd.s32 1, %s12726_s17  }
 0xd0f   : > { %p18_p4 = scmp.ge.s32.totalorder %s21_s17, 4  }
 0xd11   :  { %20 = sbr.rel (!%p18_p4) target bundleno = 1 (0x1), region = 94 }

</bundles_post_ra>
